<compile_context>
chip_gen: v6e
topology: v6e:2x2x1
jax: 0.10.0
libtpu: 0.0.40
codegen_flags: <defaults>
</compile_context>

<pallas_src>
import functools

import jax
import jax.numpy as jnp
from jax import lax
from jax.experimental import pallas as pl
from jax.experimental.pallas import tpu as pltpu

LN_EPS = 1e-5  # torch.nn.LayerNorm default


# ---------------------------------------------------------------------------
# Small helpers (f32 elementwise math — VPU/EUP side)
# ---------------------------------------------------------------------------
def _layernorm(x, gamma, beta, eps):
    mu = jnp.mean(x, axis=-1, keepdims=True)
    var = jnp.mean((x - mu) ** 2, axis=-1, keepdims=True)
    return (x - mu) * lax.rsqrt(var + eps) * gamma + beta


def _gelu_exact(x):
    # torch.nn.GELU default = exact erf formulation
    return 0.5 * x * (1.0 + lax.erf(x * jnp.float32(0.7071067811865476)))


# ---------------------------------------------------------------------------
# Kernels
# ---------------------------------------------------------------------------
def patch_embed_kernel(x_ref, w_ref, b_ref, pos_ref, o_ref):
    # x_ref: (1, tl, patch_dim) bf16 ; w_ref: (patch_dim, D) bf16 ; pos bf16
    y = jnp.dot(x_ref[0], w_ref[...], preferred_element_type=jnp.float32)   # [tl, D]
    y = y + b_ref[0] + pos_ref[0].astype(jnp.float32)
    o_ref[...] = y[None].astype(o_ref.dtype)


def block_kernel(x_ref,
                 n1g_ref, n1b_ref,
                 wq_ref, bq_ref, wk_ref, bk_ref, wv_ref, bv_ref,
                 wprojh_ref, bproj_ref,
                 n2g_ref, n2b_ref,
                 w1_ref, b1_ref, w2_ref, b2_ref,
                 nfg_ref, nfb_ref,
                 o_ref,
                 q_sc, k_sc, vw_sc,
                 *, num_heads, eps, seq_tile, apply_final_norm):
    qi = pl.program_id(1)
    N = x_ref.shape[1]
    D = x_ref.shape[2]
    tq = seq_tile
    n_chunks = N // tq

    # ---- once per batch element: LN1 + head-major Q / K / (V @ Wproj_h) -> scratch
    # Chunked over the sequence so f32 temporaries stay O(tq * D), not O(N * D).
    @pl.when(qi == 0)
    def _fill_scratch():
        def chunk_body(ci, carry):
            c0 = pl.multiple_of(ci * tq, tq)
            xc = x_ref[0, pl.ds(c0, tq), :].astype(jnp.float32)              # [tq, D]
            h1 = _layernorm(xc, n1g_ref[0], n1b_ref[0], eps).astype(jnp.bfloat16)
            for h in range(num_heads):                                        # static unroll
                # clean 2-D matmuls, contraction over D (no lane slicing of heads)
                q_h = jnp.dot(h1, wq_ref[h], preferred_element_type=jnp.float32) + bq_ref[h]
                k_h = jnp.dot(h1, wk_ref[h], preferred_element_type=jnp.float32) + bk_ref[h]
                v_h = jnp.dot(h1, wv_ref[h], preferred_element_type=jnp.float32) + bv_ref[h]
                # fuse the output projection into the value path (once per batch):
                # VW_h = V_h @ Wproj_h  -> per-tile PV matmul contracts over N and
                # directly produces the merged-head [tq, D] contribution.
                vw_h = jnp.dot(v_h.astype(jnp.bfloat16), wprojh_ref[h],
                               preferred_element_type=jnp.float32)
                q_sc[h, pl.ds(c0, tq), :] = q_h.astype(q_sc.dtype)   # scale pre-folded
                k_sc[h, pl.ds(c0, tq), :] = k_h.astype(k_sc.dtype)
                vw_sc[h, pl.ds(c0, tq), :] = vw_h.astype(vw_sc.dtype)
            return carry
        lax.fori_loop(0, n_chunks, chunk_body, 0, unroll=(n_chunks <= 4))

    # ---- attention for this query tile ----
    row0 = pl.multiple_of(qi * tq, tq)
    x_tile = x_ref[0, pl.ds(row0, tq), :].astype(jnp.float32)                # [tq, D]

    q_blk = q_sc[:, pl.ds(row0, tq), :]                                      # [H, tq, hd] bf16
    s = jnp.einsum('hqd,hkd->hqk', q_blk, k_sc[...],
                   preferred_element_type=jnp.float32)                        # [H, tq, N]
    s = s - jnp.max(s, axis=-1, keepdims=True)
    p = jnp.exp(s)
    inv_l = pl.reciprocal(jnp.sum(p, axis=-1, keepdims=True), approx=True)    # [H, tq, 1]
    p = p.astype(jnp.bfloat16)

    # head merge: sum_h diag(1/l_h) * P_h @ (V_h @ Wproj_h); contraction over N
    # (full MXU K-dim), single [tq, D] accumulator — no [H, tq, D] temporaries.
    attn = None
    for h in range(num_heads):
        t = jnp.dot(p[h], vw_sc[h], preferred_element_type=jnp.float32) * inv_l[h]
        attn = t if attn is None else attn + t
    x1 = x_tile + attn + bproj_ref[0]

    # ---- MLP branch (pre-norm) ----
    h2 = _layernorm(x1, n2g_ref[0], n2b_ref[0], eps)
    m = jnp.dot(h2.astype(jnp.bfloat16), w1_ref[...],
                preferred_element_type=jnp.float32) + b1_ref[0]
    m = _gelu_exact(m)
    m = jnp.dot(m.astype(jnp.bfloat16), w2_ref[...],
                preferred_element_type=jnp.float32) + b2_ref[0]
    out = x1 + m

    if apply_final_norm:   # static flag: final encoder LayerNorm fused into last block
        out = _layernorm(out, nfg_ref[0], nfb_ref[0], eps)

    o_ref[...] = out[None].astype(o_ref.dtype)


# ---------------------------------------------------------------------------
# VMEM budgeting / tile selection
# ---------------------------------------------------------------------------
def _vmem_limit_bytes():
    """Explicit scoped-VMEM budget: ~75% of physical, capped, with safe fallback.

    Stays under v7x's 64 MiB/TC while raising the 16/32 MiB scoped defaults on
    v5e/v6e.
    """
    try:
        cap = int(pltpu.get_tpu_info().vmem_capacity_bytes)
    except Exception:
        cap = 64 << 20
    return max(32 << 20, min((cap * 3) // 4, 112 << 20))


def _pick_divisor_tile(n, cap):
    if n <= cap:
        return n
    t = cap - (cap % 8)
    while t >= 8:
        if n % t == 0:
            return t
        t -= 8
    return n


def _pick_seq_tile(N, D, num_heads, hidden, vmem_budget, cap=256):
    """Largest query tile dividing N whose estimated VMEM footprint fits."""
    hd = D // num_heads
    lane = 128
    # resident: bf16 q/k/vw scratch (lane-padded), double-buffered full-seq x
    # block, single-buffered bf16 weights.
    resident = (num_heads * N * (2 * max(hd, lane) + max(D, lane)) * 2
                + 2 * N * D * 2
                + (4 * num_heads * D * hd + 2 * D * hidden) * 2)
    cands = [t for t in range(8, min(N, cap) + 1, 8) if N % t == 0] or [N]
    for t in sorted(cands, reverse=True):
        # f32 temporaries scaling with tq: logits+probs, residual/MLP tiles, out.
        temps = (2 * num_heads * t * max(N, lane)
                 + 8 * t * D + 2 * t * max(hidden, lane)) * 4
        if resident + temps <= vmem_budget:
            return t
    return cands[0]


# ---------------------------------------------------------------------------
# Wrappers (pallas_call plumbing)
# ---------------------------------------------------------------------------
def patch_embed(patches, w, b, pos, *, tile):
    B, L, Pd = patches.shape
    D = w.shape[1]
    tl = tile
    return pl.pallas_call(
        patch_embed_kernel,
        out_shape=jax.ShapeDtypeStruct((B, L, D), jnp.bfloat16),
        grid=(B, L // tl),
        in_specs=[
            pl.BlockSpec((1, tl, Pd), lambda bi, li: (bi, li, 0)),
            # constant blocks -> single-buffered
            pl.BlockSpec((Pd, D), lambda bi, li: (0, 0), pipeline_mode=pl.Buffered(1)),
            pl.BlockSpec((1, D), lambda bi, li: (0, 0), pipeline_mode=pl.Buffered(1)),
            pl.BlockSpec((1, tl, D), lambda bi, li: (0, li, 0)),
        ],
        out_specs=pl.BlockSpec((1, tl, D), lambda bi, li: (bi, li, 0)),
        compiler_params=pltpu.CompilerParams(
            dimension_semantics=("parallel", "parallel"),
            vmem_limit_bytes=_vmem_limit_bytes()),
    )(patches, w, b, pos)


def transformer_block(x, p, nfg, nfb, *, num_heads, seq_tile, apply_final_norm):
    B, N, D = x.shape
    Hm = p["w1"].shape[1]
    hd = D // num_heads
    assert D % num_heads == 0
    assert N % seq_tile == 0
    NQ = N // seq_tile

    kern = functools.partial(block_kernel, num_heads=num_heads, eps=LN_EPS,
                             seq_tile=seq_tile, apply_final_norm=apply_final_norm)
    out_dtype = jnp.float32 if apply_final_norm else jnp.bfloat16

    def const(shape):
        # weight/bias blocks never change block index -> single-buffer them
        return pl.BlockSpec(shape, lambda bi, qi: (0,) * len(shape),
                            pipeline_mode=pl.Buffered(1))

    # NOTE (v7x): only the batch axis is "parallel"; the query-tile axis is
    # "arbitrary" because scratch (Q/K/VW) is reused across it.  Ensure B >= 2
    # per chip on v7x or hoist the QKV precompute into its own call.
    return pl.pallas_call(
        kern,
        out_shape=jax.ShapeDtypeStruct((B, N, D), out_dtype),
        grid=(B, NQ),
        in_specs=[
            pl.BlockSpec((1, N, D), lambda bi, qi: (bi, 0, 0)),     # full seq (K/V + residual)
            const((1, D)), const((1, D)),                           # norm1
            const((num_heads, D, hd)), const((num_heads, 1, hd)),   # wq (scale folded), bq
            const((num_heads, D, hd)), const((num_heads, 1, hd)),   # wk, bk
            const((num_heads, D, hd)), const((num_heads, 1, hd)),   # wv, bv
            const((num_heads, hd, D)), const((1, D)),               # wproj (head-major), bproj
            const((1, D)), const((1, D)),                           # norm2
            const((D, Hm)), const((1, Hm)),                         # mlp fc1
            const((Hm, D)), const((1, D)),                          # mlp fc2
            const((1, D)), const((1, D)),                           # final norm (maybe unused)
        ],
        out_specs=pl.BlockSpec((1, seq_tile, D), lambda bi, qi: (bi, qi, 0)),
        scratch_shapes=[
            pltpu.VMEM((num_heads, N, hd), jnp.bfloat16),   # Q  (softmax scale pre-folded)
            pltpu.VMEM((num_heads, N, hd), jnp.bfloat16),   # K
            pltpu.VMEM((num_heads, N, D), jnp.bfloat16),    # V @ Wproj_h (proj fused)
        ],
        compiler_params=pltpu.CompilerParams(
            dimension_semantics=("parallel", "arbitrary"),
            vmem_limit_bytes=_vmem_limit_bytes()),
    )(x, p["n1g"], p["n1b"],
      p["wq"], p["bq"], p["wk"], p["bk"], p["wv"], p["bv"],
      p["wprojh"], p["bproj"],
      p["n2g"], p["n2b"], p["w1"], p["b1"], p["w2"], p["b2"],
      nfg, nfb)


# ---------------------------------------------------------------------------
# Model glue
# ---------------------------------------------------------------------------
def patchify_3d(img, p):
    """einops: 'b c (x p1) (y p2) (z p3) -> b (x y z) (p1 p2 p3 c)'"""
    B, C, X, Y, Z = img.shape
    x, y, z = X // p, Y // p, Z // p
    v = img.reshape(B, C, x, p, y, p, z, p)
    v = v.transpose(0, 2, 4, 6, 3, 5, 7, 1)          # b,x,y,z,p1,p2,p3,c
    return v.reshape(B, x * y * z, p * p * p * C)


def init_params(key, *, in_chans, img_size, patch_size, embed_dim, depth,
                num_heads, mlp_ratio):
    D = embed_dim
    hd = D // num_heads
    scale = hd ** -0.5
    grid = img_size // patch_size
    num_patches = grid * grid * grid
    patch_dim = in_chans * patch_size ** 3
    hidden = int(D * mlp_ratio)

    keys = iter(jax.random.split(key, 2 + depth * 6))
    nrm = lambda k, shape, s=0.02: s * jax.random.normal(k, shape, jnp.float32)

    params = {
        "pos_embed": jax.random.normal(next(keys), (1, num_patches, D), jnp.float32),
        "w_pe": nrm(next(keys), (patch_dim, D)).astype(jnp.bfloat16),
        "b_pe": jnp.zeros((1, D), jnp.float32),
        "norm_g": jnp.ones((1, D), jnp.float32),
        "norm_b": jnp.zeros((1, D), jnp.float32),
        "blocks": [],
    }
    for _ in range(depth):
        kq, kk, kv, kp, k1, k2 = (next(keys) for _ in range(6))
        params["blocks"].append({
            "n1g": jnp.ones((1, D), jnp.float32),
            "n1b": jnp.zeros((1, D), jnp.float32),
            # head-major QKV weights [H, D, hd]; softmax scale folded into Wq/bq
            "wq": (nrm(kq, (num_heads, D, hd)) * scale).astype(jnp.bfloat16),
            "bq": jnp.zeros((num_heads, 1, hd), jnp.float32),
            "wk": nrm(kk, (num_heads, D, hd)).astype(jnp.bfloat16),
            "bk": jnp.zeros((num_heads, 1, hd), jnp.float32),
            "wv": nrm(kv, (num_heads, D, hd)).astype(jnp.bfloat16),
            "bv": jnp.zeros((num_heads, 1, hd), jnp.float32),
            # proj weight [D(in), D(out)] pre-reshaped head-major: [H, hd, D]
            "wprojh": nrm(kp, (D, D)).astype(jnp.bfloat16).reshape(num_heads, hd, D),
            "bproj": jnp.zeros((1, D), jnp.float32),
            "n2g": jnp.ones((1, D), jnp.float32),
            "n2b": jnp.zeros((1, D), jnp.float32),
            "w1": nrm(k1, (D, hidden)).astype(jnp.bfloat16),
            "b1": jnp.zeros((1, hidden), jnp.float32),
            "w2": nrm(k2, (hidden, D)).astype(jnp.bfloat16),
            "b2": jnp.zeros((1, D), jnp.float32),
        })
    return params


def vit_forward(img, params, *, patch_size, num_heads, seq_tile=None):
    # patch embedding is HBM-bound: feed it bf16 patches / pos-embed and give it
    # its own (larger) token tile, independent of the attention query tile.
    patches = patchify_3d(img, patch_size).astype(jnp.bfloat16)   # [B, L, p^3*C]
    B, L, _ = patches.shape
    D = params["w_pe"].shape[1]

    pe_tile = _pick_divisor_tile(L, 512)
    x = patch_embed(patches, params["w_pe"], params["b_pe"],
                    params["pos_embed"].astype(jnp.bfloat16), tile=pe_tile)

    if seq_tile is None:
        hidden = params["blocks"][0]["w1"].shape[1]
        seq_tile = _pick_seq_tile(L, D, num_heads, hidden, _vmem_limit_bytes())
    assert L % seq_tile == 0 and params["blocks"], "need divisible seq tile, depth>=1"

    n_blocks = len(params["blocks"])
    for i, blk in enumerate(params["blocks"]):
        x = transformer_block(x, blk, params["norm_g"], params["norm_b"],
                              num_heads=num_heads, seq_tile=seq_tile,
                              apply_final_norm=(i == n_blocks - 1))
    return x


# TODO(synk): `random_masking` (torch.argsort / gather of random noise) is not
# part of the forward() path implemented here and is left out.

# ---------------------------------------------------------------------------
if __name__ == "__main__":
    # Small, forward-consistent, lane-aligned shapes:
    #   volume [2, 2, 16, 16, 16], 4^3 patches -> N = 64 tokens, patch_dim = 128
    B, C, IMG, P = 2, 2, 16, 4
    EMBED, DEPTH, HEADS, MLP_RATIO = 128, 2, 4, 2.0
    SEQ_TILE = 32          # 2 query tiles per batch element -> exercises K/V reuse

    key = jax.random.PRNGKey(0)
    k_param, k_img = jax.random.split(key)
    params = init_params(k_param, in_chans=C, img_size=IMG, patch_size=P,
                         embed_dim=EMBED, depth=DEPTH, num_heads=HEADS,
                         mlp_ratio=MLP_RATIO)
    img = jax.random.normal(k_img, (B, C, IMG, IMG, IMG), jnp.float32)

    fwd = jax.jit(functools.partial(vit_forward, patch_size=P, num_heads=HEADS,
                                    seq_tile=SEQ_TILE))
    out = jax.block_until_ready(fwd(img, params))
    assert out.shape == (B, (IMG // P) ** 3, EMBED), out.shape
    assert out.dtype == jnp.float32, out.dtype
    print("KERNEL_OK")
</pallas_src>

<mosaic_0001>
module attributes {stable_mosaic.version = 11 : i64} {
  func.func @patch_embed_kernel(%arg0: i32, %arg1: i32, %arg2: memref<1x64x128xbf16, #tpu.memory_space<vmem>>, %arg3: memref<128x128xbf16, #tpu.memory_space<vmem>>, %arg4: memref<1x128xf32, #tpu.memory_space<vmem>>, %arg5: memref<1x64x128xbf16, #tpu.memory_space<vmem>>, %arg6: memref<1x64x128xbf16, #tpu.memory_space<vmem>>) attributes {dimension_semantics = [#tpu.dimension_semantics<parallel>, #tpu.dimension_semantics<parallel>], iteration_bounds = array<i64: 2, 1>, scalar_prefetch = 0 : i64, scratch_operands = 0 : i64, tpu.core_type = #tpu.core_type<tc>, window_params = [{transform_indices = @transform_0, window_bounds = array<i64: 1, 64, 128>}, {pipeline_mode = #tpu.pipeline_mode<synchronous>, transform_indices = @transform_1, window_bounds = array<i64: 128, 128>}, {pipeline_mode = #tpu.pipeline_mode<synchronous>, transform_indices = @transform_2, window_bounds = array<i64: 1, 128>}, {transform_indices = @transform_3, window_bounds = array<i64: 1, 64, 128>}, {transform_indices = @transform_4, window_bounds = array<i64: 1, 64, 128>}]} {
    %c0 = arith.constant 0 : index
    %c0_0 = arith.constant 0 : index
    %c0_1 = arith.constant 0 : index
    %0 = vector.load %arg2[%c0, %c0_0, %c0_1] : memref<1x64x128xbf16, #tpu.memory_space<vmem>>, vector<1x64x128xbf16>
    %1 = vector.shape_cast %0 : vector<1x64x128xbf16> to vector<64x128xbf16>
    %c0_2 = arith.constant 0 : index
    %c0_3 = arith.constant 0 : index
    %2 = vector.load %arg3[%c0_2, %c0_3] : memref<128x128xbf16, #tpu.memory_space<vmem>>, vector<128x128xbf16>
    %cst = arith.constant dense<0.000000e+00> : vector<64x128xf32>
    %3 = tpu.matmul %1, %2, %cst {dimension_numbers = #tpu.dot_dimension_numbers<[1], [0], [0], [1], [0, 0, 1, 1], [], []>} : vector<64x128xbf16>, vector<128x128xbf16>, vector<64x128xf32> -> vector<64x128xf32>
    %c0_4 = arith.constant 0 : index
    %c0_5 = arith.constant 0 : index
    %4 = vector.load %arg4[%c0_4, %c0_5] : memref<1x128xf32, #tpu.memory_space<vmem>>, vector<1x128xf32>
    %5 = vector.shape_cast %4 : vector<1x128xf32> to vector<128xf32>
    %6 = vector.shape_cast %5 : vector<128xf32> to vector<1x128xf32>
    %7 = vector.broadcast %6 : vector<1x128xf32> to vector<64x128xf32>
    %8 = arith.addf %3, %7 : vector<64x128xf32>
    %c0_6 = arith.constant 0 : index
    %c0_7 = arith.constant 0 : index
    %c0_8 = arith.constant 0 : index
    %9 = vector.load %arg5[%c0_6, %c0_7, %c0_8] : memref<1x64x128xbf16, #tpu.memory_space<vmem>>, vector<1x64x128xbf16>
    %10 = vector.shape_cast %9 : vector<1x64x128xbf16> to vector<64x128xbf16>
    %11 = arith.extf %10 : vector<64x128xbf16> to vector<64x128xf32>
    %12 = arith.addf %8, %11 : vector<64x128xf32>
    %13 = vector.shape_cast %12 : vector<64x128xf32> to vector<1x64x128xf32>
    %14 = arith.truncf %13 : vector<1x64x128xf32> to vector<1x64x128xbf16>
    %c0_9 = arith.constant 0 : index
    %c0_10 = arith.constant 0 : index
    %c0_11 = arith.constant 0 : index
    %15 = vector.load %arg6[%c0_9, %c0_10, %c0_11] : memref<1x64x128xbf16, #tpu.memory_space<vmem>>, vector<1x64x128xbf16>
    tpu.vector_store %arg6[%c0_9, %c0_10, %c0_11], %14 {strides = array<i32>} : memref<1x64x128xbf16, #tpu.memory_space<vmem>>, vector<1x64x128xbf16>,
    return
  }
  func.func @transform_0(%arg0: i32, %arg1: i32) -> (i32, i32, i32) {
    %c0_i32 = arith.constant 0 : i32
    %c0_i32_0 = arith.constant 0 : i32
    return %arg0, %arg1, %c0_i32 : i32, i32, i32
  }
  func.func @transform_1(%arg0: i32, %arg1: i32) -> (i32, i32) {
    %c0_i32 = arith.constant 0 : i32
    %c0_i32_0 = arith.constant 0 : i32
    %c0_i32_1 = arith.constant 0 : i32
    return %c0_i32, %c0_i32_0 : i32, i32
  }
  func.func @transform_2(%arg0: i32, %arg1: i32) -> (i32, i32) {
    %c0_i32 = arith.constant 0 : i32
    %c0_i32_0 = arith.constant 0 : i32
    %c0_i32_1 = arith.constant 0 : i32
    return %c0_i32, %c0_i32_0 : i32, i32
  }
  func.func @transform_3(%arg0: i32, %arg1: i32) -> (i32, i32, i32) {
    %c0_i32 = arith.constant 0 : i32
    %c0_i32_0 = arith.constant 0 : i32
    %c0_i32_1 = arith.constant 0 : i32
    return %c0_i32, %arg1, %c0_i32_0 : i32, i32, i32
  }
  func.func @transform_4(%arg0: i32, %arg1: i32) -> (i32, i32, i32) {
    %c0_i32 = arith.constant 0 : i32
    %c0_i32_0 = arith.constant 0 : i32
    return %arg0, %arg1, %c0_i32 : i32, i32, i32
  }
}

module attributes {stable_mosaic.version = 11 : i64} {
  func.func @block_kernel(%arg0: i32, %arg1: i32, %arg2: memref<1x64x128xbf16, #tpu.memory_space<vmem>>, %arg3: memref<1x128xf32, #tpu.memory_space<vmem>>, %arg4: memref<1x128xf32, #tpu.memory_space<vmem>>, %arg5: memref<4x128x32xbf16, #tpu.memory_space<vmem>>, %arg6: memref<4x1x32xf32, #tpu.memory_space<vmem>>, %arg7: memref<4x128x32xbf16, #tpu.memory_space<vmem>>, %arg8: memref<4x1x32xf32, #tpu.memory_space<vmem>>, %arg9: memref<4x128x32xbf16, #tpu.memory_space<vmem>>, %arg10: memref<4x1x32xf32, #tpu.memory_space<vmem>>, %arg11: memref<4x32x128xbf16, #tpu.memory_space<vmem>>, %arg12: memref<1x128xf32, #tpu.memory_space<vmem>>, %arg13: memref<1x128xf32, #tpu.memory_space<vmem>>, %arg14: memref<1x128xf32, #tpu.memory_space<vmem>>, %arg15: memref<128x256xbf16, #tpu.memory_space<vmem>>, %arg16: memref<1x256xf32, #tpu.memory_space<vmem>>, %arg17: memref<256x128xbf16, #tpu.memory_space<vmem>>, %arg18: memref<1x128xf32, #tpu.memory_space<vmem>>, %arg19: memref<1x128xf32, #tpu.memory_space<vmem>>, %arg20: memref<1x128xf32, #tpu.memory_space<vmem>>, %arg21: memref<1x32x128xbf16, #tpu.memory_space<vmem>>, %arg22: memref<4x64x32xbf16, #tpu.memory_space<vmem>>, %arg23: memref<4x64x32xbf16, #tpu.memory_space<vmem>>, %arg24: memref<4x64x128xbf16, #tpu.memory_space<vmem>>) attributes {dimension_semantics = [#tpu.dimension_semantics<parallel>, #tpu.dimension_semantics<arbitrary>], iteration_bounds = array<i64: 2, 2>, scalar_prefetch = 0 : i64, scratch_operands = 3 : i64, tpu.core_type = #tpu.core_type<tc>, window_params = [{transform_indices = @transform_0, window_bounds = array<i64: 1, 64, 128>}, {pipeline_mode = #tpu.pipeline_mode<synchronous>, transform_indices = @transform_1, window_bounds = array<i64: 1, 128>}, {pipeline_mode = #tpu.pipeline_mode<synchronous>, transform_indices = @transform_2, window_bounds = array<i64: 1, 128>}, {pipeline_mode = #tpu.pipeline_mode<synchronous>, transform_indices = @transform_3, window_bounds = array<i64: 4, 128, 32>}, {pipeline_mode = #tpu.pipeline_mode<synchronous>, transform_indices = @transform_4, window_bounds = array<i64: 4, 1, 32>}, {pipeline_mode = #tpu.pipeline_mode<synchronous>, transform_indices = @transform_5, window_bounds = array<i64: 4, 128, 32>}, {pipeline_mode = #tpu.pipeline_mode<synchronous>, transform_indices = @transform_6, window_bounds = array<i64: 4, 1, 32>}, {pipeline_mode = #tpu.pipeline_mode<synchronous>, transform_indices = @transform_7, window_bounds = array<i64: 4, 128, 32>}, {pipeline_mode = #tpu.pipeline_mode<synchronous>, transform_indices = @transform_8, window_bounds = array<i64: 4, 1, 32>}, {pipeline_mode = #tpu.pipeline_mode<synchronous>, transform_indices = @transform_9, window_bounds = array<i64: 4, 32, 128>}, {pipeline_mode = #tpu.pipeline_mode<synchronous>, transform_indices = @transform_10, window_bounds = array<i64: 1, 128>}, {pipeline_mode = #tpu.pipeline_mode<synchronous>, transform_indices = @transform_11, window_bounds = array<i64: 1, 128>}, {pipeline_mode = #tpu.pipeline_mode<synchronous>, transform_indices = @transform_12, window_bounds = array<i64: 1, 128>}, {pipeline_mode = #tpu.pipeline_mode<synchronous>, transform_indices = @transform_13, window_bounds = array<i64: 128, 256>}, {pipeline_mode = #tpu.pipeline_mode<synchronous>, transform_indices = @transform_14, window_bounds = array<i64: 1, 256>}, {pipeline_mode = #tpu.pipeline_mode<synchronous>, transform_indices = @transform_15, window_bounds = array<i64: 256, 128>}, {pipeline_mode = #tpu.pipeline_mode<synchronous>, transform_indices = @transform_16, window_bounds = array<i64: 1, 128>}, {pipeline_mode = #tpu.pipeline_mode<synchronous>, transform_indices = @transform_17, window_bounds = array<i64: 1, 128>}, {pipeline_mode = #tpu.pipeline_mode<synchronous>, transform_indices = @transform_18, window_bounds = array<i64: 1, 128>}, {transform_indices = @transform_19, window_bounds = array<i64: 1, 32, 128>}]} {
    %c0_i32 = arith.constant 0 : i32
    %0 = arith.cmpi eq, %arg1, %c0_i32 : i32
    %1 = arith.extui %0 : i1 to i32
    %c0_i32_0 = arith.constant 0 : i32
    %2 = arith.cmpi ne, %1, %c0_i32_0 : i32
    scf.if %2 {
      %c0_i32_49 = arith.constant 0 : i32
      %c32_i32_50 = arith.constant 32 : i32
      %123 = arith.muli %c0_i32_49, %c32_i32_50 : i32
      %124 = tpu.assume_multiple %123, 32 : i32
      %c0_51 = arith.constant 0 : index
      %125 = arith.index_cast %124 : i32 to index
      %c0_52 = arith.constant 0 : index
      %126 = vector.load %arg2[%c0_51, %125, %c0_52] : memref<1x64x128xbf16, #tpu.memory_space<vmem>>, vector<1x32x128xbf16>
      %127 = vector.shape_cast %126 : vector<1x32x128xbf16> to vector<32x128xbf16>
      %128 = arith.extf %127 : vector<32x128xbf16> to vector<32x128xf32>
      %c0_53 = arith.constant 0 : index
      %c0_54 = arith.constant 0 : index
      %129 = vector.load %arg3[%c0_53, %c0_54] : memref<1x128xf32, #tpu.memory_space<vmem>>, vector<1x128xf32>
      %130 = vector.shape_cast %129 : vector<1x128xf32> to vector<128xf32>
      %c0_55 = arith.constant 0 : index
      %c0_56 = arith.constant 0 : index
      %131 = vector.load %arg4[%c0_55, %c0_56] : memref<1x128xf32, #tpu.memory_space<vmem>>, vector<1x128xf32>
      %132 = vector.shape_cast %131 : vector<1x128xf32> to vector<128xf32>
      %cst_57 = arith.constant dense<0.000000e+00> : vector<32xf32>
      %133 = vector.multi_reduction <add>, %128, %cst_57 [1] : vector<32x128xf32> to vector<32xf32>
      %134 = vector.shape_cast %133 : vector<32xf32> to vector<32x1xf32>
      %cst_58 = arith.constant 1.280000e+02 : f32
      %135 = vector.broadcast %cst_58 : f32 to vector<32x1xf32>
      %136 = arith.divf %134, %135 : vector<32x1xf32>
      %137 = vector.broadcast %136 : vector<32x1xf32> to vector<32x128xf32>
      %138 = arith.subf %128, %137 : vector<32x128xf32>
      %139 = arith.mulf %138, %138 : vector<32x128xf32>
      %cst_59 = arith.constant dense<0.000000e+00> : vector<32xf32>
      %140 = vector.multi_reduction <add>, %139, %cst_59 [1] : vector<32x128xf32> to vector<32xf32>
      %141 = vector.shape_cast %140 : vector<32xf32> to vector<32x1xf32>
      %cst_60 = arith.constant 1.280000e+02 : f32
      %142 = vector.broadcast %cst_60 : f32 to vector<32x1xf32>
      %143 = arith.divf %141, %142 : vector<32x1xf32>
      %144 = vector.broadcast %136 : vector<32x1xf32> to vector<32x128xf32>
      %145 = arith.subf %128, %144 : vector<32x128xf32>
      %cst_61 = arith.constant 9.99999974E-6 : f32
      %146 = vector.broadcast %cst_61 : f32 to vector<32x1xf32>
      %147 = arith.addf %143, %146 : vector<32x1xf32>
      %148 = math.rsqrt %147 : vector<32x1xf32>
      %149 = vector.broadcast %148 : vector<32x1xf32> to vector<32x128xf32>
      %150 = arith.mulf %145, %149 : vector<32x128xf32>
      %151 = vector.shape_cast %130 : vector<128xf32> to vector<1x128xf32>
      %152 = vector.broadcast %151 : vector<1x128xf32> to vector<32x128xf32>
      %153 = arith.mulf %150, %152 : vector<32x128xf32>
      %154 = vector.shape_cast %132 : vector<128xf32> to vector<1x128xf32>
      %155 = vector.broadcast %154 : vector<1x128xf32> to vector<32x128xf32>
      %156 = arith.addf %153, %155 : vector<32x128xf32>
      %157 = arith.truncf %156 : vector<32x128xf32> to vector<32x128xbf16>
      %c0_62 = arith.constant 0 : index
      %c0_63 = arith.constant 0 : index
      %c0_64 = arith.constant 0 : index
      %158 = vector.load %arg5[%c0_62, %c0_63, %c0_64] : memref<4x128x32xbf16, #tpu.memory_space<vmem>>, vector<1x128x32xbf16>
      %159 = vector.shape_cast %158 : vector<1x128x32xbf16> to vector<128x32xbf16>
      %cst_65 = arith.constant dense<0.000000e+00> : vector<32x32xf32>
      %160 = tpu.matmul %157, %159, %cst_65 {dimension_numbers = #tpu.dot_dimension_numbers<[1], [0], [0], [1], [0, 0, 1, 1], [], []>} : vector<32x128xbf16>, vector<128x32xbf16>, vector<32x32xf32> -> vector<32x32xf32>
      %c0_66 = arith.constant 0 : index
      %c0_67 = arith.constant 0 : index
      %c0_68 = arith.constant 0 : index
      %161 = vector.load %arg6[%c0_66, %c0_67, %c0_68] : memref<4x1x32xf32, #tpu.memory_space<vmem>>, vector<1x1x32xf32>
      %162 = vector.shape_cast %161 : vector<1x1x32xf32> to vector<1x32xf32>
      %163 = vector.broadcast %162 : vector<1x32xf32> to vector<32x32xf32>
      %164 = arith.addf %160, %163 : vector<32x32xf32>
      %c0_69 = arith.constant 0 : index
      %c0_70 = arith.constant 0 : index
      %c0_71 = arith.constant 0 : index
      %165 = vector.load %arg7[%c0_69, %c0_70, %c0_71] : memref<4x128x32xbf16, #tpu.memory_space<vmem>>, vector<1x128x32xbf16>
      %166 = vector.shape_cast %165 : vector<1x128x32xbf16> to vector<128x32xbf16>
      %cst_72 = arith.constant dense<0.000000e+00> : vector<32x32xf32>
      %167 = tpu.matmul %157, %166, %cst_72 {dimension_numbers = #tpu.dot_dimension_numbers<[1], [0], [0], [1], [0, 0, 1, 1], [], []>} : vector<32x128xbf16>, vector<128x32xbf16>, vector<32x32xf32> -> vector<32x32xf32>
      %c0_73 = arith.constant 0 : index
      %c0_74 = arith.constant 0 : index
      %c0_75 = arith.constant 0 : index
      %168 = vector.load %arg8[%c0_73, %c0_74, %c0_75] : memref<4x1x32xf32, #tpu.memory_space<vmem>>, vector<1x1x32xf32>
      %169 = vector.shape_cast %168 : vector<1x1x32xf32> to vector<1x32xf32>
      %170 = vector.broadcast %169 : vector<1x32xf32> to vector<32x32xf32>
      %171 = arith.addf %167, %170 : vector<32x32xf32>
      %c0_76 = arith.constant 0 : index
      %c0_77 = arith.constant 0 : index
      %c0_78 = arith.constant 0 : index
      %172 = vector.load %arg9[%c0_76, %c0_77, %c0_78] : memref<4x128x32xbf16, #tpu.memory_space<vmem>>, vector<1x128x32xbf16>
      %173 = vector.shape_cast %172 : vector<1x128x32xbf16> to vector<128x32xbf16>
      %cst_79 = arith.constant dense<0.000000e+00> : vector<32x32xf32>
      %174 = tpu.matmul %157, %173, %cst_79 {dimension_numbers = #tpu.dot_dimension_numbers<[1], [0], [0], [1], [0, 0, 1, 1], [], []>} : vector<32x128xbf16>, vector<128x32xbf16>, vector<32x32xf32> -> vector<32x32xf32>
      %c0_80 = arith.constant 0 : index
      %c0_81 = arith.constant 0 : index
      %c0_82 = arith.constant 0 : index
      %175 = vector.load %arg10[%c0_80, %c0_81, %c0_82] : memref<4x1x32xf32, #tpu.memory_space<vmem>>, vector<1x1x32xf32>
      %176 = vector.shape_cast %175 : vector<1x1x32xf32> to vector<1x32xf32>
      %177 = vector.broadcast %176 : vector<1x32xf32> to vector<32x32xf32>
      %178 = arith.addf %174, %177 : vector<32x32xf32>
      %179 = arith.truncf %178 : vector<32x32xf32> to vector<32x32xbf16>
      %c0_83 = arith.constant 0 : index
      %c0_84 = arith.constant 0 : index
      %c0_85 = arith.constant 0 : index
      %180 = vector.load %arg11[%c0_83, %c0_84, %c0_85] : memref<4x32x128xbf16, #tpu.memory_space<vmem>>, vector<1x32x128xbf16>
      %181 = vector.shape_cast %180 : vector<1x32x128xbf16> to vector<32x128xbf16>
      %cst_86 = arith.constant dense<0.000000e+00> : vector<32x128xf32>
      %182 = tpu.matmul %179, %181, %cst_86 {dimension_numbers = #tpu.dot_dimension_numbers<[1], [0], [0], [1], [0, 0, 1, 1], [], []>} : vector<32x32xbf16>, vector<32x128xbf16>, vector<32x128xf32> -> vector<32x128xf32>
      %183 = arith.truncf %164 : vector<32x32xf32> to vector<32x32xbf16>
      %c0_87 = arith.constant 0 : index
      %184 = arith.index_cast %124 : i32 to index
      %c0_88 = arith.constant 0 : index
      %185 = vector.load %arg22[%c0_87, %184, %c0_88] : memref<4x64x32xbf16, #tpu.memory_space<vmem>>, vector<1x32x32xbf16>
      %186 = vector.shape_cast %185 : vector<1x32x32xbf16> to vector<32x32xbf16>
      %187 = vector.shape_cast %183 : vector<32x32xbf16> to vector<1x32x32xbf16>
      tpu.vector_store %arg22[%c0_87, %184, %c0_88], %187 {strides = array<i32>} : memref<4x64x32xbf16, #tpu.memory_space<vmem>>, vector<1x32x32xbf16>,
      %188 = arith.truncf %171 : vector<32x32xf32> to vector<32x32xbf16>
      %c0_89 = arith.constant 0 : index
      %189 = arith.index_cast %124 : i32 to index
      %c0_90 = arith.constant 0 : index
      %190 = vector.load %arg23[%c0_89, %189, %c0_90] : memref<4x64x32xbf16, #tpu.memory_space<vmem>>, vector<1x32x32xbf16>
      %191 = vector.shape_cast %190 : vector<1x32x32xbf16> to vector<32x32xbf16>
      %192 = vector.shape_cast %188 : vector<32x32xbf16> to vector<1x32x32xbf16>
      tpu.vector_store %arg23[%c0_89, %189, %c0_90], %192 {strides = array<i32>} : memref<4x64x32xbf16, #tpu.memory_space<vmem>>, vector<1x32x32xbf16>,
      %193 = arith.truncf %182 : vector<32x128xf32> to vector<32x128xbf16>
      %c0_91 = arith.constant 0 : index
      %194 = arith.index_cast %124 : i32 to index
      %c0_92 = arith.constant 0 : index
      %195 = vector.load %arg24[%c0_91, %194, %c0_92] : memref<4x64x128xbf16, #tpu.memory_space<vmem>>, vector<1x32x128xbf16>
      %196 = vector.shape_cast %195 : vector<1x32x128xbf16> to vector<32x128xbf16>
      %197 = vector.shape_cast %193 : vector<32x128xbf16> to vector<1x32x128xbf16>
      tpu.vector_store %arg24[%c0_91, %194, %c0_92], %197 {strides = array<i32>} : memref<4x64x128xbf16, #tpu.memory_space<vmem>>, vector<1x32x128xbf16>,
      %c1_93 = arith.constant 1 : index
      %c0_94 = arith.constant 0 : index
      %c0_95 = arith.constant 0 : index
      %198 = vector.load %arg5[%c1_93, %c0_94, %c0_95] : memref<4x128x32xbf16, #tpu.memory_space<vmem>>, vector<1x128x32xbf16>
      %199 = vector.shape_cast %198 : vector<1x128x32xbf16> to vector<128x32xbf16>
      %cst_96 = arith.constant dense<0.000000e+00> : vector<32x32xf32>
      %200 = tpu.matmul %157, %199, %cst_96 {dimension_numbers = #tpu.dot_dimension_numbers<[1], [0], [0], [1], [0, 0, 1, 1], [], []>} : vector<32x128xbf16>, vector<128x32xbf16>, vector<32x32xf32> -> vector<32x32xf32>
      %c1_97 = arith.constant 1 : index
      %c0_98 = arith.constant 0 : index
      %c0_99 = arith.constant 0 : index
      %201 = vector.load %arg6[%c1_97, %c0_98, %c0_99] : memref<4x1x32xf32, #tpu.memory_space<vmem>>, vector<1x1x32xf32>
      %202 = vector.shape_cast %201 : vector<1x1x32xf32> to vector<1x32xf32>
      %203 = vector.broadcast %202 : vector<1x32xf32> to vector<32x32xf32>
      %204 = arith.addf %200, %203 : vector<32x32xf32>
      %c1_100 = arith.constant 1 : index
      %c0_101 = arith.constant 0 : index
      %c0_102 = arith.constant 0 : index
      %205 = vector.load %arg7[%c1_100, %c0_101, %c0_102] : memref<4x128x32xbf16, #tpu.memory_space<vmem>>, vector<1x128x32xbf16>
      %206 = vector.shape_cast %205 : vector<1x128x32xbf16> to vector<128x32xbf16>
      %cst_103 = arith.constant dense<0.000000e+00> : vector<32x32xf32>
      %207 = tpu.matmul %157, %206, %cst_103 {dimension_numbers = #tpu.dot_dimension_numbers<[1], [0], [0], [1], [0, 0, 1, 1], [], []>} : vector<32x128xbf16>, vector<128x32xbf16>, vector<32x32xf32> -> vector<32x32xf32>
      %c1_104 = arith.constant 1 : index
      %c0_105 = arith.constant 0 : index
      %c0_106 = arith.constant 0 : index
      %208 = vector.load %arg8[%c1_104, %c0_105, %c0_106] : memref<4x1x32xf32, #tpu.memory_space<vmem>>, vector<1x1x32xf32>
      %209 = vector.shape_cast %208 : vector<1x1x32xf32> to vector<1x32xf32>
      %210 = vector.broadcast %209 : vector<1x32xf32> to vector<32x32xf32>
      %211 = arith.addf %207, %210 : vector<32x32xf32>
      %c1_107 = arith.constant 1 : index
      %c0_108 = arith.constant 0 : index
      %c0_109 = arith.constant 0 : index
      %212 = vector.load %arg9[%c1_107, %c0_108, %c0_109] : memref<4x128x32xbf16, #tpu.memory_space<vmem>>, vector<1x128x32xbf16>
      %213 = vector.shape_cast %212 : vector<1x128x32xbf16> to vector<128x32xbf16>
      %cst_110 = arith.constant dense<0.000000e+00> : vector<32x32xf32>
      %214 = tpu.matmul %157, %213, %cst_110 {dimension_numbers = #tpu.dot_dimension_numbers<[1], [0], [0], [1], [0, 0, 1, 1], [], []>} : vector<32x128xbf16>, vector<128x32xbf16>, vector<32x32xf32> -> vector<32x32xf32>
      %c1_111 = arith.constant 1 : index
      %c0_112 = arith.constant 0 : index
      %c0_113 = arith.constant 0 : index
      %215 = vector.load %arg10[%c1_111, %c0_112, %c0_113] : memref<4x1x32xf32, #tpu.memory_space<vmem>>, vector<1x1x32xf32>
      %216 = vector.shape_cast %215 : vector<1x1x32xf32> to vector<1x32xf32>
      %217 = vector.broadcast %216 : vector<1x32xf32> to vector<32x32xf32>
      %218 = arith.addf %214, %217 : vector<32x32xf32>
      %219 = arith.truncf %218 : vector<32x32xf32> to vector<32x32xbf16>
      %c1_114 = arith.constant 1 : index
      %c0_115 = arith.constant 0 : index
      %c0_116 = arith.constant 0 : index
      %220 = vector.load %arg11[%c1_114, %c0_115, %c0_116] : memref<4x32x128xbf16, #tpu.memory_space<vmem>>, vector<1x32x128xbf16>
      %221 = vector.shape_cast %220 : vector<1x32x128xbf16> to vector<32x128xbf16>
      %cst_117 = arith.constant dense<0.000000e+00> : vector<32x128xf32>
      %222 = tpu.matmul %219, %221, %cst_117 {dimension_numbers = #tpu.dot_dimension_numbers<[1], [0], [0], [1], [0, 0, 1, 1], [], []>} : vector<32x32xbf16>, vector<32x128xbf16>, vector<32x128xf32> -> vector<32x128xf32>
      %223 = arith.truncf %204 : vector<32x32xf32> to vector<32x32xbf16>
      %c1_118 = arith.constant 1 : index
      %224 = arith.index_cast %124 : i32 to index
      %c0_119 = arith.constant 0 : index
      %225 = vector.load %arg22[%c1_118, %224, %c0_119] : memref<4x64x32xbf16, #tpu.memory_space<vmem>>, vector<1x32x32xbf16>
      %226 = vector.shape_cast %225 : vector<1x32x32xbf16> to vector<32x32xbf16>
      %227 = vector.shape_cast %223 : vector<32x32xbf16> to vector<1x32x32xbf16>
      tpu.vector_store %arg22[%c1_118, %224, %c0_119], %227 {strides = array<i32>} : memref<4x64x32xbf16, #tpu.memory_space<vmem>>, vector<1x32x32xbf16>,
      %228 = arith.truncf %211 : vector<32x32xf32> to vector<32x32xbf16>
      %c1_120 = arith.constant 1 : index
      %229 = arith.index_cast %124 : i32 to index
      %c0_121 = arith.constant 0 : index
      %230 = vector.load %arg23[%c1_120, %229, %c0_121] : memref<4x64x32xbf16, #tpu.memory_space<vmem>>, vector<1x32x32xbf16>
      %231 = vector.shape_cast %230 : vector<1x32x32xbf16> to vector<32x32xbf16>
      %232 = vector.shape_cast %228 : vector<32x32xbf16> to vector<1x32x32xbf16>
      tpu.vector_store %arg23[%c1_120, %229, %c0_121], %232 {strides = array<i32>} : memref<4x64x32xbf16, #tpu.memory_space<vmem>>, vector<1x32x32xbf16>,
      %233 = arith.truncf %222 : vector<32x128xf32> to vector<32x128xbf16>
      %c1_122 = arith.constant 1 : index
      %234 = arith.index_cast %124 : i32 to index
      %c0_123 = arith.constant 0 : index
      %235 = vector.load %arg24[%c1_122, %234, %c0_123] : memref<4x64x128xbf16, #tpu.memory_space<vmem>>, vector<1x32x128xbf16>
      %236 = vector.shape_cast %235 : vector<1x32x128xbf16> to vector<32x128xbf16>
      %237 = vector.shape_cast %233 : vector<32x128xbf16> to vector<1x32x128xbf16>
      tpu.vector_store %arg24[%c1_122, %234, %c0_123], %237 {strides = array<i32>} : memref<4x64x128xbf16, #tpu.memory_space<vmem>>, vector<1x32x128xbf16>,
      %c2_124 = arith.constant 2 : index
      %c0_125 = arith.constant 0 : index
      %c0_126 = arith.constant 0 : index
      %238 = vector.load %arg5[%c2_124, %c0_125, %c0_126] : memref<4x128x32xbf16, #tpu.memory_space<vmem>>, vector<1x128x32xbf16>
      %239 = vector.shape_cast %238 : vector<1x128x32xbf16> to vector<128x32xbf16>
      %cst_127 = arith.constant dense<0.000000e+00> : vector<32x32xf32>
      %240 = tpu.matmul %157, %239, %cst_127 {dimension_numbers = #tpu.dot_dimension_numbers<[1], [0], [0], [1], [0, 0, 1, 1], [], []>} : vector<32x128xbf16>, vector<128x32xbf16>, vector<32x32xf32> -> vector<32x32xf32>
      %c2_128 = arith.constant 2 : index
      %c0_129 = arith.constant 0 : index
      %c0_130 = arith.constant 0 : index
      %241 = vector.load %arg6[%c2_128, %c0_129, %c0_130] : memref<4x1x32xf32, #tpu.memory_space<vmem>>, vector<1x1x32xf32>
      %242 = vector.shape_cast %241 : vector<1x1x32xf32> to vector<1x32xf32>
      %243 = vector.broadcast %242 : vector<1x32xf32> to vector<32x32xf32>
      %244 = arith.addf %240, %243 : vector<32x32xf32>
      %c2_131 = arith.constant 2 : index
      %c0_132 = arith.constant 0 : index
      %c0_133 = arith.constant 0 : index
      %245 = vector.load %arg7[%c2_131, %c0_132, %c0_133] : memref<4x128x32xbf16, #tpu.memory_space<vmem>>, vector<1x128x32xbf16>
      %246 = vector.shape_cast %245 : vector<1x128x32xbf16> to vector<128x32xbf16>
      %cst_134 = arith.constant dense<0.000000e+00> : vector<32x32xf32>
      %247 = tpu.matmul %157, %246, %cst_134 {dimension_numbers = #tpu.dot_dimension_numbers<[1], [0], [0], [1], [0, 0, 1, 1], [], []>} : vector<32x128xbf16>, vector<128x32xbf16>, vector<32x32xf32> -> vector<32x32xf32>
      %c2_135 = arith.constant 2 : index
      %c0_136 = arith.constant 0 : index
      %c0_137 = arith.constant 0 : index
      %248 = vector.load %arg8[%c2_135, %c0_136, %c0_137] : memref<4x1x32xf32, #tpu.memory_space<vmem>>, vector<1x1x32xf32>
      %249 = vector.shape_cast %248 : vector<1x1x32xf32> to vector<1x32xf32>
      %250 = vector.broadcast %249 : vector<1x32xf32> to vector<32x32xf32>
      %251 = arith.addf %247, %250 : vector<32x32xf32>
      %c2_138 = arith.constant 2 : index
      %c0_139 = arith.constant 0 : index
      %c0_140 = arith.constant 0 : index
      %252 = vector.load %arg9[%c2_138, %c0_139, %c0_140] : memref<4x128x32xbf16, #tpu.memory_space<vmem>>, vector<1x128x32xbf16>
      %253 = vector.shape_cast %252 : vector<1x128x32xbf16> to vector<128x32xbf16>
      %cst_141 = arith.constant dense<0.000000e+00> : vector<32x32xf32>
      %254 = tpu.matmul %157, %253, %cst_141 {dimension_numbers = #tpu.dot_dimension_numbers<[1], [0], [0], [1], [0, 0, 1, 1], [], []>} : vector<32x128xbf16>, vector<128x32xbf16>, vector<32x32xf32> -> vector<32x32xf32>
      %c2_142 = arith.constant 2 : index
      %c0_143 = arith.constant 0 : index
      %c0_144 = arith.constant 0 : index
      %255 = vector.load %arg10[%c2_142, %c0_143, %c0_144] : memref<4x1x32xf32, #tpu.memory_space<vmem>>, vector<1x1x32xf32>
      %256 = vector.shape_cast %255 : vector<1x1x32xf32> to vector<1x32xf32>
      %257 = vector.broadcast %256 : vector<1x32xf32> to vector<32x32xf32>
      %258 = arith.addf %254, %257 : vector<32x32xf32>
      %259 = arith.truncf %258 : vector<32x32xf32> to vector<32x32xbf16>
      %c2_145 = arith.constant 2 : index
      %c0_146 = arith.constant 0 : index
      %c0_147 = arith.constant 0 : index
      %260 = vector.load %arg11[%c2_145, %c0_146, %c0_147] : memref<4x32x128xbf16, #tpu.memory_space<vmem>>, vector<1x32x128xbf16>
      %261 = vector.shape_cast %260 : vector<1x32x128xbf16> to vector<32x128xbf16>
      %cst_148 = arith.constant dense<0.000000e+00> : vector<32x128xf32>
      %262 = tpu.matmul %259, %261, %cst_148 {dimension_numbers = #tpu.dot_dimension_numbers<[1], [0], [0], [1], [0, 0, 1, 1], [], []>} : vector<32x32xbf16>, vector<32x128xbf16>, vector<32x128xf32> -> vector<32x128xf32>
      %263 = arith.truncf %244 : vector<32x32xf32> to vector<32x32xbf16>
      %c2_149 = arith.constant 2 : index
      %264 = arith.index_cast %124 : i32 to index
      %c0_150 = arith.constant 0 : index
      %265 = vector.load %arg22[%c2_149, %264, %c0_150] : memref<4x64x32xbf16, #tpu.memory_space<vmem>>, vector<1x32x32xbf16>
      %266 = vector.shape_cast %265 : vector<1x32x32xbf16> to vector<32x32xbf16>
      %267 = vector.shape_cast %263 : vector<32x32xbf16> to vector<1x32x32xbf16>
      tpu.vector_store %arg22[%c2_149, %264, %c0_150], %267 {strides = array<i32>} : memref<4x64x32xbf16, #tpu.memory_space<vmem>>, vector<1x32x32xbf16>,
      %268 = arith.truncf %251 : vector<32x32xf32> to vector<32x32xbf16>
      %c2_151 = arith.constant 2 : index
      %269 = arith.index_cast %124 : i32 to index
      %c0_152 = arith.constant 0 : index
      %270 = vector.load %arg23[%c2_151, %269, %c0_152] : memref<4x64x32xbf16, #tpu.memory_space<vmem>>, vector<1x32x32xbf16>
      %271 = vector.shape_cast %270 : vector<1x32x32xbf16> to vector<32x32xbf16>
      %272 = vector.shape_cast %268 : vector<32x32xbf16> to vector<1x32x32xbf16>
      tpu.vector_store %arg23[%c2_151, %269, %c0_152], %272 {strides = array<i32>} : memref<4x64x32xbf16, #tpu.memory_space<vmem>>, vector<1x32x32xbf16>,
      %273 = arith.truncf %262 : vector<32x128xf32> to vector<32x128xbf16>
      %c2_153 = arith.constant 2 : index
      %274 = arith.index_cast %124 : i32 to index
      %c0_154 = arith.constant 0 : index
      %275 = vector.load %arg24[%c2_153, %274, %c0_154] : memref<4x64x128xbf16, #tpu.memory_space<vmem>>, vector<1x32x128xbf16>
      %276 = vector.shape_cast %275 : vector<1x32x128xbf16> to vector<32x128xbf16>
      %277 = vector.shape_cast %273 : vector<32x128xbf16> to vector<1x32x128xbf16>
      tpu.vector_store %arg24[%c2_153, %274, %c0_154], %277 {strides = array<i32>} : memref<4x64x128xbf16, #tpu.memory_space<vmem>>, vector<1x32x128xbf16>,
      %c3_155 = arith.constant 3 : index
      %c0_156 = arith.constant 0 : index
      %c0_157 = arith.constant 0 : index
      %278 = vector.load %arg5[%c3_155, %c0_156, %c0_157] : memref<4x128x32xbf16, #tpu.memory_space<vmem>>, vector<1x128x32xbf16>
      %279 = vector.shape_cast %278 : vector<1x128x32xbf16> to vector<128x32xbf16>
      %cst_158 = arith.constant dense<0.000000e+00> : vector<32x32xf32>
      %280 = tpu.matmul %157, %279, %cst_158 {dimension_numbers = #tpu.dot_dimension_numbers<[1], [0], [0], [1], [0, 0, 1, 1], [], []>} : vector<32x128xbf16>, vector<128x32xbf16>, vector<32x32xf32> -> vector<32x32xf32>
      %c3_159 = arith.constant 3 : index
      %c0_160 = arith.constant 0 : index
      %c0_161 = arith.constant 0 : index
      %281 = vector.load %arg6[%c3_159, %c0_160, %c0_161] : memref<4x1x32xf32, #tpu.memory_space<vmem>>, vector<1x1x32xf32>
      %282 = vector.shape_cast %281 : vector<1x1x32xf32> to vector<1x32xf32>
      %283 = vector.broadcast %282 : vector<1x32xf32> to vector<32x32xf32>
      %284 = arith.addf %280, %283 : vector<32x32xf32>
      %c3_162 = arith.constant 3 : index
      %c0_163 = arith.constant 0 : index
      %c0_164 = arith.constant 0 : index
      %285 = vector.load %arg7[%c3_162, %c0_163, %c0_164] : memref<4x128x32xbf16, #tpu.memory_space<vmem>>, vector<1x128x32xbf16>
      %286 = vector.shape_cast %285 : vector<1x128x32xbf16> to vector<128x32xbf16>
      %cst_165 = arith.constant dense<0.000000e+00> : vector<32x32xf32>
      %287 = tpu.matmul %157, %286, %cst_165 {dimension_numbers = #tpu.dot_dimension_numbers<[1], [0], [0], [1], [0, 0, 1, 1], [], []>} : vector<32x128xbf16>, vector<128x32xbf16>, vector<32x32xf32> -> vector<32x32xf32>
      %c3_166 = arith.constant 3 : index
      %c0_167 = arith.constant 0 : index
      %c0_168 = arith.constant 0 : index
      %288 = vector.load %arg8[%c3_166, %c0_167, %c0_168] : memref<4x1x32xf32, #tpu.memory_space<vmem>>, vector<1x1x32xf32>
      %289 = vector.shape_cast %288 : vector<1x1x32xf32> to vector<1x32xf32>
      %290 = vector.broadcast %289 : vector<1x32xf32> to vector<32x32xf32>
      %291 = arith.addf %287, %290 : vector<32x32xf32>
      %c3_169 = arith.constant 3 : index
      %c0_170 = arith.constant 0 : index
      %c0_171 = arith.constant 0 : index
      %292 = vector.load %arg9[%c3_169, %c0_170, %c0_171] : memref<4x128x32xbf16, #tpu.memory_space<vmem>>, vector<1x128x32xbf16>
      %293 = vector.shape_cast %292 : vector<1x128x32xbf16> to vector<128x32xbf16>
      %cst_172 = arith.constant dense<0.000000e+00> : vector<32x32xf32>
      %294 = tpu.matmul %157, %293, %cst_172 {dimension_numbers = #tpu.dot_dimension_numbers<[1], [0], [0], [1], [0, 0, 1, 1], [], []>} : vector<32x128xbf16>, vector<128x32xbf16>, vector<32x32xf32> -> vector<32x32xf32>
      %c3_173 = arith.constant 3 : index
      %c0_174 = arith.constant 0 : index
      %c0_175 = arith.constant 0 : index
      %295 = vector.load %arg10[%c3_173, %c0_174, %c0_175] : memref<4x1x32xf32, #tpu.memory_space<vmem>>, vector<1x1x32xf32>
      %296 = vector.shape_cast %295 : vector<1x1x32xf32> to vector<1x32xf32>
      %297 = vector.broadcast %296 : vector<1x32xf32> to vector<32x32xf32>
      %298 = arith.addf %294, %297 : vector<32x32xf32>
      %299 = arith.truncf %298 : vector<32x32xf32> to vector<32x32xbf16>
      %c3_176 = arith.constant 3 : index
      %c0_177 = arith.constant 0 : index
      %c0_178 = arith.constant 0 : index
      %300 = vector.load %arg11[%c3_176, %c0_177, %c0_178] : memref<4x32x128xbf16, #tpu.memory_space<vmem>>, vector<1x32x128xbf16>
      %301 = vector.shape_cast %300 : vector<1x32x128xbf16> to vector<32x128xbf16>
      %cst_179 = arith.constant dense<0.000000e+00> : vector<32x128xf32>
      %302 = tpu.matmul %299, %301, %cst_179 {dimension_numbers = #tpu.dot_dimension_numbers<[1], [0], [0], [1], [0, 0, 1, 1], [], []>} : vector<32x32xbf16>, vector<32x128xbf16>, vector<32x128xf32> -> vector<32x128xf32>
      %303 = arith.truncf %284 : vector<32x32xf32> to vector<32x32xbf16>
      %c3_180 = arith.constant 3 : index
      %304 = arith.index_cast %124 : i32 to index
      %c0_181 = arith.constant 0 : index
      %305 = vector.load %arg22[%c3_180, %304, %c0_181] : memref<4x64x32xbf16, #tpu.memory_space<vmem>>, vector<1x32x32xbf16>
      %306 = vector.shape_cast %305 : vector<1x32x32xbf16> to vector<32x32xbf16>
      %307 = vector.shape_cast %303 : vector<32x32xbf16> to vector<1x32x32xbf16>
      tpu.vector_store %arg22[%c3_180, %304, %c0_181], %307 {strides = array<i32>} : memref<4x64x32xbf16, #tpu.memory_space<vmem>>, vector<1x32x32xbf16>,
      %308 = arith.truncf %291 : vector<32x32xf32> to vector<32x32xbf16>
      %c3_182 = arith.constant 3 : index
      %309 = arith.index_cast %124 : i32 to index
      %c0_183 = arith.constant 0 : index
      %310 = vector.load %arg23[%c3_182, %309, %c0_183] : memref<4x64x32xbf16, #tpu.memory_space<vmem>>, vector<1x32x32xbf16>
      %311 = vector.shape_cast %310 : vector<1x32x32xbf16> to vector<32x32xbf16>
      %312 = vector.shape_cast %308 : vector<32x32xbf16> to vector<1x32x32xbf16>
      tpu.vector_store %arg23[%c3_182, %309, %c0_183], %312 {strides = array<i32>} : memref<4x64x32xbf16, #tpu.memory_space<vmem>>, vector<1x32x32xbf16>,
      %313 = arith.truncf %302 : vector<32x128xf32> to vector<32x128xbf16>
      %c3_184 = arith.constant 3 : index
      %314 = arith.index_cast %124 : i32 to index
      %c0_185 = arith.constant 0 : index
      %315 = vector.load %arg24[%c3_184, %314, %c0_185] : memref<4x64x128xbf16, #tpu.memory_space<vmem>>, vector<1x32x128xbf16>
      %316 = vector.shape_cast %315 : vector<1x32x128xbf16> to vector<32x128xbf16>
      %317 = vector.shape_cast %313 : vector<32x128xbf16> to vector<1x32x128xbf16>
      tpu.vector_store %arg24[%c3_184, %314, %c0_185], %317 {strides = array<i32>} : memref<4x64x128xbf16, #tpu.memory_space<vmem>>, vector<1x32x128xbf16>,
      %c1_i32 = arith.constant 1 : i32
      %c32_i32_186 = arith.constant 32 : i32
      %318 = arith.muli %c1_i32, %c32_i32_186 : i32
      %319 = tpu.assume_multiple %318, 32 : i32
      %c0_187 = arith.constant 0 : index
      %320 = arith.index_cast %319 : i32 to index
      %c0_188 = arith.constant 0 : index
      %321 = vector.load %arg2[%c0_187, %320, %c0_188] : memref<1x64x128xbf16, #tpu.memory_space<vmem>>, vector<1x32x128xbf16>
      %322 = vector.shape_cast %321 : vector<1x32x128xbf16> to vector<32x128xbf16>
      %323 = arith.extf %322 : vector<32x128xbf16> to vector<32x128xf32>
      %c0_189 = arith.constant 0 : index
      %c0_190 = arith.constant 0 : index
      %324 = vector.load %arg3[%c0_189, %c0_190] : memref<1x128xf32, #tpu.memory_space<vmem>>, vector<1x128xf32>
      %325 = vector.shape_cast %324 : vector<1x128xf32> to vector<128xf32>
      %c0_191 = arith.constant 0 : index
      %c0_192 = arith.constant 0 : index
      %326 = vector.load %arg4[%c0_191, %c0_192] : memref<1x128xf32, #tpu.memory_space<vmem>>, vector<1x128xf32>
      %327 = vector.shape_cast %326 : vector<1x128xf32> to vector<128xf32>
      %cst_193 = arith.constant dense<0.000000e+00> : vector<32xf32>
      %328 = vector.multi_reduction <add>, %323, %cst_193 [1] : vector<32x128xf32> to vector<32xf32>
      %329 = vector.shape_cast %328 : vector<32xf32> to vector<32x1xf32>
      %cst_194 = arith.constant 1.280000e+02 : f32
      %330 = vector.broadcast %cst_194 : f32 to vector<32x1xf32>
      %331 = arith.divf %329, %330 : vector<32x1xf32>
      %332 = vector.broadcast %331 : vector<32x1xf32> to vector<32x128xf32>
      %333 = arith.subf %323, %332 : vector<32x128xf32>
      %334 = arith.mulf %333, %333 : vector<32x128xf32>
      %cst_195 = arith.constant dense<0.000000e+00> : vector<32xf32>
      %335 = vector.multi_reduction <add>, %334, %cst_195 [1] : vector<32x128xf32> to vector<32xf32>
      %336 = vector.shape_cast %335 : vector<32xf32> to vector<32x1xf32>
      %cst_196 = arith.constant 1.280000e+02 : f32
      %337 = vector.broadcast %cst_196 : f32 to vector<32x1xf32>
      %338 = arith.divf %336, %337 : vector<32x1xf32>
      %339 = vector.broadcast %331 : vector<32x1xf32> to vector<32x128xf32>
      %340 = arith.subf %323, %339 : vector<32x128xf32>
      %cst_197 = arith.constant 9.99999974E-6 : f32
      %341 = vector.broadcast %cst_197 : f32 to vector<32x1xf32>
      %342 = arith.addf %338, %341 : vector<32x1xf32>
      %343 = math.rsqrt %342 : vector<32x1xf32>
      %344 = vector.broadcast %343 : vector<32x1xf32> to vector<32x128xf32>
      %345 = arith.mulf %340, %344 : vector<32x128xf32>
      %346 = vector.shape_cast %325 : vector<128xf32> to vector<1x128xf32>
      %347 = vector.broadcast %346 : vector<1x128xf32> to vector<32x128xf32>
      %348 = arith.mulf %345, %347 : vector<32x128xf32>
      %349 = vector.shape_cast %327 : vector<128xf32> to vector<1x128xf32>
      %350 = vector.broadcast %349 : vector<1x128xf32> to vector<32x128xf32>
      %351 = arith.addf %348, %350 : vector<32x128xf32>
      %352 = arith.truncf %351 : vector<32x128xf32> to vector<32x128xbf16>
      %c0_198 = arith.constant 0 : index
      %c0_199 = arith.constant 0 : index
      %c0_200 = arith.constant 0 : index
      %353 = vector.load %arg5[%c0_198, %c0_199, %c0_200] : memref<4x128x32xbf16, #tpu.memory_space<vmem>>, vector<1x128x32xbf16>
      %354 = vector.shape_cast %353 : vector<1x128x32xbf16> to vector<128x32xbf16>
      %cst_201 = arith.constant dense<0.000000e+00> : vector<32x32xf32>
      %355 = tpu.matmul %352, %354, %cst_201 {dimension_numbers = #tpu.dot_dimension_numbers<[1], [0], [0], [1], [0, 0, 1, 1], [], []>} : vector<32x128xbf16>, vector<128x32xbf16>, vector<32x32xf32> -> vector<32x32xf32>
      %c0_202 = arith.constant 0 : index
      %c0_203 = arith.constant 0 : index
      %c0_204 = arith.constant 0 : index
      %356 = vector.load %arg6[%c0_202, %c0_203, %c0_204] : memref<4x1x32xf32, #tpu.memory_space<vmem>>, vector<1x1x32xf32>
      %357 = vector.shape_cast %356 : vector<1x1x32xf32> to vector<1x32xf32>
      %358 = vector.broadcast %357 : vector<1x32xf32> to vector<32x32xf32>
      %359 = arith.addf %355, %358 : vector<32x32xf32>
      %c0_205 = arith.constant 0 : index
      %c0_206 = arith.constant 0 : index
      %c0_207 = arith.constant 0 : index
      %360 = vector.load %arg7[%c0_205, %c0_206, %c0_207] : memref<4x128x32xbf16, #tpu.memory_space<vmem>>, vector<1x128x32xbf16>
      %361 = vector.shape_cast %360 : vector<1x128x32xbf16> to vector<128x32xbf16>
      %cst_208 = arith.constant dense<0.000000e+00> : vector<32x32xf32>
      %362 = tpu.matmul %352, %361, %cst_208 {dimension_numbers = #tpu.dot_dimension_numbers<[1], [0], [0], [1], [0, 0, 1, 1], [], []>} : vector<32x128xbf16>, vector<128x32xbf16>, vector<32x32xf32> -> vector<32x32xf32>
      %c0_209 = arith.constant 0 : index
      %c0_210 = arith.constant 0 : index
      %c0_211 = arith.constant 0 : index
      %363 = vector.load %arg8[%c0_209, %c0_210, %c0_211] : memref<4x1x32xf32, #tpu.memory_space<vmem>>, vector<1x1x32xf32>
      %364 = vector.shape_cast %363 : vector<1x1x32xf32> to vector<1x32xf32>
      %365 = vector.broadcast %364 : vector<1x32xf32> to vector<32x32xf32>
      %366 = arith.addf %362, %365 : vector<32x32xf32>
      %c0_212 = arith.constant 0 : index
      %c0_213 = arith.constant 0 : index
      %c0_214 = arith.constant 0 : index
      %367 = vector.load %arg9[%c0_212, %c0_213, %c0_214] : memref<4x128x32xbf16, #tpu.memory_space<vmem>>, vector<1x128x32xbf16>
      %368 = vector.shape_cast %367 : vector<1x128x32xbf16> to vector<128x32xbf16>
      %cst_215 = arith.constant dense<0.000000e+00> : vector<32x32xf32>
      %369 = tpu.matmul %352, %368, %cst_215 {dimension_numbers = #tpu.dot_dimension_numbers<[1], [0], [0], [1], [0, 0, 1, 1], [], []>} : vector<32x128xbf16>, vector<128x32xbf16>, vector<32x32xf32> -> vector<32x32xf32>
      %c0_216 = arith.constant 0 : index
      %c0_217 = arith.constant 0 : index
      %c0_218 = arith.constant 0 : index
      %370 = vector.load %arg10[%c0_216, %c0_217, %c0_218] : memref<4x1x32xf32, #tpu.memory_space<vmem>>, vector<1x1x32xf32>
      %371 = vector.shape_cast %370 : vector<1x1x32xf32> to vector<1x32xf32>
      %372 = vector.broadcast %371 : vector<1x32xf32> to vector<32x32xf32>
      %373 = arith.addf %369, %372 : vector<32x32xf32>
      %374 = arith.truncf %373 : vector<32x32xf32> to vector<32x32xbf16>
      %c0_219 = arith.constant 0 : index
      %c0_220 = arith.constant 0 : index
      %c0_221 = arith.constant 0 : index
      %375 = vector.load %arg11[%c0_219, %c0_220, %c0_221] : memref<4x32x128xbf16, #tpu.memory_space<vmem>>, vector<1x32x128xbf16>
      %376 = vector.shape_cast %375 : vector<1x32x128xbf16> to vector<32x128xbf16>
      %cst_222 = arith.constant dense<0.000000e+00> : vector<32x128xf32>
      %377 = tpu.matmul %374, %376, %cst_222 {dimension_numbers = #tpu.dot_dimension_numbers<[1], [0], [0], [1], [0, 0, 1, 1], [], []>} : vector<32x32xbf16>, vector<32x128xbf16>, vector<32x128xf32> -> vector<32x128xf32>
      %378 = arith.truncf %359 : vector<32x32xf32> to vector<32x32xbf16>
      %c0_223 = arith.constant 0 : index
      %379 = arith.index_cast %319 : i32 to index
      %c0_224 = arith.constant 0 : index
      %380 = vector.load %arg22[%c0_223, %379, %c0_224] : memref<4x64x32xbf16, #tpu.memory_space<vmem>>, vector<1x32x32xbf16>
      %381 = vector.shape_cast %380 : vector<1x32x32xbf16> to vector<32x32xbf16>
      %382 = vector.shape_cast %378 : vector<32x32xbf16> to vector<1x32x32xbf16>
      tpu.vector_store %arg22[%c0_223, %379, %c0_224], %382 {strides = array<i32>} : memref<4x64x32xbf16, #tpu.memory_space<vmem>>, vector<1x32x32xbf16>,
      %383 = arith.truncf %366 : vector<32x32xf32> to vector<32x32xbf16>
      %c0_225 = arith.constant 0 : index
      %384 = arith.index_cast %319 : i32 to index
      %c0_226 = arith.constant 0 : index
      %385 = vector.load %arg23[%c0_225, %384, %c0_226] : memref<4x64x32xbf16, #tpu.memory_space<vmem>>, vector<1x32x32xbf16>
      %386 = vector.shape_cast %385 : vector<1x32x32xbf16> to vector<32x32xbf16>
      %387 = vector.shape_cast %383 : vector<32x32xbf16> to vector<1x32x32xbf16>
      tpu.vector_store %arg23[%c0_225, %384, %c0_226], %387 {strides = array<i32>} : memref<4x64x32xbf16, #tpu.memory_space<vmem>>, vector<1x32x32xbf16>,
      %388 = arith.truncf %377 : vector<32x128xf32> to vector<32x128xbf16>
      %c0_227 = arith.constant 0 : index
      %389 = arith.index_cast %319 : i32 to index
      %c0_228 = arith.constant 0 : index
      %390 = vector.load %arg24[%c0_227, %389, %c0_228] : memref<4x64x128xbf16, #tpu.memory_space<vmem>>, vector<1x32x128xbf16>
      %391 = vector.shape_cast %390 : vector<1x32x128xbf16> to vector<32x128xbf16>
      %392 = vector.shape_cast %388 : vector<32x128xbf16> to vector<1x32x128xbf16>
      tpu.vector_store %arg24[%c0_227, %389, %c0_228], %392 {strides = array<i32>} : memref<4x64x128xbf16, #tpu.memory_space<vmem>>, vector<1x32x128xbf16>,
      %c1_229 = arith.constant 1 : index
      %c0_230 = arith.constant 0 : index
      %c0_231 = arith.constant 0 : index
      %393 = vector.load %arg5[%c1_229, %c0_230, %c0_231] : memref<4x128x32xbf16, #tpu.memory_space<vmem>>, vector<1x128x32xbf16>
      %394 = vector.shape_cast %393 : vector<1x128x32xbf16> to vector<128x32xbf16>
      %cst_232 = arith.constant dense<0.000000e+00> : vector<32x32xf32>
      %395 = tpu.matmul %352, %394, %cst_232 {dimension_numbers = #tpu.dot_dimension_numbers<[1], [0], [0], [1], [0, 0, 1, 1], [], []>} : vector<32x128xbf16>, vector<128x32xbf16>, vector<32x32xf32> -> vector<32x32xf32>
      %c1_233 = arith.constant 1 : index
      %c0_234 = arith.constant 0 : index
      %c0_235 = arith.constant 0 : index
      %396 = vector.load %arg6[%c1_233, %c0_234, %c0_235] : memref<4x1x32xf32, #tpu.memory_space<vmem>>, vector<1x1x32xf32>
      %397 = vector.shape_cast %396 : vector<1x1x32xf32> to vector<1x32xf32>
      %398 = vector.broadcast %397 : vector<1x32xf32> to vector<32x32xf32>
      %399 = arith.addf %395, %398 : vector<32x32xf32>
      %c1_236 = arith.constant 1 : index
      %c0_237 = arith.constant 0 : index
      %c0_238 = arith.constant 0 : index
      %400 = vector.load %arg7[%c1_236, %c0_237, %c0_238] : memref<4x128x32xbf16, #tpu.memory_space<vmem>>, vector<1x128x32xbf16>
      %401 = vector.shape_cast %400 : vector<1x128x32xbf16> to vector<128x32xbf16>
      %cst_239 = arith.constant dense<0.000000e+00> : vector<32x32xf32>
      %402 = tpu.matmul %352, %401, %cst_239 {dimension_numbers = #tpu.dot_dimension_numbers<[1], [0], [0], [1], [0, 0, 1, 1], [], []>} : vector<32x128xbf16>, vector<128x32xbf16>, vector<32x32xf32> -> vector<32x32xf32>
      %c1_240 = arith.constant 1 : index
      %c0_241 = arith.constant 0 : index
      %c0_242 = arith.constant 0 : index
      %403 = vector.load %arg8[%c1_240, %c0_241, %c0_242] : memref<4x1x32xf32, #tpu.memory_space<vmem>>, vector<1x1x32xf32>
      %404 = vector.shape_cast %403 : vector<1x1x32xf32> to vector<1x32xf32>
      %405 = vector.broadcast %404 : vector<1x32xf32> to vector<32x32xf32>
      %406 = arith.addf %402, %405 : vector<32x32xf32>
      %c1_243 = arith.constant 1 : index
      %c0_244 = arith.constant 0 : index
      %c0_245 = arith.constant 0 : index
      %407 = vector.load %arg9[%c1_243, %c0_244, %c0_245] : memref<4x128x32xbf16, #tpu.memory_space<vmem>>, vector<1x128x32xbf16>
      %408 = vector.shape_cast %407 : vector<1x128x32xbf16> to vector<128x32xbf16>
      %cst_246 = arith.constant dense<0.000000e+00> : vector<32x32xf32>
      %409 = tpu.matmul %352, %408, %cst_246 {dimension_numbers = #tpu.dot_dimension_numbers<[1], [0], [0], [1], [0, 0, 1, 1], [], []>} : vector<32x128xbf16>, vector<128x32xbf16>, vector<32x32xf32> -> vector<32x32xf32>
      %c1_247 = arith.constant 1 : index
      %c0_248 = arith.constant 0 : index
      %c0_249 = arith.constant 0 : index
      %410 = vector.load %arg10[%c1_247, %c0_248, %c0_249] : memref<4x1x32xf32, #tpu.memory_space<vmem>>, vector<1x1x32xf32>
      %411 = vector.shape_cast %410 : vector<1x1x32xf32> to vector<1x32xf32>
      %412 = vector.broadcast %411 : vector<1x32xf32> to vector<32x32xf32>
      %413 = arith.addf %409, %412 : vector<32x32xf32>
      %414 = arith.truncf %413 : vector<32x32xf32> to vector<32x32xbf16>
      %c1_250 = arith.constant 1 : index
      %c0_251 = arith.constant 0 : index
      %c0_252 = arith.constant 0 : index
      %415 = vector.load %arg11[%c1_250, %c0_251, %c0_252] : memref<4x32x128xbf16, #tpu.memory_space<vmem>>, vector<1x32x128xbf16>
      %416 = vector.shape_cast %415 : vector<1x32x128xbf16> to vector<32x128xbf16>
      %cst_253 = arith.constant dense<0.000000e+00> : vector<32x128xf32>
      %417 = tpu.matmul %414, %416, %cst_253 {dimension_numbers = #tpu.dot_dimension_numbers<[1], [0], [0], [1], [0, 0, 1, 1], [], []>} : vector<32x32xbf16>, vector<32x128xbf16>, vector<32x128xf32> -> vector<32x128xf32>
      %418 = arith.truncf %399 : vector<32x32xf32> to vector<32x32xbf16>
      %c1_254 = arith.constant 1 : index
      %419 = arith.index_cast %319 : i32 to index
      %c0_255 = arith.constant 0 : index
      %420 = vector.load %arg22[%c1_254, %419, %c0_255] : memref<4x64x32xbf16, #tpu.memory_space<vmem>>, vector<1x32x32xbf16>
      %421 = vector.shape_cast %420 : vector<1x32x32xbf16> to vector<32x32xbf16>
      %422 = vector.shape_cast %418 : vector<32x32xbf16> to vector<1x32x32xbf16>
      tpu.vector_store %arg22[%c1_254, %419, %c0_255], %422 {strides = array<i32>} : memref<4x64x32xbf16, #tpu.memory_space<vmem>>, vector<1x32x32xbf16>,
      %423 = arith.truncf %406 : vector<32x32xf32> to vector<32x32xbf16>
      %c1_256 = arith.constant 1 : index
      %424 = arith.index_cast %319 : i32 to index
      %c0_257 = arith.constant 0 : index
      %425 = vector.load %arg23[%c1_256, %424, %c0_257] : memref<4x64x32xbf16, #tpu.memory_space<vmem>>, vector<1x32x32xbf16>
      %426 = vector.shape_cast %425 : vector<1x32x32xbf16> to vector<32x32xbf16>
      %427 = vector.shape_cast %423 : vector<32x32xbf16> to vector<1x32x32xbf16>
      tpu.vector_store %arg23[%c1_256, %424, %c0_257], %427 {strides = array<i32>} : memref<4x64x32xbf16, #tpu.memory_space<vmem>>, vector<1x32x32xbf16>,
      %428 = arith.truncf %417 : vector<32x128xf32> to vector<32x128xbf16>
      %c1_258 = arith.constant 1 : index
      %429 = arith.index_cast %319 : i32 to index
      %c0_259 = arith.constant 0 : index
      %430 = vector.load %arg24[%c1_258, %429, %c0_259] : memref<4x64x128xbf16, #tpu.memory_space<vmem>>, vector<1x32x128xbf16>
      %431 = vector.shape_cast %430 : vector<1x32x128xbf16> to vector<32x128xbf16>
      %432 = vector.shape_cast %428 : vector<32x128xbf16> to vector<1x32x128xbf16>
      tpu.vector_store %arg24[%c1_258, %429, %c0_259], %432 {strides = array<i32>} : memref<4x64x128xbf16, #tpu.memory_space<vmem>>, vector<1x32x128xbf16>,
      %c2_260 = arith.constant 2 : index
      %c0_261 = arith.constant 0 : index
      %c0_262 = arith.constant 0 : index
      %433 = vector.load %arg5[%c2_260, %c0_261, %c0_262] : memref<4x128x32xbf16, #tpu.memory_space<vmem>>, vector<1x128x32xbf16>
      %434 = vector.shape_cast %433 : vector<1x128x32xbf16> to vector<128x32xbf16>
      %cst_263 = arith.constant dense<0.000000e+00> : vector<32x32xf32>
      %435 = tpu.matmul %352, %434, %cst_263 {dimension_numbers = #tpu.dot_dimension_numbers<[1], [0], [0], [1], [0, 0, 1, 1], [], []>} : vector<32x128xbf16>, vector<128x32xbf16>, vector<32x32xf32> -> vector<32x32xf32>
      %c2_264 = arith.constant 2 : index
      %c0_265 = arith.constant 0 : index
      %c0_266 = arith.constant 0 : index
      %436 = vector.load %arg6[%c2_264, %c0_265, %c0_266] : memref<4x1x32xf32, #tpu.memory_space<vmem>>, vector<1x1x32xf32>
      %437 = vector.shape_cast %436 : vector<1x1x32xf32> to vector<1x32xf32>
      %438 = vector.broadcast %437 : vector<1x32xf32> to vector<32x32xf32>
      %439 = arith.addf %435, %438 : vector<32x32xf32>
      %c2_267 = arith.constant 2 : index
      %c0_268 = arith.constant 0 : index
      %c0_269 = arith.constant 0 : index
      %440 = vector.load %arg7[%c2_267, %c0_268, %c0_269] : memref<4x128x32xbf16, #tpu.memory_space<vmem>>, vector<1x128x32xbf16>
      %441 = vector.shape_cast %440 : vector<1x128x32xbf16> to vector<128x32xbf16>
      %cst_270 = arith.constant dense<0.000000e+00> : vector<32x32xf32>
      %442 = tpu.matmul %352, %441, %cst_270 {dimension_numbers = #tpu.dot_dimension_numbers<[1], [0], [0], [1], [0, 0, 1, 1], [], []>} : vector<32x128xbf16>, vector<128x32xbf16>, vector<32x32xf32> -> vector<32x32xf32>
      %c2_271 = arith.constant 2 : index
      %c0_272 = arith.constant 0 : index
      %c0_273 = arith.constant 0 : index
      %443 = vector.load %arg8[%c2_271, %c0_272, %c0_273] : memref<4x1x32xf32, #tpu.memory_space<vmem>>, vector<1x1x32xf32>
      %444 = vector.shape_cast %443 : vector<1x1x32xf32> to vector<1x32xf32>
      %445 = vector.broadcast %444 : vector<1x32xf32> to vector<32x32xf32>
      %446 = arith.addf %442, %445 : vector<32x32xf32>
      %c2_274 = arith.constant 2 : index
      %c0_275 = arith.constant 0 : index
      %c0_276 = arith.constant 0 : index
      %447 = vector.load %arg9[%c2_274, %c0_275, %c0_276] : memref<4x128x32xbf16, #tpu.memory_space<vmem>>, vector<1x128x32xbf16>
      %448 = vector.shape_cast %447 : vector<1x128x32xbf16> to vector<128x32xbf16>
      %cst_277 = arith.constant dense<0.000000e+00> : vector<32x32xf32>
      %449 = tpu.matmul %352, %448, %cst_277 {dimension_numbers = #tpu.dot_dimension_numbers<[1], [0], [0], [1], [0, 0, 1, 1], [], []>} : vector<32x128xbf16>, vector<128x32xbf16>, vector<32x32xf32> -> vector<32x32xf32>
      %c2_278 = arith.constant 2 : index
      %c0_279 = arith.constant 0 : index
      %c0_280 = arith.constant 0 : index
      %450 = vector.load %arg10[%c2_278, %c0_279, %c0_280] : memref<4x1x32xf32, #tpu.memory_space<vmem>>, vector<1x1x32xf32>
      %451 = vector.shape_cast %450 : vector<1x1x32xf32> to vector<1x32xf32>
      %452 = vector.broadcast %451 : vector<1x32xf32> to vector<32x32xf32>
      %453 = arith.addf %449, %452 : vector<32x32xf32>
      %454 = arith.truncf %453 : vector<32x32xf32> to vector<32x32xbf16>
      %c2_281 = arith.constant 2 : index
      %c0_282 = arith.constant 0 : index
      %c0_283 = arith.constant 0 : index
      %455 = vector.load %arg11[%c2_281, %c0_282, %c0_283] : memref<4x32x128xbf16, #tpu.memory_space<vmem>>, vector<1x32x128xbf16>
      %456 = vector.shape_cast %455 : vector<1x32x128xbf16> to vector<32x128xbf16>
      %cst_284 = arith.constant dense<0.000000e+00> : vector<32x128xf32>
      %457 = tpu.matmul %454, %456, %cst_284 {dimension_numbers = #tpu.dot_dimension_numbers<[1], [0], [0], [1], [0, 0, 1, 1], [], []>} : vector<32x32xbf16>, vector<32x128xbf16>, vector<32x128xf32> -> vector<32x128xf32>
      %458 = arith.truncf %439 : vector<32x32xf32> to vector<32x32xbf16>
      %c2_285 = arith.constant 2 : index
      %459 = arith.index_cast %319 : i32 to index
      %c0_286 = arith.constant 0 : index
      %460 = vector.load %arg22[%c2_285, %459, %c0_286] : memref<4x64x32xbf16, #tpu.memory_space<vmem>>, vector<1x32x32xbf16>
      %461 = vector.shape_cast %460 : vector<1x32x32xbf16> to vector<32x32xbf16>
      %462 = vector.shape_cast %458 : vector<32x32xbf16> to vector<1x32x32xbf16>
      tpu.vector_store %arg22[%c2_285, %459, %c0_286], %462 {strides = array<i32>} : memref<4x64x32xbf16, #tpu.memory_space<vmem>>, vector<1x32x32xbf16>,
      %463 = arith.truncf %446 : vector<32x32xf32> to vector<32x32xbf16>
      %c2_287 = arith.constant 2 : index
      %464 = arith.index_cast %319 : i32 to index
      %c0_288 = arith.constant 0 : index
      %465 = vector.load %arg23[%c2_287, %464, %c0_288] : memref<4x64x32xbf16, #tpu.memory_space<vmem>>, vector<1x32x32xbf16>
      %466 = vector.shape_cast %465 : vector<1x32x32xbf16> to vector<32x32xbf16>
      %467 = vector.shape_cast %463 : vector<32x32xbf16> to vector<1x32x32xbf16>
      tpu.vector_store %arg23[%c2_287, %464, %c0_288], %467 {strides = array<i32>} : memref<4x64x32xbf16, #tpu.memory_space<vmem>>, vector<1x32x32xbf16>,
      %468 = arith.truncf %457 : vector<32x128xf32> to vector<32x128xbf16>
      %c2_289 = arith.constant 2 : index
      %469 = arith.index_cast %319 : i32 to index
      %c0_290 = arith.constant 0 : index
      %470 = vector.load %arg24[%c2_289, %469, %c0_290] : memref<4x64x128xbf16, #tpu.memory_space<vmem>>, vector<1x32x128xbf16>
      %471 = vector.shape_cast %470 : vector<1x32x128xbf16> to vector<32x128xbf16>
      %472 = vector.shape_cast %468 : vector<32x128xbf16> to vector<1x32x128xbf16>
      tpu.vector_store %arg24[%c2_289, %469, %c0_290], %472 {strides = array<i32>} : memref<4x64x128xbf16, #tpu.memory_space<vmem>>, vector<1x32x128xbf16>,
      %c3_291 = arith.constant 3 : index
      %c0_292 = arith.constant 0 : index
      %c0_293 = arith.constant 0 : index
      %473 = vector.load %arg5[%c3_291, %c0_292, %c0_293] : memref<4x128x32xbf16, #tpu.memory_space<vmem>>, vector<1x128x32xbf16>
      %474 = vector.shape_cast %473 : vector<1x128x32xbf16> to vector<128x32xbf16>
      %cst_294 = arith.constant dense<0.000000e+00> : vector<32x32xf32>
      %475 = tpu.matmul %352, %474, %cst_294 {dimension_numbers = #tpu.dot_dimension_numbers<[1], [0], [0], [1], [0, 0, 1, 1], [], []>} : vector<32x128xbf16>, vector<128x32xbf16>, vector<32x32xf32> -> vector<32x32xf32>
      %c3_295 = arith.constant 3 : index
      %c0_296 = arith.constant 0 : index
      %c0_297 = arith.constant 0 : index
      %476 = vector.load %arg6[%c3_295, %c0_296, %c0_297] : memref<4x1x32xf32, #tpu.memory_space<vmem>>, vector<1x1x32xf32>
      %477 = vector.shape_cast %476 : vector<1x1x32xf32> to vector<1x32xf32>
      %478 = vector.broadcast %477 : vector<1x32xf32> to vector<32x32xf32>
      %479 = arith.addf %475, %478 : vector<32x32xf32>
      %c3_298 = arith.constant 3 : index
      %c0_299 = arith.constant 0 : index
      %c0_300 = arith.constant 0 : index
      %480 = vector.load %arg7[%c3_298, %c0_299, %c0_300] : memref<4x128x32xbf16, #tpu.memory_space<vmem>>, vector<1x128x32xbf16>
      %481 = vector.shape_cast %480 : vector<1x128x32xbf16> to vector<128x32xbf16>
      %cst_301 = arith.constant dense<0.000000e+00> : vector<32x32xf32>
      %482 = tpu.matmul %352, %481, %cst_301 {dimension_numbers = #tpu.dot_dimension_numbers<[1], [0], [0], [1], [0, 0, 1, 1], [], []>} : vector<32x128xbf16>, vector<128x32xbf16>, vector<32x32xf32> -> vector<32x32xf32>
      %c3_302 = arith.constant 3 : index
      %c0_303 = arith.constant 0 : index
      %c0_304 = arith.constant 0 : index
      %483 = vector.load %arg8[%c3_302, %c0_303, %c0_304] : memref<4x1x32xf32, #tpu.memory_space<vmem>>, vector<1x1x32xf32>
      %484 = vector.shape_cast %483 : vector<1x1x32xf32> to vector<1x32xf32>
      %485 = vector.broadcast %484 : vector<1x32xf32> to vector<32x32xf32>
      %486 = arith.addf %482, %485 : vector<32x32xf32>
      %c3_305 = arith.constant 3 : index
      %c0_306 = arith.constant 0 : index
      %c0_307 = arith.constant 0 : index
      %487 = vector.load %arg9[%c3_305, %c0_306, %c0_307] : memref<4x128x32xbf16, #tpu.memory_space<vmem>>, vector<1x128x32xbf16>
      %488 = vector.shape_cast %487 : vector<1x128x32xbf16> to vector<128x32xbf16>
      %cst_308 = arith.constant dense<0.000000e+00> : vector<32x32xf32>
      %489 = tpu.matmul %352, %488, %cst_308 {dimension_numbers = #tpu.dot_dimension_numbers<[1], [0], [0], [1], [0, 0, 1, 1], [], []>} : vector<32x128xbf16>, vector<128x32xbf16>, vector<32x32xf32> -> vector<32x32xf32>
      %c3_309 = arith.constant 3 : index
      %c0_310 = arith.constant 0 : index
      %c0_311 = arith.constant 0 : index
      %490 = vector.load %arg10[%c3_309, %c0_310, %c0_311] : memref<4x1x32xf32, #tpu.memory_space<vmem>>, vector<1x1x32xf32>
      %491 = vector.shape_cast %490 : vector<1x1x32xf32> to vector<1x32xf32>
      %492 = vector.broadcast %491 : vector<1x32xf32> to vector<32x32xf32>
      %493 = arith.addf %489, %492 : vector<32x32xf32>
      %494 = arith.truncf %493 : vector<32x32xf32> to vector<32x32xbf16>
      %c3_312 = arith.constant 3 : index
      %c0_313 = arith.constant 0 : index
      %c0_314 = arith.constant 0 : index
      %495 = vector.load %arg11[%c3_312, %c0_313, %c0_314] : memref<4x32x128xbf16, #tpu.memory_space<vmem>>, vector<1x32x128xbf16>
      %496 = vector.shape_cast %495 : vector<1x32x128xbf16> to vector<32x128xbf16>
      %cst_315 = arith.constant dense<0.000000e+00> : vector<32x128xf32>
      %497 = tpu.matmul %494, %496, %cst_315 {dimension_numbers = #tpu.dot_dimension_numbers<[1], [0], [0], [1], [0, 0, 1, 1], [], []>} : vector<32x32xbf16>, vector<32x128xbf16>, vector<32x128xf32> -> vector<32x128xf32>
      %498 = arith.truncf %479 : vector<32x32xf32> to vector<32x32xbf16>
      %c3_316 = arith.constant 3 : index
      %499 = arith.index_cast %319 : i32 to index
      %c0_317 = arith.constant 0 : index
      %500 = vector.load %arg22[%c3_316, %499, %c0_317] : memref<4x64x32xbf16, #tpu.memory_space<vmem>>, vector<1x32x32xbf16>
      %501 = vector.shape_cast %500 : vector<1x32x32xbf16> to vector<32x32xbf16>
      %502 = vector.shape_cast %498 : vector<32x32xbf16> to vector<1x32x32xbf16>
      tpu.vector_store %arg22[%c3_316, %499, %c0_317], %502 {strides = array<i32>} : memref<4x64x32xbf16, #tpu.memory_space<vmem>>, vector<1x32x32xbf16>,
      %503 = arith.truncf %486 : vector<32x32xf32> to vector<32x32xbf16>
      %c3_318 = arith.constant 3 : index
      %504 = arith.index_cast %319 : i32 to index
      %c0_319 = arith.constant 0 : index
      %505 = vector.load %arg23[%c3_318, %504, %c0_319] : memref<4x64x32xbf16, #tpu.memory_space<vmem>>, vector<1x32x32xbf16>
      %506 = vector.shape_cast %505 : vector<1x32x32xbf16> to vector<32x32xbf16>
      %507 = vector.shape_cast %503 : vector<32x32xbf16> to vector<1x32x32xbf16>
      tpu.vector_store %arg23[%c3_318, %504, %c0_319], %507 {strides = array<i32>} : memref<4x64x32xbf16, #tpu.memory_space<vmem>>, vector<1x32x32xbf16>,
      %508 = arith.truncf %497 : vector<32x128xf32> to vector<32x128xbf16>
      %c3_320 = arith.constant 3 : index
      %509 = arith.index_cast %319 : i32 to index
      %c0_321 = arith.constant 0 : index
      %510 = vector.load %arg24[%c3_320, %509, %c0_321] : memref<4x64x128xbf16, #tpu.memory_space<vmem>>, vector<1x32x128xbf16>
      %511 = vector.shape_cast %510 : vector<1x32x128xbf16> to vector<32x128xbf16>
      %512 = vector.shape_cast %508 : vector<32x128xbf16> to vector<1x32x128xbf16>
      tpu.vector_store %arg24[%c3_320, %509, %c0_321], %512 {strides = array<i32>} : memref<4x64x128xbf16, #tpu.memory_space<vmem>>, vector<1x32x128xbf16>,
      %c2_i32 = arith.constant 2 : i32
    } else {
    }
    %c32_i32 = arith.constant 32 : i32
    %3 = arith.muli %arg1, %c32_i32 : i32
    %4 = tpu.assume_multiple %3, 32 : i32
    %c0 = arith.constant 0 : index
    %5 = arith.index_cast %4 : i32 to index
    %c0_1 = arith.constant 0 : index
    %6 = vector.load %arg2[%c0, %5, %c0_1] : memref<1x64x128xbf16, #tpu.memory_space<vmem>>, vector<1x32x128xbf16>
    %7 = vector.shape_cast %6 : vector<1x32x128xbf16> to vector<32x128xbf16>
    %8 = arith.extf %7 : vector<32x128xbf16> to vector<32x128xf32>
    %c0_2 = arith.constant 0 : index
    %9 = arith.index_cast %4 : i32 to index
    %c0_3 = arith.constant 0 : index
    %10 = vector.load %arg22[%c0_2, %9, %c0_3] : memref<4x64x32xbf16, #tpu.memory_space<vmem>>, vector<4x32x32xbf16>
    %c0_4 = arith.constant 0 : index
    %c0_5 = arith.constant 0 : index
    %c0_6 = arith.constant 0 : index
    %11 = vector.load %arg23[%c0_4, %c0_5, %c0_6] : memref<4x64x32xbf16, #tpu.memory_space<vmem>>, vector<4x64x32xbf16>
    "tpu.trace_start"() <{level = 10 : i32, message = "hqd,hkd->hqk"}> : () -> ()
    %cst = arith.constant dense<0.000000e+00> : vector<4x32x64xf32>
    %12 = tpu.matmul %10, %11, %cst {dimension_numbers = #tpu.dot_dimension_numbers<[2], [2], [1], [1], [0, 0, 0, 1, 1, 1], [0], [0]>} : vector<4x32x32xbf16>, vector<4x64x32xbf16>, vector<4x32x64xf32> -> vector<4x32x64xf32>
    "tpu.trace_stop"() : () -> ()
    %cst_7 = arith.constant dense<0xFF800000> : vector<4x32xf32>
    %13 = vector.multi_reduction <maximumf>, %12, %cst_7 [2] : vector<4x32x64xf32> to vector<4x32xf32>
    %14 = vector.shape_cast %13 : vector<4x32xf32> to vector<4x32x1xf32>
    %15 = vector.broadcast %14 : vector<4x32x1xf32> to vector<4x32x64xf32>
    %16 = arith.subf %12, %15 : vector<4x32x64xf32>
    %17 = math.exp %16 : vector<4x32x64xf32>
    %cst_8 = arith.constant dense<0.000000e+00> : vector<4x32xf32>
    %18 = vector.multi_reduction <add>, %17, %cst_8 [2] : vector<4x32x64xf32> to vector<4x32xf32>
    %19 = vector.shape_cast %18 : vector<4x32xf32> to vector<4x32x1xf32>
    %20 = tpu.reciprocal %19 {approx = true} : vector<4x32x1xf32> -> vector<4x32x1xf32>
    %21 = arith.truncf %17 : vector<4x32x64xf32> to vector<4x32x64xbf16>
    %22 = vector.extract_strided_slice %21 {offsets = [0, 0, 0], sizes = [1, 32, 64], strides = [1, 1, 1]} : vector<4x32x64xbf16> to vector<1x32x64xbf16>
    %23 = vector.shape_cast %22 : vector<1x32x64xbf16> to vector<32x64xbf16>
    %c0_9 = arith.constant 0 : index
    %c0_10 = arith.constant 0 : index
    %c0_11 = arith.constant 0 : index
    %24 = vector.load %arg24[%c0_9, %c0_10, %c0_11] : memref<4x64x128xbf16, #tpu.memory_space<vmem>>, vector<1x64x128xbf16>
    %25 = vector.shape_cast %24 : vector<1x64x128xbf16> to vector<64x128xbf16>
    %cst_12 = arith.constant dense<0.000000e+00> : vector<32x128xf32>
    %26 = tpu.matmul %23, %25, %cst_12 {dimension_numbers = #tpu.dot_dimension_numbers<[1], [0], [0], [1], [0, 0, 1, 1], [], []>} : vector<32x64xbf16>, vector<64x128xbf16>, vector<32x128xf32> -> vector<32x128xf32>
    %27 = vector.extract_strided_slice %20 {offsets = [0, 0, 0], sizes = [1, 32, 1], strides = [1, 1, 1]} : vector<4x32x1xf32> to vector<1x32x1xf32>
    %28 = vector.shape_cast %27 : vector<1x32x1xf32> to vector<32x1xf32>
    %29 = vector.broadcast %28 : vector<32x1xf32> to vector<32x128xf32>
    %30 = arith.mulf %26, %29 : vector<32x128xf32>
    %31 = vector.extract_strided_slice %21 {offsets = [1, 0, 0], sizes = [1, 32, 64], strides = [1, 1, 1]} : vector<4x32x64xbf16> to vector<1x32x64xbf16>
    %32 = vector.shape_cast %31 : vector<1x32x64xbf16> to vector<32x64xbf16>
    %c1 = arith.constant 1 : index
    %c0_13 = arith.constant 0 : index
    %c0_14 = arith.constant 0 : index
    %33 = vector.load %arg24[%c1, %c0_13, %c0_14] : memref<4x64x128xbf16, #tpu.memory_space<vmem>>, vector<1x64x128xbf16>
    %34 = vector.shape_cast %33 : vector<1x64x128xbf16> to vector<64x128xbf16>
    %cst_15 = arith.constant dense<0.000000e+00> : vector<32x128xf32>
    %35 = tpu.matmul %32, %34, %cst_15 {dimension_numbers = #tpu.dot_dimension_numbers<[1], [0], [0], [1], [0, 0, 1, 1], [], []>} : vector<32x64xbf16>, vector<64x128xbf16>, vector<32x128xf32> -> vector<32x128xf32>
    %36 = vector.extract_strided_slice %20 {offsets = [1, 0, 0], sizes = [1, 32, 1], strides = [1, 1, 1]} : vector<4x32x1xf32> to vector<1x32x1xf32>
    %37 = vector.shape_cast %36 : vector<1x32x1xf32> to vector<32x1xf32>
    %38 = vector.broadcast %37 : vector<32x1xf32> to vector<32x128xf32>
    %39 = arith.mulf %35, %38 : vector<32x128xf32>
    %40 = arith.addf %30, %39 : vector<32x128xf32>
    %41 = vector.extract_strided_slice %21 {offsets = [2, 0, 0], sizes = [1, 32, 64], strides = [1, 1, 1]} : vector<4x32x64xbf16> to vector<1x32x64xbf16>
    %42 = vector.shape_cast %41 : vector<1x32x64xbf16> to vector<32x64xbf16>
    %c2 = arith.constant 2 : index
    %c0_16 = arith.constant 0 : index
    %c0_17 = arith.constant 0 : index
    %43 = vector.load %arg24[%c2, %c0_16, %c0_17] : memref<4x64x128xbf16, #tpu.memory_space<vmem>>, vector<1x64x128xbf16>
    %44 = vector.shape_cast %43 : vector<1x64x128xbf16> to vector<64x128xbf16>
    %cst_18 = arith.constant dense<0.000000e+00> : vector<32x128xf32>
    %45 = tpu.matmul %42, %44, %cst_18 {dimension_numbers = #tpu.dot_dimension_numbers<[1], [0], [0], [1], [0, 0, 1, 1], [], []>} : vector<32x64xbf16>, vector<64x128xbf16>, vector<32x128xf32> -> vector<32x128xf32>
    %46 = vector.extract_strided_slice %20 {offsets = [2, 0, 0], sizes = [1, 32, 1], strides = [1, 1, 1]} : vector<4x32x1xf32> to vector<1x32x1xf32>
    %47 = vector.shape_cast %46 : vector<1x32x1xf32> to vector<32x1xf32>
    %48 = vector.broadcast %47 : vector<32x1xf32> to vector<32x128xf32>
    %49 = arith.mulf %45, %48 : vector<32x128xf32>
    %50 = arith.addf %40, %49 : vector<32x128xf32>
    %51 = vector.extract_strided_slice %21 {offsets = [3, 0, 0], sizes = [1, 32, 64], strides = [1, 1, 1]} : vector<4x32x64xbf16> to vector<1x32x64xbf16>
    %52 = vector.shape_cast %51 : vector<1x32x64xbf16> to vector<32x64xbf16>
    %c3 = arith.constant 3 : index
    %c0_19 = arith.constant 0 : index
    %c0_20 = arith.constant 0 : index
    %53 = vector.load %arg24[%c3, %c0_19, %c0_20] : memref<4x64x128xbf16, #tpu.memory_space<vmem>>, vector<1x64x128xbf16>
    %54 = vector.shape_cast %53 : vector<1x64x128xbf16> to vector<64x128xbf16>
    %cst_21 = arith.constant dense<0.000000e+00> : vector<32x128xf32>
    %55 = tpu.matmul %52, %54, %cst_21 {dimension_numbers = #tpu.dot_dimension_numbers<[1], [0], [0], [1], [0, 0, 1, 1], [], []>} : vector<32x64xbf16>, vector<64x128xbf16>, vector<32x128xf32> -> vector<32x128xf32>
    %56 = vector.extract_strided_slice %20 {offsets = [3, 0, 0], sizes = [1, 32, 1], strides = [1, 1, 1]} : vector<4x32x1xf32> to vector<1x32x1xf32>
    %57 = vector.shape_cast %56 : vector<1x32x1xf32> to vector<32x1xf32>
    %58 = vector.broadcast %57 : vector<32x1xf32> to vector<32x128xf32>
    %59 = arith.mulf %55, %58 : vector<32x128xf32>
    %60 = arith.addf %50, %59 : vector<32x128xf32>
    %61 = arith.addf %8, %60 : vector<32x128xf32>
    %c0_22 = arith.constant 0 : index
    %c0_23 = arith.constant 0 : index
    %62 = vector.load %arg12[%c0_22, %c0_23] : memref<1x128xf32, #tpu.memory_space<vmem>>, vector<1x128xf32>
    %63 = vector.shape_cast %62 : vector<1x128xf32> to vector<128xf32>
    %64 = vector.shape_cast %63 : vector<128xf32> to vector<1x128xf32>
    %65 = vector.broadcast %64 : vector<1x128xf32> to vector<32x128xf32>
    %66 = arith.addf %61, %65 : vector<32x128xf32>
    %c0_24 = arith.constant 0 : index
    %c0_25 = arith.constant 0 : index
    %67 = vector.load %arg13[%c0_24, %c0_25] : memref<1x128xf32, #tpu.memory_space<vmem>>, vector<1x128xf32>
    %68 = vector.shape_cast %67 : vector<1x128xf32> to vector<128xf32>
    %c0_26 = arith.constant 0 : index
    %c0_27 = arith.constant 0 : index
    %69 = vector.load %arg14[%c0_26, %c0_27] : memref<1x128xf32, #tpu.memory_space<vmem>>, vector<1x128xf32>
    %70 = vector.shape_cast %69 : vector<1x128xf32> to vector<128xf32>
    %cst_28 = arith.constant dense<0.000000e+00> : vector<32xf32>
    %71 = vector.multi_reduction <add>, %66, %cst_28 [1] : vector<32x128xf32> to vector<32xf32>
    %72 = vector.shape_cast %71 : vector<32xf32> to vector<32x1xf32>
    %cst_29 = arith.constant 1.280000e+02 : f32
    %73 = vector.broadcast %cst_29 : f32 to vector<32x1xf32>
    %74 = arith.divf %72, %73 : vector<32x1xf32>
    %75 = vector.broadcast %74 : vector<32x1xf32> to vector<32x128xf32>
    %76 = arith.subf %66, %75 : vector<32x128xf32>
    %77 = arith.mulf %76, %76 : vector<32x128xf32>
    %cst_30 = arith.constant dense<0.000000e+00> : vector<32xf32>
    %78 = vector.multi_reduction <add>, %77, %cst_30 [1] : vector<32x128xf32> to vector<32xf32>
    %79 = vector.shape_cast %78 : vector<32xf32> to vector<32x1xf32>
    %cst_31 = arith.constant 1.280000e+02 : f32
    %80 = vector.broadcast %cst_31 : f32 to vector<32x1xf32>
    %81 = arith.divf %79, %80 : vector<32x1xf32>
    %82 = vector.broadcast %74 : vector<32x1xf32> to vector<32x128xf32>
    %83 = arith.subf %66, %82 : vector<32x128xf32>
    %cst_32 = arith.constant 9.99999974E-6 : f32
    %84 = vector.broadcast %cst_32 : f32 to vector<32x1xf32>
    %85 = arith.addf %81, %84 : vector<32x1xf32>
    %86 = math.rsqrt %85 : vector<32x1xf32>
    %87 = vector.broadcast %86 : vector<32x1xf32> to vector<32x128xf32>
    %88 = arith.mulf %83, %87 : vector<32x128xf32>
    %89 = vector.shape_cast %68 : vector<128xf32> to vector<1x128xf32>
    %90 = vector.broadcast %89 : vector<1x128xf32> to vector<32x128xf32>
    %91 = arith.mulf %88, %90 : vector<32x128xf32>
    %92 = vector.shape_cast %70 : vector<128xf32> to vector<1x128xf32>
    %93 = vector.broadcast %92 : vector<1x128xf32> to vector<32x128xf32>
    %94 = arith.addf %91, %93 : vector<32x128xf32>
    %95 = arith.truncf %94 : vector<32x128xf32> to vector<32x128xbf16>
    %c0_33 = arith.constant 0 : index
    %c0_34 = arith.constant 0 : index
    %96 = vector.load %arg15[%c0_33, %c0_34] : memref<128x256xbf16, #tpu.memory_space<vmem>>, vector<128x256xbf16>
    %cst_35 = arith.constant dense<0.000000e+00> : vector<32x256xf32>
    %97 = tpu.matmul %95, %96, %cst_35 {dimension_numbers = #tpu.dot_dimension_numbers<[1], [0], [0], [1], [0, 0, 1, 1], [], []>} : vector<32x128xbf16>, vector<128x256xbf16>, vector<32x256xf32> -> vector<32x256xf32>
    %c0_36 = arith.constant 0 : index
    %c0_37 = arith.constant 0 : index
    %98 = vector.load %arg16[%c0_36, %c0_37] : memref<1x256xf32, #tpu.memory_space<vmem>>, vector<1x256xf32>
    %99 = vector.shape_cast %98 : vector<1x256xf32> to vector<256xf32>
    %100 = vector.shape_cast %99 : vector<256xf32> to vector<1x256xf32>
    %101 = vector.broadcast %100 : vector<1x256xf32> to vector<32x256xf32>
    %102 = arith.addf %97, %101 : vector<32x256xf32>
    %cst_38 = arith.constant 5.000000e-01 : f32
    %103 = vector.broadcast %cst_38 : f32 to vector<32x256xf32>
    %104 = arith.mulf %103, %102 : vector<32x256xf32>
    %cst_39 = arith.constant 0.707106769 : f32
    %105 = vector.broadcast %cst_39 : f32 to vector<32x256xf32>
    %106 = arith.mulf %102, %105 : vector<32x256xf32>
    %107 = math.erf %106 : vector<32x256xf32>
    %cst_40 = arith.constant 1.000000e+00 : f32
    %108 = vector.broadcast %cst_40 : f32 to vector<32x256xf32>
    %109 = arith.addf %108, %107 : vector<32x256xf32>
    %110 = arith.mulf %104, %109 : vector<32x256xf32>
    %111 = arith.truncf %110 : vector<32x256xf32> to vector<32x256xbf16>
    %c0_41 = arith.constant 0 : index
    %c0_42 = arith.constant 0 : index
    %112 = vector.load %arg17[%c0_41, %c0_42] : memref<256x128xbf16, #tpu.memory_space<vmem>>, vector<256x128xbf16>
    %cst_43 = arith.constant dense<0.000000e+00> : vector<32x128xf32>
    %113 = tpu.matmul %111, %112, %cst_43 {dimension_numbers = #tpu.dot_dimension_numbers<[1], [0], [0], [1], [0, 0, 1, 1], [], []>} : vector<32x256xbf16>, vector<256x128xbf16>, vector<32x128xf32> -> vector<32x128xf32>
    %c0_44 = arith.constant 0 : index
    %c0_45 = arith.constant 0 : index
    %114 = vector.load %arg18[%c0_44, %c0_45] : memref<1x128xf32, #tpu.memory_space<vmem>>, vector<1x128xf32>
    %115 = vector.shape_cast %114 : vector<1x128xf32> to vector<128xf32>
    %116 = vector.shape_cast %115 : vector<128xf32> to vector<1x128xf32>
    %117 = vector.broadcast %116 : vector<1x128xf32> to vector<32x128xf32>
    %118 = arith.addf %113, %117 : vector<32x128xf32>
    %119 = arith.addf %66, %118 : vector<32x128xf32>
    %120 = vector.shape_cast %119 : vector<32x128xf32> to vector<1x32x128xf32>
    %121 = arith.truncf %120 : vector<1x32x128xf32> to vector<1x32x128xbf16>
    %c0_46 = arith.constant 0 : index
    %c0_47 = arith.constant 0 : index
    %c0_48 = arith.constant 0 : index
    %122 = vector.load %arg21[%c0_46, %c0_47, %c0_48] : memref<1x32x128xbf16, #tpu.memory_space<vmem>>, vector<1x32x128xbf16>
    tpu.vector_store %arg21[%c0_46, %c0_47, %c0_48], %121 {strides = array<i32>} : memref<1x32x128xbf16, #tpu.memory_space<vmem>>, vector<1x32x128xbf16>,
    return
  }
  func.func @transform_0(%arg0: i32, %arg1: i32) -> (i32, i32, i32) {
    %c0_i32 = arith.constant 0 : i32
    %c0_i32_0 = arith.constant 0 : i32
    %c0_i32_1 = arith.constant 0 : i32
    return %arg0, %c0_i32, %c0_i32_0 : i32, i32, i32
  }
  func.func @transform_1(%arg0: i32, %arg1: i32) -> (i32, i32) {
    %c0_i32 = arith.constant 0 : i32
    %c0_i32_0 = arith.constant 0 : i32
    %c0_i32_1 = arith.constant 0 : i32
    return %c0_i32, %c0_i32_0 : i32, i32
  }
  func.func @transform_2(%arg0: i32, %arg1: i32) -> (i32, i32) {
    %c0_i32 = arith.constant 0 : i32
    %c0_i32_0 = arith.constant 0 : i32
    %c0_i32_1 = arith.constant 0 : i32
    return %c0_i32, %c0_i32_0 : i32, i32
  }
  func.func @transform_3(%arg0: i32, %arg1: i32) -> (i32, i32, i32) {
    %c0_i32 = arith.constant 0 : i32
    %c0_i32_0 = arith.constant 0 : i32
    %c0_i32_1 = arith.constant 0 : i32
    %c0_i32_2 = arith.constant 0 : i32
    return %c0_i32, %c0_i32_0, %c0_i32_1 : i32, i32, i32
  }
  func.func @transform_4(%arg0: i32, %arg1: i32) -> (i32, i32, i32) {
    %c0_i32 = arith.constant 0 : i32
    %c0_i32_0 = arith.constant 0 : i32
    %c0_i32_1 = arith.constant 0 : i32
    %c0_i32_2 = arith.constant 0 : i32
    return %c0_i32, %c0_i32_0, %c0_i32_1 : i32, i32, i32
  }
  func.func @transform_5(%arg0: i32, %arg1: i32) -> (i32, i32, i32) {
    %c0_i32 = arith.constant 0 : i32
    %c0_i32_0 = arith.constant 0 : i32
    %c0_i32_1 = arith.constant 0 : i32
    %c0_i32_2 = arith.constant 0 : i32
    return %c0_i32, %c0_i32_0, %c0_i32_1 : i32, i32, i32
  }
  func.func @transform_6(%arg0: i32, %arg1: i32) -> (i32, i32, i32) {
    %c0_i32 = arith.constant 0 : i32
    %c0_i32_0 = arith.constant 0 : i32
    %c0_i32_1 = arith.constant 0 : i32
    %c0_i32_2 = arith.constant 0 : i32
    return %c0_i32, %c0_i32_0, %c0_i32_1 : i32, i32, i32
  }
  func.func @transform_7(%arg0: i32, %arg1: i32) -> (i32, i32, i32) {
    %c0_i32 = arith.constant 0 : i32
    %c0_i32_0 = arith.constant 0 : i32
    %c0_i32_1 = arith.constant 0 : i32
    %c0_i32_2 = arith.constant 0 : i32
    return %c0_i32, %c0_i32_0, %c0_i32_1 : i32, i32, i32
  }
  func.func @transform_8(%arg0: i32, %arg1: i32) -> (i32, i32, i32) {
    %c0_i32 = arith.constant 0 : i32
    %c0_i32_0 = arith.constant 0 : i32
    %c0_i32_1 = arith.constant 0 : i32
    %c0_i32_2 = arith.constant 0 : i32
    return %c0_i32, %c0_i32_0, %c0_i32_1 : i32, i32, i32
  }
  func.func @transform_9(%arg0: i32, %arg1: i32) -> (i32, i32, i32) {
    %c0_i32 = arith.constant 0 : i32
    %c0_i32_0 = arith.constant 0 : i32
    %c0_i32_1 = arith.constant 0 : i32
    %c0_i32_2 = arith.constant 0 : i32
    return %c0_i32, %c0_i32_0, %c0_i32_1 : i32, i32, i32
  }
  func.func @transform_10(%arg0: i32, %arg1: i32) -> (i32, i32) {
    %c0_i32 = arith.constant 0 : i32
    %c0_i32_0 = arith.constant 0 : i32
    %c0_i32_1 = arith.constant 0 : i32
    return %c0_i32, %c0_i32_0 : i32, i32
  }
  func.func @transform_11(%arg0: i32, %arg1: i32) -> (i32, i32) {
    %c0_i32 = arith.constant 0 : i32
    %c0_i32_0 = arith.constant 0 : i32
    %c0_i32_1 = arith.constant 0 : i32
    return %c0_i32, %c0_i32_0 : i32, i32
  }
  func.func @transform_12(%arg0: i32, %arg1: i32) -> (i32, i32) {
    %c0_i32 = arith.constant 0 : i32
    %c0_i32_0 = arith.constant 0 : i32
    %c0_i32_1 = arith.constant 0 : i32
    return %c0_i32, %c0_i32_0 : i32, i32
  }
  func.func @transform_13(%arg0: i32, %arg1: i32) -> (i32, i32) {
    %c0_i32 = arith.constant 0 : i32
    %c0_i32_0 = arith.constant 0 : i32
    %c0_i32_1 = arith.constant 0 : i32
    return %c0_i32, %c0_i32_0 : i32, i32
  }
  func.func @transform_14(%arg0: i32, %arg1: i32) -> (i32, i32) {
    %c0_i32 = arith.constant 0 : i32
    %c0_i32_0 = arith.constant 0 : i32
    %c0_i32_1 = arith.constant 0 : i32
    return %c0_i32, %c0_i32_0 : i32, i32
  }
  func.func @transform_15(%arg0: i32, %arg1: i32) -> (i32, i32) {
    %c0_i32 = arith.constant 0 : i32
    %c0_i32_0 = arith.constant 0 : i32
    %c0_i32_1 = arith.constant 0 : i32
    return %c0_i32, %c0_i32_0 : i32, i32
  }
  func.func @transform_16(%arg0: i32, %arg1: i32) -> (i32, i32) {
    %c0_i32 = arith.constant 0 : i32
    %c0_i32_0 = arith.constant 0 : i32
    %c0_i32_1 = arith.constant 0 : i32
    return %c0_i32, %c0_i32_0 : i32, i32
  }
  func.func @transform_17(%arg0: i32, %arg1: i32) -> (i32, i32) {
    %c0_i32 = arith.constant 0 : i32
    %c0_i32_0 = arith.constant 0 : i32
    %c0_i32_1 = arith.constant 0 : i32
    return %c0_i32, %c0_i32_0 : i32, i32
  }
  func.func @transform_18(%arg0: i32, %arg1: i32) -> (i32, i32) {
    %c0_i32 = arith.constant 0 : i32
    %c0_i32_0 = arith.constant 0 : i32
    %c0_i32_1 = arith.constant 0 : i32
    return %c0_i32, %c0_i32_0 : i32, i32
  }
  func.func @transform_19(%arg0: i32, %arg1: i32) -> (i32, i32, i32) {
    %c0_i32 = arith.constant 0 : i32
    %c0_i32_0 = arith.constant 0 : i32
    return %arg0, %arg1, %c0_i32 : i32, i32, i32
  }
}

module attributes {stable_mosaic.version = 11 : i64} {
  func.func @block_kernel(%arg0: i32, %arg1: i32, %arg2: memref<1x64x128xbf16, #tpu.memory_space<vmem>>, %arg3: memref<1x128xf32, #tpu.memory_space<vmem>>, %arg4: memref<1x128xf32, #tpu.memory_space<vmem>>, %arg5: memref<4x128x32xbf16, #tpu.memory_space<vmem>>, %arg6: memref<4x1x32xf32, #tpu.memory_space<vmem>>, %arg7: memref<4x128x32xbf16, #tpu.memory_space<vmem>>, %arg8: memref<4x1x32xf32, #tpu.memory_space<vmem>>, %arg9: memref<4x128x32xbf16, #tpu.memory_space<vmem>>, %arg10: memref<4x1x32xf32, #tpu.memory_space<vmem>>, %arg11: memref<4x32x128xbf16, #tpu.memory_space<vmem>>, %arg12: memref<1x128xf32, #tpu.memory_space<vmem>>, %arg13: memref<1x128xf32, #tpu.memory_space<vmem>>, %arg14: memref<1x128xf32, #tpu.memory_space<vmem>>, %arg15: memref<128x256xbf16, #tpu.memory_space<vmem>>, %arg16: memref<1x256xf32, #tpu.memory_space<vmem>>, %arg17: memref<256x128xbf16, #tpu.memory_space<vmem>>, %arg18: memref<1x128xf32, #tpu.memory_space<vmem>>, %arg19: memref<1x128xf32, #tpu.memory_space<vmem>>, %arg20: memref<1x128xf32, #tpu.memory_space<vmem>>, %arg21: memref<1x32x128xf32, #tpu.memory_space<vmem>>, %arg22: memref<4x64x32xbf16, #tpu.memory_space<vmem>>, %arg23: memref<4x64x32xbf16, #tpu.memory_space<vmem>>, %arg24: memref<4x64x128xbf16, #tpu.memory_space<vmem>>) attributes {dimension_semantics = [#tpu.dimension_semantics<parallel>, #tpu.dimension_semantics<arbitrary>], iteration_bounds = array<i64: 2, 2>, scalar_prefetch = 0 : i64, scratch_operands = 3 : i64, tpu.core_type = #tpu.core_type<tc>, window_params = [{transform_indices = @transform_0, window_bounds = array<i64: 1, 64, 128>}, {pipeline_mode = #tpu.pipeline_mode<synchronous>, transform_indices = @transform_1, window_bounds = array<i64: 1, 128>}, {pipeline_mode = #tpu.pipeline_mode<synchronous>, transform_indices = @transform_2, window_bounds = array<i64: 1, 128>}, {pipeline_mode = #tpu.pipeline_mode<synchronous>, transform_indices = @transform_3, window_bounds = array<i64: 4, 128, 32>}, {pipeline_mode = #tpu.pipeline_mode<synchronous>, transform_indices = @transform_4, window_bounds = array<i64: 4, 1, 32>}, {pipeline_mode = #tpu.pipeline_mode<synchronous>, transform_indices = @transform_5, window_bounds = array<i64: 4, 128, 32>}, {pipeline_mode = #tpu.pipeline_mode<synchronous>, transform_indices = @transform_6, window_bounds = array<i64: 4, 1, 32>}, {pipeline_mode = #tpu.pipeline_mode<synchronous>, transform_indices = @transform_7, window_bounds = array<i64: 4, 128, 32>}, {pipeline_mode = #tpu.pipeline_mode<synchronous>, transform_indices = @transform_8, window_bounds = array<i64: 4, 1, 32>}, {pipeline_mode = #tpu.pipeline_mode<synchronous>, transform_indices = @transform_9, window_bounds = array<i64: 4, 32, 128>}, {pipeline_mode = #tpu.pipeline_mode<synchronous>, transform_indices = @transform_10, window_bounds = array<i64: 1, 128>}, {pipeline_mode = #tpu.pipeline_mode<synchronous>, transform_indices = @transform_11, window_bounds = array<i64: 1, 128>}, {pipeline_mode = #tpu.pipeline_mode<synchronous>, transform_indices = @transform_12, window_bounds = array<i64: 1, 128>}, {pipeline_mode = #tpu.pipeline_mode<synchronous>, transform_indices = @transform_13, window_bounds = array<i64: 128, 256>}, {pipeline_mode = #tpu.pipeline_mode<synchronous>, transform_indices = @transform_14, window_bounds = array<i64: 1, 256>}, {pipeline_mode = #tpu.pipeline_mode<synchronous>, transform_indices = @transform_15, window_bounds = array<i64: 256, 128>}, {pipeline_mode = #tpu.pipeline_mode<synchronous>, transform_indices = @transform_16, window_bounds = array<i64: 1, 128>}, {pipeline_mode = #tpu.pipeline_mode<synchronous>, transform_indices = @transform_17, window_bounds = array<i64: 1, 128>}, {pipeline_mode = #tpu.pipeline_mode<synchronous>, transform_indices = @transform_18, window_bounds = array<i64: 1, 128>}, {transform_indices = @transform_19, window_bounds = array<i64: 1, 32, 128>}]} {
    %c0_i32 = arith.constant 0 : i32
    %0 = arith.cmpi eq, %arg1, %c0_i32 : i32
    %1 = arith.extui %0 : i1 to i32
    %c0_i32_0 = arith.constant 0 : i32
    %2 = arith.cmpi ne, %1, %c0_i32_0 : i32
    scf.if %2 {
      %c0_i32_58 = arith.constant 0 : i32
      %c32_i32_59 = arith.constant 32 : i32
      %150 = arith.muli %c0_i32_58, %c32_i32_59 : i32
      %151 = tpu.assume_multiple %150, 32 : i32
      %c0_60 = arith.constant 0 : index
      %152 = arith.index_cast %151 : i32 to index
      %c0_61 = arith.constant 0 : index
      %153 = vector.load %arg2[%c0_60, %152, %c0_61] : memref<1x64x128xbf16, #tpu.memory_space<vmem>>, vector<1x32x128xbf16>
      %154 = vector.shape_cast %153 : vector<1x32x128xbf16> to vector<32x128xbf16>
      %155 = arith.extf %154 : vector<32x128xbf16> to vector<32x128xf32>
      %c0_62 = arith.constant 0 : index
      %c0_63 = arith.constant 0 : index
      %156 = vector.load %arg3[%c0_62, %c0_63] : memref<1x128xf32, #tpu.memory_space<vmem>>, vector<1x128xf32>
      %157 = vector.shape_cast %156 : vector<1x128xf32> to vector<128xf32>
      %c0_64 = arith.constant 0 : index
      %c0_65 = arith.constant 0 : index
      %158 = vector.load %arg4[%c0_64, %c0_65] : memref<1x128xf32, #tpu.memory_space<vmem>>, vector<1x128xf32>
      %159 = vector.shape_cast %158 : vector<1x128xf32> to vector<128xf32>
      %cst_66 = arith.constant dense<0.000000e+00> : vector<32xf32>
      %160 = vector.multi_reduction <add>, %155, %cst_66 [1] : vector<32x128xf32> to vector<32xf32>
      %161 = vector.shape_cast %160 : vector<32xf32> to vector<32x1xf32>
      %cst_67 = arith.constant 1.280000e+02 : f32
      %162 = vector.broadcast %cst_67 : f32 to vector<32x1xf32>
      %163 = arith.divf %161, %162 : vector<32x1xf32>
      %164 = vector.broadcast %163 : vector<32x1xf32> to vector<32x128xf32>
      %165 = arith.subf %155, %164 : vector<32x128xf32>
      %166 = arith.mulf %165, %165 : vector<32x128xf32>
      %cst_68 = arith.constant dense<0.000000e+00> : vector<32xf32>
      %167 = vector.multi_reduction <add>, %166, %cst_68 [1] : vector<32x128xf32> to vector<32xf32>
      %168 = vector.shape_cast %167 : vector<32xf32> to vector<32x1xf32>
      %cst_69 = arith.constant 1.280000e+02 : f32
      %169 = vector.broadcast %cst_69 : f32 to vector<32x1xf32>
      %170 = arith.divf %168, %169 : vector<32x1xf32>
      %171 = vector.broadcast %163 : vector<32x1xf32> to vector<32x128xf32>
      %172 = arith.subf %155, %171 : vector<32x128xf32>
      %cst_70 = arith.constant 9.99999974E-6 : f32
      %173 = vector.broadcast %cst_70 : f32 to vector<32x1xf32>
      %174 = arith.addf %170, %173 : vector<32x1xf32>
      %175 = math.rsqrt %174 : vector<32x1xf32>
      %176 = vector.broadcast %175 : vector<32x1xf32> to vector<32x128xf32>
      %177 = arith.mulf %172, %176 : vector<32x128xf32>
      %178 = vector.shape_cast %157 : vector<128xf32> to vector<1x128xf32>
      %179 = vector.broadcast %178 : vector<1x128xf32> to vector<32x128xf32>
      %180 = arith.mulf %177, %179 : vector<32x128xf32>
      %181 = vector.shape_cast %159 : vector<128xf32> to vector<1x128xf32>
      %182 = vector.broadcast %181 : vector<1x128xf32> to vector<32x128xf32>
      %183 = arith.addf %180, %182 : vector<32x128xf32>
      %184 = arith.truncf %183 : vector<32x128xf32> to vector<32x128xbf16>
      %c0_71 = arith.constant 0 : index
      %c0_72 = arith.constant 0 : index
      %c0_73 = arith.constant 0 : index
      %185 = vector.load %arg5[%c0_71, %c0_72, %c0_73] : memref<4x128x32xbf16, #tpu.memory_space<vmem>>, vector<1x128x32xbf16>
      %186 = vector.shape_cast %185 : vector<1x128x32xbf16> to vector<128x32xbf16>
      %cst_74 = arith.constant dense<0.000000e+00> : vector<32x32xf32>
      %187 = tpu.matmul %184, %186, %cst_74 {dimension_numbers = #tpu.dot_dimension_numbers<[1], [0], [0], [1], [0, 0, 1, 1], [], []>} : vector<32x128xbf16>, vector<128x32xbf16>, vector<32x32xf32> -> vector<32x32xf32>
      %c0_75 = arith.constant 0 : index
      %c0_76 = arith.constant 0 : index
      %c0_77 = arith.constant 0 : index
      %188 = vector.load %arg6[%c0_75, %c0_76, %c0_77] : memref<4x1x32xf32, #tpu.memory_space<vmem>>, vector<1x1x32xf32>
      %189 = vector.shape_cast %188 : vector<1x1x32xf32> to vector<1x32xf32>
      %190 = vector.broadcast %189 : vector<1x32xf32> to vector<32x32xf32>
      %191 = arith.addf %187, %190 : vector<32x32xf32>
      %c0_78 = arith.constant 0 : index
      %c0_79 = arith.constant 0 : index
      %c0_80 = arith.constant 0 : index
      %192 = vector.load %arg7[%c0_78, %c0_79, %c0_80] : memref<4x128x32xbf16, #tpu.memory_space<vmem>>, vector<1x128x32xbf16>
      %193 = vector.shape_cast %192 : vector<1x128x32xbf16> to vector<128x32xbf16>
      %cst_81 = arith.constant dense<0.000000e+00> : vector<32x32xf32>
      %194 = tpu.matmul %184, %193, %cst_81 {dimension_numbers = #tpu.dot_dimension_numbers<[1], [0], [0], [1], [0, 0, 1, 1], [], []>} : vector<32x128xbf16>, vector<128x32xbf16>, vector<32x32xf32> -> vector<32x32xf32>
      %c0_82 = arith.constant 0 : index
      %c0_83 = arith.constant 0 : index
      %c0_84 = arith.constant 0 : index
      %195 = vector.load %arg8[%c0_82, %c0_83, %c0_84] : memref<4x1x32xf32, #tpu.memory_space<vmem>>, vector<1x1x32xf32>
      %196 = vector.shape_cast %195 : vector<1x1x32xf32> to vector<1x32xf32>
      %197 = vector.broadcast %196 : vector<1x32xf32> to vector<32x32xf32>
      %198 = arith.addf %194, %197 : vector<32x32xf32>
      %c0_85 = arith.constant 0 : index
      %c0_86 = arith.constant 0 : index
      %c0_87 = arith.constant 0 : index
      %199 = vector.load %arg9[%c0_85, %c0_86, %c0_87] : memref<4x128x32xbf16, #tpu.memory_space<vmem>>, vector<1x128x32xbf16>
      %200 = vector.shape_cast %199 : vector<1x128x32xbf16> to vector<128x32xbf16>
      %cst_88 = arith.constant dense<0.000000e+00> : vector<32x32xf32>
      %201 = tpu.matmul %184, %200, %cst_88 {dimension_numbers = #tpu.dot_dimension_numbers<[1], [0], [0], [1], [0, 0, 1, 1], [], []>} : vector<32x128xbf16>, vector<128x32xbf16>, vector<32x32xf32> -> vector<32x32xf32>
      %c0_89 = arith.constant 0 : index
      %c0_90 = arith.constant 0 : index
      %c0_91 = arith.constant 0 : index
      %202 = vector.load %arg10[%c0_89, %c0_90, %c0_91] : memref<4x1x32xf32, #tpu.memory_space<vmem>>, vector<1x1x32xf32>
      %203 = vector.shape_cast %202 : vector<1x1x32xf32> to vector<1x32xf32>
      %204 = vector.broadcast %203 : vector<1x32xf32> to vector<32x32xf32>
      %205 = arith.addf %201, %204 : vector<32x32xf32>
      %206 = arith.truncf %205 : vector<32x32xf32> to vector<32x32xbf16>
      %c0_92 = arith.constant 0 : index
      %c0_93 = arith.constant 0 : index
      %c0_94 = arith.constant 0 : index
      %207 = vector.load %arg11[%c0_92, %c0_93, %c0_94] : memref<4x32x128xbf16, #tpu.memory_space<vmem>>, vector<1x32x128xbf16>
      %208 = vector.shape_cast %207 : vector<1x32x128xbf16> to vector<32x128xbf16>
      %cst_95 = arith.constant dense<0.000000e+00> : vector<32x128xf32>
      %209 = tpu.matmul %206, %208, %cst_95 {dimension_numbers = #tpu.dot_dimension_numbers<[1], [0], [0], [1], [0, 0, 1, 1], [], []>} : vector<32x32xbf16>, vector<32x128xbf16>, vector<32x128xf32> -> vector<32x128xf32>
      %210 = arith.truncf %191 : vector<32x32xf32> to vector<32x32xbf16>
      %c0_96 = arith.constant 0 : index
      %211 = arith.index_cast %151 : i32 to index
      %c0_97 = arith.constant 0 : index
      %212 = vector.load %arg22[%c0_96, %211, %c0_97] : memref<4x64x32xbf16, #tpu.memory_space<vmem>>, vector<1x32x32xbf16>
      %213 = vector.shape_cast %212 : vector<1x32x32xbf16> to vector<32x32xbf16>
      %214 = vector.shape_cast %210 : vector<32x32xbf16> to vector<1x32x32xbf16>
      tpu.vector_store %arg22[%c0_96, %211, %c0_97], %214 {strides = array<i32>} : memref<4x64x32xbf16, #tpu.memory_space<vmem>>, vector<1x32x32xbf16>,
      %215 = arith.truncf %198 : vector<32x32xf32> to vector<32x32xbf16>
      %c0_98 = arith.constant 0 : index
      %216 = arith.index_cast %151 : i32 to index
      %c0_99 = arith.constant 0 : index
      %217 = vector.load %arg23[%c0_98, %216, %c0_99] : memref<4x64x32xbf16, #tpu.memory_space<vmem>>, vector<1x32x32xbf16>
      %218 = vector.shape_cast %217 : vector<1x32x32xbf16> to vector<32x32xbf16>
      %219 = vector.shape_cast %215 : vector<32x32xbf16> to vector<1x32x32xbf16>
      tpu.vector_store %arg23[%c0_98, %216, %c0_99], %219 {strides = array<i32>} : memref<4x64x32xbf16, #tpu.memory_space<vmem>>, vector<1x32x32xbf16>,
      %220 = arith.truncf %209 : vector<32x128xf32> to vector<32x128xbf16>
      %c0_100 = arith.constant 0 : index
      %221 = arith.index_cast %151 : i32 to index
      %c0_101 = arith.constant 0 : index
      %222 = vector.load %arg24[%c0_100, %221, %c0_101] : memref<4x64x128xbf16, #tpu.memory_space<vmem>>, vector<1x32x128xbf16>
      %223 = vector.shape_cast %222 : vector<1x32x128xbf16> to vector<32x128xbf16>
      %224 = vector.shape_cast %220 : vector<32x128xbf16> to vector<1x32x128xbf16>
      tpu.vector_store %arg24[%c0_100, %221, %c0_101], %224 {strides = array<i32>} : memref<4x64x128xbf16, #tpu.memory_space<vmem>>, vector<1x32x128xbf16>,
      %c1_102 = arith.constant 1 : index
      %c0_103 = arith.constant 0 : index
      %c0_104 = arith.constant 0 : index
      %225 = vector.load %arg5[%c1_102, %c0_103, %c0_104] : memref<4x128x32xbf16, #tpu.memory_space<vmem>>, vector<1x128x32xbf16>
      %226 = vector.shape_cast %225 : vector<1x128x32xbf16> to vector<128x32xbf16>
      %cst_105 = arith.constant dense<0.000000e+00> : vector<32x32xf32>
      %227 = tpu.matmul %184, %226, %cst_105 {dimension_numbers = #tpu.dot_dimension_numbers<[1], [0], [0], [1], [0, 0, 1, 1], [], []>} : vector<32x128xbf16>, vector<128x32xbf16>, vector<32x32xf32> -> vector<32x32xf32>
      %c1_106 = arith.constant 1 : index
      %c0_107 = arith.constant 0 : index
      %c0_108 = arith.constant 0 : index
      %228 = vector.load %arg6[%c1_106, %c0_107, %c0_108] : memref<4x1x32xf32, #tpu.memory_space<vmem>>, vector<1x1x32xf32>
      %229 = vector.shape_cast %228 : vector<1x1x32xf32> to vector<1x32xf32>
      %230 = vector.broadcast %229 : vector<1x32xf32> to vector<32x32xf32>
      %231 = arith.addf %227, %230 : vector<32x32xf32>
      %c1_109 = arith.constant 1 : index
      %c0_110 = arith.constant 0 : index
      %c0_111 = arith.constant 0 : index
      %232 = vector.load %arg7[%c1_109, %c0_110, %c0_111] : memref<4x128x32xbf16, #tpu.memory_space<vmem>>, vector<1x128x32xbf16>
      %233 = vector.shape_cast %232 : vector<1x128x32xbf16> to vector<128x32xbf16>
      %cst_112 = arith.constant dense<0.000000e+00> : vector<32x32xf32>
      %234 = tpu.matmul %184, %233, %cst_112 {dimension_numbers = #tpu.dot_dimension_numbers<[1], [0], [0], [1], [0, 0, 1, 1], [], []>} : vector<32x128xbf16>, vector<128x32xbf16>, vector<32x32xf32> -> vector<32x32xf32>
      %c1_113 = arith.constant 1 : index
      %c0_114 = arith.constant 0 : index
      %c0_115 = arith.constant 0 : index
      %235 = vector.load %arg8[%c1_113, %c0_114, %c0_115] : memref<4x1x32xf32, #tpu.memory_space<vmem>>, vector<1x1x32xf32>
      %236 = vector.shape_cast %235 : vector<1x1x32xf32> to vector<1x32xf32>
      %237 = vector.broadcast %236 : vector<1x32xf32> to vector<32x32xf32>
      %238 = arith.addf %234, %237 : vector<32x32xf32>
      %c1_116 = arith.constant 1 : index
      %c0_117 = arith.constant 0 : index
      %c0_118 = arith.constant 0 : index
      %239 = vector.load %arg9[%c1_116, %c0_117, %c0_118] : memref<4x128x32xbf16, #tpu.memory_space<vmem>>, vector<1x128x32xbf16>
      %240 = vector.shape_cast %239 : vector<1x128x32xbf16> to vector<128x32xbf16>
      %cst_119 = arith.constant dense<0.000000e+00> : vector<32x32xf32>
      %241 = tpu.matmul %184, %240, %cst_119 {dimension_numbers = #tpu.dot_dimension_numbers<[1], [0], [0], [1], [0, 0, 1, 1], [], []>} : vector<32x128xbf16>, vector<128x32xbf16>, vector<32x32xf32> -> vector<32x32xf32>
      %c1_120 = arith.constant 1 : index
      %c0_121 = arith.constant 0 : index
      %c0_122 = arith.constant 0 : index
      %242 = vector.load %arg10[%c1_120, %c0_121, %c0_122] : memref<4x1x32xf32, #tpu.memory_space<vmem>>, vector<1x1x32xf32>
      %243 = vector.shape_cast %242 : vector<1x1x32xf32> to vector<1x32xf32>
      %244 = vector.broadcast %243 : vector<1x32xf32> to vector<32x32xf32>
      %245 = arith.addf %241, %244 : vector<32x32xf32>
      %246 = arith.truncf %245 : vector<32x32xf32> to vector<32x32xbf16>
      %c1_123 = arith.constant 1 : index
      %c0_124 = arith.constant 0 : index
      %c0_125 = arith.constant 0 : index
      %247 = vector.load %arg11[%c1_123, %c0_124, %c0_125] : memref<4x32x128xbf16, #tpu.memory_space<vmem>>, vector<1x32x128xbf16>
      %248 = vector.shape_cast %247 : vector<1x32x128xbf16> to vector<32x128xbf16>
      %cst_126 = arith.constant dense<0.000000e+00> : vector<32x128xf32>
      %249 = tpu.matmul %246, %248, %cst_126 {dimension_numbers = #tpu.dot_dimension_numbers<[1], [0], [0], [1], [0, 0, 1, 1], [], []>} : vector<32x32xbf16>, vector<32x128xbf16>, vector<32x128xf32> -> vector<32x128xf32>
      %250 = arith.truncf %231 : vector<32x32xf32> to vector<32x32xbf16>
      %c1_127 = arith.constant 1 : index
      %251 = arith.index_cast %151 : i32 to index
      %c0_128 = arith.constant 0 : index
      %252 = vector.load %arg22[%c1_127, %251, %c0_128] : memref<4x64x32xbf16, #tpu.memory_space<vmem>>, vector<1x32x32xbf16>
      %253 = vector.shape_cast %252 : vector<1x32x32xbf16> to vector<32x32xbf16>
      %254 = vector.shape_cast %250 : vector<32x32xbf16> to vector<1x32x32xbf16>
      tpu.vector_store %arg22[%c1_127, %251, %c0_128], %254 {strides = array<i32>} : memref<4x64x32xbf16, #tpu.memory_space<vmem>>, vector<1x32x32xbf16>,
      %255 = arith.truncf %238 : vector<32x32xf32> to vector<32x32xbf16>
      %c1_129 = arith.constant 1 : index
      %256 = arith.index_cast %151 : i32 to index
      %c0_130 = arith.constant 0 : index
      %257 = vector.load %arg23[%c1_129, %256, %c0_130] : memref<4x64x32xbf16, #tpu.memory_space<vmem>>, vector<1x32x32xbf16>
      %258 = vector.shape_cast %257 : vector<1x32x32xbf16> to vector<32x32xbf16>
      %259 = vector.shape_cast %255 : vector<32x32xbf16> to vector<1x32x32xbf16>
      tpu.vector_store %arg23[%c1_129, %256, %c0_130], %259 {strides = array<i32>} : memref<4x64x32xbf16, #tpu.memory_space<vmem>>, vector<1x32x32xbf16>,
      %260 = arith.truncf %249 : vector<32x128xf32> to vector<32x128xbf16>
      %c1_131 = arith.constant 1 : index
      %261 = arith.index_cast %151 : i32 to index
      %c0_132 = arith.constant 0 : index
      %262 = vector.load %arg24[%c1_131, %261, %c0_132] : memref<4x64x128xbf16, #tpu.memory_space<vmem>>, vector<1x32x128xbf16>
      %263 = vector.shape_cast %262 : vector<1x32x128xbf16> to vector<32x128xbf16>
      %264 = vector.shape_cast %260 : vector<32x128xbf16> to vector<1x32x128xbf16>
      tpu.vector_store %arg24[%c1_131, %261, %c0_132], %264 {strides = array<i32>} : memref<4x64x128xbf16, #tpu.memory_space<vmem>>, vector<1x32x128xbf16>,
      %c2_133 = arith.constant 2 : index
      %c0_134 = arith.constant 0 : index
      %c0_135 = arith.constant 0 : index
      %265 = vector.load %arg5[%c2_133, %c0_134, %c0_135] : memref<4x128x32xbf16, #tpu.memory_space<vmem>>, vector<1x128x32xbf16>
      %266 = vector.shape_cast %265 : vector<1x128x32xbf16> to vector<128x32xbf16>
      %cst_136 = arith.constant dense<0.000000e+00> : vector<32x32xf32>
      %267 = tpu.matmul %184, %266, %cst_136 {dimension_numbers = #tpu.dot_dimension_numbers<[1], [0], [0], [1], [0, 0, 1, 1], [], []>} : vector<32x128xbf16>, vector<128x32xbf16>, vector<32x32xf32> -> vector<32x32xf32>
      %c2_137 = arith.constant 2 : index
      %c0_138 = arith.constant 0 : index
      %c0_139 = arith.constant 0 : index
      %268 = vector.load %arg6[%c2_137, %c0_138, %c0_139] : memref<4x1x32xf32, #tpu.memory_space<vmem>>, vector<1x1x32xf32>
      %269 = vector.shape_cast %268 : vector<1x1x32xf32> to vector<1x32xf32>
      %270 = vector.broadcast %269 : vector<1x32xf32> to vector<32x32xf32>
      %271 = arith.addf %267, %270 : vector<32x32xf32>
      %c2_140 = arith.constant 2 : index
      %c0_141 = arith.constant 0 : index
      %c0_142 = arith.constant 0 : index
      %272 = vector.load %arg7[%c2_140, %c0_141, %c0_142] : memref<4x128x32xbf16, #tpu.memory_space<vmem>>, vector<1x128x32xbf16>
      %273 = vector.shape_cast %272 : vector<1x128x32xbf16> to vector<128x32xbf16>
      %cst_143 = arith.constant dense<0.000000e+00> : vector<32x32xf32>
      %274 = tpu.matmul %184, %273, %cst_143 {dimension_numbers = #tpu.dot_dimension_numbers<[1], [0], [0], [1], [0, 0, 1, 1], [], []>} : vector<32x128xbf16>, vector<128x32xbf16>, vector<32x32xf32> -> vector<32x32xf32>
      %c2_144 = arith.constant 2 : index
      %c0_145 = arith.constant 0 : index
      %c0_146 = arith.constant 0 : index
      %275 = vector.load %arg8[%c2_144, %c0_145, %c0_146] : memref<4x1x32xf32, #tpu.memory_space<vmem>>, vector<1x1x32xf32>
      %276 = vector.shape_cast %275 : vector<1x1x32xf32> to vector<1x32xf32>
      %277 = vector.broadcast %276 : vector<1x32xf32> to vector<32x32xf32>
      %278 = arith.addf %274, %277 : vector<32x32xf32>
      %c2_147 = arith.constant 2 : index
      %c0_148 = arith.constant 0 : index
      %c0_149 = arith.constant 0 : index
      %279 = vector.load %arg9[%c2_147, %c0_148, %c0_149] : memref<4x128x32xbf16, #tpu.memory_space<vmem>>, vector<1x128x32xbf16>
      %280 = vector.shape_cast %279 : vector<1x128x32xbf16> to vector<128x32xbf16>
      %cst_150 = arith.constant dense<0.000000e+00> : vector<32x32xf32>
      %281 = tpu.matmul %184, %280, %cst_150 {dimension_numbers = #tpu.dot_dimension_numbers<[1], [0], [0], [1], [0, 0, 1, 1], [], []>} : vector<32x128xbf16>, vector<128x32xbf16>, vector<32x32xf32> -> vector<32x32xf32>
      %c2_151 = arith.constant 2 : index
      %c0_152 = arith.constant 0 : index
      %c0_153 = arith.constant 0 : index
      %282 = vector.load %arg10[%c2_151, %c0_152, %c0_153] : memref<4x1x32xf32, #tpu.memory_space<vmem>>, vector<1x1x32xf32>
      %283 = vector.shape_cast %282 : vector<1x1x32xf32> to vector<1x32xf32>
      %284 = vector.broadcast %283 : vector<1x32xf32> to vector<32x32xf32>
      %285 = arith.addf %281, %284 : vector<32x32xf32>
      %286 = arith.truncf %285 : vector<32x32xf32> to vector<32x32xbf16>
      %c2_154 = arith.constant 2 : index
      %c0_155 = arith.constant 0 : index
      %c0_156 = arith.constant 0 : index
      %287 = vector.load %arg11[%c2_154, %c0_155, %c0_156] : memref<4x32x128xbf16, #tpu.memory_space<vmem>>, vector<1x32x128xbf16>
      %288 = vector.shape_cast %287 : vector<1x32x128xbf16> to vector<32x128xbf16>
      %cst_157 = arith.constant dense<0.000000e+00> : vector<32x128xf32>
      %289 = tpu.matmul %286, %288, %cst_157 {dimension_numbers = #tpu.dot_dimension_numbers<[1], [0], [0], [1], [0, 0, 1, 1], [], []>} : vector<32x32xbf16>, vector<32x128xbf16>, vector<32x128xf32> -> vector<32x128xf32>
      %290 = arith.truncf %271 : vector<32x32xf32> to vector<32x32xbf16>
      %c2_158 = arith.constant 2 : index
      %291 = arith.index_cast %151 : i32 to index
      %c0_159 = arith.constant 0 : index
      %292 = vector.load %arg22[%c2_158, %291, %c0_159] : memref<4x64x32xbf16, #tpu.memory_space<vmem>>, vector<1x32x32xbf16>
      %293 = vector.shape_cast %292 : vector<1x32x32xbf16> to vector<32x32xbf16>
      %294 = vector.shape_cast %290 : vector<32x32xbf16> to vector<1x32x32xbf16>
      tpu.vector_store %arg22[%c2_158, %291, %c0_159], %294 {strides = array<i32>} : memref<4x64x32xbf16, #tpu.memory_space<vmem>>, vector<1x32x32xbf16>,
      %295 = arith.truncf %278 : vector<32x32xf32> to vector<32x32xbf16>
      %c2_160 = arith.constant 2 : index
      %296 = arith.index_cast %151 : i32 to index
      %c0_161 = arith.constant 0 : index
      %297 = vector.load %arg23[%c2_160, %296, %c0_161] : memref<4x64x32xbf16, #tpu.memory_space<vmem>>, vector<1x32x32xbf16>
      %298 = vector.shape_cast %297 : vector<1x32x32xbf16> to vector<32x32xbf16>
      %299 = vector.shape_cast %295 : vector<32x32xbf16> to vector<1x32x32xbf16>
      tpu.vector_store %arg23[%c2_160, %296, %c0_161], %299 {strides = array<i32>} : memref<4x64x32xbf16, #tpu.memory_space<vmem>>, vector<1x32x32xbf16>,
      %300 = arith.truncf %289 : vector<32x128xf32> to vector<32x128xbf16>
      %c2_162 = arith.constant 2 : index
      %301 = arith.index_cast %151 : i32 to index
      %c0_163 = arith.constant 0 : index
      %302 = vector.load %arg24[%c2_162, %301, %c0_163] : memref<4x64x128xbf16, #tpu.memory_space<vmem>>, vector<1x32x128xbf16>
      %303 = vector.shape_cast %302 : vector<1x32x128xbf16> to vector<32x128xbf16>
      %304 = vector.shape_cast %300 : vector<32x128xbf16> to vector<1x32x128xbf16>
      tpu.vector_store %arg24[%c2_162, %301, %c0_163], %304 {strides = array<i32>} : memref<4x64x128xbf16, #tpu.memory_space<vmem>>, vector<1x32x128xbf16>,
      %c3_164 = arith.constant 3 : index
      %c0_165 = arith.constant 0 : index
      %c0_166 = arith.constant 0 : index
      %305 = vector.load %arg5[%c3_164, %c0_165, %c0_166] : memref<4x128x32xbf16, #tpu.memory_space<vmem>>, vector<1x128x32xbf16>
      %306 = vector.shape_cast %305 : vector<1x128x32xbf16> to vector<128x32xbf16>
      %cst_167 = arith.constant dense<0.000000e+00> : vector<32x32xf32>
      %307 = tpu.matmul %184, %306, %cst_167 {dimension_numbers = #tpu.dot_dimension_numbers<[1], [0], [0], [1], [0, 0, 1, 1], [], []>} : vector<32x128xbf16>, vector<128x32xbf16>, vector<32x32xf32> -> vector<32x32xf32>
      %c3_168 = arith.constant 3 : index
      %c0_169 = arith.constant 0 : index
      %c0_170 = arith.constant 0 : index
      %308 = vector.load %arg6[%c3_168, %c0_169, %c0_170] : memref<4x1x32xf32, #tpu.memory_space<vmem>>, vector<1x1x32xf32>
      %309 = vector.shape_cast %308 : vector<1x1x32xf32> to vector<1x32xf32>
      %310 = vector.broadcast %309 : vector<1x32xf32> to vector<32x32xf32>
      %311 = arith.addf %307, %310 : vector<32x32xf32>
      %c3_171 = arith.constant 3 : index
      %c0_172 = arith.constant 0 : index
      %c0_173 = arith.constant 0 : index
      %312 = vector.load %arg7[%c3_171, %c0_172, %c0_173] : memref<4x128x32xbf16, #tpu.memory_space<vmem>>, vector<1x128x32xbf16>
      %313 = vector.shape_cast %312 : vector<1x128x32xbf16> to vector<128x32xbf16>
      %cst_174 = arith.constant dense<0.000000e+00> : vector<32x32xf32>
      %314 = tpu.matmul %184, %313, %cst_174 {dimension_numbers = #tpu.dot_dimension_numbers<[1], [0], [0], [1], [0, 0, 1, 1], [], []>} : vector<32x128xbf16>, vector<128x32xbf16>, vector<32x32xf32> -> vector<32x32xf32>
      %c3_175 = arith.constant 3 : index
      %c0_176 = arith.constant 0 : index
      %c0_177 = arith.constant 0 : index
      %315 = vector.load %arg8[%c3_175, %c0_176, %c0_177] : memref<4x1x32xf32, #tpu.memory_space<vmem>>, vector<1x1x32xf32>
      %316 = vector.shape_cast %315 : vector<1x1x32xf32> to vector<1x32xf32>
      %317 = vector.broadcast %316 : vector<1x32xf32> to vector<32x32xf32>
      %318 = arith.addf %314, %317 : vector<32x32xf32>
      %c3_178 = arith.constant 3 : index
      %c0_179 = arith.constant 0 : index
      %c0_180 = arith.constant 0 : index
      %319 = vector.load %arg9[%c3_178, %c0_179, %c0_180] : memref<4x128x32xbf16, #tpu.memory_space<vmem>>, vector<1x128x32xbf16>
      %320 = vector.shape_cast %319 : vector<1x128x32xbf16> to vector<128x32xbf16>
      %cst_181 = arith.constant dense<0.000000e+00> : vector<32x32xf32>
      %321 = tpu.matmul %184, %320, %cst_181 {dimension_numbers = #tpu.dot_dimension_numbers<[1], [0], [0], [1], [0, 0, 1, 1], [], []>} : vector<32x128xbf16>, vector<128x32xbf16>, vector<32x32xf32> -> vector<32x32xf32>
      %c3_182 = arith.constant 3 : index
      %c0_183 = arith.constant 0 : index
      %c0_184 = arith.constant 0 : index
      %322 = vector.load %arg10[%c3_182, %c0_183, %c0_184] : memref<4x1x32xf32, #tpu.memory_space<vmem>>, vector<1x1x32xf32>
      %323 = vector.shape_cast %322 : vector<1x1x32xf32> to vector<1x32xf32>
      %324 = vector.broadcast %323 : vector<1x32xf32> to vector<32x32xf32>
      %325 = arith.addf %321, %324 : vector<32x32xf32>
      %326 = arith.truncf %325 : vector<32x32xf32> to vector<32x32xbf16>
      %c3_185 = arith.constant 3 : index
      %c0_186 = arith.constant 0 : index
      %c0_187 = arith.constant 0 : index
      %327 = vector.load %arg11[%c3_185, %c0_186, %c0_187] : memref<4x32x128xbf16, #tpu.memory_space<vmem>>, vector<1x32x128xbf16>
      %328 = vector.shape_cast %327 : vector<1x32x128xbf16> to vector<32x128xbf16>
      %cst_188 = arith.constant dense<0.000000e+00> : vector<32x128xf32>
      %329 = tpu.matmul %326, %328, %cst_188 {dimension_numbers = #tpu.dot_dimension_numbers<[1], [0], [0], [1], [0, 0, 1, 1], [], []>} : vector<32x32xbf16>, vector<32x128xbf16>, vector<32x128xf32> -> vector<32x128xf32>
      %330 = arith.truncf %311 : vector<32x32xf32> to vector<32x32xbf16>
      %c3_189 = arith.constant 3 : index
      %331 = arith.index_cast %151 : i32 to index
      %c0_190 = arith.constant 0 : index
      %332 = vector.load %arg22[%c3_189, %331, %c0_190] : memref<4x64x32xbf16, #tpu.memory_space<vmem>>, vector<1x32x32xbf16>
      %333 = vector.shape_cast %332 : vector<1x32x32xbf16> to vector<32x32xbf16>
      %334 = vector.shape_cast %330 : vector<32x32xbf16> to vector<1x32x32xbf16>
      tpu.vector_store %arg22[%c3_189, %331, %c0_190], %334 {strides = array<i32>} : memref<4x64x32xbf16, #tpu.memory_space<vmem>>, vector<1x32x32xbf16>,
      %335 = arith.truncf %318 : vector<32x32xf32> to vector<32x32xbf16>
      %c3_191 = arith.constant 3 : index
      %336 = arith.index_cast %151 : i32 to index
      %c0_192 = arith.constant 0 : index
      %337 = vector.load %arg23[%c3_191, %336, %c0_192] : memref<4x64x32xbf16, #tpu.memory_space<vmem>>, vector<1x32x32xbf16>
      %338 = vector.shape_cast %337 : vector<1x32x32xbf16> to vector<32x32xbf16>
      %339 = vector.shape_cast %335 : vector<32x32xbf16> to vector<1x32x32xbf16>
      tpu.vector_store %arg23[%c3_191, %336, %c0_192], %339 {strides = array<i32>} : memref<4x64x32xbf16, #tpu.memory_space<vmem>>, vector<1x32x32xbf16>,
      %340 = arith.truncf %329 : vector<32x128xf32> to vector<32x128xbf16>
      %c3_193 = arith.constant 3 : index
      %341 = arith.index_cast %151 : i32 to index
      %c0_194 = arith.constant 0 : index
      %342 = vector.load %arg24[%c3_193, %341, %c0_194] : memref<4x64x128xbf16, #tpu.memory_space<vmem>>, vector<1x32x128xbf16>
      %343 = vector.shape_cast %342 : vector<1x32x128xbf16> to vector<32x128xbf16>
      %344 = vector.shape_cast %340 : vector<32x128xbf16> to vector<1x32x128xbf16>
      tpu.vector_store %arg24[%c3_193, %341, %c0_194], %344 {strides = array<i32>} : memref<4x64x128xbf16, #tpu.memory_space<vmem>>, vector<1x32x128xbf16>,
      %c1_i32 = arith.constant 1 : i32
      %c32_i32_195 = arith.constant 32 : i32
      %345 = arith.muli %c1_i32, %c32_i32_195 : i32
      %346 = tpu.assume_multiple %345, 32 : i32
      %c0_196 = arith.constant 0 : index
      %347 = arith.index_cast %346 : i32 to index
      %c0_197 = arith.constant 0 : index
      %348 = vector.load %arg2[%c0_196, %347, %c0_197] : memref<1x64x128xbf16, #tpu.memory_space<vmem>>, vector<1x32x128xbf16>
      %349 = vector.shape_cast %348 : vector<1x32x128xbf16> to vector<32x128xbf16>
      %350 = arith.extf %349 : vector<32x128xbf16> to vector<32x128xf32>
      %c0_198 = arith.constant 0 : index
      %c0_199 = arith.constant 0 : index
      %351 = vector.load %arg3[%c0_198, %c0_199] : memref<1x128xf32, #tpu.memory_space<vmem>>, vector<1x128xf32>
      %352 = vector.shape_cast %351 : vector<1x128xf32> to vector<128xf32>
      %c0_200 = arith.constant 0 : index
      %c0_201 = arith.constant 0 : index
      %353 = vector.load %arg4[%c0_200, %c0_201] : memref<1x128xf32, #tpu.memory_space<vmem>>, vector<1x128xf32>
      %354 = vector.shape_cast %353 : vector<1x128xf32> to vector<128xf32>
      %cst_202 = arith.constant dense<0.000000e+00> : vector<32xf32>
      %355 = vector.multi_reduction <add>, %350, %cst_202 [1] : vector<32x128xf32> to vector<32xf32>
      %356 = vector.shape_cast %355 : vector<32xf32> to vector<32x1xf32>
      %cst_203 = arith.constant 1.280000e+02 : f32
      %357 = vector.broadcast %cst_203 : f32 to vector<32x1xf32>
      %358 = arith.divf %356, %357 : vector<32x1xf32>
      %359 = vector.broadcast %358 : vector<32x1xf32> to vector<32x128xf32>
      %360 = arith.subf %350, %359 : vector<32x128xf32>
      %361 = arith.mulf %360, %360 : vector<32x128xf32>
      %cst_204 = arith.constant dense<0.000000e+00> : vector<32xf32>
      %362 = vector.multi_reduction <add>, %361, %cst_204 [1] : vector<32x128xf32> to vector<32xf32>
      %363 = vector.shape_cast %362 : vector<32xf32> to vector<32x1xf32>
      %cst_205 = arith.constant 1.280000e+02 : f32
      %364 = vector.broadcast %cst_205 : f32 to vector<32x1xf32>
      %365 = arith.divf %363, %364 : vector<32x1xf32>
      %366 = vector.broadcast %358 : vector<32x1xf32> to vector<32x128xf32>
      %367 = arith.subf %350, %366 : vector<32x128xf32>
      %cst_206 = arith.constant 9.99999974E-6 : f32
      %368 = vector.broadcast %cst_206 : f32 to vector<32x1xf32>
      %369 = arith.addf %365, %368 : vector<32x1xf32>
      %370 = math.rsqrt %369 : vector<32x1xf32>
      %371 = vector.broadcast %370 : vector<32x1xf32> to vector<32x128xf32>
      %372 = arith.mulf %367, %371 : vector<32x128xf32>
      %373 = vector.shape_cast %352 : vector<128xf32> to vector<1x128xf32>
      %374 = vector.broadcast %373 : vector<1x128xf32> to vector<32x128xf32>
      %375 = arith.mulf %372, %374 : vector<32x128xf32>
      %376 = vector.shape_cast %354 : vector<128xf32> to vector<1x128xf32>
      %377 = vector.broadcast %376 : vector<1x128xf32> to vector<32x128xf32>
      %378 = arith.addf %375, %377 : vector<32x128xf32>
      %379 = arith.truncf %378 : vector<32x128xf32> to vector<32x128xbf16>
      %c0_207 = arith.constant 0 : index
      %c0_208 = arith.constant 0 : index
      %c0_209 = arith.constant 0 : index
      %380 = vector.load %arg5[%c0_207, %c0_208, %c0_209] : memref<4x128x32xbf16, #tpu.memory_space<vmem>>, vector<1x128x32xbf16>
      %381 = vector.shape_cast %380 : vector<1x128x32xbf16> to vector<128x32xbf16>
      %cst_210 = arith.constant dense<0.000000e+00> : vector<32x32xf32>
      %382 = tpu.matmul %379, %381, %cst_210 {dimension_numbers = #tpu.dot_dimension_numbers<[1], [0], [0], [1], [0, 0, 1, 1], [], []>} : vector<32x128xbf16>, vector<128x32xbf16>, vector<32x32xf32> -> vector<32x32xf32>
      %c0_211 = arith.constant 0 : index
      %c0_212 = arith.constant 0 : index
      %c0_213 = arith.constant 0 : index
      %383 = vector.load %arg6[%c0_211, %c0_212, %c0_213] : memref<4x1x32xf32, #tpu.memory_space<vmem>>, vector<1x1x32xf32>
      %384 = vector.shape_cast %383 : vector<1x1x32xf32> to vector<1x32xf32>
      %385 = vector.broadcast %384 : vector<1x32xf32> to vector<32x32xf32>
      %386 = arith.addf %382, %385 : vector<32x32xf32>
      %c0_214 = arith.constant 0 : index
      %c0_215 = arith.constant 0 : index
      %c0_216 = arith.constant 0 : index
      %387 = vector.load %arg7[%c0_214, %c0_215, %c0_216] : memref<4x128x32xbf16, #tpu.memory_space<vmem>>, vector<1x128x32xbf16>
      %388 = vector.shape_cast %387 : vector<1x128x32xbf16> to vector<128x32xbf16>
      %cst_217 = arith.constant dense<0.000000e+00> : vector<32x32xf32>
      %389 = tpu.matmul %379, %388, %cst_217 {dimension_numbers = #tpu.dot_dimension_numbers<[1], [0], [0], [1], [0, 0, 1, 1], [], []>} : vector<32x128xbf16>, vector<128x32xbf16>, vector<32x32xf32> -> vector<32x32xf32>
      %c0_218 = arith.constant 0 : index
      %c0_219 = arith.constant 0 : index
      %c0_220 = arith.constant 0 : index
      %390 = vector.load %arg8[%c0_218, %c0_219, %c0_220] : memref<4x1x32xf32, #tpu.memory_space<vmem>>, vector<1x1x32xf32>
      %391 = vector.shape_cast %390 : vector<1x1x32xf32> to vector<1x32xf32>
      %392 = vector.broadcast %391 : vector<1x32xf32> to vector<32x32xf32>
      %393 = arith.addf %389, %392 : vector<32x32xf32>
      %c0_221 = arith.constant 0 : index
      %c0_222 = arith.constant 0 : index
      %c0_223 = arith.constant 0 : index
      %394 = vector.load %arg9[%c0_221, %c0_222, %c0_223] : memref<4x128x32xbf16, #tpu.memory_space<vmem>>, vector<1x128x32xbf16>
      %395 = vector.shape_cast %394 : vector<1x128x32xbf16> to vector<128x32xbf16>
      %cst_224 = arith.constant dense<0.000000e+00> : vector<32x32xf32>
      %396 = tpu.matmul %379, %395, %cst_224 {dimension_numbers = #tpu.dot_dimension_numbers<[1], [0], [0], [1], [0, 0, 1, 1], [], []>} : vector<32x128xbf16>, vector<128x32xbf16>, vector<32x32xf32> -> vector<32x32xf32>
      %c0_225 = arith.constant 0 : index
      %c0_226 = arith.constant 0 : index
      %c0_227 = arith.constant 0 : index
      %397 = vector.load %arg10[%c0_225, %c0_226, %c0_227] : memref<4x1x32xf32, #tpu.memory_space<vmem>>, vector<1x1x32xf32>
      %398 = vector.shape_cast %397 : vector<1x1x32xf32> to vector<1x32xf32>
      %399 = vector.broadcast %398 : vector<1x32xf32> to vector<32x32xf32>
      %400 = arith.addf %396, %399 : vector<32x32xf32>
      %401 = arith.truncf %400 : vector<32x32xf32> to vector<32x32xbf16>
      %c0_228 = arith.constant 0 : index
      %c0_229 = arith.constant 0 : index
      %c0_230 = arith.constant 0 : index
      %402 = vector.load %arg11[%c0_228, %c0_229, %c0_230] : memref<4x32x128xbf16, #tpu.memory_space<vmem>>, vector<1x32x128xbf16>
      %403 = vector.shape_cast %402 : vector<1x32x128xbf16> to vector<32x128xbf16>
      %cst_231 = arith.constant dense<0.000000e+00> : vector<32x128xf32>
      %404 = tpu.matmul %401, %403, %cst_231 {dimension_numbers = #tpu.dot_dimension_numbers<[1], [0], [0], [1], [0, 0, 1, 1], [], []>} : vector<32x32xbf16>, vector<32x128xbf16>, vector<32x128xf32> -> vector<32x128xf32>
      %405 = arith.truncf %386 : vector<32x32xf32> to vector<32x32xbf16>
      %c0_232 = arith.constant 0 : index
      %406 = arith.index_cast %346 : i32 to index
      %c0_233 = arith.constant 0 : index
      %407 = vector.load %arg22[%c0_232, %406, %c0_233] : memref<4x64x32xbf16, #tpu.memory_space<vmem>>, vector<1x32x32xbf16>
      %408 = vector.shape_cast %407 : vector<1x32x32xbf16> to vector<32x32xbf16>
      %409 = vector.shape_cast %405 : vector<32x32xbf16> to vector<1x32x32xbf16>
      tpu.vector_store %arg22[%c0_232, %406, %c0_233], %409 {strides = array<i32>} : memref<4x64x32xbf16, #tpu.memory_space<vmem>>, vector<1x32x32xbf16>,
      %410 = arith.truncf %393 : vector<32x32xf32> to vector<32x32xbf16>
      %c0_234 = arith.constant 0 : index
      %411 = arith.index_cast %346 : i32 to index
      %c0_235 = arith.constant 0 : index
      %412 = vector.load %arg23[%c0_234, %411, %c0_235] : memref<4x64x32xbf16, #tpu.memory_space<vmem>>, vector<1x32x32xbf16>
      %413 = vector.shape_cast %412 : vector<1x32x32xbf16> to vector<32x32xbf16>
      %414 = vector.shape_cast %410 : vector<32x32xbf16> to vector<1x32x32xbf16>
      tpu.vector_store %arg23[%c0_234, %411, %c0_235], %414 {strides = array<i32>} : memref<4x64x32xbf16, #tpu.memory_space<vmem>>, vector<1x32x32xbf16>,
      %415 = arith.truncf %404 : vector<32x128xf32> to vector<32x128xbf16>
      %c0_236 = arith.constant 0 : index
      %416 = arith.index_cast %346 : i32 to index
      %c0_237 = arith.constant 0 : index
      %417 = vector.load %arg24[%c0_236, %416, %c0_237] : memref<4x64x128xbf16, #tpu.memory_space<vmem>>, vector<1x32x128xbf16>
      %418 = vector.shape_cast %417 : vector<1x32x128xbf16> to vector<32x128xbf16>
      %419 = vector.shape_cast %415 : vector<32x128xbf16> to vector<1x32x128xbf16>
      tpu.vector_store %arg24[%c0_236, %416, %c0_237], %419 {strides = array<i32>} : memref<4x64x128xbf16, #tpu.memory_space<vmem>>, vector<1x32x128xbf16>,
      %c1_238 = arith.constant 1 : index
      %c0_239 = arith.constant 0 : index
      %c0_240 = arith.constant 0 : index
      %420 = vector.load %arg5[%c1_238, %c0_239, %c0_240] : memref<4x128x32xbf16, #tpu.memory_space<vmem>>, vector<1x128x32xbf16>
      %421 = vector.shape_cast %420 : vector<1x128x32xbf16> to vector<128x32xbf16>
      %cst_241 = arith.constant dense<0.000000e+00> : vector<32x32xf32>
      %422 = tpu.matmul %379, %421, %cst_241 {dimension_numbers = #tpu.dot_dimension_numbers<[1], [0], [0], [1], [0, 0, 1, 1], [], []>} : vector<32x128xbf16>, vector<128x32xbf16>, vector<32x32xf32> -> vector<32x32xf32>
      %c1_242 = arith.constant 1 : index
      %c0_243 = arith.constant 0 : index
      %c0_244 = arith.constant 0 : index
      %423 = vector.load %arg6[%c1_242, %c0_243, %c0_244] : memref<4x1x32xf32, #tpu.memory_space<vmem>>, vector<1x1x32xf32>
      %424 = vector.shape_cast %423 : vector<1x1x32xf32> to vector<1x32xf32>
      %425 = vector.broadcast %424 : vector<1x32xf32> to vector<32x32xf32>
      %426 = arith.addf %422, %425 : vector<32x32xf32>
      %c1_245 = arith.constant 1 : index
      %c0_246 = arith.constant 0 : index
      %c0_247 = arith.constant 0 : index
      %427 = vector.load %arg7[%c1_245, %c0_246, %c0_247] : memref<4x128x32xbf16, #tpu.memory_space<vmem>>, vector<1x128x32xbf16>
      %428 = vector.shape_cast %427 : vector<1x128x32xbf16> to vector<128x32xbf16>
      %cst_248 = arith.constant dense<0.000000e+00> : vector<32x32xf32>
      %429 = tpu.matmul %379, %428, %cst_248 {dimension_numbers = #tpu.dot_dimension_numbers<[1], [0], [0], [1], [0, 0, 1, 1], [], []>} : vector<32x128xbf16>, vector<128x32xbf16>, vector<32x32xf32> -> vector<32x32xf32>
      %c1_249 = arith.constant 1 : index
      %c0_250 = arith.constant 0 : index
      %c0_251 = arith.constant 0 : index
      %430 = vector.load %arg8[%c1_249, %c0_250, %c0_251] : memref<4x1x32xf32, #tpu.memory_space<vmem>>, vector<1x1x32xf32>
      %431 = vector.shape_cast %430 : vector<1x1x32xf32> to vector<1x32xf32>
      %432 = vector.broadcast %431 : vector<1x32xf32> to vector<32x32xf32>
      %433 = arith.addf %429, %432 : vector<32x32xf32>
      %c1_252 = arith.constant 1 : index
      %c0_253 = arith.constant 0 : index
      %c0_254 = arith.constant 0 : index
      %434 = vector.load %arg9[%c1_252, %c0_253, %c0_254] : memref<4x128x32xbf16, #tpu.memory_space<vmem>>, vector<1x128x32xbf16>
      %435 = vector.shape_cast %434 : vector<1x128x32xbf16> to vector<128x32xbf16>
      %cst_255 = arith.constant dense<0.000000e+00> : vector<32x32xf32>
      %436 = tpu.matmul %379, %435, %cst_255 {dimension_numbers = #tpu.dot_dimension_numbers<[1], [0], [0], [1], [0, 0, 1, 1], [], []>} : vector<32x128xbf16>, vector<128x32xbf16>, vector<32x32xf32> -> vector<32x32xf32>
      %c1_256 = arith.constant 1 : index
      %c0_257 = arith.constant 0 : index
      %c0_258 = arith.constant 0 : index
      %437 = vector.load %arg10[%c1_256, %c0_257, %c0_258] : memref<4x1x32xf32, #tpu.memory_space<vmem>>, vector<1x1x32xf32>
      %438 = vector.shape_cast %437 : vector<1x1x32xf32> to vector<1x32xf32>
      %439 = vector.broadcast %438 : vector<1x32xf32> to vector<32x32xf32>
      %440 = arith.addf %436, %439 : vector<32x32xf32>
      %441 = arith.truncf %440 : vector<32x32xf32> to vector<32x32xbf16>
      %c1_259 = arith.constant 1 : index
      %c0_260 = arith.constant 0 : index
      %c0_261 = arith.constant 0 : index
      %442 = vector.load %arg11[%c1_259, %c0_260, %c0_261] : memref<4x32x128xbf16, #tpu.memory_space<vmem>>, vector<1x32x128xbf16>
      %443 = vector.shape_cast %442 : vector<1x32x128xbf16> to vector<32x128xbf16>
      %cst_262 = arith.constant dense<0.000000e+00> : vector<32x128xf32>
      %444 = tpu.matmul %441, %443, %cst_262 {dimension_numbers = #tpu.dot_dimension_numbers<[1], [0], [0], [1], [0, 0, 1, 1], [], []>} : vector<32x32xbf16>, vector<32x128xbf16>, vector<32x128xf32> -> vector<32x128xf32>
      %445 = arith.truncf %426 : vector<32x32xf32> to vector<32x32xbf16>
      %c1_263 = arith.constant 1 : index
      %446 = arith.index_cast %346 : i32 to index
      %c0_264 = arith.constant 0 : index
      %447 = vector.load %arg22[%c1_263, %446, %c0_264] : memref<4x64x32xbf16, #tpu.memory_space<vmem>>, vector<1x32x32xbf16>
      %448 = vector.shape_cast %447 : vector<1x32x32xbf16> to vector<32x32xbf16>
      %449 = vector.shape_cast %445 : vector<32x32xbf16> to vector<1x32x32xbf16>
      tpu.vector_store %arg22[%c1_263, %446, %c0_264], %449 {strides = array<i32>} : memref<4x64x32xbf16, #tpu.memory_space<vmem>>, vector<1x32x32xbf16>,
      %450 = arith.truncf %433 : vector<32x32xf32> to vector<32x32xbf16>
      %c1_265 = arith.constant 1 : index
      %451 = arith.index_cast %346 : i32 to index
      %c0_266 = arith.constant 0 : index
      %452 = vector.load %arg23[%c1_265, %451, %c0_266] : memref<4x64x32xbf16, #tpu.memory_space<vmem>>, vector<1x32x32xbf16>
      %453 = vector.shape_cast %452 : vector<1x32x32xbf16> to vector<32x32xbf16>
      %454 = vector.shape_cast %450 : vector<32x32xbf16> to vector<1x32x32xbf16>
      tpu.vector_store %arg23[%c1_265, %451, %c0_266], %454 {strides = array<i32>} : memref<4x64x32xbf16, #tpu.memory_space<vmem>>, vector<1x32x32xbf16>,
      %455 = arith.truncf %444 : vector<32x128xf32> to vector<32x128xbf16>
      %c1_267 = arith.constant 1 : index
      %456 = arith.index_cast %346 : i32 to index
      %c0_268 = arith.constant 0 : index
      %457 = vector.load %arg24[%c1_267, %456, %c0_268] : memref<4x64x128xbf16, #tpu.memory_space<vmem>>, vector<1x32x128xbf16>
      %458 = vector.shape_cast %457 : vector<1x32x128xbf16> to vector<32x128xbf16>
      %459 = vector.shape_cast %455 : vector<32x128xbf16> to vector<1x32x128xbf16>
      tpu.vector_store %arg24[%c1_267, %456, %c0_268], %459 {strides = array<i32>} : memref<4x64x128xbf16, #tpu.memory_space<vmem>>, vector<1x32x128xbf16>,
      %c2_269 = arith.constant 2 : index
      %c0_270 = arith.constant 0 : index
      %c0_271 = arith.constant 0 : index
      %460 = vector.load %arg5[%c2_269, %c0_270, %c0_271] : memref<4x128x32xbf16, #tpu.memory_space<vmem>>, vector<1x128x32xbf16>
      %461 = vector.shape_cast %460 : vector<1x128x32xbf16> to vector<128x32xbf16>
      %cst_272 = arith.constant dense<0.000000e+00> : vector<32x32xf32>
      %462 = tpu.matmul %379, %461, %cst_272 {dimension_numbers = #tpu.dot_dimension_numbers<[1], [0], [0], [1], [0, 0, 1, 1], [], []>} : vector<32x128xbf16>, vector<128x32xbf16>, vector<32x32xf32> -> vector<32x32xf32>
      %c2_273 = arith.constant 2 : index
      %c0_274 = arith.constant 0 : index
      %c0_275 = arith.constant 0 : index
      %463 = vector.load %arg6[%c2_273, %c0_274, %c0_275] : memref<4x1x32xf32, #tpu.memory_space<vmem>>, vector<1x1x32xf32>
      %464 = vector.shape_cast %463 : vector<1x1x32xf32> to vector<1x32xf32>
      %465 = vector.broadcast %464 : vector<1x32xf32> to vector<32x32xf32>
      %466 = arith.addf %462, %465 : vector<32x32xf32>
      %c2_276 = arith.constant 2 : index
      %c0_277 = arith.constant 0 : index
      %c0_278 = arith.constant 0 : index
      %467 = vector.load %arg7[%c2_276, %c0_277, %c0_278] : memref<4x128x32xbf16, #tpu.memory_space<vmem>>, vector<1x128x32xbf16>
      %468 = vector.shape_cast %467 : vector<1x128x32xbf16> to vector<128x32xbf16>
      %cst_279 = arith.constant dense<0.000000e+00> : vector<32x32xf32>
      %469 = tpu.matmul %379, %468, %cst_279 {dimension_numbers = #tpu.dot_dimension_numbers<[1], [0], [0], [1], [0, 0, 1, 1], [], []>} : vector<32x128xbf16>, vector<128x32xbf16>, vector<32x32xf32> -> vector<32x32xf32>
      %c2_280 = arith.constant 2 : index
      %c0_281 = arith.constant 0 : index
      %c0_282 = arith.constant 0 : index
      %470 = vector.load %arg8[%c2_280, %c0_281, %c0_282] : memref<4x1x32xf32, #tpu.memory_space<vmem>>, vector<1x1x32xf32>
      %471 = vector.shape_cast %470 : vector<1x1x32xf32> to vector<1x32xf32>
      %472 = vector.broadcast %471 : vector<1x32xf32> to vector<32x32xf32>
      %473 = arith.addf %469, %472 : vector<32x32xf32>
      %c2_283 = arith.constant 2 : index
      %c0_284 = arith.constant 0 : index
      %c0_285 = arith.constant 0 : index
      %474 = vector.load %arg9[%c2_283, %c0_284, %c0_285] : memref<4x128x32xbf16, #tpu.memory_space<vmem>>, vector<1x128x32xbf16>
      %475 = vector.shape_cast %474 : vector<1x128x32xbf16> to vector<128x32xbf16>
      %cst_286 = arith.constant dense<0.000000e+00> : vector<32x32xf32>
      %476 = tpu.matmul %379, %475, %cst_286 {dimension_numbers = #tpu.dot_dimension_numbers<[1], [0], [0], [1], [0, 0, 1, 1], [], []>} : vector<32x128xbf16>, vector<128x32xbf16>, vector<32x32xf32> -> vector<32x32xf32>
      %c2_287 = arith.constant 2 : index
      %c0_288 = arith.constant 0 : index
      %c0_289 = arith.constant 0 : index
      %477 = vector.load %arg10[%c2_287, %c0_288, %c0_289] : memref<4x1x32xf32, #tpu.memory_space<vmem>>, vector<1x1x32xf32>
      %478 = vector.shape_cast %477 : vector<1x1x32xf32> to vector<1x32xf32>
      %479 = vector.broadcast %478 : vector<1x32xf32> to vector<32x32xf32>
      %480 = arith.addf %476, %479 : vector<32x32xf32>
      %481 = arith.truncf %480 : vector<32x32xf32> to vector<32x32xbf16>
      %c2_290 = arith.constant 2 : index
      %c0_291 = arith.constant 0 : index
      %c0_292 = arith.constant 0 : index
      %482 = vector.load %arg11[%c2_290, %c0_291, %c0_292] : memref<4x32x128xbf16, #tpu.memory_space<vmem>>, vector<1x32x128xbf16>
      %483 = vector.shape_cast %482 : vector<1x32x128xbf16> to vector<32x128xbf16>
      %cst_293 = arith.constant dense<0.000000e+00> : vector<32x128xf32>
      %484 = tpu.matmul %481, %483, %cst_293 {dimension_numbers = #tpu.dot_dimension_numbers<[1], [0], [0], [1], [0, 0, 1, 1], [], []>} : vector<32x32xbf16>, vector<32x128xbf16>, vector<32x128xf32> -> vector<32x128xf32>
      %485 = arith.truncf %466 : vector<32x32xf32> to vector<32x32xbf16>
      %c2_294 = arith.constant 2 : index
      %486 = arith.index_cast %346 : i32 to index
      %c0_295 = arith.constant 0 : index
      %487 = vector.load %arg22[%c2_294, %486, %c0_295] : memref<4x64x32xbf16, #tpu.memory_space<vmem>>, vector<1x32x32xbf16>
      %488 = vector.shape_cast %487 : vector<1x32x32xbf16> to vector<32x32xbf16>
      %489 = vector.shape_cast %485 : vector<32x32xbf16> to vector<1x32x32xbf16>
      tpu.vector_store %arg22[%c2_294, %486, %c0_295], %489 {strides = array<i32>} : memref<4x64x32xbf16, #tpu.memory_space<vmem>>, vector<1x32x32xbf16>,
      %490 = arith.truncf %473 : vector<32x32xf32> to vector<32x32xbf16>
      %c2_296 = arith.constant 2 : index
      %491 = arith.index_cast %346 : i32 to index
      %c0_297 = arith.constant 0 : index
      %492 = vector.load %arg23[%c2_296, %491, %c0_297] : memref<4x64x32xbf16, #tpu.memory_space<vmem>>, vector<1x32x32xbf16>
      %493 = vector.shape_cast %492 : vector<1x32x32xbf16> to vector<32x32xbf16>
      %494 = vector.shape_cast %490 : vector<32x32xbf16> to vector<1x32x32xbf16>
      tpu.vector_store %arg23[%c2_296, %491, %c0_297], %494 {strides = array<i32>} : memref<4x64x32xbf16, #tpu.memory_space<vmem>>, vector<1x32x32xbf16>,
      %495 = arith.truncf %484 : vector<32x128xf32> to vector<32x128xbf16>
      %c2_298 = arith.constant 2 : index
      %496 = arith.index_cast %346 : i32 to index
      %c0_299 = arith.constant 0 : index
      %497 = vector.load %arg24[%c2_298, %496, %c0_299] : memref<4x64x128xbf16, #tpu.memory_space<vmem>>, vector<1x32x128xbf16>
      %498 = vector.shape_cast %497 : vector<1x32x128xbf16> to vector<32x128xbf16>
      %499 = vector.shape_cast %495 : vector<32x128xbf16> to vector<1x32x128xbf16>
      tpu.vector_store %arg24[%c2_298, %496, %c0_299], %499 {strides = array<i32>} : memref<4x64x128xbf16, #tpu.memory_space<vmem>>, vector<1x32x128xbf16>,
      %c3_300 = arith.constant 3 : index
      %c0_301 = arith.constant 0 : index
      %c0_302 = arith.constant 0 : index
      %500 = vector.load %arg5[%c3_300, %c0_301, %c0_302] : memref<4x128x32xbf16, #tpu.memory_space<vmem>>, vector<1x128x32xbf16>
      %501 = vector.shape_cast %500 : vector<1x128x32xbf16> to vector<128x32xbf16>
      %cst_303 = arith.constant dense<0.000000e+00> : vector<32x32xf32>
      %502 = tpu.matmul %379, %501, %cst_303 {dimension_numbers = #tpu.dot_dimension_numbers<[1], [0], [0], [1], [0, 0, 1, 1], [], []>} : vector<32x128xbf16>, vector<128x32xbf16>, vector<32x32xf32> -> vector<32x32xf32>
      %c3_304 = arith.constant 3 : index
      %c0_305 = arith.constant 0 : index
      %c0_306 = arith.constant 0 : index
      %503 = vector.load %arg6[%c3_304, %c0_305, %c0_306] : memref<4x1x32xf32, #tpu.memory_space<vmem>>, vector<1x1x32xf32>
      %504 = vector.shape_cast %503 : vector<1x1x32xf32> to vector<1x32xf32>
      %505 = vector.broadcast %504 : vector<1x32xf32> to vector<32x32xf32>
      %506 = arith.addf %502, %505 : vector<32x32xf32>
      %c3_307 = arith.constant 3 : index
      %c0_308 = arith.constant 0 : index
      %c0_309 = arith.constant 0 : index
      %507 = vector.load %arg7[%c3_307, %c0_308, %c0_309] : memref<4x128x32xbf16, #tpu.memory_space<vmem>>, vector<1x128x32xbf16>
      %508 = vector.shape_cast %507 : vector<1x128x32xbf16> to vector<128x32xbf16>
      %cst_310 = arith.constant dense<0.000000e+00> : vector<32x32xf32>
      %509 = tpu.matmul %379, %508, %cst_310 {dimension_numbers = #tpu.dot_dimension_numbers<[1], [0], [0], [1], [0, 0, 1, 1], [], []>} : vector<32x128xbf16>, vector<128x32xbf16>, vector<32x32xf32> -> vector<32x32xf32>
      %c3_311 = arith.constant 3 : index
      %c0_312 = arith.constant 0 : index
      %c0_313 = arith.constant 0 : index
      %510 = vector.load %arg8[%c3_311, %c0_312, %c0_313] : memref<4x1x32xf32, #tpu.memory_space<vmem>>, vector<1x1x32xf32>
      %511 = vector.shape_cast %510 : vector<1x1x32xf32> to vector<1x32xf32>
      %512 = vector.broadcast %511 : vector<1x32xf32> to vector<32x32xf32>
      %513 = arith.addf %509, %512 : vector<32x32xf32>
      %c3_314 = arith.constant 3 : index
      %c0_315 = arith.constant 0 : index
      %c0_316 = arith.constant 0 : index
      %514 = vector.load %arg9[%c3_314, %c0_315, %c0_316] : memref<4x128x32xbf16, #tpu.memory_space<vmem>>, vector<1x128x32xbf16>
      %515 = vector.shape_cast %514 : vector<1x128x32xbf16> to vector<128x32xbf16>
      %cst_317 = arith.constant dense<0.000000e+00> : vector<32x32xf32>
      %516 = tpu.matmul %379, %515, %cst_317 {dimension_numbers = #tpu.dot_dimension_numbers<[1], [0], [0], [1], [0, 0, 1, 1], [], []>} : vector<32x128xbf16>, vector<128x32xbf16>, vector<32x32xf32> -> vector<32x32xf32>
      %c3_318 = arith.constant 3 : index
      %c0_319 = arith.constant 0 : index
      %c0_320 = arith.constant 0 : index
      %517 = vector.load %arg10[%c3_318, %c0_319, %c0_320] : memref<4x1x32xf32, #tpu.memory_space<vmem>>, vector<1x1x32xf32>
      %518 = vector.shape_cast %517 : vector<1x1x32xf32> to vector<1x32xf32>
      %519 = vector.broadcast %518 : vector<1x32xf32> to vector<32x32xf32>
      %520 = arith.addf %516, %519 : vector<32x32xf32>
      %521 = arith.truncf %520 : vector<32x32xf32> to vector<32x32xbf16>
      %c3_321 = arith.constant 3 : index
      %c0_322 = arith.constant 0 : index
      %c0_323 = arith.constant 0 : index
      %522 = vector.load %arg11[%c3_321, %c0_322, %c0_323] : memref<4x32x128xbf16, #tpu.memory_space<vmem>>, vector<1x32x128xbf16>
      %523 = vector.shape_cast %522 : vector<1x32x128xbf16> to vector<32x128xbf16>
      %cst_324 = arith.constant dense<0.000000e+00> : vector<32x128xf32>
      %524 = tpu.matmul %521, %523, %cst_324 {dimension_numbers = #tpu.dot_dimension_numbers<[1], [0], [0], [1], [0, 0, 1, 1], [], []>} : vector<32x32xbf16>, vector<32x128xbf16>, vector<32x128xf32> -> vector<32x128xf32>
      %525 = arith.truncf %506 : vector<32x32xf32> to vector<32x32xbf16>
      %c3_325 = arith.constant 3 : index
      %526 = arith.index_cast %346 : i32 to index
      %c0_326 = arith.constant 0 : index
      %527 = vector.load %arg22[%c3_325, %526, %c0_326] : memref<4x64x32xbf16, #tpu.memory_space<vmem>>, vector<1x32x32xbf16>
      %528 = vector.shape_cast %527 : vector<1x32x32xbf16> to vector<32x32xbf16>
      %529 = vector.shape_cast %525 : vector<32x32xbf16> to vector<1x32x32xbf16>
      tpu.vector_store %arg22[%c3_325, %526, %c0_326], %529 {strides = array<i32>} : memref<4x64x32xbf16, #tpu.memory_space<vmem>>, vector<1x32x32xbf16>,
      %530 = arith.truncf %513 : vector<32x32xf32> to vector<32x32xbf16>
      %c3_327 = arith.constant 3 : index
      %531 = arith.index_cast %346 : i32 to index
      %c0_328 = arith.constant 0 : index
      %532 = vector.load %arg23[%c3_327, %531, %c0_328] : memref<4x64x32xbf16, #tpu.memory_space<vmem>>, vector<1x32x32xbf16>
      %533 = vector.shape_cast %532 : vector<1x32x32xbf16> to vector<32x32xbf16>
      %534 = vector.shape_cast %530 : vector<32x32xbf16> to vector<1x32x32xbf16>
      tpu.vector_store %arg23[%c3_327, %531, %c0_328], %534 {strides = array<i32>} : memref<4x64x32xbf16, #tpu.memory_space<vmem>>, vector<1x32x32xbf16>,
      %535 = arith.truncf %524 : vector<32x128xf32> to vector<32x128xbf16>
      %c3_329 = arith.constant 3 : index
      %536 = arith.index_cast %346 : i32 to index
      %c0_330 = arith.constant 0 : index
      %537 = vector.load %arg24[%c3_329, %536, %c0_330] : memref<4x64x128xbf16, #tpu.memory_space<vmem>>, vector<1x32x128xbf16>
      %538 = vector.shape_cast %537 : vector<1x32x128xbf16> to vector<32x128xbf16>
      %539 = vector.shape_cast %535 : vector<32x128xbf16> to vector<1x32x128xbf16>
      tpu.vector_store %arg24[%c3_329, %536, %c0_330], %539 {strides = array<i32>} : memref<4x64x128xbf16, #tpu.memory_space<vmem>>, vector<1x32x128xbf16>,
      %c2_i32 = arith.constant 2 : i32
    } else {
    }
    %c32_i32 = arith.constant 32 : i32
    %3 = arith.muli %arg1, %c32_i32 : i32
    %4 = tpu.assume_multiple %3, 32 : i32
    %c0 = arith.constant 0 : index
    %5 = arith.index_cast %4 : i32 to index
    %c0_1 = arith.constant 0 : index
    %6 = vector.load %arg2[%c0, %5, %c0_1] : memref<1x64x128xbf16, #tpu.memory_space<vmem>>, vector<1x32x128xbf16>
    %7 = vector.shape_cast %6 : vector<1x32x128xbf16> to vector<32x128xbf16>
    %8 = arith.extf %7 : vector<32x128xbf16> to vector<32x128xf32>
    %c0_2 = arith.constant 0 : index
    %9 = arith.index_cast %4 : i32 to index
    %c0_3 = arith.constant 0 : index
    %10 = vector.load %arg22[%c0_2, %9, %c0_3] : memref<4x64x32xbf16, #tpu.memory_space<vmem>>, vector<4x32x32xbf16>
    %c0_4 = arith.constant 0 : index
    %c0_5 = arith.constant 0 : index
    %c0_6 = arith.constant 0 : index
    %11 = vector.load %arg23[%c0_4, %c0_5, %c0_6] : memref<4x64x32xbf16, #tpu.memory_space<vmem>>, vector<4x64x32xbf16>
    "tpu.trace_start"() <{level = 10 : i32, message = "hqd,hkd->hqk"}> : () -> ()
    %cst = arith.constant dense<0.000000e+00> : vector<4x32x64xf32>
    %12 = tpu.matmul %10, %11, %cst {dimension_numbers = #tpu.dot_dimension_numbers<[2], [2], [1], [1], [0, 0, 0, 1, 1, 1], [0], [0]>} : vector<4x32x32xbf16>, vector<4x64x32xbf16>, vector<4x32x64xf32> -> vector<4x32x64xf32>
    "tpu.trace_stop"() : () -> ()
    %cst_7 = arith.constant dense<0xFF800000> : vector<4x32xf32>
    %13 = vector.multi_reduction <maximumf>, %12, %cst_7 [2] : vector<4x32x64xf32> to vector<4x32xf32>
    %14 = vector.shape_cast %13 : vector<4x32xf32> to vector<4x32x1xf32>
    %15 = vector.broadcast %14 : vector<4x32x1xf32> to vector<4x32x64xf32>
    %16 = arith.subf %12, %15 : vector<4x32x64xf32>
    %17 = math.exp %16 : vector<4x32x64xf32>
    %cst_8 = arith.constant dense<0.000000e+00> : vector<4x32xf32>
    %18 = vector.multi_reduction <add>, %17, %cst_8 [2] : vector<4x32x64xf32> to vector<4x32xf32>
    %19 = vector.shape_cast %18 : vector<4x32xf32> to vector<4x32x1xf32>
    %20 = tpu.reciprocal %19 {approx = true} : vector<4x32x1xf32> -> vector<4x32x1xf32>
    %21 = arith.truncf %17 : vector<4x32x64xf32> to vector<4x32x64xbf16>
    %22 = vector.extract_strided_slice %21 {offsets = [0, 0, 0], sizes = [1, 32, 64], strides = [1, 1, 1]} : vector<4x32x64xbf16> to vector<1x32x64xbf16>
    %23 = vector.shape_cast %22 : vector<1x32x64xbf16> to vector<32x64xbf16>
    %c0_9 = arith.constant 0 : index
    %c0_10 = arith.constant 0 : index
    %c0_11 = arith.constant 0 : index
    %24 = vector.load %arg24[%c0_9, %c0_10, %c0_11] : memref<4x64x128xbf16, #tpu.memory_space<vmem>>, vector<1x64x128xbf16>
    %25 = vector.shape_cast %24 : vector<1x64x128xbf16> to vector<64x128xbf16>
    %cst_12 = arith.constant dense<0.000000e+00> : vector<32x128xf32>
    %26 = tpu.matmul %23, %25, %cst_12 {dimension_numbers = #tpu.dot_dimension_numbers<[1], [0], [0], [1], [0, 0, 1, 1], [], []>} : vector<32x64xbf16>, vector<64x128xbf16>, vector<32x128xf32> -> vector<32x128xf32>
    %27 = vector.extract_strided_slice %20 {offsets = [0, 0, 0], sizes = [1, 32, 1], strides = [1, 1, 1]} : vector<4x32x1xf32> to vector<1x32x1xf32>
    %28 = vector.shape_cast %27 : vector<1x32x1xf32> to vector<32x1xf32>
    %29 = vector.broadcast %28 : vector<32x1xf32> to vector<32x128xf32>
    %30 = arith.mulf %26, %29 : vector<32x128xf32>
    %31 = vector.extract_strided_slice %21 {offsets = [1, 0, 0], sizes = [1, 32, 64], strides = [1, 1, 1]} : vector<4x32x64xbf16> to vector<1x32x64xbf16>
    %32 = vector.shape_cast %31 : vector<1x32x64xbf16> to vector<32x64xbf16>
    %c1 = arith.constant 1 : index
    %c0_13 = arith.constant 0 : index
    %c0_14 = arith.constant 0 : index
    %33 = vector.load %arg24[%c1, %c0_13, %c0_14] : memref<4x64x128xbf16, #tpu.memory_space<vmem>>, vector<1x64x128xbf16>
    %34 = vector.shape_cast %33 : vector<1x64x128xbf16> to vector<64x128xbf16>
    %cst_15 = arith.constant dense<0.000000e+00> : vector<32x128xf32>
    %35 = tpu.matmul %32, %34, %cst_15 {dimension_numbers = #tpu.dot_dimension_numbers<[1], [0], [0], [1], [0, 0, 1, 1], [], []>} : vector<32x64xbf16>, vector<64x128xbf16>, vector<32x128xf32> -> vector<32x128xf32>
    %36 = vector.extract_strided_slice %20 {offsets = [1, 0, 0], sizes = [1, 32, 1], strides = [1, 1, 1]} : vector<4x32x1xf32> to vector<1x32x1xf32>
    %37 = vector.shape_cast %36 : vector<1x32x1xf32> to vector<32x1xf32>
    %38 = vector.broadcast %37 : vector<32x1xf32> to vector<32x128xf32>
    %39 = arith.mulf %35, %38 : vector<32x128xf32>
    %40 = arith.addf %30, %39 : vector<32x128xf32>
    %41 = vector.extract_strided_slice %21 {offsets = [2, 0, 0], sizes = [1, 32, 64], strides = [1, 1, 1]} : vector<4x32x64xbf16> to vector<1x32x64xbf16>
    %42 = vector.shape_cast %41 : vector<1x32x64xbf16> to vector<32x64xbf16>
    %c2 = arith.constant 2 : index
    %c0_16 = arith.constant 0 : index
    %c0_17 = arith.constant 0 : index
    %43 = vector.load %arg24[%c2, %c0_16, %c0_17] : memref<4x64x128xbf16, #tpu.memory_space<vmem>>, vector<1x64x128xbf16>
    %44 = vector.shape_cast %43 : vector<1x64x128xbf16> to vector<64x128xbf16>
    %cst_18 = arith.constant dense<0.000000e+00> : vector<32x128xf32>
    %45 = tpu.matmul %42, %44, %cst_18 {dimension_numbers = #tpu.dot_dimension_numbers<[1], [0], [0], [1], [0, 0, 1, 1], [], []>} : vector<32x64xbf16>, vector<64x128xbf16>, vector<32x128xf32> -> vector<32x128xf32>
    %46 = vector.extract_strided_slice %20 {offsets = [2, 0, 0], sizes = [1, 32, 1], strides = [1, 1, 1]} : vector<4x32x1xf32> to vector<1x32x1xf32>
    %47 = vector.shape_cast %46 : vector<1x32x1xf32> to vector<32x1xf32>
    %48 = vector.broadcast %47 : vector<32x1xf32> to vector<32x128xf32>
    %49 = arith.mulf %45, %48 : vector<32x128xf32>
    %50 = arith.addf %40, %49 : vector<32x128xf32>
    %51 = vector.extract_strided_slice %21 {offsets = [3, 0, 0], sizes = [1, 32, 64], strides = [1, 1, 1]} : vector<4x32x64xbf16> to vector<1x32x64xbf16>
    %52 = vector.shape_cast %51 : vector<1x32x64xbf16> to vector<32x64xbf16>
    %c3 = arith.constant 3 : index
    %c0_19 = arith.constant 0 : index
    %c0_20 = arith.constant 0 : index
    %53 = vector.load %arg24[%c3, %c0_19, %c0_20] : memref<4x64x128xbf16, #tpu.memory_space<vmem>>, vector<1x64x128xbf16>
    %54 = vector.shape_cast %53 : vector<1x64x128xbf16> to vector<64x128xbf16>
    %cst_21 = arith.constant dense<0.000000e+00> : vector<32x128xf32>
    %55 = tpu.matmul %52, %54, %cst_21 {dimension_numbers = #tpu.dot_dimension_numbers<[1], [0], [0], [1], [0, 0, 1, 1], [], []>} : vector<32x64xbf16>, vector<64x128xbf16>, vector<32x128xf32> -> vector<32x128xf32>
    %56 = vector.extract_strided_slice %20 {offsets = [3, 0, 0], sizes = [1, 32, 1], strides = [1, 1, 1]} : vector<4x32x1xf32> to vector<1x32x1xf32>
    %57 = vector.shape_cast %56 : vector<1x32x1xf32> to vector<32x1xf32>
    %58 = vector.broadcast %57 : vector<32x1xf32> to vector<32x128xf32>
    %59 = arith.mulf %55, %58 : vector<32x128xf32>
    %60 = arith.addf %50, %59 : vector<32x128xf32>
    %61 = arith.addf %8, %60 : vector<32x128xf32>
    %c0_22 = arith.constant 0 : index
    %c0_23 = arith.constant 0 : index
    %62 = vector.load %arg12[%c0_22, %c0_23] : memref<1x128xf32, #tpu.memory_space<vmem>>, vector<1x128xf32>
    %63 = vector.shape_cast %62 : vector<1x128xf32> to vector<128xf32>
    %64 = vector.shape_cast %63 : vector<128xf32> to vector<1x128xf32>
    %65 = vector.broadcast %64 : vector<1x128xf32> to vector<32x128xf32>
    %66 = arith.addf %61, %65 : vector<32x128xf32>
    %c0_24 = arith.constant 0 : index
    %c0_25 = arith.constant 0 : index
    %67 = vector.load %arg13[%c0_24, %c0_25] : memref<1x128xf32, #tpu.memory_space<vmem>>, vector<1x128xf32>
    %68 = vector.shape_cast %67 : vector<1x128xf32> to vector<128xf32>
    %c0_26 = arith.constant 0 : index
    %c0_27 = arith.constant 0 : index
    %69 = vector.load %arg14[%c0_26, %c0_27] : memref<1x128xf32, #tpu.memory_space<vmem>>, vector<1x128xf32>
    %70 = vector.shape_cast %69 : vector<1x128xf32> to vector<128xf32>
    %cst_28 = arith.constant dense<0.000000e+00> : vector<32xf32>
    %71 = vector.multi_reduction <add>, %66, %cst_28 [1] : vector<32x128xf32> to vector<32xf32>
    %72 = vector.shape_cast %71 : vector<32xf32> to vector<32x1xf32>
    %cst_29 = arith.constant 1.280000e+02 : f32
    %73 = vector.broadcast %cst_29 : f32 to vector<32x1xf32>
    %74 = arith.divf %72, %73 : vector<32x1xf32>
    %75 = vector.broadcast %74 : vector<32x1xf32> to vector<32x128xf32>
    %76 = arith.subf %66, %75 : vector<32x128xf32>
    %77 = arith.mulf %76, %76 : vector<32x128xf32>
    %cst_30 = arith.constant dense<0.000000e+00> : vector<32xf32>
    %78 = vector.multi_reduction <add>, %77, %cst_30 [1] : vector<32x128xf32> to vector<32xf32>
    %79 = vector.shape_cast %78 : vector<32xf32> to vector<32x1xf32>
    %cst_31 = arith.constant 1.280000e+02 : f32
    %80 = vector.broadcast %cst_31 : f32 to vector<32x1xf32>
    %81 = arith.divf %79, %80 : vector<32x1xf32>
    %82 = vector.broadcast %74 : vector<32x1xf32> to vector<32x128xf32>
    %83 = arith.subf %66, %82 : vector<32x128xf32>
    %cst_32 = arith.constant 9.99999974E-6 : f32
    %84 = vector.broadcast %cst_32 : f32 to vector<32x1xf32>
    %85 = arith.addf %81, %84 : vector<32x1xf32>
    %86 = math.rsqrt %85 : vector<32x1xf32>
    %87 = vector.broadcast %86 : vector<32x1xf32> to vector<32x128xf32>
    %88 = arith.mulf %83, %87 : vector<32x128xf32>
    %89 = vector.shape_cast %68 : vector<128xf32> to vector<1x128xf32>
    %90 = vector.broadcast %89 : vector<1x128xf32> to vector<32x128xf32>
    %91 = arith.mulf %88, %90 : vector<32x128xf32>
    %92 = vector.shape_cast %70 : vector<128xf32> to vector<1x128xf32>
    %93 = vector.broadcast %92 : vector<1x128xf32> to vector<32x128xf32>
    %94 = arith.addf %91, %93 : vector<32x128xf32>
    %95 = arith.truncf %94 : vector<32x128xf32> to vector<32x128xbf16>
    %c0_33 = arith.constant 0 : index
    %c0_34 = arith.constant 0 : index
    %96 = vector.load %arg15[%c0_33, %c0_34] : memref<128x256xbf16, #tpu.memory_space<vmem>>, vector<128x256xbf16>
    %cst_35 = arith.constant dense<0.000000e+00> : vector<32x256xf32>
    %97 = tpu.matmul %95, %96, %cst_35 {dimension_numbers = #tpu.dot_dimension_numbers<[1], [0], [0], [1], [0, 0, 1, 1], [], []>} : vector<32x128xbf16>, vector<128x256xbf16>, vector<32x256xf32> -> vector<32x256xf32>
    %c0_36 = arith.constant 0 : index
    %c0_37 = arith.constant 0 : index
    %98 = vector.load %arg16[%c0_36, %c0_37] : memref<1x256xf32, #tpu.memory_space<vmem>>, vector<1x256xf32>
    %99 = vector.shape_cast %98 : vector<1x256xf32> to vector<256xf32>
    %100 = vector.shape_cast %99 : vector<256xf32> to vector<1x256xf32>
    %101 = vector.broadcast %100 : vector<1x256xf32> to vector<32x256xf32>
    %102 = arith.addf %97, %101 : vector<32x256xf32>
    %cst_38 = arith.constant 5.000000e-01 : f32
    %103 = vector.broadcast %cst_38 : f32 to vector<32x256xf32>
    %104 = arith.mulf %103, %102 : vector<32x256xf32>
    %cst_39 = arith.constant 0.707106769 : f32
    %105 = vector.broadcast %cst_39 : f32 to vector<32x256xf32>
    %106 = arith.mulf %102, %105 : vector<32x256xf32>
    %107 = math.erf %106 : vector<32x256xf32>
    %cst_40 = arith.constant 1.000000e+00 : f32
    %108 = vector.broadcast %cst_40 : f32 to vector<32x256xf32>
    %109 = arith.addf %108, %107 : vector<32x256xf32>
    %110 = arith.mulf %104, %109 : vector<32x256xf32>
    %111 = arith.truncf %110 : vector<32x256xf32> to vector<32x256xbf16>
    %c0_41 = arith.constant 0 : index
    %c0_42 = arith.constant 0 : index
    %112 = vector.load %arg17[%c0_41, %c0_42] : memref<256x128xbf16, #tpu.memory_space<vmem>>, vector<256x128xbf16>
    %cst_43 = arith.constant dense<0.000000e+00> : vector<32x128xf32>
    %113 = tpu.matmul %111, %112, %cst_43 {dimension_numbers = #tpu.dot_dimension_numbers<[1], [0], [0], [1], [0, 0, 1, 1], [], []>} : vector<32x256xbf16>, vector<256x128xbf16>, vector<32x128xf32> -> vector<32x128xf32>
    %c0_44 = arith.constant 0 : index
    %c0_45 = arith.constant 0 : index
    %114 = vector.load %arg18[%c0_44, %c0_45] : memref<1x128xf32, #tpu.memory_space<vmem>>, vector<1x128xf32>
    %115 = vector.shape_cast %114 : vector<1x128xf32> to vector<128xf32>
    %116 = vector.shape_cast %115 : vector<128xf32> to vector<1x128xf32>
    %117 = vector.broadcast %116 : vector<1x128xf32> to vector<32x128xf32>
    %118 = arith.addf %113, %117 : vector<32x128xf32>
    %119 = arith.addf %66, %118 : vector<32x128xf32>
    %c0_46 = arith.constant 0 : index
    %c0_47 = arith.constant 0 : index
    %120 = vector.load %arg19[%c0_46, %c0_47] : memref<1x128xf32, #tpu.memory_space<vmem>>, vector<1x128xf32>
    %121 = vector.shape_cast %120 : vector<1x128xf32> to vector<128xf32>
    %c0_48 = arith.constant 0 : index
    %c0_49 = arith.constant 0 : index
    %122 = vector.load %arg20[%c0_48, %c0_49] : memref<1x128xf32, #tpu.memory_space<vmem>>, vector<1x128xf32>
    %123 = vector.shape_cast %122 : vector<1x128xf32> to vector<128xf32>
    %cst_50 = arith.constant dense<0.000000e+00> : vector<32xf32>
    %124 = vector.multi_reduction <add>, %119, %cst_50 [1] : vector<32x128xf32> to vector<32xf32>
    %125 = vector.shape_cast %124 : vector<32xf32> to vector<32x1xf32>
    %cst_51 = arith.constant 1.280000e+02 : f32
    %126 = vector.broadcast %cst_51 : f32 to vector<32x1xf32>
    %127 = arith.divf %125, %126 : vector<32x1xf32>
    %128 = vector.broadcast %127 : vector<32x1xf32> to vector<32x128xf32>
    %129 = arith.subf %119, %128 : vector<32x128xf32>
    %130 = arith.mulf %129, %129 : vector<32x128xf32>
    %cst_52 = arith.constant dense<0.000000e+00> : vector<32xf32>
    %131 = vector.multi_reduction <add>, %130, %cst_52 [1] : vector<32x128xf32> to vector<32xf32>
    %132 = vector.shape_cast %131 : vector<32xf32> to vector<32x1xf32>
    %cst_53 = arith.constant 1.280000e+02 : f32
    %133 = vector.broadcast %cst_53 : f32 to vector<32x1xf32>
    %134 = arith.divf %132, %133 : vector<32x1xf32>
    %135 = vector.broadcast %127 : vector<32x1xf32> to vector<32x128xf32>
    %136 = arith.subf %119, %135 : vector<32x128xf32>
    %cst_54 = arith.constant 9.99999974E-6 : f32
    %137 = vector.broadcast %cst_54 : f32 to vector<32x1xf32>
    %138 = arith.addf %134, %137 : vector<32x1xf32>
    %139 = math.rsqrt %138 : vector<32x1xf32>
    %140 = vector.broadcast %139 : vector<32x1xf32> to vector<32x128xf32>
    %141 = arith.mulf %136, %140 : vector<32x128xf32>
    %142 = vector.shape_cast %121 : vector<128xf32> to vector<1x128xf32>
    %143 = vector.broadcast %142 : vector<1x128xf32> to vector<32x128xf32>
    %144 = arith.mulf %141, %143 : vector<32x128xf32>
    %145 = vector.shape_cast %123 : vector<128xf32> to vector<1x128xf32>
    %146 = vector.broadcast %145 : vector<1x128xf32> to vector<32x128xf32>
    %147 = arith.addf %144, %146 : vector<32x128xf32>
    %148 = vector.shape_cast %147 : vector<32x128xf32> to vector<1x32x128xf32>
    %c0_55 = arith.constant 0 : index
    %c0_56 = arith.constant 0 : index
    %c0_57 = arith.constant 0 : index
    %149 = vector.load %arg21[%c0_55, %c0_56, %c0_57] : memref<1x32x128xf32, #tpu.memory_space<vmem>>, vector<1x32x128xf32>
    tpu.vector_store %arg21[%c0_55, %c0_56, %c0_57], %148 {strides = array<i32>} : memref<1x32x128xf32, #tpu.memory_space<vmem>>, vector<1x32x128xf32>,
    return
  }
  func.func @transform_0(%arg0: i32, %arg1: i32) -> (i32, i32, i32) {
    %c0_i32 = arith.constant 0 : i32
    %c0_i32_0 = arith.constant 0 : i32
    %c0_i32_1 = arith.constant 0 : i32
    return %arg0, %c0_i32, %c0_i32_0 : i32, i32, i32
  }
  func.func @transform_1(%arg0: i32, %arg1: i32) -> (i32, i32) {
    %c0_i32 = arith.constant 0 : i32
    %c0_i32_0 = arith.constant 0 : i32
    %c0_i32_1 = arith.constant 0 : i32
    return %c0_i32, %c0_i32_0 : i32, i32
  }
  func.func @transform_2(%arg0: i32, %arg1: i32) -> (i32, i32) {
    %c0_i32 = arith.constant 0 : i32
    %c0_i32_0 = arith.constant 0 : i32
    %c0_i32_1 = arith.constant 0 : i32
    return %c0_i32, %c0_i32_0 : i32, i32
  }
  func.func @transform_3(%arg0: i32, %arg1: i32) -> (i32, i32, i32) {
    %c0_i32 = arith.constant 0 : i32
    %c0_i32_0 = arith.constant 0 : i32
    %c0_i32_1 = arith.constant 0 : i32
    %c0_i32_2 = arith.constant 0 : i32
    return %c0_i32, %c0_i32_0, %c0_i32_1 : i32, i32, i32
  }
  func.func @transform_4(%arg0: i32, %arg1: i32) -> (i32, i32, i32) {
    %c0_i32 = arith.constant 0 : i32
    %c0_i32_0 = arith.constant 0 : i32
    %c0_i32_1 = arith.constant 0 : i32
    %c0_i32_2 = arith.constant 0 : i32
    return %c0_i32, %c0_i32_0, %c0_i32_1 : i32, i32, i32
  }
  func.func @transform_5(%arg0: i32, %arg1: i32) -> (i32, i32, i32) {
    %c0_i32 = arith.constant 0 : i32
    %c0_i32_0 = arith.constant 0 : i32
    %c0_i32_1 = arith.constant 0 : i32
    %c0_i32_2 = arith.constant 0 : i32
    return %c0_i32, %c0_i32_0, %c0_i32_1 : i32, i32, i32
  }
  func.func @transform_6(%arg0: i32, %arg1: i32) -> (i32, i32, i32) {
    %c0_i32 = arith.constant 0 : i32
    %c0_i32_0 = arith.constant 0 : i32
    %c0_i32_1 = arith.constant 0 : i32
    %c0_i32_2 = arith.constant 0 : i32
    return %c0_i32, %c0_i32_0, %c0_i32_1 : i32, i32, i32
  }
  func.func @transform_7(%arg0: i32, %arg1: i32) -> (i32, i32, i32) {
    %c0_i32 = arith.constant 0 : i32
    %c0_i32_0 = arith.constant 0 : i32
    %c0_i32_1 = arith.constant 0 : i32
    %c0_i32_2 = arith.constant 0 : i32
    return %c0_i32, %c0_i32_0, %c0_i32_1 : i32, i32, i32
  }
  func.func @transform_8(%arg0: i32, %arg1: i32) -> (i32, i32, i32) {
    %c0_i32 = arith.constant 0 : i32
    %c0_i32_0 = arith.constant 0 : i32
    %c0_i32_1 = arith.constant 0 : i32
    %c0_i32_2 = arith.constant 0 : i32
    return %c0_i32, %c0_i32_0, %c0_i32_1 : i32, i32, i32
  }
  func.func @transform_9(%arg0: i32, %arg1: i32) -> (i32, i32, i32) {
    %c0_i32 = arith.constant 0 : i32
    %c0_i32_0 = arith.constant 0 : i32
    %c0_i32_1 = arith.constant 0 : i32
    %c0_i32_2 = arith.constant 0 : i32
    return %c0_i32, %c0_i32_0, %c0_i32_1 : i32, i32, i32
  }
  func.func @transform_10(%arg0: i32, %arg1: i32) -> (i32, i32) {
    %c0_i32 = arith.constant 0 : i32
    %c0_i32_0 = arith.constant 0 : i32
    %c0_i32_1 = arith.constant 0 : i32
    return %c0_i32, %c0_i32_0 : i32, i32
  }
  func.func @transform_11(%arg0: i32, %arg1: i32) -> (i32, i32) {
    %c0_i32 = arith.constant 0 : i32
    %c0_i32_0 = arith.constant 0 : i32
    %c0_i32_1 = arith.constant 0 : i32
    return %c0_i32, %c0_i32_0 : i32, i32
  }
  func.func @transform_12(%arg0: i32, %arg1: i32) -> (i32, i32) {
    %c0_i32 = arith.constant 0 : i32
    %c0_i32_0 = arith.constant 0 : i32
    %c0_i32_1 = arith.constant 0 : i32
    return %c0_i32, %c0_i32_0 : i32, i32
  }
  func.func @transform_13(%arg0: i32, %arg1: i32) -> (i32, i32) {
    %c0_i32 = arith.constant 0 : i32
    %c0_i32_0 = arith.constant 0 : i32
    %c0_i32_1 = arith.constant 0 : i32
    return %c0_i32, %c0_i32_0 : i32, i32
  }
  func.func @transform_14(%arg0: i32, %arg1: i32) -> (i32, i32) {
    %c0_i32 = arith.constant 0 : i32
    %c0_i32_0 = arith.constant 0 : i32
    %c0_i32_1 = arith.constant 0 : i32
    return %c0_i32, %c0_i32_0 : i32, i32
  }
  func.func @transform_15(%arg0: i32, %arg1: i32) -> (i32, i32) {
    %c0_i32 = arith.constant 0 : i32
    %c0_i32_0 = arith.constant 0 : i32
    %c0_i32_1 = arith.constant 0 : i32
    return %c0_i32, %c0_i32_0 : i32, i32
  }
  func.func @transform_16(%arg0: i32, %arg1: i32) -> (i32, i32) {
    %c0_i32 = arith.constant 0 : i32
    %c0_i32_0 = arith.constant 0 : i32
    %c0_i32_1 = arith.constant 0 : i32
    return %c0_i32, %c0_i32_0 : i32, i32
  }
  func.func @transform_17(%arg0: i32, %arg1: i32) -> (i32, i32) {
    %c0_i32 = arith.constant 0 : i32
    %c0_i32_0 = arith.constant 0 : i32
    %c0_i32_1 = arith.constant 0 : i32
    return %c0_i32, %c0_i32_0 : i32, i32
  }
  func.func @transform_18(%arg0: i32, %arg1: i32) -> (i32, i32) {
    %c0_i32 = arith.constant 0 : i32
    %c0_i32_0 = arith.constant 0 : i32
    %c0_i32_1 = arith.constant 0 : i32
    return %c0_i32, %c0_i32_0 : i32, i32
  }
  func.func @transform_19(%arg0: i32, %arg1: i32) -> (i32, i32, i32) {
    %c0_i32 = arith.constant 0 : i32
    %c0_i32_0 = arith.constant 0 : i32
    return %arg0, %arg1, %c0_i32 : i32, i32, i32
  }
}

</mosaic_0001>

<bundles_post_ra>
// kernel: vit_forward.3
= control target key start
LH: loop header
LB: loop body
LE: loop exit
PB: predicated region body
PF: predicated region fallthrough
CT: control target
= control target key end

     0   :  { %s816_s15 = smov 0   ;;  %s818_s16 = smov 0   ;;  %s901_s0 = inlined_call_operand.vmem [shape: bf16[2,64,128], index: 0, kind: input, shape index: {}]   ;;  %s902_s1 = inlined_call_operand.vmem [shape: bf16[128,128], index: 1, kind: input, shape index: {}]   ;;  %s903_s2 = inlined_call_operand.vmem [shape: f32[1,128], index: 2, kind: input, shape index: {}]   ;;  %s904_s3 = inlined_call_operand.vmem [shape: bf16[1,64,128], index: 3, kind: input, shape index: {}]   ;;  %s905_s4 = inlined_call_operand.vmem [shape: bf16[2,64,128], index: 4, kind: output, shape index: {}]  }
   0x1   :  { %s820_s17 = smov 0  }
   0x2 LB: > { %s26_s18 = sadd.s32 1, %s785_s16  ;;  %p599_p0 = scmp.ge.s32.totalorder %s789_s17, 1  ;;  %s789_s17 = sphi %s820_s17, %s14_s17   ;;  %s785_s16 = sphi %s818_s16, %s907_s16   ;;  %s781_s15 = sphi %s816_s15, %s906_s15  }
   0x3   : > { %p28_p1 = scmp.ge.s32.totalorder %s26_s18, 2  ;;  %p194_p2 = scmp.lt.s32.totalorder %s789_s17, 3 }
   0x5   : > { %s909_s18 = smov (%p28_p1, %s26_s18), 0  ;;  %p195_p3 = pnand %p599_p0, %p194_p2 }
   0x6   : > { %p234_p4 = scmp.lt.s32.totalorder (!%p195_p3), %s781_s15, 1 }
   0x7   : > { %198 = sbr.rel (%p195_p3) target bundleno = 251 (0xfb), region = 36 }
   0xc   : > { %v755_v0 = vld [vmem:[%s902_s1 + $0x38] sm:$0xff]   ;;  %v756_v1 = vld [vmem:[%s902_s1 + $0x30] sm:$0xff]   ;;  %s911_s15 = smov (!%p234_p4, %s781_s15), 1  ;;  %v757_v2 = vld [vmem:[%s902_s1 + $0x28] sm:$0xff]  }
   0xd   : > { %691 = vmatprep.subr.bf16.mxu0 %v755_v0  ;;  %715 = vmatprep.subr.bf16.mxu1 %v755_v0  ;;  %s627_s25 = sshll.u32 %s911_s15, 5  ;;  %v758_v3 = vld [vmem:[%s902_s1 + $0x20] sm:$0xff]   ;;  %v759_v6 = vld [vmem:[%s902_s1 + $0x18] sm:$0xff]   ;;  %v760_v7 = vld [vmem:[%s902_s1 + $0x10] sm:$0xff]  }
   0xe   : > { %692 = vmatpush3.bf16.msra.mxu0 %v755_v0  ;;  %723 = vmatpush3.bf16.msra.mxu1 %v755_v0  ;;  %s851_s28 = scalar_lea.vmem %s901_s0, %s627_s25  ;;  %v761_v8 = vld [vmem:[%s902_s1 + $0x8] sm:$0xff]   ;;  %v762_v9 = vld [vmem:[%s902_s1] sm:$0xff]   ;;  %v675_v14 = vld [vmem:[%s904_s3 + $0x18] sm:$0xff]   ;;  %s257_s30 = scalar_lea.vmem %s905_s4, %s627_s25 }
   0xf   : > { %693 = vmatprep.subr.bf16.mxu0 %v756_v1  ;;  %716 = vmatprep.subr.bf16.mxu1 %v756_v1  ;;  %v763_v4 = vld [vmem:[%s851_s28] sm:$0xff]   ;;  %v764_v5 = vld [vmem:[%s851_s28 + $0x10] sm:$0xff]   ;;  %v765_v10 = vld [vmem:[%s851_s28 + $0x8] sm:$0xff]   ;;  %v651_v22 = vunpack.c.l.bf16 %v675_v14  ;;  %v652_v26 = vunpack.c.h.bf16 %v675_v14 }
  0x10   : > { %707 = vmatprep.mubr.bf16.mxu0 %v763_v4  ;;  %711 = vmatprep.mubr.bf16.mxu1 %v764_v5  ;;  %v766_v11 = vld [vmem:[%s851_s28 + $0x18] sm:$0xff]   ;;  %v604_v12 = vld [vmem:[%s903_s2] ss:$0 sm:$0xff]  ;;  %v673_v13 = vld [vmem:[%s904_s3 + $0x8] sm:$0xff]  }
  0x11   : > { %v638_v17 = vld [vmem:[%s904_s3] sm:$0xff]   ;;  %v674_v18 = vld [vmem:[%s904_s3 + $0x10] sm:$0xff]   ;;  %v643_v20 = vunpack.c.l.bf16 %v673_v13  ;;  %v644_v25 = vunpack.c.h.bf16 %v673_v13 }
  0x12   : > { %694 = vmatpush3.bf16.msra.mxu0 %v756_v1  ;;  %724 = vmatpush3.bf16.msra.mxu1 %v756_v1  ;;  %v639_v28 = vunpack.c.l.bf16 %v638_v17  ;;  %v647_v30 = vunpack.c.l.bf16 %v674_v18  ;;  %v640_v35 = vunpack.c.h.bf16 %v638_v17  ;;  %v648_v36 = vunpack.c.h.bf16 %v674_v18 }
  0x13   : > { %695 = vmatprep.subr.bf16.mxu0 %v757_v2  ;;  %717 = vmatprep.subr.bf16.mxu1 %v757_v2 }
  0x16   : > { %696 = vmatpush3.bf16.msra.mxu0 %v757_v2  ;;  %725 = vmatpush3.bf16.msra.mxu1 %v757_v2 }
  0x17   : > { %697 = vmatprep.subr.bf16.mxu0 %v758_v3  ;;  %718 = vmatprep.subr.bf16.mxu1 %v758_v3 }
  0x1a   : > { %698 = vmatpush3.bf16.msra.mxu0 %v758_v3  ;;  %726 = vmatpush3.bf16.msra.mxu1 %v758_v3 }
  0x1b   : > { %699 = vmatprep.subr.bf16.mxu0 %v759_v6  ;;  %719 = vmatprep.subr.bf16.mxu1 %v759_v6 }
  0x1e   : > { %700 = vmatpush3.bf16.msra.mxu0 %v759_v6  ;;  %727 = vmatpush3.bf16.msra.mxu1 %v759_v6 }
  0x1f   : > { %701 = vmatprep.subr.bf16.mxu0 %v760_v7  ;;  %720 = vmatprep.subr.bf16.mxu1 %v760_v7 }
  0x22   : > { %702 = vmatpush3.bf16.msra.mxu0 %v760_v7  ;;  %728 = vmatpush3.bf16.msra.mxu1 %v760_v7 }
  0x23   : > { %703 = vmatprep.subr.bf16.mxu0 %v761_v8  ;;  %721 = vmatprep.subr.bf16.mxu1 %v761_v8 }
  0x26   : > { %704 = vmatpush3.bf16.msra.mxu0 %v761_v8  ;;  %729 = vmatpush3.bf16.msra.mxu1 %v761_v8 }
  0x27   : > { %705 = vmatprep.subr.bf16.mxu0 %v762_v9  ;;  %722 = vmatprep.subr.bf16.mxu1 %v762_v9 }
  0x2a   : > { %706 = vmatpush3.bf16.msra.mxu0 %v762_v9  ;;  %730 = vmatpush3.bf16.msra.mxu1 %v762_v9 }
  0x2d   : > { %708 = vmatmul.mubr.bf16.vlgmr.msra.gmra.mxu0 %v765_v10  ;;  %712 = vmatmul.mubr.bf16.vlgmr.msra.gmra.mxu1 %v766_v11 }
  0xed   : > { %v709_v15 = vpop.f32.mrf.mxu0  ;;  %v713_v16 = vpop.f32.mrf.mxu1 }
  0xee   : > { %v406_v19 = vadd.f32 %v709_v15, %v604_v12  ;;  %v422_v21 = vadd.f32 %v713_v16, %v604_v12 }
  0xef   : > { %v397_v23 = vpop.f32.mrf.mxu0  ;;  %v413_v24 = vpop.f32.mrf.mxu1 }
  0xf0   : > { %v398_v27 = vadd.f32 %v604_v12, %v397_v23  ;;  %v414_v29 = vadd.f32 %v604_v12, %v413_v24  ;;  %v446_v37 = vadd.f32 %v643_v20, %v406_v19  ;;  %v450_v38 = vadd.f32 %v651_v22, %v422_v21 }
  0xf1   : > { %v710_v31 = vpop.f32.mrf.mxu0  ;;  %v714_v32 = vpop.f32.mrf.mxu1 }
  0xf2   : > { %v409_v33 = vadd.f32 %v710_v31, %v604_v12  ;;  %v425_v34 = vadd.f32 %v714_v32, %v604_v12  ;;  %v444_v45 = vadd.f32 %v639_v28, %v398_v27  ;;  %v448_v46 = vadd.f32 %v647_v30, %v414_v29 }
  0xf3   : > { %v400_v39 = vpop.f32.mrf.mxu0  ;;  %v416_v40 = vpop.f32.mrf.mxu1 }
  0xf4   : > { %v447_v41 = vadd.f32 %v644_v25, %v409_v33  ;;  %v451_v42 = vadd.f32 %v652_v26, %v425_v34  ;;  %v401_v43 = vadd.f32 %v604_v12, %v400_v39  ;;  %v417_v44 = vadd.f32 %v604_v12, %v416_v40 }
  0xf6   : > { %v661_v47 = vpack.c.bf16 %v447_v41, %v446_v37  ;;  %v671_v48 = vpack.c.bf16 %v451_v42, %v450_v38  ;;  %v445_v49 = vadd.f32 %v640_v35, %v401_v43  ;;  %v449_v50 = vadd.f32 %v648_v36, %v417_v44 }
  0xf8   : > { %676 = vst [vmem:[%s257_s30 + $0x8] sm:$0xff] %v661_v47   ;;  %678 = vst [vmem:[%s257_s30 + $0x18] sm:$0xff] %v671_v48   ;;  %v656_v51 = vpack.c.bf16 %v445_v49, %v444_v45  ;;  %v666_v52 = vpack.c.bf16 %v449_v50, %v448_v46 }
  0xfa   : > { %657 = vst [vmem:[%s257_s30] sm:$0xff] %v656_v51   ;;  %677 = vst [vmem:[%s257_s30 + $0x10] sm:$0xff] %v666_v52  }
  0xfb PF: > { %s14_s17 = sadd.s32 1, %s789_s17   ;;  %s906_s15 = smov %s785_s16 }
  0xfc   : > { %p11_p5 = scmp.ge.s32.totalorder %s14_s17, 4   ;;  %s907_s16 = smov %s909_s18 }
  0xfe   :  { %13 = sbr.rel (!%p11_p5) target bundleno = 2 (0x2), region = 69 }

// kernel: vit_forward.4
= control target key start
LH: loop header
LB: loop body
LE: loop exit
PB: predicated region body
PF: predicated region fallthrough
CT: control target
= control target key end

     0   :  { %s9002_s30 = smov 0   ;;  %s9004_s20 = smov 0   ;;  %s10286_s0 = inlined_call_operand.vmem [shape: bf16[2,64,128], index: 0, kind: input, shape index: {}]   ;;  %s10287_s1 = inlined_call_operand.vmem [shape: f32[1,128], index: 1, kind: input, shape index: {}]   ;;  %s10288_s2 = inlined_call_operand.vmem [shape: f32[1,128], index: 2, kind: input, shape index: {}]   ;;  %s10289_s3 = inlined_call_operand.vmem [shape: bf16[4,128,32], index: 3, kind: input, shape index: {}]   ;;  %s10290_s4 = inlined_call_operand.vmem [shape: f32[4,1,32], index: 4, kind: input, shape index: {}]   ;;  %s10291_s5 = inlined_call_operand.vmem [shape: bf16[4,128,32], index: 5, kind: input, shape index: {}]   ;;  %s10292_s6 = inlined_call_operand.vmem [shape: f32[4,1,32], index: 6, kind: input, shape index: {}]   ;;  %s10293_s7 = inlined_call_operand.vmem [shape: bf16[4,128,32], index: 7, kind: input, shape index: {}]   ;;  %s10294_s8 = inlined_call_operand.vmem [shape: f32[4,1,32], index: 8, kind: input, shape index: {}]   ;;  %s10295_s9 = inlined_call_operand.vmem [shape: bf16[4,32,128], index: 9, kind: input, shape index: {}]   ;;  %s10296_s10 = inlined_call_operand.vmem [shape: f32[1,128], index: 10, kind: input, shape index: {}]   ;;  %s10297_s11 = inlined_call_operand.vmem [shape: f32[1,128], index: 11, kind: input, shape index: {}]   ;;  %s10298_s12 = inlined_call_operand.vmem [shape: f32[1,128], index: 12, kind: input, shape index: {}]   ;;  %s10299_s13 = inlined_call_operand.vmem [shape: bf16[128,256], index: 13, kind: input, shape index: {}]   ;;  %s10300_s14 = inlined_call_operand.vmem [shape: f32[1,256], index: 14, kind: input, shape index: {}]   ;;  %s10301_s15 = inlined_call_operand.vmem [shape: bf16[256,128], index: 15, kind: input, shape index: {}]   ;;  %s10302_s16 = inlined_call_operand.vmem [shape: f32[1,128], index: 16, kind: input, shape index: {}]   ;;  %s10303_s17 = inlined_call_operand.vmem [shape: f32[1,128], index: 17, kind: input, shape index: {}]   ;;  %s10304_s18 = inlined_call_operand.vmem [shape: f32[1,128], index: 18, kind: input, shape index: {}]   ;;  %s10305_s19 = inlined_call_operand.vmem [shape: bf16[2,64,128], index: 19, kind: output, shape index: {}]  }
   0x1   :  { %10309 = sst [smem:[#allocation7_spill]] %s10286_s0  ;;  %s9000_s0 = smov 0  }
   0x2   :  { %10310 = sst [smem:[#allocation8_spill]] %s10287_s1  ;;  %s9006_s21 = smov 0  }
   0x3   :  { %10311 = sst [smem:[#allocation9_spill]] %s10288_s2  ;;  %s9008_s1 = smov 0  }
   0x4   :  { %10312 = sst [smem:[#allocation10_spill]] %s10289_s3 }
   0x5   :  { %10313 = sst [smem:[#allocation11_spill]] %s10305_s19 }
   0x6 LB: > { %s38_s17 = sadd.s32 1, %s8889_s20  ;;  %s41_s18 = sadd.s32 1, %s8893_s21  ;;  %s8897_s1 = sphi %s9008_s1, %s29_s1   ;;  %s8893_s21 = sphi %s9006_s21, %s10326_s21   ;;  %s8889_s20 = sphi %s9004_s20, %s10325_s20   ;;  %s8885_s30 = sphi %s9002_s30, %s10324_s30   ;;  %s8881_s0 = sphi %s9000_s0, %s10323_s0  }
   0x7   : > { %p39_p0 = scmp.ge.s32.totalorder %s38_s17, 2  ;;  %p6404_p1 = scmp.ge.s32.totalorder %s8897_s1, 1 }
   0x8   : > { %p551_p2 = scmp.lt.s32.totalorder %s8897_s1, 5 }
   0x9   : > { %s10328_s17 = smov (%p39_p0, %s38_s17), 0  ;;  %s10330_s18 = smov (!%p39_p0, %s41_s18), %s8893_s21 }
   0xa   : > { %10314 = sst [smem:[#allocation5_spill]] %s10328_s17  ;;  %p552_p3 = pnand %p6404_p1, %p551_p2 }
   0xb   : > { %p43_p4 = scmp.ge.s32.totalorder %s10330_s18, 2  ;;  %p611_p5 = scmp.lt.s32.totalorder (!%p552_p3), %s8885_s30, 1 }
   0xc   : > { %555 = sbr.rel (%p552_p3) target bundleno = 4045 (0xfcd), region = 96  ;;  %s6407_s22 = sshll.u32 (!%p552_p3), %s8881_s0, 2 }
   0xd   : > { %s10332_s18 = smov (%p43_p4, %s10330_s18), 0  ;;  %p619_p6 = scmp.lt.s32.totalorder (!%p552_p3), %s6407_s22, 7 }
   0xe   : > { %10315 = sst [smem:[#allocation6_spill]] %s10332_s18  ;;  %p6410_p7 = scmp.ne.s32.totalorder (!%p552_p3), %s8881_s0, 0 }
   0xf   : > { %s10316_s3 = sld [smem:[#allocation7_spill]] (!%p552_p3) }
  0x10   : > { %s10317_s19 = sld [smem:[#allocation11_spill]] (!%p552_p3) }
  0x11   : > { %s10334_s30 = smov (!%p611_p5, %s8885_s30), 1  ;;  %s10336_s22 = smov (!%p619_p6, %s6407_s22), 7 }
  0x12   : > { %s7194_s2 = sshll.u32 %s10334_s30, 5  ;;  %s6408_s23 = sshll.u32 %s10334_s30, 3 }
  0x13   : > { %s622_s27 = sadd.s32 %s6408_s23, %s10336_s22  ;;  %630 = sbr.rel (%p6410_p7) target bundleno = 2657 (0xa61), region = 100 }
  0x14   : > { %s6409_s28 = sshll.u32 %s622_s27, 2  ;;  %s10318_s22 = sld [smem:[#allocation10_spill]] (!%p6410_p7) }
  0x15   : > { %s9036_s26 = scalar_lea.vmem %s10316_s3, %s7194_s2  ;;  %s10319_s3 = sld [smem:[#allocation8_spill]] (!%p6410_p7) }
  0x16   : > { %s9041_s18 = scalar_lea.vmem %s10317_s19, %s6409_s28  ;;  %s10320_s29 = sld [smem:[#allocation9_spill]] (!%p6410_p7) }
  0x18   : > { %v7296_v0 = vld [vmem:[%s9036_s26] sm:$0xff]   ;;  %v7409_v1 = vld [vmem:[%s9036_s26 + $0x8] sm:$0xff]   ;;  %v8468_v23 = vld [vmem:[%s10291_s5 + $0x38] sm:$0xff]   ;;  %vm1158_vm0 = vcmask 257024   ;;  %vm1086_vm1 = vcmask 261120  }
  0x19   : > { %v7297_v2 = vunpack.c.l.bf16 %v7296_v0  ;;  %v7301_v3 = vunpack.c.l.bf16 %v7409_v1  ;;  %v7298_v4 = vunpack.c.h.bf16 %v7296_v0  ;;  %v7302_v5 = vunpack.c.h.bf16 %v7409_v1  ;;  %7790 = vmatprep.subr.bf16.mxu1 %v8468_v23  ;;  %v8470_v25 = vld [vmem:[%s10291_s5 + $0x30] sm:$0xff]   ;;  %v8472_v27 = vld [vmem:[%s10291_s5 + $0x28] sm:$0xff]   ;;  %v8474_v29 = vld [vmem:[%s10291_s5 + $0x20] sm:$0xff]  }
  0x1a   : > { %v8467_v22 = vld [vmem:[%s10318_s22 + $0x38] sm:$0xff]   ;;  %7791 = vmatpush3.bf16.msra.mxu1 %v8468_v23  ;;  %v8469_v24 = vld [vmem:[%s10318_s22 + $0x30] sm:$0xff]   ;;  %v8471_v26 = vld [vmem:[%s10318_s22 + $0x28] sm:$0xff]  }
  0x1b   : > { %641 = vadd.xlane.f32.xlu0 %v7297_v2  ;;  %645 = vadd.xlane.f32.xlu1 %v7301_v3  ;;  %v8473_v28 = vld [vmem:[%s10318_s22 + $0x20] sm:$0xff]   ;;  %v8475_v30 = vld [vmem:[%s10318_s22 + $0x18] sm:$0xff]   ;;  %v8477_v32 = vld [vmem:[%s10318_s22 + $0x10] sm:$0xff]  }
  0x1c   : > { %7770 = vmatprep.subr.bf16.mxu0 %v8467_v22  ;;  %7792 = vmatprep.subr.bf16.mxu1 %v8470_v25  ;;  %v8476_v31 = vld [vmem:[%s10291_s5 + $0x18] sm:$0xff]   ;;  %v8478_v33 = vld [vmem:[%s10291_s5 + $0x10] sm:$0xff]   ;;  %v8479_v34 = vld [vmem:[%s10318_s22 + $0x8] sm:$0xff]  }
  0x1d   : > { %7771 = vmatpush3.bf16.msra.mxu0 %v8467_v22  ;;  %v8480_v35 = vld [vmem:[%s10291_s5 + $0x8] sm:$0xff]   ;;  %v8481_v36 = vld [vmem:[%s10318_s22] sm:$0xff]   ;;  %v8483_v38 = vld [vmem:[%s10293_s7 + $0x38] sm:$0xff]  }
  0x1e   : > { %7772 = vmatprep.subr.bf16.mxu0 %v8469_v24  ;;  %7793 = vmatpush3.bf16.msra.mxu1 %v8470_v25  ;;  %v8482_v37 = vld [vmem:[%s10291_s5] sm:$0xff]   ;;  %v8499_v22 = vld [vmem:[%s10295_s9 + $0x8] sm:$0xff]  }
  0x1f   : > { %643 = vadd.xlane.f32.xlu0 %v7298_v4  ;;  %647 = vadd.xlane.f32.xlu1 %v7302_v5  ;;  %v6411_v53 = vld [vmem:[%s10319_s3] ss:$0 sm:$0xff] }
  0x20   : > { %7794 = vmatprep.subr.bf16.mxu1 %v8472_v27  ;;  %v6412_v58 = vld [vmem:[%s10320_s29] ss:$0 sm:$0xff] }
  0x21   : > { %7773 = vmatpush3.bf16.msra.mxu0 %v8469_v24  ;;  %v8500_v23 = vld [vmem:[%s10295_s9] sm:$0xff]   ;;  %v8501_v24 = vld [vmem:[%s10318_s22 + $0x78] sm:$0xff]  }
  0x22   : > { %7774 = vmatprep.subr.bf16.mxu0 %v8471_v26  ;;  %7795 = vmatpush3.bf16.msra.mxu1 %v8472_v27  ;;  %v6413_v25 = vld [vmem:[%s10290_s4] ss:$0 sm:$0xff] }
  0x23   : > { %7796 = vmatprep.subr.bf16.mxu1 %v8474_v29 }
  0x25   : > { %7775 = vmatpush3.bf16.msra.mxu0 %v8471_v26  ;;  %v6422_v26 = vld [vmem:[%s10292_s6] ss:$0 sm:$0xff] }
  0x26   : > { %7776 = vmatprep.subr.bf16.mxu0 %v8473_v28  ;;  %7797 = vmatpush3.bf16.msra.mxu1 %v8474_v29 }
  0x27   : > { %7798 = vmatprep.subr.bf16.mxu1 %v8476_v31 }
  0x29   : > { %7777 = vmatpush3.bf16.msra.mxu0 %v8473_v28 }
  0x2a   : > { %7778 = vmatprep.subr.bf16.mxu0 %v8475_v30  ;;  %7799 = vmatpush3.bf16.msra.mxu1 %v8476_v31 }
  0x2b   : > { %7800 = vmatprep.subr.bf16.mxu1 %v8478_v33 }
  0x2d   : > { %7779 = vmatpush3.bf16.msra.mxu0 %v8475_v30 }
  0x2e   : > { %7780 = vmatprep.subr.bf16.mxu0 %v8477_v32  ;;  %7801 = vmatpush3.bf16.msra.mxu1 %v8478_v33 }
  0x2f   : > { %7802 = vmatprep.subr.bf16.mxu1 %v8480_v35 }
  0x31   : > { %7781 = vmatpush3.bf16.msra.mxu0 %v8477_v32 }
  0x32   : > { %7782 = vmatprep.subr.bf16.mxu0 %v8479_v34  ;;  %7803 = vmatpush3.bf16.msra.mxu1 %v8480_v35 }
  0x33   : > { %7804 = vmatprep.subr.bf16.mxu1 %v8482_v37 }
  0x35   : > { %7783 = vmatpush3.bf16.msra.mxu0 %v8479_v34 }
  0x36   : > { %7784 = vmatprep.subr.bf16.mxu0 %v8481_v36  ;;  %7805 = vmatpush3.bf16.msra.mxu1 %v8482_v37 }
  0x37   : > { %7830 = vmatprep.subr.bf16.mxu1 %v8499_v22 }
  0x39   : > { %7785 = vmatpush3.bf16.msra.mxu0 %v8481_v36 }
  0x3a   : > { %7810 = vmatprep.subr.bf16.mxu0 %v8483_v38 }
  0xa4   : > { %v642_v6 = vpop.xlane.xlu0 %641  ;;  %v646_v7 = vpop.xlane.xlu1 %645 }
  0xa5   : > { %v650_v8 = vmul.f32 0.0078125, %v642_v6  ;;  %v652_v9 = vmul.f32 0.0078125, %v646_v7  ;;  %v8484_v7 = vld [vmem:[%s10293_s7 + $0x30] sm:$0xff]  }
  0xa7   : > { %v9046_v10 = vsub.f32 %v7297_v2, %v650_v8  ;;  %v9048_v11 = vsub.f32 %v7301_v3, %v652_v9  ;;  %v8485_v8 = vld [vmem:[%s10293_s7 + $0x28] sm:$0xff]   ;;  %v8486_v9 = vld [vmem:[%s10293_s7 + $0x20] sm:$0xff]  }
  0xa8   : > { %v644_v12 = vpop.xlane.xlu0 %643  ;;  %v648_v13 = vpop.xlane.xlu1 %647 }
  0xa9   : > { %v651_v14 = vmul.f32 0.0078125, %v644_v12  ;;  %v658_v15 = vmul.f32 %v9046_v10, %v9046_v10  ;;  %v653_v16 = vmul.f32 0.0078125, %v648_v13  ;;  %v660_v19 = vmul.f32 %v9048_v11, %v9048_v11  ;;  %v8489_v12 = vld [vmem:[%s10293_s7 + $0x8] sm:$0xff]   ;;  %v8490_v13 = vld [vmem:[%s10293_s7] sm:$0xff]  }
  0xab   : > { %v9052_v17 = vsub.f32 %v7298_v4, %v651_v14  ;;  %662 = vadd.xlane.f32.xlu0 %v658_v15  ;;  %v9054_v18 = vsub.f32 %v7302_v5, %v653_v16  ;;  %v8491_v14 = vld [vmem:[%s10291_s5 + $0x78] sm:$0xff]   ;;  %v8492_v15 = vld [vmem:[%s10291_s5 + $0x70] sm:$0xff]   ;;  %v8493_v16 = vld [vmem:[%s10291_s5 + $0x68] sm:$0xff]  }
  0xad   : > { %v659_v20 = vmul.f32 %v9052_v17, %v9052_v17  ;;  %v661_v21 = vmul.f32 %v9054_v18, %v9054_v18 }
  0xaf   : > { %666 = vadd.xlane.f32.xlu0 %v660_v19  ;;  %664 = vadd.xlane.f32.xlu1 %v659_v20  ;;  %v8496_v19 = vld [vmem:[%s10291_s5 + $0x50] sm:$0xff]   ;;  %v8497_v20 = vld [vmem:[%s10291_s5 + $0x48] sm:$0xff]  }
  0xb3   : > { %668 = vadd.xlane.f32.xlu1 %v661_v21  ;;  %v8498_v21 = vld [vmem:[%s10291_s5 + $0x40] sm:$0xff]  }
 0x134   : > { %v663_v39 = vpop.xlane.xlu0 %662 }
 0x135   : > { %v670_v40 = vmul.f32 0.0078125, %v663_v39 }
 0x137   : > { %v674_v41 = vadd.f32 1e-05, %v670_v40 }
 0x138   : > { %v665_v42 = vpop.xlane.xlu1 %664  ;;  %v667_v43 = vpop.xlane.xlu0 %666 }
 0x139   : > { %8675 = vrsqrt.f32 %v674_v41  ;;  %v671_v44 = vmul.f32 0.0078125, %v665_v42  ;;  %v672_v45 = vmul.f32 0.0078125, %v667_v43 }
 0x13b   : > { %v675_v46 = vadd.f32 1e-05, %v671_v44  ;;  %v676_v47 = vadd.f32 1e-05, %v672_v45 }
 0x13c   : > { %v669_v48 = vpop.xlane.xlu1 %668 }
 0x13d   : > { %8677 = vrsqrt.f32 %v675_v46  ;;  %v673_v49 = vmul.f32 0.0078125, %v669_v48 }
 0x13e   : > { %8679 = vrsqrt.f32 %v676_v47 }
 0x13f   : > { %v677_v50 = vadd.f32 1e-05, %v673_v49 }
 0x141   : > { %8681 = vrsqrt.f32 %v677_v50 }
 0x146   : > { %v8676_v51 = vpop.eup %8675 }
 0x147   : > { %v682_v52 = vmul.f32 %v8676_v51, %v9046_v10  ;;  %v8487_v10 = vld [vmem:[%s10293_s7 + $0x18] sm:$0xff]  }
 0x149   : > { %v692_v56 = vmul.f32 %v6411_v53, %v682_v52 }
 0x14a   : > { %v8678_v54 = vpop.eup %8677 }
 0x14b   : > { %v8680_v55 = vpop.eup %8679  ;;  %v683_v57 = vmul.f32 %v8678_v54, %v9052_v17  ;;  %v702_v62 = vadd.f32 %v6412_v58, %v692_v56  ;;  %v8494_v17 = vld [vmem:[%s10291_s5 + $0x60] sm:$0xff]  }
 0x14c   : > { %v684_v59 = vmul.f32 %v8680_v55, %v9048_v11  ;;  %v8488_v11 = vld [vmem:[%s10293_s7 + $0x10] sm:$0xff]   ;;  %v6431_v54 = vld [vmem:[%s10294_s8] ss:$0 sm:$0xff] }
 0x14d   : > { %v693_v60 = vmul.f32 %v6411_v53, %v683_v57 }
 0x14e   : > { %v8682_v61 = vpop.eup %8681  ;;  %v694_v0 = vmul.f32 %v6411_v53, %v684_v59 }
 0x14f   : > { %v703_v63 = vadd.f32 %v6412_v58, %v693_v60  ;;  %v685_v1 = vmul.f32 %v8682_v61, %v9054_v18  ;;  %v8495_v18 = vld [vmem:[%s10291_s5 + $0x58] sm:$0xff]  }
 0x150   : > { %v704_v4 = vadd.f32 %v6412_v58, %v694_v0  ;;  %v8504_v0 = vld [vmem:[%s10318_s22 + $0x60] sm:$0xff]  }
 0x151   : > { %v9123_v2 = vpack.c.bf16 %v703_v63, %v702_v62  ;;  %v695_v3 = vmul.f32 %v6411_v53, %v685_v1  ;;  %v8502_v62 = vld [vmem:[%s10318_s22 + $0x70] sm:$0xff]   ;;  %v8503_v63 = vld [vmem:[%s10318_s22 + $0x68] sm:$0xff]   ;;  %v8505_v1 = vld [vmem:[%s10318_s22 + $0x58] sm:$0xff]  }
 0x153   : > { %v705_v5 = vadd.f32 %v6412_v58, %v695_v3  ;;  %7786 = vmatprep.mubr.bf16.mxu0 %v9123_v2  ;;  %7806 = vmatprep.mubr.bf16.mxu1 %v9123_v2  ;;  %v8506_v3 = vld [vmem:[%s10318_s22 + $0x50] sm:$0xff]  }
 0x155   : > { %v9127_v6 = vpack.c.bf16 %v705_v5, %v704_v4  ;;  %v6499_v4 = vld [vmem:[%s10292_s6 + $0x1] ss:$0 sm:$0xff]  ;;  %v8507_v5 = vld [vmem:[%s10318_s22 + $0x48] sm:$0xff]  }
 0x157   : > { %7787 = vmatmul.mubr.bf16.vlgmr.msra.gmra.mxu0 %v9127_v6  ;;  %7807 = vmatmul.mubr.bf16.vlgmr.msra.gmra.mxu1 %v9127_v6 }
 0x158   : > { %7811 = vmatpush3.bf16.msra.mxu0 %v8483_v38  ;;  %7826 = vmatprep.mubr.bf16.mxu0 %v9123_v2 }
 0x159   : > { %7812 = vmatprep.subr.bf16.mxu0 %v8484_v7  ;;  %7831 = vmatpush3.bf16.msra.mxu1 %v8499_v22  ;;  %v8511_v22 = vld [vmem:[%s10293_s7 + $0x68] sm:$0xff]  }
 0x15a   : > { %7832 = vmatprep.subr.bf16.mxu1 %v8500_v23 }
 0x15c   : > { %7813 = vmatpush3.bf16.msra.mxu0 %v8484_v7 }
 0x15d   : > { %7814 = vmatprep.subr.bf16.mxu0 %v8485_v8  ;;  %7833 = vmatpush3.bf16.msra.mxu1 %v8500_v23  ;;  %v8512_v23 = vld [vmem:[%s10293_s7 + $0x60] sm:$0xff]  }
 0x15e   : > { %7838 = vmatprep.subr.bf16.mxu1 %v8501_v24 }
 0x160   : > { %7815 = vmatpush3.bf16.msra.mxu0 %v8485_v8 }
 0x161   : > { %7816 = vmatprep.subr.bf16.mxu0 %v8486_v9 }
 0x164   : > { %7817 = vmatpush3.bf16.msra.mxu0 %v8486_v9 }
 0x165   : > { %7818 = vmatprep.subr.bf16.mxu0 %v8487_v10 }
 0x168   : > { %7819 = vmatpush3.bf16.msra.mxu0 %v8487_v10  ;;  %v8508_v10 = vld [vmem:[%s10318_s22 + $0x40] sm:$0xff]  }
 0x169   : > { %7820 = vmatprep.subr.bf16.mxu0 %v8488_v11 }
 0x16c   : > { %7821 = vmatpush3.bf16.msra.mxu0 %v8488_v11 }
 0x16d   : > { %7822 = vmatprep.subr.bf16.mxu0 %v8489_v12 }
 0x170   : > { %7823 = vmatpush3.bf16.msra.mxu0 %v8489_v12 }
 0x171   : > { %7824 = vmatprep.subr.bf16.mxu0 %v8490_v13 }
 0x174   : > { %7825 = vmatpush3.bf16.msra.mxu0 %v8490_v13 }
 0x175   : > { %7858 = vmatprep.subr.bf16.mxu0 %v8491_v14 }
 0x177   : > { %7827 = vmatmul.mubr.bf16.vlgmr.msra.gmra.mxu0 %v9127_v6 }
 0x178   : > { %7859 = vmatpush3.bf16.msra.mxu0 %v8491_v14  ;;  %7874 = vmatprep.mubr.bf16.mxu0 %v9123_v2 }
 0x179   : > { %7860 = vmatprep.subr.bf16.mxu0 %v8492_v15 }
 0x17c   : > { %7861 = vmatpush3.bf16.msra.mxu0 %v8492_v15 }
 0x17d   : > { %7862 = vmatprep.subr.bf16.mxu0 %v8493_v16 }
 0x180   : > { %7863 = vmatpush3.bf16.msra.mxu0 %v8493_v16 }
 0x181   : > { %7864 = vmatprep.subr.bf16.mxu0 %v8494_v17 }
 0x184   : > { %7865 = vmatpush3.bf16.msra.mxu0 %v8494_v17  ;;  %v8509_v17 = vld [vmem:[%s10293_s7 + $0x78] sm:$0xff]  }
 0x185   : > { %7866 = vmatprep.subr.bf16.mxu0 %v8495_v18 }
 0x188   : > { %7867 = vmatpush3.bf16.msra.mxu0 %v8495_v18 }
 0x189   : > { %7868 = vmatprep.subr.bf16.mxu0 %v8496_v19 }
 0x18c   : > { %7869 = vmatpush3.bf16.msra.mxu0 %v8496_v19 }
 0x18d   : > { %7870 = vmatprep.subr.bf16.mxu0 %v8497_v20 }
 0x190   : > { %7871 = vmatpush3.bf16.msra.mxu0 %v8497_v20 }
 0x191   : > { %7872 = vmatprep.subr.bf16.mxu0 %v8498_v21 }
 0x194   : > { %7873 = vmatpush3.bf16.msra.mxu0 %v8498_v21  ;;  %v8510_v21 = vld [vmem:[%s10293_s7 + $0x70] sm:$0xff]  }
 0x197   : > { %7875 = vmatmul.mubr.bf16.vlgmr.msra.gmra.mxu0 %v9127_v6 }
 0x217   : > { %v7788_v27 = vpop.f32.mrf.mxu0  ;;  %v7808_v28 = vpop.f32.mrf.mxu1 }
 0x218   : > { %v822_v29 = vadd.f32 %v7788_v27, %v6413_v25  ;;  %v942_v30 = vadd.f32 %v7808_v28, %v6422_v26  ;;  %v8516_v27 = vld [vmem:[%s10293_s7 + $0x40] sm:$0xff]   ;;  %v8517_v28 = vld [vmem:[%s10291_s5 + $0xb8] sm:$0xff]  }
 0x219   : > { %v813_v31 = vpop.f32.mrf.mxu0  ;;  %v933_v32 = vpop.f32.mrf.mxu1 }
 0x21a   : > { %v7197_v33 = vpack.c.bf16 %v822_v29, %v822_v29  ;;  %v7201_v34 = vpack.c.bf16 %v942_v30, %v942_v30  ;;  %v814_v35 = vadd.f32 %v6413_v25, %v813_v31  ;;  %v934_v36 = vadd.f32 %v6422_v26, %v933_v32  ;;  %v8518_v29 = vld [vmem:[%s10291_s5 + $0xb0] sm:$0xff]   ;;  %v8519_v30 = vld [vmem:[%s10291_s5 + $0xa8] sm:$0xff]   ;;  %v8520_v31 = vld [vmem:[%s10291_s5 + $0xa0] sm:$0xff]  }
 0x21b   : > { %v7789_v37 = vpop.f32.mrf.mxu0  ;;  %v7809_v38 = vpop.f32.mrf.mxu1  ;;  %v8521_v32 = vld [vmem:[%s10291_s5 + $0x98] sm:$0xff]  }
 0x21c   : > { %1161 = vst.msk [vmem:[#allocation2 + $0x8] sm:$0xf] %vm1158_vm0, %v7197_v33  ;;  %1181 = vst.msk [vmem:[#allocation3 + $0x8] sm:$0xf] %vm1158_vm0, %v7201_v34  ;;  %v7195_v39 = vpack.c.bf16 %v814_v35, %v814_v35  ;;  %v7199_v40 = vpack.c.bf16 %v934_v36, %v934_v36  ;;  %v825_v41 = vadd.f32 %v7789_v37, %v6413_v25  ;;  %v8522_v33 = vld [vmem:[%s10291_s5 + $0x90] sm:$0xff]   ;;  %v8523_v34 = vld [vmem:[%s10291_s5 + $0x88] sm:$0xff]  }
 0x21d   : > { %v945_v42 = vadd.f32 %v7809_v38, %v6422_v26  ;;  %v816_v43 = vpop.f32.mrf.mxu0  ;;  %v936_v44 = vpop.f32.mrf.mxu1  ;;  %v8524_v35 = vld [vmem:[%s10291_s5 + $0x80] sm:$0xff]   ;;  %v8525_v36 = vld [vmem:[%s10295_s9 + $0x18] sm:$0xff]   ;;  %v8526_v37 = vld [vmem:[%s10295_s9 + $0x10] sm:$0xff]  }
 0x21e   : > { %1159 = vst.msk [vmem:[#allocation2] sm:$0xf] %vm1158_vm0, %v7195_v39  ;;  %1179 = vst.msk [vmem:[#allocation3] sm:$0xf] %vm1158_vm0, %v7199_v40  ;;  %v7198_v45 = vpack.c.bf16 %v825_v41, %v825_v41  ;;  %v817_v47 = vadd.f32 %v6413_v25, %v816_v43  ;;  %v937_v48 = vadd.f32 %v6422_v26, %v936_v44  ;;  %v8514_v25 = vld [vmem:[%s10293_s7 + $0x50] sm:$0xff]   ;;  %v8515_v26 = vld [vmem:[%s10293_s7 + $0x48] sm:$0xff]   ;;  %7898 = vmatprep.subr.bf16.mxu0 %v8525_v36 }
 0x21f   : > { %v7202_v46 = vpack.c.bf16 %v945_v42, %v945_v42  ;;  %7899 = vmatpush3.bf16.msra.mxu0 %v8525_v36  ;;  %v8527_v38 = vld [vmem:[%s10318_s22 + $0xb8] sm:$0xff]   ;;  %v8538_v36 = vld [vmem:[%s10293_s7 + $0xa0] sm:$0xff]  }
 0x220   : > { %1162 = vst.msk [vmem:[#allocation2 + $0xc] sm:$0xf] %vm1158_vm0, %v7198_v45  ;;  %v7196_v49 = vpack.c.bf16 %v817_v47, %v817_v47  ;;  %v7200_v50 = vpack.c.bf16 %v937_v48, %v937_v48  ;;  %7900 = vmatprep.subr.bf16.mxu0 %v8526_v37  ;;  %v6473_v45 = vld [vmem:[%s10290_s4 + $0x1] ss:$0 sm:$0xff] }
 0x221   : > { %1182 = vst.msk [vmem:[#allocation3 + $0xc] sm:$0xf] %vm1158_vm0, %v7202_v46 }
 0x222   : > { %1160 = vst.msk [vmem:[#allocation2 + $0x4] sm:$0xf] %vm1158_vm0, %v7196_v49  ;;  %1180 = vst.msk [vmem:[#allocation3 + $0x4] sm:$0xf] %vm1158_vm0, %v7200_v50 }
 0x223   : > { %7901 = vmatpush3.bf16.msra.mxu0 %v8526_v37  ;;  %v8539_v37 = vld [vmem:[%s10293_s7 + $0x98] sm:$0xff]  }
 0x224   : > { %7906 = vmatprep.subr.bf16.mxu0 %v8527_v38 }
 0x237   : > { %v7828_v51 = vpop.f32.mrf.mxu0 }
 0x238   : > { %v1062_v59 = vadd.f32 %v7828_v51, %v6431_v54 }
 0x239   : > { %v1053_v52 = vpop.f32.mrf.mxu0 }
 0x23a   : > { %v1054_v57 = vadd.f32 %v6431_v54, %v1053_v52  ;;  %v9303_v52 = vld [vmem:[%s9036_s26 + $0x10] sm:$0xff]  }
 0x23b   : > { %v7829_v53 = vpop.f32.mrf.mxu0 }
 0x23c   : > { %v1065_v55 = vadd.f32 %v7829_v53, %v6431_v54 }
 0x23d   : > { %v1056_v56 = vpop.f32.mrf.mxu0 }
 0x23e   : > { %v1057_v58 = vadd.f32 %v6431_v54, %v1056_v56  ;;  %v1069_v61 = vpack.c.bf16 %v1065_v55, %v1062_v59  ;;  %v7345_v55 = vunpack.c.l.bf16 %v9303_v52  ;;  %v7346_v56 = vunpack.c.h.bf16 %v9303_v52 }
 0x240   : > { %v1068_v60 = vpack.c.bf16 %v1057_v58, %v1054_v57  ;;  %2735 = vadd.xlane.f32.xlu0 %v7345_v55  ;;  %2737 = vadd.xlane.f32.xlu1 %v7346_v56 }
 0x242   : > { %7834 = vmatprep.mubr.msk.bf16.mxu1 %vm1086_vm1, %v1068_v60  ;;  %v9314_v60 = vld [vmem:[%s9036_s26 + $0x18] sm:$0xff]  }
 0x243   : > { %7835 = vmatmul.mubr.msk.bf16.vlgmr.msra.gmra.mxu1 %vm1086_vm1, %v1069_v61 }
 0x244   : > { %7839 = vmatpush3.bf16.msra.mxu1 %v8501_v24  ;;  %7854 = vmatprep.mubr.bf16.mxu1 %v9123_v2  ;;  %v8513_v24 = vld [vmem:[%s10293_s7 + $0x58] sm:$0xff]  }
 0x245   : > { %7840 = vmatprep.subr.bf16.mxu1 %v8502_v62 }
 0x248   : > { %7841 = vmatpush3.bf16.msra.mxu1 %v8502_v62  ;;  %v7349_v62 = vunpack.c.l.bf16 %v9314_v60 }
 0x249   : > { %7842 = vmatprep.subr.bf16.mxu1 %v8503_v63 }
 0x24a   : > { %2739 = vadd.xlane.f32.xlu0 %v7349_v62 }
 0x24c   : > { %7843 = vmatpush3.bf16.msra.mxu1 %v8503_v63  ;;  %v7350_v63 = vunpack.c.h.bf16 %v9314_v60  ;;  %v8552_v60 = vld [vmem:[%s10295_s9 + $0x20] sm:$0xff]  }
 0x24d   : > { %7844 = vmatprep.subr.bf16.mxu1 %v8504_v0 }
 0x24e   : > { %2741 = vadd.xlane.f32.xlu1 %v7350_v63 }
 0x250   : > { %7845 = vmatpush3.bf16.msra.mxu1 %v8504_v0 }
 0x251   : > { %7846 = vmatprep.subr.bf16.mxu1 %v8505_v1 }
 0x254   : > { %7847 = vmatpush3.bf16.msra.mxu1 %v8505_v1 }
 0x255   : > { %7848 = vmatprep.subr.bf16.mxu1 %v8506_v3 }
 0x257   : > { %v7876_v7 = vpop.f32.mrf.mxu0 }
 0x258   : > { %7849 = vmatpush3.bf16.msra.mxu1 %v8506_v3  ;;  %v1441_v8 = vadd.f32 %v7876_v7, %v6499_v4 }
 0x259   : > { %v1432_v9 = vpop.f32.mrf.mxu0  ;;  %7850 = vmatprep.subr.bf16.mxu1 %v8507_v5 }
 0x25a   : > { %v7213_v11 = vpack.c.bf16 %v1441_v8, %v1441_v8  ;;  %v1433_v12 = vadd.f32 %v6499_v4, %v1432_v9 }
 0x25b   : > { %v7877_v13 = vpop.f32.mrf.mxu0 }
 0x25c   : > { %1686 = vst.msk [vmem:[#allocation3 + $0x28] sm:$0xf] %vm1158_vm0, %v7213_v11  ;;  %v7211_v14 = vpack.c.bf16 %v1433_v12, %v1433_v12  ;;  %7851 = vmatpush3.bf16.msra.mxu1 %v8507_v5  ;;  %v1444_v15 = vadd.f32 %v7877_v13, %v6499_v4  ;;  %v8528_v13 = vld [vmem:[%s10318_s22 + $0xb0] sm:$0xff]  }
 0x25d   : > { %v1435_v16 = vpop.f32.mrf.mxu0  ;;  %7852 = vmatprep.subr.bf16.mxu1 %v8508_v10 }
 0x25e   : > { %1684 = vst.msk [vmem:[#allocation3 + $0x20] sm:$0xf] %vm1158_vm0, %v7211_v14  ;;  %v7214_v18 = vpack.c.bf16 %v1444_v15, %v1444_v15  ;;  %v1436_v19 = vadd.f32 %v6499_v4, %v1435_v16  ;;  %v6525_v4 = vld [vmem:[%s10294_s8 + $0x1] ss:$0 sm:$0xff]  ;;  %v8529_v14 = vld [vmem:[%s10318_s22 + $0xa8] sm:$0xff]   ;;  %v8531_v16 = vld [vmem:[%s10318_s22 + $0x98] sm:$0xff]  }
 0x25f   : > { %v8530_v15 = vld [vmem:[%s10318_s22 + $0xa0] sm:$0xff]  }
 0x260   : > { %1687 = vst.msk [vmem:[#allocation3 + $0x2c] sm:$0xf] %vm1158_vm0, %v7214_v18  ;;  %v7212_v20 = vpack.c.bf16 %v1436_v19, %v1436_v19  ;;  %7853 = vmatpush3.bf16.msra.mxu1 %v8508_v10  ;;  %v6597_v18 = vld [vmem:[%s10292_s6 + $0x2] ss:$0 sm:$0xff]  ;;  %v8533_v19 = vld [vmem:[%s10318_s22 + $0x88] sm:$0xff]  }
 0x261   : > { %7878 = vmatprep.subr.bf16.mxu1 %v8509_v17 }
 0x262   : > { %1685 = vst.msk [vmem:[#allocation3 + $0x24] sm:$0xf] %vm1158_vm0, %v7212_v20 }
 0x263   : > { %7855 = vmatmul.mubr.bf16.vlgmr.msra.gmra.mxu1 %v9127_v6 }
 0x264   : > { %7879 = vmatpush3.bf16.msra.mxu1 %v8509_v17  ;;  %7894 = vmatprep.mubr.bf16.mxu1 %v9123_v2  ;;  %v8532_v17 = vld [vmem:[%s10318_s22 + $0x90] sm:$0xff]  }
 0x265   : > { %7880 = vmatprep.subr.bf16.mxu1 %v8510_v21 }
 0x268   : > { %7881 = vmatpush3.bf16.msra.mxu1 %v8510_v21 }
 0x269   : > { %7882 = vmatprep.subr.bf16.mxu1 %v8511_v22 }
 0x26c   : > { %7883 = vmatpush3.bf16.msra.mxu1 %v8511_v22 }
 0x26d   : > { %7884 = vmatprep.subr.bf16.mxu1 %v8512_v23 }
 0x270   : > { %7885 = vmatpush3.bf16.msra.mxu1 %v8512_v23  ;;  %v8534_v23 = vld [vmem:[%s10318_s22 + $0x80] sm:$0xff]  }
 0x271   : > { %7886 = vmatprep.subr.bf16.mxu1 %v8513_v24 }
 0x274   : > { %7887 = vmatpush3.bf16.msra.mxu1 %v8513_v24 }
 0x275   : > { %7888 = vmatprep.subr.bf16.mxu1 %v8514_v25 }
 0x278   : > { %7889 = vmatpush3.bf16.msra.mxu1 %v8514_v25 }
 0x279   : > { %7890 = vmatprep.subr.bf16.mxu1 %v8515_v26 }
 0x27c   : > { %7891 = vmatpush3.bf16.msra.mxu1 %v8515_v26 }
 0x27d   : > { %7892 = vmatprep.subr.bf16.mxu1 %v8516_v27 }
 0x280   : > { %7893 = vmatpush3.bf16.msra.mxu1 %v8516_v27 }
 0x281   : > { %7926 = vmatprep.subr.bf16.mxu1 %v8517_v28 }
 0x283   : > { %7895 = vmatmul.mubr.bf16.vlgmr.msra.gmra.mxu1 %v9127_v6 }
 0x284   : > { %7927 = vmatpush3.bf16.msra.mxu1 %v8517_v28  ;;  %7942 = vmatprep.mubr.bf16.mxu1 %v9123_v2 }
 0x285   : > { %7928 = vmatprep.subr.bf16.mxu1 %v8518_v29 }
 0x288   : > { %7929 = vmatpush3.bf16.msra.mxu1 %v8518_v29 }
 0x289   : > { %7930 = vmatprep.subr.bf16.mxu1 %v8519_v30 }
 0x28c   : > { %7931 = vmatpush3.bf16.msra.mxu1 %v8519_v30  ;;  %v8535_v30 = vld [vmem:[%s10293_s7 + $0xb8] sm:$0xff]  }
 0x28d   : > { %7932 = vmatprep.subr.bf16.mxu1 %v8520_v31 }
 0x290   : > { %7933 = vmatpush3.bf16.msra.mxu1 %v8520_v31 }
 0x291   : > { %7934 = vmatprep.subr.bf16.mxu1 %v8521_v32 }
 0x294   : > { %7935 = vmatpush3.bf16.msra.mxu1 %v8521_v32 }
 0x295   : > { %7936 = vmatprep.subr.bf16.mxu1 %v8522_v33 }
 0x298   : > { %7937 = vmatpush3.bf16.msra.mxu1 %v8522_v33 }
 0x299   : > { %7938 = vmatprep.subr.bf16.mxu1 %v8523_v34 }
 0x29c   : > { %7939 = vmatpush3.bf16.msra.mxu1 %v8523_v34  ;;  %v8536_v34 = vld [vmem:[%s10293_s7 + $0xb0] sm:$0xff]  }
 0x29d   : > { %7940 = vmatprep.subr.bf16.mxu1 %v8524_v35 }
 0x2a0   : > { %7941 = vmatpush3.bf16.msra.mxu1 %v8524_v35  ;;  %v8537_v35 = vld [vmem:[%s10293_s7 + $0xa8] sm:$0xff]  }
 0x2a3   : > { %7943 = vmatmul.mubr.bf16.vlgmr.msra.gmra.mxu1 %v9127_v6 }
 0x303   : > { %v7836_v39 = vpop.f32.mrf.mxu1 }
 0x305   : > { %v1127_v40 = vpop.f32.mrf.mxu1 }
 0x307   : > { %v7837_v41 = vpop.f32.mrf.mxu1 }
 0x308   : > { %v7311_v42 = vpack.c.bf16 %v7837_v41, %v7836_v39  ;;  %v8541_v39 = vld [vmem:[%s10293_s7 + $0x88] sm:$0xff]   ;;  %v8543_v41 = vld [vmem:[%s10291_s5 + $0xf8] sm:$0xff]  }
 0x309   : > { %v1130_v43 = vpop.f32.mrf.mxu1 }
 0x30a   : > { %7410 = vst [vmem:[#allocation4 + $0x8] sm:$0xff] %v7311_v42   ;;  %v7306_v44 = vpack.c.bf16 %v1130_v43, %v1127_v40  ;;  %v8542_v40 = vld [vmem:[%s10293_s7 + $0x80] sm:$0xff]   ;;  %v8544_v42 = vld [vmem:[%s10291_s5 + $0xf0] sm:$0xff]   ;;  %v8545_v43 = vld [vmem:[%s10291_s5 + $0xe8] sm:$0xff]  }
 0x30c   : > { %7307 = vst [vmem:[#allocation4] sm:$0xff] %v7306_v44   ;;  %v8546_v44 = vld [vmem:[%s10291_s5 + $0xe0] sm:$0xff]  }
 0x323   : > { %v7856_v46 = vpop.f32.mrf.mxu1 }
 0x324   : > { %v1319_v47 = vadd.f32 %v7856_v46, %v6473_v45  ;;  %v8548_v46 = vld [vmem:[%s10291_s5 + $0xd0] sm:$0xff]  }
 0x325   : > { %v1310_v48 = vpop.f32.mrf.mxu1 }
 0x326   : > { %v7209_v49 = vpack.c.bf16 %v1319_v47, %v1319_v47  ;;  %v1311_v50 = vadd.f32 %v6473_v45, %v1310_v48  ;;  %v8549_v47 = vld [vmem:[%s10291_s5 + $0xc8] sm:$0xff]   ;;  %v8550_v48 = vld [vmem:[%s10291_s5 + $0xc0] sm:$0xff]  }
 0x327   : > { %v7857_v51 = vpop.f32.mrf.mxu1 }
 0x328   : > { %1664 = vst.msk [vmem:[#allocation2 + $0x28] sm:$0xf] %vm1158_vm0, %v7209_v49  ;;  %v7207_v53 = vpack.c.bf16 %v1311_v50, %v1311_v50  ;;  %v1322_v54 = vadd.f32 %v7857_v51, %v6473_v45  ;;  %v2738_v49 = vpop.xlane.xlu1 %2737  ;;  %v2736_v50 = vpop.xlane.xlu0 %2735 }
 0x329   : > { %v1313_v57 = vpop.f32.mrf.mxu1  ;;  %v2744_v51 = vmul.f32 0.0078125, %v2738_v49 }
 0x32a   : > { %1662 = vst.msk [vmem:[#allocation2 + $0x20] sm:$0xf] %vm1158_vm0, %v7207_v53  ;;  %v7210_v58 = vpack.c.bf16 %v1322_v54, %v1322_v54  ;;  %v1314_v59 = vadd.f32 %v6473_v45, %v1313_v57  ;;  %v8547_v45 = vld [vmem:[%s10291_s5 + $0xd8] sm:$0xff]   ;;  %v2743_v53 = vmul.f32 0.0078125, %v2736_v50 }
 0x32b   : > { %v9413_v54 = vsub.f32 %v7346_v56, %v2744_v51 }
 0x32c   : > { %1665 = vst.msk [vmem:[#allocation2 + $0x2c] sm:$0xf] %vm1158_vm0, %v7210_v58  ;;  %v7208_v61 = vpack.c.bf16 %v1314_v59, %v1314_v59  ;;  %v9417_v57 = vsub.f32 %v7345_v55, %v2743_v53  ;;  %v2742_v58 = vpop.xlane.xlu1 %2741  ;;  %v2740_v59 = vpop.xlane.xlu0 %2739 }
 0x32e   : > { %1663 = vst.msk [vmem:[#allocation2 + $0x24] sm:$0xf] %vm1158_vm0, %v7208_v61  ;;  %v2746_v61 = vmul.f32 0.0078125, %v2742_v58 }
 0x343   : > { %v7896_v0 = vpop.f32.mrf.mxu1 }
 0x344   : > { %v1563_v10 = vadd.f32 %v7896_v0, %v6525_v4  ;;  %v2745_v0 = vmul.f32 0.0078125, %v2740_v59 }
 0x345   : > { %v1554_v1 = vpop.f32.mrf.mxu1 }
 0x346   : > { %v1555_v8 = vadd.f32 %v6525_v4, %v1554_v1  ;;  %v2752_v1 = vmul.f32 %v9413_v54, %v9413_v54  ;;  %v9429_v56 = vsub.f32 %v7349_v62, %v2745_v0  ;;  %v8553_v62 = vld [vmem:[%s10318_s22 + $0xf8] sm:$0xff]  }
 0x347   : > { %v7897_v3 = vpop.f32.mrf.mxu1 }
 0x348   : > { %v1566_v5 = vadd.f32 %v7897_v3, %v6525_v4  ;;  %v2751_v3 = vmul.f32 %v9417_v57, %v9417_v57  ;;  %2757 = vadd.xlane.f32.xlu1 %v2752_v1  ;;  %v2753_v55 = vmul.f32 %v9429_v56, %v9429_v56  ;;  %v8561_v1 = vld [vmem:[%s10293_s7 + $0xf8] sm:$0xff]  }
 0x349   : > { %v1557_v7 = vpop.f32.mrf.mxu1 }
 0x34a   : > { %v1558_v9 = vadd.f32 %v6525_v4, %v1557_v7  ;;  %v1570_v12 = vpack.c.bf16 %v1566_v5, %v1563_v10  ;;  %v9425_v4 = vsub.f32 %v7350_v63, %v2746_v61  ;;  %2755 = vadd.xlane.f32.xlu0 %v2751_v3  ;;  %v8551_v5 = vld [vmem:[%s10295_s9 + $0x28] sm:$0xff]  }
 0x34b   : > { %7966 = vmatprep.subr.bf16.mxu1 %v8551_v5 }
 0x34c   : > { %v1569_v11 = vpack.c.bf16 %v1558_v9, %v1555_v8  ;;  %v2754_v52 = vmul.f32 %v9425_v4, %v9425_v4  ;;  %7967 = vmatpush3.bf16.msra.mxu1 %v8551_v5 }
 0x34d   : > { %7968 = vmatprep.subr.bf16.mxu1 %v8552_v60 }
 0x34e   : > { %7902 = vmatprep.mubr.msk.bf16.mxu0 %vm1086_vm1, %v1569_v11  ;;  %2761 = vadd.xlane.f32.xlu1 %v2754_v52 }
 0x34f   : > { %7903 = vmatmul.mubr.msk.bf16.vlgmr.msra.gmra.mxu0 %vm1086_vm1, %v1570_v12  ;;  %2759 = vadd.xlane.f32.xlu0 %v2753_v55  ;;  %v6571_v12 = vld [vmem:[%s10290_s4 + $0x2] ss:$0 sm:$0xff] }
 0x350   : > { %7907 = vmatpush3.bf16.msra.mxu0 %v8527_v38  ;;  %7922 = vmatprep.mubr.bf16.mxu0 %v9123_v2  ;;  %v8540_v38 = vld [vmem:[%s10293_s7 + $0x90] sm:$0xff]  }
 0x351   : > { %7908 = vmatprep.subr.bf16.mxu0 %v8528_v13  ;;  %7969 = vmatpush3.bf16.msra.mxu1 %v8552_v60 }
 0x352   : > { %7974 = vmatprep.subr.bf16.mxu1 %v8553_v62 }
 0x354   : > { %7909 = vmatpush3.bf16.msra.mxu0 %v8528_v13 }
 0x355   : > { %7910 = vmatprep.subr.bf16.mxu0 %v8529_v14 }
 0x358   : > { %7911 = vmatpush3.bf16.msra.mxu0 %v8529_v14 }
 0x359   : > { %7912 = vmatprep.subr.bf16.mxu0 %v8530_v15 }
 0x35c   : > { %7913 = vmatpush3.bf16.msra.mxu0 %v8530_v15 }
 0x35d   : > { %7914 = vmatprep.subr.bf16.mxu0 %v8531_v16 }
 0x360   : > { %7915 = vmatpush3.bf16.msra.mxu0 %v8531_v16 }
 0x361   : > { %7916 = vmatprep.subr.bf16.mxu0 %v8532_v17 }
 0x363   : > { %v7944_v20 = vpop.f32.mrf.mxu1 }
 0x364   : > { %7917 = vmatpush3.bf16.msra.mxu0 %v8532_v17  ;;  %v1948_v21 = vadd.f32 %v7944_v20, %v6597_v18 }
 0x365   : > { %v1939_v22 = vpop.f32.mrf.mxu1  ;;  %7918 = vmatprep.subr.bf16.mxu0 %v8533_v19 }
 0x366   : > { %v7225_v24 = vpack.c.bf16 %v1948_v21, %v1948_v21  ;;  %v1940_v25 = vadd.f32 %v6597_v18, %v1939_v22 }
 0x367   : > { %v7945_v26 = vpop.f32.mrf.mxu1 }
 0x368   : > { %2193 = vst.msk [vmem:[#allocation3 + $0x48] sm:$0xf] %vm1158_vm0, %v7225_v24  ;;  %v7223_v27 = vpack.c.bf16 %v1940_v25, %v1940_v25  ;;  %7919 = vmatpush3.bf16.msra.mxu0 %v8533_v19  ;;  %v1951_v28 = vadd.f32 %v7945_v26, %v6597_v18 }
 0x369   : > { %v1942_v29 = vpop.f32.mrf.mxu1  ;;  %7920 = vmatprep.subr.bf16.mxu0 %v8534_v23 }
 0x36a   : > { %2191 = vst.msk [vmem:[#allocation3 + $0x40] sm:$0xf] %vm1158_vm0, %v7223_v27  ;;  %v7226_v31 = vpack.c.bf16 %v1951_v28, %v1951_v28  ;;  %v1943_v32 = vadd.f32 %v6597_v18, %v1942_v29  ;;  %v6623_v28 = vld [vmem:[%s10294_s8 + $0x2] ss:$0 sm:$0xff] }
 0x36c   : > { %2194 = vst.msk [vmem:[#allocation3 + $0x4c] sm:$0xf] %vm1158_vm0, %v7226_v31  ;;  %v7224_v33 = vpack.c.bf16 %v1943_v32, %v1943_v32  ;;  %7921 = vmatpush3.bf16.msra.mxu0 %v8534_v23 }
 0x36d   : > { %7946 = vmatprep.subr.bf16.mxu0 %v8535_v30 }
 0x36e   : > { %2192 = vst.msk [vmem:[#allocation3 + $0x44] sm:$0xf] %vm1158_vm0, %v7224_v33 }
 0x36f   : > { %7923 = vmatmul.mubr.bf16.vlgmr.msra.gmra.mxu0 %v9127_v6 }
 0x370   : > { %7947 = vmatpush3.bf16.msra.mxu0 %v8535_v30  ;;  %7962 = vmatprep.mubr.bf16.mxu0 %v9123_v2 }
 0x371   : > { %7948 = vmatprep.subr.bf16.mxu0 %v8536_v34 }
 0x374   : > { %7949 = vmatpush3.bf16.msra.mxu0 %v8536_v34 }
 0x375   : > { %7950 = vmatprep.subr.bf16.mxu0 %v8537_v35 }
 0x378   : > { %7951 = vmatpush3.bf16.msra.mxu0 %v8537_v35 }
 0x379   : > { %7952 = vmatprep.subr.bf16.mxu0 %v8538_v36 }
 0x37c   : > { %7953 = vmatpush3.bf16.msra.mxu0 %v8538_v36  ;;  %v8554_v36 = vld [vmem:[%s10318_s22 + $0xf0] sm:$0xff]  }
 0x37d   : > { %7954 = vmatprep.subr.bf16.mxu0 %v8539_v37 }
 0x380   : > { %7955 = vmatpush3.bf16.msra.mxu0 %v8539_v37  ;;  %v8555_v37 = vld [vmem:[%s10318_s22 + $0xe8] sm:$0xff]  }
 0x381   : > { %7956 = vmatprep.subr.bf16.mxu0 %v8540_v38 }
 0x384   : > { %7957 = vmatpush3.bf16.msra.mxu0 %v8540_v38  ;;  %v8556_v38 = vld [vmem:[%s10318_s22 + $0xe0] sm:$0xff]  }
 0x385   : > { %7958 = vmatprep.subr.bf16.mxu0 %v8541_v39 }
 0x388   : > { %7959 = vmatpush3.bf16.msra.mxu0 %v8541_v39  ;;  %v8557_v39 = vld [vmem:[%s10318_s22 + $0xd8] sm:$0xff]  }
 0x389   : > { %7960 = vmatprep.subr.bf16.mxu0 %v8542_v40 }
 0x38c   : > { %7961 = vmatpush3.bf16.msra.mxu0 %v8542_v40  ;;  %v8558_v40 = vld [vmem:[%s10318_s22 + $0xd0] sm:$0xff]  }
 0x38d   : > { %7994 = vmatprep.subr.bf16.mxu0 %v8543_v41 }
 0x38f   : > { %7963 = vmatmul.mubr.bf16.vlgmr.msra.gmra.mxu0 %v9127_v6 }
 0x390   : > { %7995 = vmatpush3.bf16.msra.mxu0 %v8543_v41  ;;  %8010 = vmatprep.mubr.bf16.mxu0 %v9123_v2  ;;  %v6695_v41 = vld [vmem:[%s10292_s6 + $0x3] ss:$0 sm:$0xff] }
 0x391   : > { %7996 = vmatprep.subr.bf16.mxu0 %v8544_v42 }
 0x394   : > { %7997 = vmatpush3.bf16.msra.mxu0 %v8544_v42  ;;  %v8559_v42 = vld [vmem:[%s10318_s22 + $0xc8] sm:$0xff]  }
 0x395   : > { %7998 = vmatprep.subr.bf16.mxu0 %v8545_v43 }
 0x398   : > { %7999 = vmatpush3.bf16.msra.mxu0 %v8545_v43 }
 0x399   : > { %8000 = vmatprep.subr.bf16.mxu0 %v8546_v44 }
 0x39c   : > { %8001 = vmatpush3.bf16.msra.mxu0 %v8546_v44 }
 0x39d   : > { %8002 = vmatprep.subr.bf16.mxu0 %v8547_v45 }
 0x3a0   : > { %8003 = vmatpush3.bf16.msra.mxu0 %v8547_v45 }
 0x3a1   : > { %8004 = vmatprep.subr.bf16.mxu0 %v8548_v46 }
 0x3a4   : > { %8005 = vmatpush3.bf16.msra.mxu0 %v8548_v46  ;;  %v8560_v46 = vld [vmem:[%s10318_s22 + $0xc0] sm:$0xff]  }
 0x3a5   : > { %8006 = vmatprep.subr.bf16.mxu0 %v8549_v47 }
 0x3a8   : > { %8007 = vmatpush3.bf16.msra.mxu0 %v8549_v47 }
 0x3a9   : > { %8008 = vmatprep.subr.bf16.mxu0 %v8550_v48 }
 0x3ac   : > { %8009 = vmatpush3.bf16.msra.mxu0 %v8550_v48 }
 0x3af   : > { %8011 = vmatmul.mubr.bf16.vlgmr.msra.gmra.mxu0 %v9127_v6 }
 0x3d1   : > { %v2758_v49 = vpop.xlane.xlu1 %2757 }
 0x3d2   : > { %v2764_v51 = vmul.f32 0.0078125, %v2758_v49  ;;  %v6669_v49 = vld [vmem:[%s10290_s4 + $0x3] ss:$0 sm:$0xff] }
 0x3d3   : > { %v2756_v53 = vpop.xlane.xlu0 %2755 }
 0x3d4   : > { %v2763_v61 = vmul.f32 0.0078125, %v2756_v53  ;;  %v2768_v55 = vadd.f32 1e-05, %v2764_v51 }
 0x3d6   : > { %v2767_v60 = vadd.f32 1e-05, %v2763_v61  ;;  %8683 = vrsqrt.f32 %v2768_v55 }
 0x3d8   : > { %8685 = vrsqrt.f32 %v2767_v60 }
 0x40f   : > { %v7904_v63 = vpop.f32.mrf.mxu0 }
 0x411   : > { %v1628_v7 = vpop.f32.mrf.mxu0 }
 0x413   : > { %v7905_v8 = vpop.f32.mrf.mxu0 }
 0x414   : > { %v7321_v9 = vpack.c.bf16 %v7905_v8, %v7904_v63  ;;  %v8563_v63 = vld [vmem:[%s10293_s7 + $0xe8] sm:$0xff]   ;;  %v8565_v8 = vld [vmem:[%s10293_s7 + $0xd8] sm:$0xff]  }
 0x415   : > { %v1631_v10 = vpop.f32.mrf.mxu0 }
 0x416   : > { %7411 = vst [vmem:[#allocation4 + $0x28] sm:$0xff] %v7321_v9   ;;  %v7316_v11 = vpack.c.bf16 %v1631_v10, %v1628_v7  ;;  %v8564_v7 = vld [vmem:[%s10293_s7 + $0xe0] sm:$0xff]   ;;  %v8684_v9 = vpop.eup %8683  ;;  %v8566_v10 = vld [vmem:[%s10293_s7 + $0xd0] sm:$0xff]  }
 0x418   : > { %7317 = vst [vmem:[#allocation4 + $0x20] sm:$0xff] %v7316_v11   ;;  %v2776_v11 = vmul.f32 %v8684_v9, %v9413_v54  ;;  %v8568_v54 = vld [vmem:[%s10293_s7 + $0xc0] sm:$0xff]  }
 0x42f   : > { %v7924_v13 = vpop.f32.mrf.mxu0 }
 0x430   : > { %v1826_v14 = vadd.f32 %v7924_v13, %v6571_v12  ;;  %v8567_v13 = vld [vmem:[%s10293_s7 + $0xc8] sm:$0xff]  }
 0x431   : > { %v1817_v15 = vpop.f32.mrf.mxu0 }
 0x432   : > { %v7221_v16 = vpack.c.bf16 %v1826_v14, %v1826_v14  ;;  %v1818_v17 = vadd.f32 %v6571_v12, %v1817_v15  ;;  %v6754_v14 = vld [vmem:[%s10319_s3] ss:$0 sm:$0xff]  ;;  %v2762_v15 = vpop.xlane.xlu1 %2761 }
 0x433   : > { %v7925_v18 = vpop.f32.mrf.mxu0 }
 0x434   : > { %2171 = vst.msk [vmem:[#allocation2 + $0x48] sm:$0xf] %vm1158_vm0, %v7221_v16  ;;  %v7219_v19 = vpack.c.bf16 %v1818_v17, %v1818_v17  ;;  %v1829_v20 = vadd.f32 %v7925_v18, %v6571_v12  ;;  %v2786_v16 = vmul.f32 %v6754_v14, %v2776_v11  ;;  %v2760_v18 = vpop.xlane.xlu0 %2759 }
 0x435   : > { %v1820_v21 = vpop.f32.mrf.mxu0 }
 0x436   : > { %2169 = vst.msk [vmem:[#allocation2 + $0x40] sm:$0xf] %vm1158_vm0, %v7219_v19  ;;  %v7222_v22 = vpack.c.bf16 %v1829_v20, %v1829_v20  ;;  %v1821_v23 = vadd.f32 %v6571_v12, %v1820_v21  ;;  %v2766_v19 = vmul.f32 0.0078125, %v2762_v15  ;;  %v2765_v20 = vmul.f32 0.0078125, %v2760_v18  ;;  %v8581_v15 = vld [vmem:[%s10318_s22 + $0x28] sm:$0xff]   ;;  %v8584_v18 = vld [vmem:[%s10318_s22 + $0x10] sm:$0xff]  }
 0x438   : > { %2172 = vst.msk [vmem:[#allocation2 + $0x4c] sm:$0xf] %vm1158_vm0, %v7222_v22  ;;  %v7220_v24 = vpack.c.bf16 %v1821_v23, %v1821_v23  ;;  %v8569_v23 = vld [vmem:[%s10291_s5 + $0x38] sm:$0xff]  }
 0x43a   : > { %2170 = vst.msk [vmem:[#allocation2 + $0x44] sm:$0xf] %vm1158_vm0, %v7220_v24  ;;  %v2770_v24 = vadd.f32 1e-05, %v2766_v19 }
 0x43c   : > { %8687 = vrsqrt.f32 %v2770_v24 }
 0x44f   : > { %v7964_v25 = vpop.f32.mrf.mxu0 }
 0x450   : > { %v2070_v33 = vadd.f32 %v7964_v25, %v6623_v28  ;;  %v2769_v25 = vadd.f32 1e-05, %v2765_v20 }
 0x451   : > { %v2061_v26 = vpop.f32.mrf.mxu0 }
 0x452   : > { %v2062_v31 = vadd.f32 %v6623_v28, %v2061_v26  ;;  %8689 = vrsqrt.f32 %v2769_v25 }
 0x453   : > { %v7965_v27 = vpop.f32.mrf.mxu0 }
 0x454   : > { %v2073_v29 = vadd.f32 %v7965_v27, %v6623_v28  ;;  %v8570_v27 = vld [vmem:[%s10291_s5 + $0x30] sm:$0xff]  }
 0x455   : > { %v2064_v30 = vpop.f32.mrf.mxu0 }
 0x456   : > { %v2065_v32 = vadd.f32 %v6623_v28, %v2064_v30  ;;  %v2077_v35 = vpack.c.bf16 %v2073_v29, %v2070_v33  ;;  %v8571_v28 = vld [vmem:[%s10291_s5 + $0x28] sm:$0xff]   ;;  %v8572_v29 = vld [vmem:[%s10291_s5 + $0x20] sm:$0xff]  }
 0x458   : > { %v2076_v34 = vpack.c.bf16 %v2065_v32, %v2062_v31  ;;  %v8574_v32 = vld [vmem:[%s10291_s5 + $0x10] sm:$0xff]  }
 0x45a   : > { %7970 = vmatprep.mubr.msk.bf16.mxu1 %vm1086_vm1, %v2076_v34 }
 0x45b   : > { %7971 = vmatmul.mubr.msk.bf16.vlgmr.msra.gmra.mxu1 %vm1086_vm1, %v2077_v35  ;;  %v8575_v35 = vld [vmem:[%s10291_s5 + $0x8] sm:$0xff]  }
 0x45c   : > { %7975 = vmatpush3.bf16.msra.mxu1 %v8553_v62  ;;  %7990 = vmatprep.mubr.bf16.mxu1 %v9123_v2  ;;  %v8562_v62 = vld [vmem:[%s10293_s7 + $0xf0] sm:$0xff]  }
 0x45d   : > { %7976 = vmatprep.subr.bf16.mxu1 %v8554_v36 }
 0x460   : > { %7977 = vmatpush3.bf16.msra.mxu1 %v8554_v36 }
 0x461   : > { %7978 = vmatprep.subr.bf16.mxu1 %v8555_v37 }
 0x464   : > { %7979 = vmatpush3.bf16.msra.mxu1 %v8555_v37 }
 0x465   : > { %7980 = vmatprep.subr.bf16.mxu1 %v8556_v38 }
 0x468   : > { %7981 = vmatpush3.bf16.msra.mxu1 %v8556_v38  ;;  %v8576_v38 = vld [vmem:[%s10291_s5] sm:$0xff]  }
 0x469   : > { %7982 = vmatprep.subr.bf16.mxu1 %v8557_v39 }
 0x46c   : > { %7983 = vmatpush3.bf16.msra.mxu1 %v8557_v39 }
 0x46d   : > { %7984 = vmatprep.subr.bf16.mxu1 %v8558_v40 }
 0x46f   : > { %v8012_v43 = vpop.f32.mrf.mxu0 }
 0x470   : > { %7985 = vmatpush3.bf16.msra.mxu1 %v8558_v40  ;;  %v2455_v44 = vadd.f32 %v8012_v43, %v6695_v41 }
 0x471   : > { %v2446_v45 = vpop.f32.mrf.mxu0  ;;  %7986 = vmatprep.subr.bf16.mxu1 %v8559_v42 }
 0x472   : > { %v7237_v47 = vpack.c.bf16 %v2455_v44, %v2455_v44  ;;  %v2447_v48 = vadd.f32 %v6695_v41, %v2446_v45 }
 0x473   : > { %v8013_v50 = vpop.f32.mrf.mxu0 }
 0x474   : > { %2700 = vst.msk [vmem:[#allocation3 + $0x68] sm:$0xf] %vm1158_vm0, %v7237_v47  ;;  %v7235_v58 = vpack.c.bf16 %v2447_v48, %v2447_v48  ;;  %7987 = vmatpush3.bf16.msra.mxu1 %v8559_v42  ;;  %v2458_v59 = vadd.f32 %v8013_v50, %v6695_v41  ;;  %v8579_v42 = vld [vmem:[%s10318_s22 + $0x38] sm:$0xff]  }
 0x475   : > { %v2449_v0 = vpop.f32.mrf.mxu0  ;;  %7988 = vmatprep.subr.bf16.mxu1 %v8560_v46 }
 0x476   : > { %2698 = vst.msk [vmem:[#allocation3 + $0x60] sm:$0xf] %vm1158_vm0, %v7235_v58  ;;  %v7238_v3 = vpack.c.bf16 %v2458_v59, %v2458_v59  ;;  %v2450_v52 = vadd.f32 %v6695_v41, %v2449_v0  ;;  %v8578_v41 = vld [vmem:[%s10295_s9 + $0x30] sm:$0xff]  }
 0x478   : > { %2701 = vst.msk [vmem:[#allocation3 + $0x6c] sm:$0xf] %vm1158_vm0, %v7238_v3  ;;  %v7236_v5 = vpack.c.bf16 %v2450_v52, %v2450_v52  ;;  %7989 = vmatpush3.bf16.msra.mxu1 %v8560_v46 }
 0x479   : > { %8014 = vmatprep.subr.bf16.mxu1 %v8561_v1 }
 0x47a   : > { %2699 = vst.msk [vmem:[#allocation3 + $0x64] sm:$0xf] %vm1158_vm0, %v7236_v5 }
 0x47b   : > { %7991 = vmatmul.mubr.bf16.vlgmr.msra.gmra.mxu1 %v9127_v6 }
 0x47c   : > { %8015 = vmatpush3.bf16.msra.mxu1 %v8561_v1  ;;  %8030 = vmatprep.mubr.bf16.mxu1 %v9123_v2  ;;  %v8686_v2 = vpop.eup %8685 }
 0x47d   : > { %8016 = vmatprep.subr.bf16.mxu1 %v8562_v62  ;;  %v2775_v12 = vmul.f32 %v8686_v2, %v9417_v57  ;;  %v6755_v57 = vld [vmem:[%s10320_s29] ss:$0 sm:$0xff]  ;;  %v8688_v30 = vpop.eup %8687 }
 0x47e   : > { %v2796_v21 = vadd.f32 %v6755_v57, %v2786_v16  ;;  %v8690_v31 = vpop.eup %8689  ;;  %v2778_v33 = vmul.f32 %v8688_v30, %v9425_v4  ;;  %v8582_v16 = vld [vmem:[%s10318_s22 + $0x20] sm:$0xff]  }
 0x47f   : > { %v2785_v17 = vmul.f32 %v6754_v14, %v2775_v12  ;;  %v2777_v34 = vmul.f32 %v8690_v31, %v9429_v56  ;;  %v8577_v56 = vld [vmem:[%s10295_s9 + $0x38] sm:$0xff]  }
 0x480   : > { %8017 = vmatpush3.bf16.msra.mxu1 %v8562_v62  ;;  %v2788_v36 = vmul.f32 %v6754_v14, %v2778_v33  ;;  %8034 = vmatprep.subr.bf16.mxu0 %v8577_v56  ;;  %v8588_v33 = vld [vmem:[%s10293_s7 + $0x30] sm:$0xff]  }
 0x481   : > { %8018 = vmatprep.subr.bf16.mxu1 %v8563_v63  ;;  %v2795_v22 = vadd.f32 %v6755_v57, %v2785_v17  ;;  %v2787_v37 = vmul.f32 %v6754_v14, %v2777_v34  ;;  %8035 = vmatpush3.bf16.msra.mxu0 %v8577_v56  ;;  %v8580_v14 = vld [vmem:[%s10318_s22 + $0x30] sm:$0xff]   ;;  %v8583_v17 = vld [vmem:[%s10318_s22 + $0x18] sm:$0xff]   ;;  %v8589_v34 = vld [vmem:[%s10293_s7 + $0x28] sm:$0xff]  }
 0x482   : > { %v2798_v39 = vadd.f32 %v6755_v57, %v2788_v36  ;;  %8036 = vmatprep.subr.bf16.mxu0 %v8578_v41  ;;  %v8591_v36 = vld [vmem:[%s10293_s7 + $0x18] sm:$0xff]   ;;  %v8596_v56 = vld [vmem:[%s10291_s5 + $0x70] sm:$0xff]  }
 0x483   : > { %v9522_v26 = vpack.c.bf16 %v2796_v21, %v2795_v22  ;;  %v2797_v40 = vadd.f32 %v6755_v57, %v2787_v37  ;;  %v6765_v57 = vld [vmem:[%s10292_s6] ss:$0 sm:$0xff]  ;;  %v8592_v37 = vld [vmem:[%s10293_s7 + $0x10] sm:$0xff]  }
 0x484   : > { %8019 = vmatpush3.bf16.msra.mxu1 %v8563_v63  ;;  %v8586_v21 = vld [vmem:[%s10318_s22] sm:$0xff]  }
 0x485   : > { %8020 = vmatprep.subr.bf16.mxu1 %v8564_v7  ;;  %v9549_v4 = vpack.c.bf16 %v2798_v39, %v2797_v40  ;;  %8037 = vmatpush3.bf16.msra.mxu0 %v8578_v41  ;;  %v8594_v39 = vld [vmem:[%s10293_s7] sm:$0xff]   ;;  %v8595_v40 = vld [vmem:[%s10291_s5 + $0x78] sm:$0xff]   ;;  %v8597_v41 = vld [vmem:[%s10291_s5 + $0x68] sm:$0xff]  }
 0x486   : > { %8042 = vmatprep.subr.bf16.mxu0 %v8579_v42 }
 0x488   : > { %8021 = vmatpush3.bf16.msra.mxu1 %v8564_v7  ;;  %v6721_v7 = vld [vmem:[%s10294_s8 + $0x3] ss:$0 sm:$0xff] }
 0x489   : > { %8022 = vmatprep.subr.bf16.mxu1 %v8565_v8 }
 0x48c   : > { %8023 = vmatpush3.bf16.msra.mxu1 %v8565_v8 }
 0x48d   : > { %8024 = vmatprep.subr.bf16.mxu1 %v8566_v10 }
 0x490   : > { %8025 = vmatpush3.bf16.msra.mxu1 %v8566_v10 }
 0x491   : > { %8026 = vmatprep.subr.bf16.mxu1 %v8567_v13 }
 0x494   : > { %8027 = vmatpush3.bf16.msra.mxu1 %v8567_v13 }
 0x495   : > { %8028 = vmatprep.subr.bf16.mxu1 %v8568_v54 }
 0x498   : > { %8029 = vmatpush3.bf16.msra.mxu1 %v8568_v54  ;;  %v8585_v54 = vld [vmem:[%s10318_s22 + $0x8] sm:$0xff]  }
 0x499   : > { %8062 = vmatprep.subr.bf16.mxu1 %v8569_v23 }
 0x49b   : > { %8031 = vmatmul.mubr.bf16.vlgmr.msra.gmra.mxu1 %v9127_v6  ;;  %v8573_v6 = vld [vmem:[%s10291_s5 + $0x18] sm:$0xff]  }
 0x49c   : > { %8063 = vmatpush3.bf16.msra.mxu1 %v8569_v23  ;;  %8078 = vmatprep.mubr.bf16.mxu1 %v9522_v26 }
 0x49d   : > { %8064 = vmatprep.subr.bf16.mxu1 %v8570_v27 }
 0x4a0   : > { %8065 = vmatpush3.bf16.msra.mxu1 %v8570_v27 }
 0x4a1   : > { %8066 = vmatprep.subr.bf16.mxu1 %v8571_v28 }
 0x4a4   : > { %8067 = vmatpush3.bf16.msra.mxu1 %v8571_v28 }
 0x4a5   : > { %8068 = vmatprep.subr.bf16.mxu1 %v8572_v29 }
 0x4a8   : > { %8069 = vmatpush3.bf16.msra.mxu1 %v8572_v29  ;;  %v8587_v29 = vld [vmem:[%s10293_s7 + $0x38] sm:$0xff]  }
 0x4a9   : > { %8070 = vmatprep.subr.bf16.mxu1 %v8573_v6 }
 0x4ac   : > { %8071 = vmatpush3.bf16.msra.mxu1 %v8573_v6 }
 0x4ad   : > { %8072 = vmatprep.subr.bf16.mxu1 %v8574_v32 }
 0x4b0   : > { %8073 = vmatpush3.bf16.msra.mxu1 %v8574_v32 }
 0x4b1   : > { %8074 = vmatprep.subr.bf16.mxu1 %v8575_v35 }
 0x4b4   : > { %8075 = vmatpush3.bf16.msra.mxu1 %v8575_v35  ;;  %v8590_v35 = vld [vmem:[%s10293_s7 + $0x20] sm:$0xff]  }
 0x4b5   : > { %8076 = vmatprep.subr.bf16.mxu1 %v8576_v38 }
 0x4b8   : > { %8077 = vmatpush3.bf16.msra.mxu1 %v8576_v38  ;;  %v8593_v38 = vld [vmem:[%s10293_s7 + $0x8] sm:$0xff]  }
 0x4bb   : > { %8079 = vmatmul.mubr.bf16.vlgmr.msra.gmra.mxu1 %v9549_v4 }
 0x51b   : > { %v7972_v43 = vpop.f32.mrf.mxu1 }
 0x51d   : > { %v2135_v44 = vpop.f32.mrf.mxu1 }
 0x51f   : > { %v7973_v45 = vpop.f32.mrf.mxu1 }
 0x520   : > { %v7331_v46 = vpack.c.bf16 %v7973_v45, %v7972_v43  ;;  %v8599_v43 = vld [vmem:[%s10291_s5 + $0x58] sm:$0xff]   ;;  %v8601_v45 = vld [vmem:[%s10291_s5 + $0x48] sm:$0xff]  }
 0x521   : > { %v2138_v47 = vpop.f32.mrf.mxu1 }
 0x522   : > { %7412 = vst [vmem:[#allocation4 + $0x48] sm:$0xff] %v7331_v46   ;;  %v7326_v48 = vpack.c.bf16 %v2138_v47, %v2135_v44  ;;  %v8600_v44 = vld [vmem:[%s10291_s5 + $0x50] sm:$0xff]   ;;  %v8602_v46 = vld [vmem:[%s10291_s5 + $0x40] sm:$0xff]   ;;  %v8603_v47 = vld [vmem:[%s10295_s9 + $0x8] sm:$0xff]  }
 0x523   : > { %8102 = vmatprep.subr.bf16.mxu1 %v8603_v47 }
 0x524   : > { %7327 = vst [vmem:[#allocation4 + $0x40] sm:$0xff] %v7326_v48   ;;  %8103 = vmatpush3.bf16.msra.mxu1 %v8603_v47  ;;  %v8604_v48 = vld [vmem:[%s10295_s9] sm:$0xff]   ;;  %v8622_v47 = vld [vmem:[%s10291_s5 + $0xb0] sm:$0xff]  }
 0x525   : > { %8104 = vmatprep.subr.bf16.mxu1 %v8604_v48 }
 0x528   : > { %8105 = vmatpush3.bf16.msra.mxu1 %v8604_v48  ;;  %v8623_v48 = vld [vmem:[%s10291_s5 + $0xa8] sm:$0xff]  }
 0x53b   : > { %v7992_v50 = vpop.f32.mrf.mxu1 }
 0x53c   : > { %v2333_v51 = vadd.f32 %v7992_v50, %v6669_v49 }
 0x53d   : > { %v2324_v53 = vpop.f32.mrf.mxu1 }
 0x53e   : > { %v7233_v58 = vpack.c.bf16 %v2333_v51, %v2333_v51  ;;  %v2325_v59 = vadd.f32 %v6669_v49, %v2324_v53 }
 0x53f   : > { %v7993_v61 = vpop.f32.mrf.mxu1 }
 0x540   : > { %2678 = vst.msk [vmem:[#allocation2 + $0x68] sm:$0xf] %vm1158_vm0, %v7233_v58  ;;  %v7231_v0 = vpack.c.bf16 %v2325_v59, %v2325_v59  ;;  %v2336_v1 = vadd.f32 %v7993_v61, %v6669_v49 }
 0x541   : > { %v2327_v3 = vpop.f32.mrf.mxu1 }
 0x542   : > { %2676 = vst.msk [vmem:[#allocation2 + $0x60] sm:$0xf] %vm1158_vm0, %v7231_v0  ;;  %v7234_v52 = vpack.c.bf16 %v2336_v1, %v2336_v1  ;;  %v2328_v55 = vadd.f32 %v6669_v49, %v2327_v3  ;;  %v8605_v49 = vld [vmem:[%s10318_s22 + $0x78] sm:$0xff]   ;;  %v6756_v0 = vld [vmem:[%s10290_s4] ss:$0 sm:$0xff] }
 0x543   : > { %8110 = vmatprep.subr.bf16.mxu1 %v8605_v49 }
 0x544   : > { %2679 = vst.msk [vmem:[#allocation2 + $0x6c] sm:$0xf] %vm1158_vm0, %v7234_v52  ;;  %v7232_v5 = vpack.c.bf16 %v2328_v55, %v2328_v55 }
 0x546   : > { %2677 = vst.msk [vmem:[#allocation2 + $0x64] sm:$0xf] %vm1158_vm0, %v7232_v5 }
 0x55b   : > { %v8032_v60 = vpop.f32.mrf.mxu1 }
 0x55c   : > { %v2577_v11 = vadd.f32 %v8032_v60, %v6721_v7 }
 0x55d   : > { %v2568_v62 = vpop.f32.mrf.mxu1 }
 0x55e   : > { %v2569_v2 = vadd.f32 %v6721_v7, %v2568_v62 }
 0x55f   : > { %v8033_v63 = vpop.f32.mrf.mxu1 }
 0x560   : > { %v2580_v8 = vadd.f32 %v8033_v63, %v6721_v7 }
 0x561   : > { %v2571_v9 = vpop.f32.mrf.mxu1 }
 0x562   : > { %v2572_v10 = vadd.f32 %v6721_v7, %v2571_v9  ;;  %v2584_v13 = vpack.c.bf16 %v2580_v8, %v2577_v11 }
 0x564   : > { %v2583_v12 = vpack.c.bf16 %v2572_v10, %v2569_v2 }
 0x566   : > { %8038 = vmatprep.mubr.msk.bf16.mxu0 %vm1086_vm1, %v2583_v12 }
 0x567   : > { %8039 = vmatmul.mubr.msk.bf16.vlgmr.msra.gmra.mxu0 %vm1086_vm1, %v2584_v13  ;;  %v6774_v13 = vld [vmem:[%s10294_s8] ss:$0 sm:$0xff] }
 0x568   : > { %8043 = vmatpush3.bf16.msra.mxu0 %v8579_v42  ;;  %8058 = vmatprep.mubr.bf16.mxu0 %v9522_v26  ;;  %v8598_v42 = vld [vmem:[%s10291_s5 + $0x60] sm:$0xff]  }
 0x569   : > { %8044 = vmatprep.subr.bf16.mxu0 %v8580_v14 }
 0x56c   : > { %8045 = vmatpush3.bf16.msra.mxu0 %v8580_v14 }
 0x56d   : > { %8046 = vmatprep.subr.bf16.mxu0 %v8581_v15 }
 0x570   : > { %8047 = vmatpush3.bf16.msra.mxu0 %v8581_v15 }
 0x571   : > { %8048 = vmatprep.subr.bf16.mxu0 %v8582_v16 }
 0x574   : > { %8049 = vmatpush3.bf16.msra.mxu0 %v8582_v16 }
 0x575   : > { %8050 = vmatprep.subr.bf16.mxu0 %v8583_v17 }
 0x578   : > { %8051 = vmatpush3.bf16.msra.mxu0 %v8583_v17 }
 0x579   : > { %8052 = vmatprep.subr.bf16.mxu0 %v8584_v18 }
 0x57b   : > { %v8080_v19 = vpop.f32.mrf.mxu1 }
 0x57c   : > { %8053 = vmatpush3.bf16.msra.mxu0 %v8584_v18  ;;  %v3035_v20 = vadd.f32 %v8080_v19, %v6765_v57  ;;  %v8606_v19 = vld [vmem:[%s10318_s22 + $0x70] sm:$0xff]  }
 0x57d   : > { %8054 = vmatprep.subr.bf16.mxu0 %v8585_v54  ;;  %v3026_v22 = vpop.f32.mrf.mxu1 }
 0x57e   : > { %v7249_v23 = vpack.c.bf16 %v3035_v20, %v3035_v20  ;;  %v3027_v24 = vadd.f32 %v6765_v57, %v3026_v22  ;;  %v8607_v20 = vld [vmem:[%s10318_s22 + $0x68] sm:$0xff]   ;;  %v8609_v22 = vld [vmem:[%s10318_s22 + $0x58] sm:$0xff]  }
 0x57f   : > { %v8081_v25 = vpop.f32.mrf.mxu1 }
 0x580   : > { %8055 = vmatpush3.bf16.msra.mxu0 %v8585_v54  ;;  %3274 = vst.msk [vmem:[#allocation3 + $0x18] sm:$0xf] %vm1158_vm0, %v7249_v23  ;;  %v7247_v27 = vpack.c.bf16 %v3027_v24, %v3027_v24  ;;  %v3038_v28 = vadd.f32 %v8081_v25, %v6765_v57  ;;  %v8610_v23 = vld [vmem:[%s10318_s22 + $0x50] sm:$0xff]   ;;  %v6842_v24 = vld [vmem:[%s10292_s6 + $0x1] ss:$0 sm:$0xff]  ;;  %v8611_v25 = vld [vmem:[%s10318_s22 + $0x48] sm:$0xff]  }
 0x581   : > { %8056 = vmatprep.subr.bf16.mxu0 %v8586_v21  ;;  %v3029_v6 = vpop.f32.mrf.mxu1 }
 0x582   : > { %3272 = vst.msk [vmem:[#allocation3 + $0x10] sm:$0xf] %vm1158_vm0, %v7247_v27  ;;  %v7250_v30 = vpack.c.bf16 %v3038_v28, %v3038_v28  ;;  %v3030_v31 = vadd.f32 %v6765_v57, %v3029_v6  ;;  %v8612_v6 = vld [vmem:[%s10318_s22 + $0x40] sm:$0xff]  }
 0x584   : > { %8057 = vmatpush3.bf16.msra.mxu0 %v8586_v21  ;;  %3275 = vst.msk [vmem:[#allocation3 + $0x1c] sm:$0xf] %vm1158_vm0, %v7250_v30  ;;  %v7248_v32 = vpack.c.bf16 %v3030_v31, %v3030_v31  ;;  %v8608_v21 = vld [vmem:[%s10318_s22 + $0x60] sm:$0xff]  }
 0x585   : > { %8082 = vmatprep.subr.bf16.mxu0 %v8587_v29 }
 0x586   : > { %3273 = vst.msk [vmem:[#allocation3 + $0x14] sm:$0xf] %vm1158_vm0, %v7248_v32 }
 0x587   : > { %8059 = vmatmul.mubr.bf16.vlgmr.msra.gmra.mxu0 %v9549_v4 }
 0x588   : > { %8083 = vmatpush3.bf16.msra.mxu0 %v8587_v29  ;;  %8098 = vmatprep.mubr.bf16.mxu0 %v9522_v26 }
 0x589   : > { %8084 = vmatprep.subr.bf16.mxu0 %v8588_v33 }
 0x58c   : > { %8085 = vmatpush3.bf16.msra.mxu0 %v8588_v33 }
 0x58d   : > { %8086 = vmatprep.subr.bf16.mxu0 %v8589_v34 }
 0x590   : > { %8087 = vmatpush3.bf16.msra.mxu0 %v8589_v34 }
 0x591   : > { %8088 = vmatprep.subr.bf16.mxu0 %v8590_v35 }
 0x594   : > { %8089 = vmatpush3.bf16.msra.mxu0 %v8590_v35 }
 0x595   : > { %8090 = vmatprep.subr.bf16.mxu0 %v8591_v36 }
 0x598   : > { %8091 = vmatpush3.bf16.msra.mxu0 %v8591_v36  ;;  %v8613_v36 = vld [vmem:[%s10293_s7 + $0x78] sm:$0xff]  }
 0x599   : > { %8092 = vmatprep.subr.bf16.mxu0 %v8592_v37 }
 0x59c   : > { %8093 = vmatpush3.bf16.msra.mxu0 %v8592_v37 }
 0x59d   : > { %8094 = vmatprep.subr.bf16.mxu0 %v8593_v38 }
 0x5a0   : > { %8095 = vmatpush3.bf16.msra.mxu0 %v8593_v38 }
 0x5a1   : > { %8096 = vmatprep.subr.bf16.mxu0 %v8594_v39 }
 0x5a4   : > { %8097 = vmatpush3.bf16.msra.mxu0 %v8594_v39 }
 0x5a5   : > { %8130 = vmatprep.subr.bf16.mxu0 %v8595_v40 }
 0x5a7   : > { %8099 = vmatmul.mubr.bf16.vlgmr.msra.gmra.mxu0 %v9549_v4 }
 0x5a8   : > { %8131 = vmatpush3.bf16.msra.mxu0 %v8595_v40  ;;  %8146 = vmatprep.mubr.bf16.mxu0 %v9522_v26  ;;  %v8614_v40 = vld [vmem:[%s10293_s7 + $0x70] sm:$0xff]  }
 0x5a9   : > { %8132 = vmatprep.subr.bf16.mxu0 %v8596_v56 }
 0x5ac   : > { %8133 = vmatpush3.bf16.msra.mxu0 %v8596_v56  ;;  %v8615_v56 = vld [vmem:[%s10293_s7 + $0x68] sm:$0xff]  }
 0x5ad   : > { %8134 = vmatprep.subr.bf16.mxu0 %v8597_v41 }
 0x5b0   : > { %8135 = vmatpush3.bf16.msra.mxu0 %v8597_v41  ;;  %v8616_v41 = vld [vmem:[%s10293_s7 + $0x60] sm:$0xff]  }
 0x5b1   : > { %8136 = vmatprep.subr.bf16.mxu0 %v8598_v42 }
 0x5b4   : > { %8137 = vmatpush3.bf16.msra.mxu0 %v8598_v42  ;;  %v8617_v42 = vld [vmem:[%s10293_s7 + $0x58] sm:$0xff]  }
 0x5b5   : > { %8138 = vmatprep.subr.bf16.mxu0 %v8599_v43 }
 0x5b8   : > { %8139 = vmatpush3.bf16.msra.mxu0 %v8599_v43  ;;  %v8618_v43 = vld [vmem:[%s10293_s7 + $0x50] sm:$0xff]  }
 0x5b9   : > { %8140 = vmatprep.subr.bf16.mxu0 %v8600_v44 }
 0x5bc   : > { %8141 = vmatpush3.bf16.msra.mxu0 %v8600_v44  ;;  %v8619_v44 = vld [vmem:[%s10293_s7 + $0x48] sm:$0xff]  }
 0x5bd   : > { %8142 = vmatprep.subr.bf16.mxu0 %v8601_v45 }
 0x5c0   : > { %8143 = vmatpush3.bf16.msra.mxu0 %v8601_v45  ;;  %v8620_v45 = vld [vmem:[%s10293_s7 + $0x40] sm:$0xff]  }
 0x5c1   : > { %8144 = vmatprep.subr.bf16.mxu0 %v8602_v46 }
 0x5c4   : > { %8145 = vmatpush3.bf16.msra.mxu0 %v8602_v46  ;;  %v8621_v46 = vld [vmem:[%s10291_s5 + $0xb8] sm:$0xff]  }
 0x5c7   : > { %8147 = vmatmul.mubr.bf16.vlgmr.msra.gmra.mxu0 %v9549_v4 }
 0x627   : > { %v8040_v50 = vpop.f32.mrf.mxu0 }
 0x629   : > { %v2642_v51 = vpop.f32.mrf.mxu0 }
 0x62b   : > { %v8041_v53 = vpop.f32.mrf.mxu0 }
 0x62c   : > { %v7341_v58 = vpack.c.bf16 %v8041_v53, %v8040_v50  ;;  %v8625_v50 = vld [vmem:[%s10291_s5 + $0x98] sm:$0xff]   ;;  %v8627_v53 = vld [vmem:[%s10291_s5 + $0x88] sm:$0xff]  }
 0x62d   : > { %v2645_v59 = vpop.f32.mrf.mxu0 }
 0x62e   : > { %7413 = vst [vmem:[#allocation4 + $0x68] sm:$0xff] %v7341_v58   ;;  %v7336_v61 = vpack.c.bf16 %v2645_v59, %v2642_v51  ;;  %v8626_v51 = vld [vmem:[%s10291_s5 + $0x90] sm:$0xff]   ;;  %v8628_v58 = vld [vmem:[%s10291_s5 + $0x80] sm:$0xff]   ;;  %v8629_v59 = vld [vmem:[%s10295_s9 + $0x18] sm:$0xff]  }
 0x62f   : > { %8170 = vmatprep.subr.bf16.mxu0 %v8629_v59 }
 0x630   : > { %7337 = vst [vmem:[#allocation4 + $0x60] sm:$0xff] %v7336_v61   ;;  %8171 = vmatpush3.bf16.msra.mxu0 %v8629_v59  ;;  %v8630_v61 = vld [vmem:[%s10295_s9 + $0x10] sm:$0xff]  }
 0x631   : > { %8172 = vmatprep.subr.bf16.mxu0 %v8630_v61  ;;  %v8648_v59 = vld [vmem:[%s10291_s5 + $0xf0] sm:$0xff]  }
 0x634   : > { %8173 = vmatpush3.bf16.msra.mxu0 %v8630_v61  ;;  %v8649_v61 = vld [vmem:[%s10291_s5 + $0xe8] sm:$0xff]  }
 0x647   : > { %v8060_v1 = vpop.f32.mrf.mxu0 }
 0x648   : > { %v2915_v3 = vadd.f32 %v8060_v1, %v6756_v0 }
 0x649   : > { %v2906_v52 = vpop.f32.mrf.mxu0 }
 0x64a   : > { %v7245_v55 = vpack.c.bf16 %v2915_v3, %v2915_v3  ;;  %v2907_v5 = vadd.f32 %v6756_v0, %v2906_v52 }
 0x64b   : > { %v8061_v60 = vpop.f32.mrf.mxu0 }
 0x64c   : > { %3253 = vst.msk [vmem:[#allocation2 + $0x18] sm:$0xf] %vm1158_vm0, %v7245_v55  ;;  %v7243_v62 = vpack.c.bf16 %v2907_v5, %v2907_v5  ;;  %v2918_v63 = vadd.f32 %v8061_v60, %v6756_v0 }
 0x64d   : > { %v2909_v7 = vpop.f32.mrf.mxu0 }
 0x64e   : > { %3251 = vst.msk [vmem:[#allocation2 + $0x10] sm:$0xf] %vm1158_vm0, %v7243_v62  ;;  %v7246_v8 = vpack.c.bf16 %v2918_v63, %v2918_v63  ;;  %v2910_v9 = vadd.f32 %v6756_v0, %v2909_v7  ;;  %v8631_v0 = vld [vmem:[%s10318_s22 + $0xb8] sm:$0xff]   ;;  %v6816_v62 = vld [vmem:[%s10290_s4 + $0x1] ss:$0 sm:$0xff] }
 0x64f   : > { %8178 = vmatprep.subr.bf16.mxu0 %v8631_v0 }
 0x650   : > { %3254 = vst.msk [vmem:[#allocation2 + $0x1c] sm:$0xf] %vm1158_vm0, %v7246_v8  ;;  %v7244_v2 = vpack.c.bf16 %v2910_v9, %v2910_v9 }
 0x652   : > { %3252 = vst.msk [vmem:[#allocation2 + $0x14] sm:$0xf] %vm1158_vm0, %v7244_v2 }
 0x667   : > { %v8100_v10 = vpop.f32.mrf.mxu0 }
 0x668   : > { %v3155_v18 = vadd.f32 %v8100_v10, %v6774_v13 }
 0x669   : > { %v3146_v11 = vpop.f32.mrf.mxu0 }
 0x66a   : > { %v3147_v16 = vadd.f32 %v6774_v13, %v3146_v11 }
 0x66b   : > { %v8101_v12 = vpop.f32.mrf.mxu0 }
 0x66c   : > { %v3158_v14 = vadd.f32 %v8101_v12, %v6774_v13 }
 0x66d   : > { %v3149_v15 = vpop.f32.mrf.mxu0 }
 0x66e   : > { %v3150_v17 = vadd.f32 %v6774_v13, %v3149_v15  ;;  %v3162_v57 = vpack.c.bf16 %v3158_v14, %v3155_v18 }
 0x670   : > { %v3161_v54 = vpack.c.bf16 %v3150_v17, %v3147_v16 }
 0x672   : > { %8106 = vmatprep.mubr.msk.bf16.mxu1 %vm1086_vm1, %v3161_v54 }
 0x673   : > { %8107 = vmatmul.mubr.msk.bf16.vlgmr.msra.gmra.mxu1 %vm1086_vm1, %v3162_v57  ;;  %v6868_v57 = vld [vmem:[%s10294_s8 + $0x1] ss:$0 sm:$0xff] }
 0x674   : > { %8111 = vmatpush3.bf16.msra.mxu1 %v8605_v49  ;;  %8126 = vmatprep.mubr.bf16.mxu1 %v9522_v26  ;;  %v8624_v49 = vld [vmem:[%s10291_s5 + $0xa0] sm:$0xff]  }
 0x675   : > { %8112 = vmatprep.subr.bf16.mxu1 %v8606_v19 }
 0x678   : > { %8113 = vmatpush3.bf16.msra.mxu1 %v8606_v19 }
 0x679   : > { %8114 = vmatprep.subr.bf16.mxu1 %v8607_v20 }
 0x67c   : > { %8115 = vmatpush3.bf16.msra.mxu1 %v8607_v20 }
 0x67d   : > { %8116 = vmatprep.subr.bf16.mxu1 %v8608_v21 }
 0x680   : > { %8117 = vmatpush3.bf16.msra.mxu1 %v8608_v21 }
 0x681   : > { %8118 = vmatprep.subr.bf16.mxu1 %v8609_v22 }
 0x684   : > { %8119 = vmatpush3.bf16.msra.mxu1 %v8609_v22 }
 0x685   : > { %8120 = vmatprep.subr.bf16.mxu1 %v8610_v23 }
 0x687   : > { %v8148_v27 = vpop.f32.mrf.mxu0 }
 0x688   : > { %8121 = vmatpush3.bf16.msra.mxu1 %v8610_v23  ;;  %v3531_v28 = vadd.f32 %v8148_v27, %v6842_v24  ;;  %v8632_v27 = vld [vmem:[%s10318_s22 + $0xb0] sm:$0xff]  }
 0x689   : > { %v3522_v29 = vpop.f32.mrf.mxu0  ;;  %8122 = vmatprep.subr.bf16.mxu1 %v8611_v25 }
 0x68a   : > { %v7261_v30 = vpack.c.bf16 %v3531_v28, %v3531_v28  ;;  %v3523_v31 = vadd.f32 %v6842_v24, %v3522_v29  ;;  %v8633_v28 = vld [vmem:[%s10318_s22 + $0xa8] sm:$0xff]   ;;  %v8634_v29 = vld [vmem:[%s10318_s22 + $0xa0] sm:$0xff]  }
 0x68b   : > { %v8149_v32 = vpop.f32.mrf.mxu0 }
 0x68c   : > { %3773 = vst.msk [vmem:[#allocation3 + $0x38] sm:$0xf] %vm1158_vm0, %v7261_v30  ;;  %v7259_v33 = vpack.c.bf16 %v3523_v31, %v3523_v31  ;;  %8123 = vmatpush3.bf16.msra.mxu1 %v8611_v25  ;;  %v3534_v34 = vadd.f32 %v8149_v32, %v6842_v24  ;;  %v8636_v30 = vld [vmem:[%s10318_s22 + $0x90] sm:$0xff]   ;;  %v6940_v31 = vld [vmem:[%s10292_s6 + $0x2] ss:$0 sm:$0xff]  ;;  %v8637_v32 = vld [vmem:[%s10318_s22 + $0x88] sm:$0xff]  }
 0x68d   : > { %v3525_v35 = vpop.f32.mrf.mxu0  ;;  %8124 = vmatprep.subr.bf16.mxu1 %v8612_v6 }
 0x68e   : > { %3771 = vst.msk [vmem:[#allocation3 + $0x30] sm:$0xf] %vm1158_vm0, %v7259_v33  ;;  %v7262_v37 = vpack.c.bf16 %v3534_v34, %v3534_v34  ;;  %v3526_v38 = vadd.f32 %v6842_v24, %v3525_v35 }
 0x690   : > { %3774 = vst.msk [vmem:[#allocation3 + $0x3c] sm:$0xf] %vm1158_vm0, %v7262_v37  ;;  %v7260_v39 = vpack.c.bf16 %v3526_v38, %v3526_v38  ;;  %8125 = vmatpush3.bf16.msra.mxu1 %v8612_v6  ;;  %v8635_v6 = vld [vmem:[%s10318_s22 + $0x98] sm:$0xff]  }
 0x691   : > { %8150 = vmatprep.subr.bf16.mxu1 %v8613_v36 }
 0x692   : > { %3772 = vst.msk [vmem:[#allocation3 + $0x34] sm:$0xf] %vm1158_vm0, %v7260_v39 }
 0x693   : > { %8127 = vmatmul.mubr.bf16.vlgmr.msra.gmra.mxu1 %v9549_v4 }
 0x694   : > { %8151 = vmatpush3.bf16.msra.mxu1 %v8613_v36  ;;  %8166 = vmatprep.mubr.bf16.mxu1 %v9522_v26  ;;  %v8638_v36 = vld [vmem:[%s10318_s22 + $0x80] sm:$0xff]  }
 0x695   : > { %8152 = vmatprep.subr.bf16.mxu1 %v8614_v40 }
 0x698   : > { %8153 = vmatpush3.bf16.msra.mxu1 %v8614_v40 }
 0x699   : > { %8154 = vmatprep.subr.bf16.mxu1 %v8615_v56 }
 0x69c   : > { %8155 = vmatpush3.bf16.msra.mxu1 %v8615_v56 }
 0x69d   : > { %8156 = vmatprep.subr.bf16.mxu1 %v8616_v41 }
 0x6a0   : > { %8157 = vmatpush3.bf16.msra.mxu1 %v8616_v41 }
 0x6a1   : > { %8158 = vmatprep.subr.bf16.mxu1 %v8617_v42 }
 0x6a4   : > { %8159 = vmatpush3.bf16.msra.mxu1 %v8617_v42  ;;  %v8639_v42 = vld [vmem:[%s10293_s7 + $0xb8] sm:$0xff]  }
 0x6a5   : > { %8160 = vmatprep.subr.bf16.mxu1 %v8618_v43 }
 0x6a8   : > { %8161 = vmatpush3.bf16.msra.mxu1 %v8618_v43 }
 0x6a9   : > { %8162 = vmatprep.subr.bf16.mxu1 %v8619_v44 }
 0x6ac   : > { %8163 = vmatpush3.bf16.msra.mxu1 %v8619_v44 }
 0x6ad   : > { %8164 = vmatprep.subr.bf16.mxu1 %v8620_v45 }
 0x6b0   : > { %8165 = vmatpush3.bf16.msra.mxu1 %v8620_v45 }
 0x6b1   : > { %8198 = vmatprep.subr.bf16.mxu1 %v8621_v46 }
 0x6b3   : > { %8167 = vmatmul.mubr.bf16.vlgmr.msra.gmra.mxu1 %v9549_v4 }
 0x6b4   : > { %8199 = vmatpush3.bf16.msra.mxu1 %v8621_v46  ;;  %8214 = vmatprep.mubr.bf16.mxu1 %v9522_v26  ;;  %v8640_v46 = vld [vmem:[%s10293_s7 + $0xb0] sm:$0xff]  }
 0x6b5   : > { %8200 = vmatprep.subr.bf16.mxu1 %v8622_v47 }
 0x6b8   : > { %8201 = vmatpush3.bf16.msra.mxu1 %v8622_v47  ;;  %v8641_v47 = vld [vmem:[%s10293_s7 + $0xa8] sm:$0xff]  }
 0x6b9   : > { %8202 = vmatprep.subr.bf16.mxu1 %v8623_v48 }
 0x6bc   : > { %8203 = vmatpush3.bf16.msra.mxu1 %v8623_v48  ;;  %v8642_v48 = vld [vmem:[%s10293_s7 + $0xa0] sm:$0xff]  }
 0x6bd   : > { %8204 = vmatprep.subr.bf16.mxu1 %v8624_v49 }
 0x6c0   : > { %8205 = vmatpush3.bf16.msra.mxu1 %v8624_v49  ;;  %v8643_v49 = vld [vmem:[%s10293_s7 + $0x98] sm:$0xff]  }
 0x6c1   : > { %8206 = vmatprep.subr.bf16.mxu1 %v8625_v50 }
 0x6c4   : > { %8207 = vmatpush3.bf16.msra.mxu1 %v8625_v50  ;;  %v8644_v50 = vld [vmem:[%s10293_s7 + $0x90] sm:$0xff]  }
 0x6c5   : > { %8208 = vmatprep.subr.bf16.mxu1 %v8626_v51 }
 0x6c8   : > { %8209 = vmatpush3.bf16.msra.mxu1 %v8626_v51  ;;  %v8645_v51 = vld [vmem:[%s10293_s7 + $0x88] sm:$0xff]  }
 0x6c9   : > { %8210 = vmatprep.subr.bf16.mxu1 %v8627_v53 }
 0x6cc   : > { %8211 = vmatpush3.bf16.msra.mxu1 %v8627_v53  ;;  %v8646_v53 = vld [vmem:[%s10293_s7 + $0x80] sm:$0xff]  }
 0x6cd   : > { %8212 = vmatprep.subr.bf16.mxu1 %v8628_v58 }
 0x6d0   : > { %8213 = vmatpush3.bf16.msra.mxu1 %v8628_v58  ;;  %v8647_v58 = vld [vmem:[%s10291_s5 + $0xf8] sm:$0xff]  }
 0x6d3   : > { %8215 = vmatmul.mubr.bf16.vlgmr.msra.gmra.mxu1 %v9549_v4 }
 0x733   : > { %v8108_v1 = vpop.f32.mrf.mxu1 }
 0x735   : > { %v3219_v3 = vpop.f32.mrf.mxu1 }
 0x737   : > { %v8109_v52 = vpop.f32.mrf.mxu1 }
 0x738   : > { %v7359_v55 = vpack.c.bf16 %v8109_v52, %v8108_v1  ;;  %v8651_v1 = vld [vmem:[%s10291_s5 + $0xd8] sm:$0xff]   ;;  %v8653_v52 = vld [vmem:[%s10291_s5 + $0xc8] sm:$0xff]  }
 0x739   : > { %v3222_v5 = vpop.f32.mrf.mxu1 }
 0x73a   : > { %7416 = vst [vmem:[#allocation4 + $0x18] sm:$0xff] %v7359_v55   ;;  %v7354_v60 = vpack.c.bf16 %v3222_v5, %v3219_v3  ;;  %v8652_v3 = vld [vmem:[%s10291_s5 + $0xd0] sm:$0xff]   ;;  %v8654_v55 = vld [vmem:[%s10291_s5 + $0xc0] sm:$0xff]   ;;  %v8655_v5 = vld [vmem:[%s10295_s9 + $0x28] sm:$0xff]  }
 0x73b   : > { %8238 = vmatprep.subr.bf16.mxu1 %v8655_v5 }
 0x73c   : > { %7355 = vst [vmem:[#allocation4 + $0x10] sm:$0xff] %v7354_v60   ;;  %8239 = vmatpush3.bf16.msra.mxu1 %v8655_v5  ;;  %v8656_v60 = vld [vmem:[%s10295_s9 + $0x20] sm:$0xff]  }
 0x73d   : > { %8240 = vmatprep.subr.bf16.mxu1 %v8656_v60 }
 0x740   : > { %8241 = vmatpush3.bf16.msra.mxu1 %v8656_v60 }
 0x753   : > { %v8128_v63 = vpop.f32.mrf.mxu1 }
 0x754   : > { %v3411_v7 = vadd.f32 %v8128_v63, %v6816_v62 }
 0x755   : > { %v3402_v8 = vpop.f32.mrf.mxu1 }
 0x756   : > { %v7257_v9 = vpack.c.bf16 %v3411_v7, %v3411_v7  ;;  %v3403_v2 = vadd.f32 %v6816_v62, %v3402_v8 }
 0x757   : > { %v8129_v10 = vpop.f32.mrf.mxu1 }
 0x758   : > { %3751 = vst.msk [vmem:[#allocation2 + $0x38] sm:$0xf] %vm1158_vm0, %v7257_v9  ;;  %v7255_v11 = vpack.c.bf16 %v3403_v2, %v3403_v2  ;;  %v3414_v12 = vadd.f32 %v8129_v10, %v6816_v62 }
 0x759   : > { %v3405_v13 = vpop.f32.mrf.mxu1 }
 0x75a   : > { %3749 = vst.msk [vmem:[#allocation2 + $0x30] sm:$0xf] %vm1158_vm0, %v7255_v11  ;;  %v7258_v14 = vpack.c.bf16 %v3414_v12, %v3414_v12  ;;  %v3406_v15 = vadd.f32 %v6816_v62, %v3405_v13  ;;  %v8657_v62 = vld [vmem:[%s10318_s22 + $0xf8] sm:$0xff]   ;;  %v6914_v11 = vld [vmem:[%s10290_s4 + $0x2] ss:$0 sm:$0xff] }
 0x75b   : > { %8246 = vmatprep.subr.bf16.mxu1 %v8657_v62 }
 0x75c   : > { %3752 = vst.msk [vmem:[#allocation2 + $0x3c] sm:$0xf] %vm1158_vm0, %v7258_v14  ;;  %v7256_v16 = vpack.c.bf16 %v3406_v15, %v3406_v15 }
 0x75e   : > { %3750 = vst.msk [vmem:[#allocation2 + $0x34] sm:$0xf] %vm1158_vm0, %v7256_v16 }
 0x773   : > { %v8168_v17 = vpop.f32.mrf.mxu1 }
 0x774   : > { %v3651_v23 = vadd.f32 %v8168_v17, %v6868_v57 }
 0x775   : > { %v3642_v18 = vpop.f32.mrf.mxu1 }
 0x776   : > { %v3643_v21 = vadd.f32 %v6868_v57, %v3642_v18 }
 0x777   : > { %v8169_v54 = vpop.f32.mrf.mxu1 }
 0x778   : > { %v3654_v19 = vadd.f32 %v8169_v54, %v6868_v57 }
 0x779   : > { %v3645_v20 = vpop.f32.mrf.mxu1 }
 0x77a   : > { %v3646_v22 = vadd.f32 %v6868_v57, %v3645_v20  ;;  %v3658_v25 = vpack.c.bf16 %v3654_v19, %v3651_v23 }
 0x77c   : > { %v3657_v24 = vpack.c.bf16 %v3646_v22, %v3643_v21 }
 0x77e   : > { %8174 = vmatprep.mubr.msk.bf16.mxu0 %vm1086_vm1, %v3657_v24 }
 0x77f   : > { %8175 = vmatmul.mubr.msk.bf16.vlgmr.msra.gmra.mxu0 %vm1086_vm1, %v3658_v25  ;;  %v6966_v25 = vld [vmem:[%s10294_s8 + $0x2] ss:$0 sm:$0xff] }
 0x780   : > { %8179 = vmatpush3.bf16.msra.mxu0 %v8631_v0  ;;  %8194 = vmatprep.mubr.bf16.mxu0 %v9522_v26  ;;  %v8650_v0 = vld [vmem:[%s10291_s5 + $0xe0] sm:$0xff]  }
 0x781   : > { %8180 = vmatprep.subr.bf16.mxu0 %v8632_v27 }
 0x784   : > { %8181 = vmatpush3.bf16.msra.mxu0 %v8632_v27 }
 0x785   : > { %8182 = vmatprep.subr.bf16.mxu0 %v8633_v28 }
 0x788   : > { %8183 = vmatpush3.bf16.msra.mxu0 %v8633_v28 }
 0x789   : > { %8184 = vmatprep.subr.bf16.mxu0 %v8634_v29 }
 0x78c   : > { %8185 = vmatpush3.bf16.msra.mxu0 %v8634_v29 }
 0x78d   : > { %8186 = vmatprep.subr.bf16.mxu0 %v8635_v6 }
 0x790   : > { %8187 = vmatpush3.bf16.msra.mxu0 %v8635_v6 }
 0x791   : > { %8188 = vmatprep.subr.bf16.mxu0 %v8636_v30 }
 0x793   : > { %v8216_v33 = vpop.f32.mrf.mxu1 }
 0x794   : > { %8189 = vmatpush3.bf16.msra.mxu0 %v8636_v30  ;;  %v4031_v34 = vadd.f32 %v8216_v33, %v6940_v31  ;;  %v8658_v33 = vld [vmem:[%s10318_s22 + $0xf0] sm:$0xff]  }
 0x795   : > { %v4022_v35 = vpop.f32.mrf.mxu1  ;;  %8190 = vmatprep.subr.bf16.mxu0 %v8637_v32 }
 0x796   : > { %v7273_v37 = vpack.c.bf16 %v4031_v34, %v4031_v34  ;;  %v4023_v38 = vadd.f32 %v6940_v31, %v4022_v35  ;;  %v8659_v34 = vld [vmem:[%s10318_s22 + $0xe8] sm:$0xff]   ;;  %v8660_v35 = vld [vmem:[%s10318_s22 + $0xe0] sm:$0xff]  }
 0x797   : > { %v8217_v39 = vpop.f32.mrf.mxu1 }
 0x798   : > { %4273 = vst.msk [vmem:[#allocation3 + $0x58] sm:$0xf] %vm1158_vm0, %v7273_v37  ;;  %v7271_v40 = vpack.c.bf16 %v4023_v38, %v4023_v38  ;;  %8191 = vmatpush3.bf16.msra.mxu0 %v8637_v32  ;;  %v4034_v56 = vadd.f32 %v8217_v39, %v6940_v31  ;;  %v8662_v37 = vld [vmem:[%s10318_s22 + $0xd0] sm:$0xff]   ;;  %v7038_v38 = vld [vmem:[%s10292_s6 + $0x3] ss:$0 sm:$0xff]  ;;  %v8663_v39 = vld [vmem:[%s10318_s22 + $0xc8] sm:$0xff]  }
 0x799   : > { %v4025_v41 = vpop.f32.mrf.mxu1  ;;  %8192 = vmatprep.subr.bf16.mxu0 %v8638_v36 }
 0x79a   : > { %4271 = vst.msk [vmem:[#allocation3 + $0x50] sm:$0xf] %vm1158_vm0, %v7271_v40  ;;  %v7274_v43 = vpack.c.bf16 %v4034_v56, %v4034_v56  ;;  %v4026_v44 = vadd.f32 %v6940_v31, %v4025_v41 }
 0x79c   : > { %4274 = vst.msk [vmem:[#allocation3 + $0x5c] sm:$0xf] %vm1158_vm0, %v7274_v43  ;;  %v7272_v45 = vpack.c.bf16 %v4026_v44, %v4026_v44  ;;  %8193 = vmatpush3.bf16.msra.mxu0 %v8638_v36  ;;  %v8661_v36 = vld [vmem:[%s10318_s22 + $0xd8] sm:$0xff]  }
 0x79d   : > { %8218 = vmatprep.subr.bf16.mxu0 %v8639_v42 }
 0x79e   : > { %4272 = vst.msk [vmem:[#allocation3 + $0x54] sm:$0xf] %vm1158_vm0, %v7272_v45 }
 0x79f   : > { %8195 = vmatmul.mubr.bf16.vlgmr.msra.gmra.mxu0 %v9549_v4 }
 0x7a0   : > { %8219 = vmatpush3.bf16.msra.mxu0 %v8639_v42  ;;  %8234 = vmatprep.mubr.bf16.mxu0 %v9522_v26  ;;  %v8664_v42 = vld [vmem:[%s10318_s22 + $0xc0] sm:$0xff]  }
 0x7a1   : > { %8220 = vmatprep.subr.bf16.mxu0 %v8640_v46 }
 0x7a4   : > { %8221 = vmatpush3.bf16.msra.mxu0 %v8640_v46 }
 0x7a5   : > { %8222 = vmatprep.subr.bf16.mxu0 %v8641_v47 }
 0x7a8   : > { %8223 = vmatpush3.bf16.msra.mxu0 %v8641_v47 }
 0x7a9   : > { %8224 = vmatprep.subr.bf16.mxu0 %v8642_v48 }
 0x7ac   : > { %8225 = vmatpush3.bf16.msra.mxu0 %v8642_v48 }
 0x7ad   : > { %8226 = vmatprep.subr.bf16.mxu0 %v8643_v49 }
 0x7b0   : > { %8227 = vmatpush3.bf16.msra.mxu0 %v8643_v49  ;;  %v8665_v49 = vld [vmem:[%s10293_s7 + $0xf8] sm:$0xff]  }
 0x7b1   : > { %8228 = vmatprep.subr.bf16.mxu0 %v8644_v50 }
 0x7b4   : > { %8229 = vmatpush3.bf16.msra.mxu0 %v8644_v50 }
 0x7b5   : > { %8230 = vmatprep.subr.bf16.mxu0 %v8645_v51 }
 0x7b8   : > { %8231 = vmatpush3.bf16.msra.mxu0 %v8645_v51 }
 0x7b9   : > { %8232 = vmatprep.subr.bf16.mxu0 %v8646_v53 }
 0x7bc   : > { %8233 = vmatpush3.bf16.msra.mxu0 %v8646_v53 }
 0x7bd   : > { %8266 = vmatprep.subr.bf16.mxu0 %v8647_v58 }
 0x7bf   : > { %8235 = vmatmul.mubr.bf16.vlgmr.msra.gmra.mxu0 %v9549_v4 }
 0x7c0   : > { %8267 = vmatpush3.bf16.msra.mxu0 %v8647_v58  ;;  %8282 = vmatprep.mubr.bf16.mxu0 %v9522_v26  ;;  %v8666_v58 = vld [vmem:[%s10293_s7 + $0xf0] sm:$0xff]  }
 0x7c1   : > { %8268 = vmatprep.subr.bf16.mxu0 %v8648_v59 }
 0x7c4   : > { %8269 = vmatpush3.bf16.msra.mxu0 %v8648_v59  ;;  %v8667_v59 = vld [vmem:[%s10293_s7 + $0xe8] sm:$0xff]  }
 0x7c5   : > { %8270 = vmatprep.subr.bf16.mxu0 %v8649_v61 }
 0x7c8   : > { %8271 = vmatpush3.bf16.msra.mxu0 %v8649_v61  ;;  %v8668_v61 = vld [vmem:[%s10293_s7 + $0xe0] sm:$0xff]  }
 0x7c9   : > { %8272 = vmatprep.subr.bf16.mxu0 %v8650_v0 }
 0x7cc   : > { %8273 = vmatpush3.bf16.msra.mxu0 %v8650_v0  ;;  %v8669_v0 = vld [vmem:[%s10293_s7 + $0xd8] sm:$0xff]  }
 0x7cd   : > { %8274 = vmatprep.subr.bf16.mxu0 %v8651_v1 }
 0x7d0   : > { %8275 = vmatpush3.bf16.msra.mxu0 %v8651_v1  ;;  %v8671_v1 = vld [vmem:[%s10293_s7 + $0xc8] sm:$0xff]  }
 0x7d1   : > { %8276 = vmatprep.subr.bf16.mxu0 %v8652_v3 }
 0x7d4   : > { %8277 = vmatpush3.bf16.msra.mxu0 %v8652_v3  ;;  %v8672_v3 = vld [vmem:[%s10293_s7 + $0xc0] sm:$0xff]  }
 0x7d5   : > { %8278 = vmatprep.subr.bf16.mxu0 %v8653_v52 }
 0x7d8   : > { %8279 = vmatpush3.bf16.msra.mxu0 %v8653_v52  ;;  %v8673_v52 = vld [vmem:[%s10295_s9 + $0x38] sm:$0xff]  }
 0x7d9   : > { %8280 = vmatprep.subr.bf16.mxu0 %v8654_v55 }
 0x7dc   : > { %8281 = vmatpush3.bf16.msra.mxu0 %v8654_v55  ;;  %v8674_v55 = vld [vmem:[%s10295_s9 + $0x30] sm:$0xff]  }
 0x7dd   : > { %8306 = vmatprep.subr.bf16.mxu0 %v8673_v52 }
 0x7df   : > { %8283 = vmatmul.mubr.bf16.vlgmr.msra.gmra.mxu0 %v9549_v4 }
 0x7e0   : > { %8307 = vmatpush3.bf16.msra.mxu0 %v8673_v52 }
 0x7e1   : > { %8308 = vmatprep.subr.bf16.mxu0 %v8674_v55 }
 0x7e4   : > { %8309 = vmatpush3.bf16.msra.mxu0 %v8674_v55 }
 0x83f   : > { %v8176_v63 = vpop.f32.mrf.mxu0 }
 0x841   : > { %v3715_v7 = vpop.f32.mrf.mxu0 }
 0x843   : > { %v8177_v8 = vpop.f32.mrf.mxu0 }
 0x844   : > { %v7369_v9 = vpack.c.bf16 %v8177_v8, %v8176_v63 }
 0x845   : > { %v3718_v2 = vpop.f32.mrf.mxu0 }
 0x846   : > { %7417 = vst [vmem:[#allocation4 + $0x38] sm:$0xff] %v7369_v9   ;;  %v7364_v10 = vpack.c.bf16 %v3718_v2, %v3715_v7 }
 0x848   : > { %7365 = vst [vmem:[#allocation4 + $0x30] sm:$0xff] %v7364_v10  }
 0x85f   : > { %v8196_v12 = vpop.f32.mrf.mxu0 }
 0x860   : > { %v3911_v13 = vadd.f32 %v8196_v12, %v6914_v11 }
 0x861   : > { %v3902_v14 = vpop.f32.mrf.mxu0 }
 0x862   : > { %v7269_v15 = vpack.c.bf16 %v3911_v13, %v3911_v13  ;;  %v3903_v16 = vadd.f32 %v6914_v11, %v3902_v14 }
 0x863   : > { %v8197_v17 = vpop.f32.mrf.mxu0 }
 0x864   : > { %4251 = vst.msk [vmem:[#allocation2 + $0x58] sm:$0xf] %vm1158_vm0, %v7269_v15  ;;  %v7267_v18 = vpack.c.bf16 %v3903_v16, %v3903_v16  ;;  %v3914_v54 = vadd.f32 %v8197_v17, %v6914_v11 }
 0x865   : > { %v3905_v57 = vpop.f32.mrf.mxu0 }
 0x866   : > { %4249 = vst.msk [vmem:[#allocation2 + $0x50] sm:$0xf] %vm1158_vm0, %v7267_v18  ;;  %v7270_v19 = vpack.c.bf16 %v3914_v54, %v3914_v54  ;;  %v3906_v20 = vadd.f32 %v6914_v11, %v3905_v57 }
 0x868   : > { %4252 = vst.msk [vmem:[#allocation2 + $0x5c] sm:$0xf] %vm1158_vm0, %v7270_v19  ;;  %v7268_v21 = vpack.c.bf16 %v3906_v20, %v3906_v20 }
 0x86a   : > { %4250 = vst.msk [vmem:[#allocation2 + $0x54] sm:$0xf] %vm1158_vm0, %v7268_v21  ;;  %v7064_v21 = vld [vmem:[%s10294_s8 + $0x3] ss:$0 sm:$0xff] }
 0x87f   : > { %v8236_v22 = vpop.f32.mrf.mxu0 }
 0x880   : > { %v4151_v30 = vadd.f32 %v8236_v22, %v6966_v25 }
 0x881   : > { %v4142_v23 = vpop.f32.mrf.mxu0 }
 0x882   : > { %v4143_v29 = vadd.f32 %v6966_v25, %v4142_v23 }
 0x883   : > { %v8237_v24 = vpop.f32.mrf.mxu0 }
 0x884   : > { %v4154_v27 = vadd.f32 %v8237_v24, %v6966_v25 }
 0x885   : > { %v4145_v28 = vpop.f32.mrf.mxu0 }
 0x886   : > { %v4146_v6 = vadd.f32 %v6966_v25, %v4145_v28  ;;  %v4158_v32 = vpack.c.bf16 %v4154_v27, %v4151_v30 }
 0x888   : > { %v4157_v31 = vpack.c.bf16 %v4146_v6, %v4143_v29 }
 0x88a   : > { %8242 = vmatprep.mubr.msk.bf16.mxu1 %vm1086_vm1, %v4157_v31 }
 0x88b   : > { %8243 = vmatmul.mubr.msk.bf16.vlgmr.msra.gmra.mxu1 %vm1086_vm1, %v4158_v32 }
 0x88c   : > { %8247 = vmatpush3.bf16.msra.mxu1 %v8657_v62  ;;  %8262 = vmatprep.mubr.bf16.mxu1 %v9522_v26 }
 0x88d   : > { %8248 = vmatprep.subr.bf16.mxu1 %v8658_v33 }
 0x890   : > { %8249 = vmatpush3.bf16.msra.mxu1 %v8658_v33 }
 0x891   : > { %8250 = vmatprep.subr.bf16.mxu1 %v8659_v34 }
 0x894   : > { %8251 = vmatpush3.bf16.msra.mxu1 %v8659_v34 }
 0x895   : > { %8252 = vmatprep.subr.bf16.mxu1 %v8660_v35 }
 0x898   : > { %8253 = vmatpush3.bf16.msra.mxu1 %v8660_v35 }
 0x899   : > { %8254 = vmatprep.subr.bf16.mxu1 %v8661_v36 }
 0x89c   : > { %8255 = vmatpush3.bf16.msra.mxu1 %v8661_v36 }
 0x89d   : > { %8256 = vmatprep.subr.bf16.mxu1 %v8662_v37 }
 0x89f   : > { %v8284_v40 = vpop.f32.mrf.mxu0 }
 0x8a0   : > { %8257 = vmatpush3.bf16.msra.mxu1 %v8662_v37  ;;  %v4531_v56 = vadd.f32 %v8284_v40, %v7038_v38 }
 0x8a1   : > { %v4522_v41 = vpop.f32.mrf.mxu0  ;;  %8258 = vmatprep.subr.bf16.mxu1 %v8663_v39 }
 0x8a2   : > { %v7285_v43 = vpack.c.bf16 %v4531_v56, %v4531_v56  ;;  %v4523_v44 = vadd.f32 %v7038_v38, %v4522_v41 }
 0x8a3   : > { %v8285_v45 = vpop.f32.mrf.mxu0 }
 0x8a4   : > { %4773 = vst.msk [vmem:[#allocation3 + $0x78] sm:$0xf] %vm1158_vm0, %v7285_v43  ;;  %v7283_v46 = vpack.c.bf16 %v4523_v44, %v4523_v44  ;;  %8259 = vmatpush3.bf16.msra.mxu1 %v8663_v39  ;;  %v4534_v47 = vadd.f32 %v8285_v45, %v7038_v38 }
 0x8a5   : > { %v4525_v48 = vpop.f32.mrf.mxu0  ;;  %8260 = vmatprep.subr.bf16.mxu1 %v8664_v42 }
 0x8a6   : > { %4771 = vst.msk [vmem:[#allocation3 + $0x70] sm:$0xf] %vm1158_vm0, %v7283_v46  ;;  %v7286_v50 = vpack.c.bf16 %v4534_v47, %v4534_v47  ;;  %v4526_v51 = vadd.f32 %v7038_v38, %v4525_v48 }
 0x8a8   : > { %4774 = vst.msk [vmem:[#allocation3 + $0x7c] sm:$0xf] %vm1158_vm0, %v7286_v50  ;;  %v7284_v53 = vpack.c.bf16 %v4526_v51, %v4526_v51  ;;  %8261 = vmatpush3.bf16.msra.mxu1 %v8664_v42 }
 0x8a9   : > { %8286 = vmatprep.subr.bf16.mxu1 %v8665_v49 }
 0x8aa   : > { %4772 = vst.msk [vmem:[#allocation3 + $0x74] sm:$0xf] %vm1158_vm0, %v7284_v53 }
 0x8ab   : > { %8263 = vmatmul.mubr.bf16.vlgmr.msra.gmra.mxu1 %v9549_v4 }
 0x8ac   : > { %8287 = vmatpush3.bf16.msra.mxu1 %v8665_v49  ;;  %8302 = vmatprep.mubr.bf16.mxu1 %v9522_v26  ;;  %v8670_v26 = vld [vmem:[%s10293_s7 + $0xd0] sm:$0xff]  }
 0x8ad   : > { %8288 = vmatprep.subr.bf16.mxu1 %v8666_v58 }
 0x8b0   : > { %8289 = vmatpush3.bf16.msra.mxu1 %v8666_v58 }
 0x8b1   : > { %8290 = vmatprep.subr.bf16.mxu1 %v8667_v59 }
 0x8b4   : > { %8291 = vmatpush3.bf16.msra.mxu1 %v8667_v59 }
 0x8b5   : > { %8292 = vmatprep.subr.bf16.mxu1 %v8668_v61 }
 0x8b8   : > { %8293 = vmatpush3.bf16.msra.mxu1 %v8668_v61 }
 0x8b9   : > { %8294 = vmatprep.subr.bf16.mxu1 %v8669_v0 }
 0x8bc   : > { %8295 = vmatpush3.bf16.msra.mxu1 %v8669_v0 }
 0x8bd   : > { %8296 = vmatprep.subr.bf16.mxu1 %v8670_v26 }
 0x8c0   : > { %8297 = vmatpush3.bf16.msra.mxu1 %v8670_v26 }
 0x8c1   : > { %8298 = vmatprep.subr.bf16.mxu1 %v8671_v1 }
 0x8c4   : > { %8299 = vmatpush3.bf16.msra.mxu1 %v8671_v1 }
 0x8c5   : > { %8300 = vmatprep.subr.bf16.mxu1 %v8672_v3 }
 0x8c8   : > { %8301 = vmatpush3.bf16.msra.mxu1 %v8672_v3 }
 0x8cb   : > { %8303 = vmatmul.mubr.bf16.vlgmr.msra.gmra.mxu1 %v9549_v4  ;;  %v7012_v4 = vld [vmem:[%s10290_s4 + $0x3] ss:$0 sm:$0xff] }
 0x94b   : > { %v8244_v5 = vpop.f32.mrf.mxu1 }
 0x94d   : > { %v4215_v60 = vpop.f32.mrf.mxu1 }
 0x94f   : > { %v8245_v62 = vpop.f32.mrf.mxu1 }
 0x950   : > { %v7379_v63 = vpack.c.bf16 %v8245_v62, %v8244_v5 }
 0x951   : > { %v4218_v7 = vpop.f32.mrf.mxu1 }
 0x952   : > { %7418 = vst [vmem:[#allocation4 + $0x58] sm:$0xff] %v7379_v63   ;;  %v7374_v8 = vpack.c.bf16 %v4218_v7, %v4215_v60 }
 0x954   : > { %7375 = vst [vmem:[#allocation4 + $0x50] sm:$0xff] %v7374_v8  }
 0x96b   : > { %v8264_v9 = vpop.f32.mrf.mxu1 }
 0x96c   : > { %v4411_v2 = vadd.f32 %v8264_v9, %v7012_v4 }
 0x96d   : > { %v4402_v10 = vpop.f32.mrf.mxu1 }
 0x96e   : > { %v7281_v11 = vpack.c.bf16 %v4411_v2, %v4411_v2  ;;  %v4403_v12 = vadd.f32 %v7012_v4, %v4402_v10 }
 0x96f   : > { %v8265_v13 = vpop.f32.mrf.mxu1 }
 0x970   : > { %4751 = vst.msk [vmem:[#allocation2 + $0x78] sm:$0xf] %vm1158_vm0, %v7281_v11  ;;  %v7279_v14 = vpack.c.bf16 %v4403_v12, %v4403_v12  ;;  %v4414_v15 = vadd.f32 %v8265_v13, %v7012_v4 }
 0x971   : > { %v4405_v16 = vpop.f32.mrf.mxu1 }
 0x972   : > { %4749 = vst.msk [vmem:[#allocation2 + $0x70] sm:$0xf] %vm1158_vm0, %v7279_v14  ;;  %v7282_v17 = vpack.c.bf16 %v4414_v15, %v4414_v15  ;;  %v4406_v18 = vadd.f32 %v7012_v4, %v4405_v16 }
 0x974   : > { %4752 = vst.msk [vmem:[#allocation2 + $0x7c] sm:$0xf] %vm1158_vm0, %v7282_v17  ;;  %v7280_v54 = vpack.c.bf16 %v4406_v18, %v4406_v18 }
 0x976   : > { %4750 = vst.msk [vmem:[#allocation2 + $0x74] sm:$0xf] %vm1158_vm0, %v7280_v54 }
 0x98b   : > { %v8304_v57 = vpop.f32.mrf.mxu1 }
 0x98c   : > { %v4651_v27 = vadd.f32 %v8304_v57, %v7064_v21 }
 0x98d   : > { %v4642_v19 = vpop.f32.mrf.mxu1 }
 0x98e   : > { %v4643_v24 = vadd.f32 %v7064_v21, %v4642_v19 }
 0x98f   : > { %v8305_v20 = vpop.f32.mrf.mxu1 }
 0x990   : > { %v4654_v22 = vadd.f32 %v8305_v20, %v7064_v21 }
 0x991   : > { %v4645_v23 = vpop.f32.mrf.mxu1 }
 0x992   : > { %v4646_v25 = vadd.f32 %v7064_v21, %v4645_v23  ;;  %v4658_v29 = vpack.c.bf16 %v4654_v22, %v4651_v27 }
 0x994   : > { %v4657_v28 = vpack.c.bf16 %v4646_v25, %v4643_v24 }
 0x996   : > { %8310 = vmatprep.mubr.msk.bf16.mxu0 %vm1086_vm1, %v4657_v28 }
 0x997   : > { %8311 = vmatmul.mubr.msk.bf16.vlgmr.msra.gmra.mxu0 %vm1086_vm1, %v4658_v29 }
 0xa57   : > { %v8312_v6 = vpop.f32.mrf.mxu0 }
 0xa59   : > { %v4715_v30 = vpop.f32.mrf.mxu0 }
 0xa5b   : > { %v8313_v31 = vpop.f32.mrf.mxu0 }
 0xa5c   : > { %v7389_v32 = vpack.c.bf16 %v8313_v31, %v8312_v6 }
 0xa5d   : > { %v4718_v33 = vpop.f32.mrf.mxu0 }
 0xa5e   : > { %7419 = vst [vmem:[#allocation4 + $0x78] sm:$0xff] %v7389_v32   ;;  %v7384_v34 = vpack.c.bf16 %v4718_v33, %v4715_v30 }
 0xa60   : > { %7385 = vst [vmem:[#allocation4 + $0x70] sm:$0xff] %v7384_v34  }
 0xa61 PF: > { %v8691_v35 = vld [vmem:[#allocation3 + $0x18] sm:$0xff]   ;;  %vm4890_vm2 = vcmask 261120   ;;  %v8693_v38 = vld [vmem:[#allocation3 + $0x10] sm:$0xff]   ;;  %s7093_s25 = sshll.u32 %s8881_s0, 5  ;;  %v8695_v41 = vld [vmem:[#allocation3 + $0x8] sm:$0xff]   ;;  %vm5249_vm3 = vcmask 523264  }
 0xa62   : > { %v8692_v36 = vld [vmem:[#allocation3 + $0x38] sm:$0xff]   ;;  %8410 = vmatprep.subr.msk.bf16.mxu0 %vm4890_vm2, %v8691_v35  ;;  %v4907_v37 = vsel %vm4890_vm2, %v8691_v35, 0  ;;  %v8694_v40 = vld [vmem:[#allocation3 + $0x30] sm:$0xff]   ;;  %v4904_v56 = vsel %vm4890_vm2, %v8693_v38, 0  ;;  %s9964_s27 = sshra.s32 %s7093_s25, 3  ;;  %v8696_v43 = vld [vmem:[#allocation3 + $0x28] sm:$0xff]  }
 0xa63   : > { %8414 = vmatprep.subr.msk.bf16.mxu1 %vm4890_vm2, %v8692_v36  ;;  %8315 = vmatpush3.bf16.xpose.msra.mxu0 %v4907_v37  ;;  %v5004_v39 = vsel %vm4890_vm2, %v8692_v36, 0  ;;  %v5001_v42 = vsel %vm4890_vm2, %v8694_v40, 0  ;;  %s7094_s19 = sshll.u32 %s9964_s27, 2  ;;  %v4901_v46 = vsel %vm4890_vm2, %v8695_v41, 0  ;;  %v8697_v47 = vld [vmem:[#allocation3] sm:$0xff]   ;;  %v4998_v48 = vsel %vm4890_vm2, %v8696_v43, 0 }
 0xa64   : > { %8327 = vmatpush3.bf16.xpose.msra.mxu1 %v5004_v39  ;;  %8411 = vmatprep.subr.msk.bf16.mxu0 %vm4890_vm2, %v8693_v38  ;;  %s9970_s28 = scalar_lea.vmem [#allocation2], %s7094_s19  ;;  %v8698_v49 = vld [vmem:[#allocation3 + $0x20] sm:$0xff]   ;;  %v8702_v50 = vld [vmem:[#allocation3 + $0x58] sm:$0xff]   ;;  %v4898_v53 = vsel %vm4890_vm2, %v8697_v47, 0  ;;  %v8705_v1 = vld [vmem:[#allocation3 + $0x50] sm:$0xff]   ;;  %s4801_s0 = scalar_lea.vmem %s9036_s26, %s7094_s19 }
 0xa65   : > { %8415 = vmatprep.subr.msk.bf16.mxu1 %vm4890_vm2, %v8694_v40  ;;  %v8699_v44 = vld [vmem:[%s9970_s28] sm:$0xff]   ;;  %v8703_v51 = vld [vmem:[#allocation3 + $0x78] sm:$0xff]   ;;  %v4995_v58 = vsel %vm4890_vm2, %v8698_v49, 0  ;;  %v5101_v59 = vsel %vm4890_vm2, %v8702_v50, 0  ;;  %v8700_v0 = vld [vmem:[%s9970_s28 + $0x8] sm:$0xff]   ;;  %v5098_v62 = vsel %vm4890_vm2, %v8705_v1, 0 }
 0xa66   : > { %8322 = vmatprep.mubr.msk.bf16.mxu0 %vm4890_vm2, %v8699_v44  ;;  %v8701_v45 = vld [vmem:[%s9970_s28 + $0x20] sm:$0xff]   ;;  %v5198_v61 = vsel %vm4890_vm2, %v8703_v51, 0  ;;  %v8704_v26 = vld [vmem:[%s9970_s28 + $0x28] sm:$0xff]   ;;  %v8706_v3 = vld [vmem:[#allocation3 + $0x70] sm:$0xff]  }
 0xa67   : > { %8334 = vmatprep.mubr.msk.bf16.mxu1 %vm4890_vm2, %v8701_v45  ;;  %v8711_v52 = vld [vmem:[%s9970_s28 + $0x40] sm:$0xff]   ;;  %v8707_v5 = vld [vmem:[#allocation3 + $0x48] sm:$0xff]   ;;  %v5195_v63 = vsel %vm4890_vm2, %v8706_v3, 0  ;;  %v8715_v28 = vld [vmem:[#allocation4 + $0x18] sm:$0xff]  }
 0xa68   : > { %v8712_v55 = vld [vmem:[%s9970_s28 + $0x60] sm:$0xff]   ;;  %v8708_v60 = vld [vmem:[#allocation3 + $0x68] sm:$0xff]   ;;  %v5095_v7 = vsel %vm4890_vm2, %v8707_v5, 0  ;;  %v8716_v29 = vld [vmem:[#allocation4 + $0x38] sm:$0xff]  }
 0xa69   : > { %v5192_v8 = vsel %vm4890_vm2, %v8708_v60, 0  ;;  %v8709_v4 = vld [vmem:[#allocation3 + $0x40] sm:$0xff]   ;;  %v8713_v11 = vld [vmem:[%s9970_s28 + $0x48] sm:$0xff]   ;;  %v8717_v6 = vld [vmem:[#allocation4 + $0x10] sm:$0xff]  }
 0xa6a   : > { %v8710_v9 = vld [vmem:[#allocation3 + $0x60] sm:$0xff]   ;;  %v5092_v2 = vsel %vm4890_vm2, %v8709_v4, 0  ;;  %v8714_v12 = vld [vmem:[%s9970_s28 + $0x68] sm:$0xff]   ;;  %v8718_v30 = vld [vmem:[#allocation4 + $0x30] sm:$0xff]  }
 0xa6b   : > { %8317 = vmatpush3.bf16.xpose.msra.mxu0 %v4904_v56  ;;  %v5189_v10 = vsel %vm4890_vm2, %v8710_v9, 0  ;;  %v8719_v31 = vld [vmem:[#allocation4 + $0x8] sm:$0xff]   ;;  %v8721_v38 = vld [vmem:[#allocation4] sm:$0xff]  }
 0xa6c   : > { %8329 = vmatpush3.bf16.xpose.msra.mxu1 %v5001_v42  ;;  %8412 = vmatprep.subr.msk.bf16.mxu0 %vm4890_vm2, %v8695_v41  ;;  %v8720_v37 = vld [vmem:[#allocation4 + $0x28] sm:$0xff]   ;;  %v8722_v45 = vld [vmem:[#allocation4 + $0x20] sm:$0xff]  }
 0xa6d   : > { %8416 = vmatprep.subr.msk.bf16.mxu1 %vm4890_vm2, %v8696_v43 }
 0xa73   : > { %8319 = vmatpush3.bf16.xpose.msra.mxu0 %v4901_v46 }
 0xa74   : > { %8331 = vmatpush3.bf16.xpose.msra.mxu1 %v4998_v48  ;;  %8413 = vmatprep.subr.msk.bf16.mxu0 %vm4890_vm2, %v8697_v47 }
 0xa75   : > { %8417 = vmatprep.subr.msk.bf16.mxu1 %vm4890_vm2, %v8698_v49 }
 0xa7b   : > { %8321 = vmatpush3.bf16.xpose.msra.mxu0 %v4898_v53 }
 0xa7c   : > { %8333 = vmatpush3.bf16.xpose.msra.mxu1 %v4995_v58  ;;  %8418 = vmatprep.subr.msk.bf16.mxu0 %vm4890_vm2, %v8702_v50  ;;  %v8723_v50 = vld [vmem:[#allocation4 + $0x58] sm:$0xff]  }
 0xa7d   : > { %8422 = vmatprep.subr.msk.bf16.mxu1 %vm4890_vm2, %v8703_v51  ;;  %v10076_v51 = vld [vmem:[#allocation4 + $0x78] sm:$0xff]  }
 0xa82   : > { %8323 = vmatmul.mubr.msk.bf16.vlgmr.msra.gmra.mxu0 %vm4890_vm2, %v8700_v0 }
 0xa83   : > { %8335 = vmatmul.mubr.msk.bf16.vlgmr.msra.gmra.mxu1 %vm4890_vm2, %v8704_v26  ;;  %8339 = vmatpush3.bf16.xpose.msra.mxu0 %v5101_v59 }
 0xa84   : > { %8351 = vmatpush3.bf16.xpose.msra.mxu1 %v5198_v61  ;;  %8419 = vmatprep.subr.msk.bf16.mxu0 %vm4890_vm2, %v8705_v1 }
 0xa85   : > { %8423 = vmatprep.subr.msk.bf16.mxu1 %vm4890_vm2, %v8706_v3  ;;  %8346 = vmatprep.mubr.msk.bf16.mxu0 %vm4890_vm2, %v8711_v52 }
 0xa86   : > { %8358 = vmatprep.mubr.msk.bf16.mxu1 %vm4890_vm2, %v8712_v55 }
 0xa8b   : > { %8341 = vmatpush3.bf16.xpose.msra.mxu0 %v5098_v62 }
 0xa8c   : > { %8353 = vmatpush3.bf16.xpose.msra.mxu1 %v5195_v63  ;;  %8420 = vmatprep.subr.msk.bf16.mxu0 %vm4890_vm2, %v8707_v5 }
 0xa8d   : > { %8424 = vmatprep.subr.msk.bf16.mxu1 %vm4890_vm2, %v8708_v60 }
 0xa93   : > { %8343 = vmatpush3.bf16.xpose.msra.mxu0 %v5095_v7 }
 0xa94   : > { %8355 = vmatpush3.bf16.xpose.msra.mxu1 %v5192_v8  ;;  %8421 = vmatprep.subr.msk.bf16.mxu0 %vm4890_vm2, %v8709_v4 }
 0xa95   : > { %8425 = vmatprep.subr.msk.bf16.mxu1 %vm4890_vm2, %v8710_v9 }
 0xa9b   : > { %8345 = vmatpush3.bf16.xpose.msra.mxu0 %v5092_v2 }
 0xa9c   : > { %8357 = vmatpush3.bf16.xpose.msra.mxu1 %v5189_v10  ;;  %8362 = vmatprep.subr.bf16.mxu0 %v8715_v28 }
 0xa9d   : > { %8374 = vmatprep.subr.bf16.mxu1 %v8716_v29 }
 0xaa2   : > { %8347 = vmatmul.mubr.msk.bf16.vlgmr.msra.gmra.mxu0 %vm4890_vm2, %v8713_v11 }
 0xaa3   : > { %8359 = vmatmul.mubr.msk.bf16.vlgmr.msra.gmra.mxu1 %vm4890_vm2, %v8714_v12  ;;  %8363 = vmatpush3.bf16.msra.mxu0 %v8715_v28 }
 0xaa4   : > { %8364 = vmatprep.subr.bf16.mxu0 %v8717_v6  ;;  %8375 = vmatpush3.bf16.msra.mxu1 %v8716_v29 }
 0xaa5   : > { %8376 = vmatprep.subr.bf16.mxu1 %v8718_v30 }
 0xaa7   : > { %8365 = vmatpush3.bf16.msra.mxu0 %v8717_v6 }
 0xaa8   : > { %8366 = vmatprep.subr.bf16.mxu0 %v8719_v31  ;;  %8377 = vmatpush3.bf16.msra.mxu1 %v8718_v30 }
 0xaa9   : > { %8378 = vmatprep.subr.bf16.mxu1 %v8720_v37 }
 0xaab   : > { %8367 = vmatpush3.bf16.msra.mxu0 %v8719_v31 }
 0xaac   : > { %8368 = vmatprep.subr.bf16.mxu0 %v8721_v38  ;;  %8379 = vmatpush3.bf16.msra.mxu1 %v8720_v37  ;;  %v8726_v37 = vld [vmem:[#allocation4 + $0x48] sm:$0xff]  }
 0xaad   : > { %8380 = vmatprep.subr.bf16.mxu1 %v8722_v45 }
 0xaaf   : > { %8369 = vmatpush3.bf16.msra.mxu0 %v8721_v38 }
 0xab0   : > { %8381 = vmatpush3.bf16.msra.mxu1 %v8722_v45  ;;  %8386 = vmatprep.subr.bf16.mxu0 %v8723_v50 }
 0xab1   : > { %8398 = vmatprep.subr.bf16.mxu1 %v10076_v51 }
 0xb42   : > { %v10012_v13 = vpop.f32.mrf.mxu0 }
 0xb43   : > { %v10014_v14 = vpop.f32.mrf.mxu1  ;;  %v5256_v15 = vsel %vm5249_vm3, %v10012_v13, -inf }
 0xb44   : > { %5257 = vmax.xlane.f32.xlu1 %v5256_v15  ;;  %v10018_v16 = vpop.f32.mrf.mxu0  ;;  %v5268_v27 = vsel %vm5249_vm3, %v10014_v14, -inf }
 0xb45   : > { %v10020_v17 = vpop.f32.mrf.mxu1  ;;  %v5250_v18 = vsel %vm5249_vm3, %v10018_v16, -inf }
 0xb46   : > { %5251 = vmax.xlane.f32.xlu0 %v5250_v18  ;;  %v10024_v54 = vpop.f32.mrf.mxu0  ;;  %v5262_v19 = vsel %vm5249_vm3, %v10020_v17, -inf }
 0xb47   : > { %v5259_v57 = vsel %vm5249_vm3, %v10024_v54, -inf  ;;  %v10030_v20 = vpop.f32.mrf.mxu1 }
 0xb48   : > { %5260 = vmax.xlane.f32.xlu1 %v5259_v57  ;;  %v5271_v21 = vsel %vm5249_vm3, %v10030_v20, -inf  ;;  %v10034_v22 = vpop.f32.mrf.mxu0 }
 0xb49   : > { %v10036_v23 = vpop.f32.mrf.mxu1  ;;  %v5253_v24 = vsel %vm5249_vm3, %v10034_v22, -inf }
 0xb4a   : > { %5263 = vmax.xlane.f32.xlu0 %v5262_v19  ;;  %v5265_v25 = vsel %vm5249_vm3, %v10036_v23, -inf }
 0xb4c   : > { %5272 = vmax.xlane.f32.xlu1 %v5271_v21 }
 0xb4e   : > { %5254 = vmax.xlane.f32.xlu0 %v5253_v24 }
 0xb50   : > { %5266 = vmax.xlane.f32.xlu1 %v5265_v25  ;;  %v8724_v25 = vld [vmem:[#allocation4 + $0x50] sm:$0xff]  }
 0xb52   : > { %5269 = vmax.xlane.f32.xlu0 %v5268_v27 }
 0xb62   : > { %v10044_v32 = vpop.f32.mrf.mxu0 }
 0xb63   : > { %v10046_v33 = vpop.f32.mrf.mxu1  ;;  %v5280_v34 = vsel %vm5249_vm3, %v10044_v32, -inf }
 0xb64   : > { %5281 = vmax.xlane.f32.xlu0 %v5280_v34  ;;  %v10050_v35 = vpop.f32.mrf.mxu0  ;;  %v5292_v47 = vsel %vm5249_vm3, %v10046_v33, -inf  ;;  %v8727_v34 = vld [vmem:[#allocation4 + $0x70] sm:$0xff]  }
 0xb65   : > { %v10052_v36 = vpop.f32.mrf.mxu1  ;;  %v5274_v40 = vsel %vm5249_vm3, %v10050_v35, -inf }
 0xb66   : > { %v10054_v39 = vpop.f32.mrf.mxu0  ;;  %v5286_v43 = vsel %vm5249_vm3, %v10052_v36, -inf }
 0xb67   : > { %v5283_v56 = vsel %vm5249_vm3, %v10054_v39, -inf  ;;  %v10060_v41 = vpop.f32.mrf.mxu1 }
 0xb68   : > { %5275 = vmax.xlane.f32.xlu0 %v5274_v40  ;;  %5284 = vmax.xlane.f32.xlu1 %v5283_v56  ;;  %v10062_v42 = vpop.f32.mrf.mxu0  ;;  %v5295_v49 = vsel %vm5249_vm3, %v10060_v41, -inf }
 0xb69   : > { %v5277_v44 = vsel %vm5249_vm3, %v10062_v42, -inf  ;;  %v10068_v46 = vpop.f32.mrf.mxu1 }
 0xb6a   : > { %v5289_v48 = vsel %vm5249_vm3, %v10068_v46, -inf }
 0xb6c   : > { %5287 = vmax.xlane.f32.xlu0 %v5286_v43  ;;  %5278 = vmax.xlane.f32.xlu1 %v5277_v44 }
 0xb70   : > { %5293 = vmax.xlane.f32.xlu0 %v5292_v47  ;;  %5290 = vmax.xlane.f32.xlu1 %v5289_v48  ;;  %v8729_v47 = vld [vmem:[#allocation4 + $0x68] sm:$0xff]   ;;  %v8728_v48 = vld [vmem:[#allocation4 + $0x40] sm:$0xff]  }
 0xb74   : > { %5296 = vmax.xlane.f32.xlu1 %v5295_v49 }
 0xbcd   : > { %v5258_v53 = vpop.xlane.xlu1 %5257 }
 0xbce   : > { %v5300_v58 = vsub.f32 %v10012_v13, %v5258_v53 }
 0xbcf   : > { %v5252_v59 = vpop.xlane.xlu0 %5251 }
 0xbd0   : > { %v5318_v61 = vmul.f32 1.442695, %v5300_v58  ;;  %v5298_v1 = vsub.f32 %v10018_v16, %v5252_v59 }
 0xbd1   : > { %v5261_v0 = vpop.xlane.xlu1 %5260 }
 0xbd2   : > { %8771 = vpow2.f32 %v5318_v61  ;;  %v5301_v26 = vsub.f32 %v10024_v54, %v5261_v0  ;;  %v5314_v62 = vmul.f32 1.442695, %v5298_v1  ;;  %v8730_v61 = vld [vmem:[#allocation4 + $0x60] sm:$0xff]  }
 0xbd3   : > { %v5264_v3 = vpop.xlane.xlu0 %5263 }
 0xbd4   : > { %v5320_v52 = vmul.f32 1.442695, %v5301_v26  ;;  %v5302_v55 = vsub.f32 %v10020_v17, %v5264_v3 }
 0xbd5   : > { %v5273_v5 = vpop.xlane.xlu1 %5272 }
 0xbd6   : > { %8773 = vpow2.f32 %v5320_v52  ;;  %v5305_v60 = vsub.f32 %v10030_v20, %v5273_v5  ;;  %v5322_v4 = vmul.f32 1.442695, %v5302_v55 }
 0xbd7   : > { %v5255_v63 = vpop.xlane.xlu0 %5254 }
 0xbd8   : > { %v5328_v7 = vmul.f32 1.442695, %v5305_v60  ;;  %v5299_v8 = vsub.f32 %v10034_v22, %v5255_v63 }
 0xbd9   : > { %v5267_v9 = vpop.xlane.xlu1 %5266 }
 0xbda   : > { %8775 = vpow2.f32 %v5328_v7  ;;  %v5316_v2 = vmul.f32 1.442695, %v5299_v8  ;;  %v5303_v10 = vsub.f32 %v10036_v23, %v5267_v9 }
 0xbdb   : > { %8777 = vpow2.f32 %v5314_v62  ;;  %v5270_v11 = vpop.xlane.xlu0 %5269 }
 0xbdc   : > { %8779 = vpow2.f32 %v5316_v2  ;;  %v5324_v12 = vmul.f32 1.442695, %v5303_v10  ;;  %v5304_v13 = vsub.f32 %v10014_v14, %v5270_v11 }
 0xbdd   : > { %8781 = vpow2.f32 %v5322_v4 }
 0xbde   : > { %8783 = vpow2.f32 %v5324_v12  ;;  %v5326_v15 = vmul.f32 1.442695, %v5304_v13 }
 0xbdf   : > { %v8772_v16 = vpop.eup %8771 }
 0xbe0   : > { %8785 = vpow2.f32 %v5326_v15  ;;  %v5352_v17 = vsel %vm5249_vm3, %v8772_v16, 0.0 }
 0xbe1   : > { %5353 = vadd.xlane.f32.xlu0 %v5352_v17 }
 0xbe3   : > { %v8774_v18 = vpop.eup %8773 }
 0xbe4   : > { %v5355_v54 = vsel %vm5249_vm3, %v8774_v18, 0.0  ;;  %v5411_v24 = vpack.c.bf16 %v8774_v18, %v8772_v16 }
 0xbe5   : > { %5356 = vadd.xlane.f32.xlu1 %v5355_v54 }
 0xbe7   : > { %v8776_v57 = vpop.eup %8775 }
 0xbe8   : > { %v8778_v19 = vpop.eup %8777  ;;  %v5367_v20 = vsel %vm5249_vm3, %v8776_v57, 0.0 }
 0xbe9   : > { %v8780_v21 = vpop.eup %8779  ;;  %5368 = vadd.xlane.f32.xlu1 %v5367_v20  ;;  %v5346_v45 = vsel %vm5249_vm3, %v8778_v19, 0.0 }
 0xbea   : > { %v8782_v22 = vpop.eup %8781  ;;  %v5410_v14 = vpack.c.bf16 %v8780_v21, %v8778_v19  ;;  %v5349_v27 = vsel %vm5249_vm3, %v8780_v21, 0.0 }
 0xbeb   : > { %v8784_v23 = vpop.eup %8783 }
 0xbec   : > { %8370 = vmatprep.mubr.msk.bf16.mxu0 %vm5249_vm3, %v5410_v14  ;;  %v5412_v28 = vpack.c.bf16 %v8784_v23, %v8782_v22  ;;  %v5361_v38 = vsel %vm5249_vm3, %v8784_v23, 0.0 }
 0xbed   : > { %v8786_v29 = vpop.eup %8785  ;;  %8371 = vmatmul.mubr.msk.bf16.vlgmr.msra.gmra.mxu0 %vm5249_vm3, %v5411_v24  ;;  %v5282_v6 = vpop.xlane.xlu0 %5281  ;;  %5350 = vadd.xlane.f32.xlu1 %v5349_v27 }
 0xbee   : > { %8382 = vmatprep.mubr.msk.bf16.mxu1 %vm5249_vm3, %v5412_v28  ;;  %v5364_v30 = vsel %vm5249_vm3, %v8786_v29, 0.0  ;;  %v5413_v31 = vpack.c.bf16 %v8776_v57, %v8786_v29  ;;  %8387 = vmatpush3.bf16.msra.mxu0 %v8723_v50  ;;  %v5308_v49 = vsub.f32 %v10044_v32, %v5282_v6 }
 0xbef   : > { %5365 = vadd.xlane.f32.xlu0 %v5364_v30  ;;  %8388 = vmatprep.subr.bf16.mxu0 %v8724_v25 }
 0xbf0   : > { %8383 = vmatmul.mubr.msk.bf16.vlgmr.msra.gmra.mxu1 %vm5249_vm3, %v5413_v31  ;;  %v5334_v0 = vmul.f32 1.442695, %v5308_v49 }
 0xbf1   : > { %v5276_v40 = vpop.xlane.xlu0 %5275  ;;  %v5285_v56 = vpop.xlane.xlu1 %5284  ;;  %5362 = vadd.xlane.f32.xlu1 %v5361_v38  ;;  %8399 = vmatpush3.bf16.msra.mxu1 %v10076_v51  ;;  %v5358_v51 = vsel %vm5249_vm3, %v8782_v22, 0.0 }
 0xbf2   : > { %v5306_v43 = vsub.f32 %v10050_v35, %v5276_v40  ;;  %v5309_v44 = vsub.f32 %v10054_v39, %v5285_v56  ;;  %8389 = vmatpush3.bf16.msra.mxu0 %v8724_v25  ;;  %8400 = vmatprep.subr.bf16.mxu1 %v8727_v34 }
 0xbf3   : > { %5347 = vadd.xlane.f32.xlu0 %v5346_v45  ;;  %8390 = vmatprep.subr.bf16.mxu0 %v8726_v37 }
 0xbf4   : > { %v5330_v50 = vmul.f32 1.442695, %v5306_v43  ;;  %v5336_v53 = vmul.f32 1.442695, %v5309_v44 }
 0xbf5   : > { %v5288_v58 = vpop.xlane.xlu0 %5287  ;;  %v5279_v59 = vpop.xlane.xlu1 %5278  ;;  %8401 = vmatpush3.bf16.msra.mxu1 %v8727_v34 }
 0xbf6   : > { %8787 = vpow2.f32 %v5330_v50  ;;  %v5310_v35 = vsub.f32 %v10052_v36, %v5288_v58  ;;  %v5307_v39 = vsub.f32 %v10062_v42, %v5279_v59  ;;  %8391 = vmatpush3.bf16.msra.mxu0 %v8726_v37  ;;  %8402 = vmatprep.subr.bf16.mxu1 %v8729_v47 }
 0xbf7   : > { %5359 = vadd.xlane.f32.xlu0 %v5358_v51  ;;  %8392 = vmatprep.subr.bf16.mxu0 %v8728_v48  ;;  %8789 = vpow2.f32 %v5336_v53 }
 0xbf8   : > { %v5338_v26 = vmul.f32 1.442695, %v5310_v35  ;;  %v5332_v32 = vmul.f32 1.442695, %v5307_v39 }
 0xbf9   : > { %v5294_v1 = vpop.xlane.xlu0 %5293  ;;  %v5291_v3 = vpop.xlane.xlu1 %5290  ;;  %8403 = vmatpush3.bf16.msra.mxu1 %v8729_v47 }
 0xbfa   : > { %8791 = vpow2.f32 %v5338_v26  ;;  %v5312_v52 = vsub.f32 %v10046_v33, %v5294_v1  ;;  %v5311_v36 = vsub.f32 %v10068_v46, %v5291_v3  ;;  %8393 = vmatpush3.bf16.msra.mxu0 %v8728_v48  ;;  %8404 = vmatprep.subr.bf16.mxu1 %v8730_v61 }
 0xbfb   : > { %8793 = vpow2.f32 %v5332_v32 }
 0xbfc   : > { %8795 = vpow2.f32 %v5334_v0  ;;  %v5342_v42 = vmul.f32 1.442695, %v5312_v52  ;;  %v5340_v55 = vmul.f32 1.442695, %v5311_v36 }
 0xbfd   : > { %v5297_v5 = vpop.xlane.xlu1 %5296  ;;  %8405 = vmatpush3.bf16.msra.mxu1 %v8730_v61 }
 0xbfe   : > { %v5313_v60 = vsub.f32 %v10060_v41, %v5297_v5  ;;  %8797 = vpow2.f32 %v5340_v55 }
 0xbff   : > { %8799 = vpow2.f32 %v5342_v42 }
 0xc00   : > { %v5344_v62 = vmul.f32 1.442695, %v5313_v60 }
 0xc02   : > { %8801 = vpow2.f32 %v5344_v62 }
 0xc03   : > { %v8788_v63 = vpop.eup %8787 }
 0xc04   : > { %v5370_v7 = vsel %vm5249_vm3, %v8788_v63, 0.0  ;;  %v8790_v33 = vpop.eup %8789 }
 0xc05   : > { %5371 = vadd.xlane.f32.xlu0 %v5370_v7  ;;  %v5379_v57 = vsel %vm5249_vm3, %v8790_v33, 0.0 }
 0xc07   : > { %v8792_v46 = vpop.eup %8791 }
 0xc08   : > { %v8794_v8 = vpop.eup %8793  ;;  %v5382_v4 = vsel %vm5249_vm3, %v8792_v46, 0.0 }
 0xc09   : > { %v8796_v9 = vpop.eup %8795  ;;  %5383 = vadd.xlane.f32.xlu0 %v5382_v4  ;;  %v5373_v2 = vsel %vm5249_vm3, %v8794_v8, 0.0  ;;  %v5414_v10 = vpack.c.bf16 %v8794_v8, %v8788_v63  ;;  %v7392_v63 = vld [vmem:[%s4801_s0] sm:$0xff]  }
 0xc0a   : > { %5374 = vadd.xlane.f32.xlu1 %v5373_v2  ;;  %v5415_v41 = vpack.c.bf16 %v8790_v33, %v8796_v9  ;;  %v5376_v12 = vsel %vm5249_vm3, %v8796_v9, 0.0 }
 0xc0b   : > { %8394 = vmatprep.mubr.msk.bf16.mxu0 %vm5249_vm3, %v5414_v10  ;;  %v8798_v11 = vpop.eup %8797 }
 0xc0c   : > { %8395 = vmatmul.mubr.msk.bf16.vlgmr.msra.gmra.mxu0 %vm5249_vm3, %v5415_v41  ;;  %v8800_v13 = vpop.eup %8799  ;;  %v5385_v15 = vsel %vm5249_vm3, %v8798_v11, 0.0  ;;  %v5416_v16 = vpack.c.bf16 %v8798_v11, %v8792_v46  ;;  %v7420_v41 = vld [vmem:[%s4801_s0 + $0x8] sm:$0xff]  }
 0xc0d   : > { %5377 = vadd.xlane.f32.xlu0 %v5376_v12  ;;  %v5388_v18 = vsel %vm5249_vm3, %v8800_v13, 0.0 }
 0xc0e   : > { %5386 = vadd.xlane.f32.xlu1 %v5385_v15  ;;  %8406 = vmatprep.mubr.msk.bf16.mxu1 %vm5249_vm3, %v5416_v16 }
 0xc0f   : > { %v8802_v17 = vpop.eup %8801 }
 0xc10   : > { %v5417_v54 = vpack.c.bf16 %v8802_v17, %v8800_v13  ;;  %v5391_v19 = vsel %vm5249_vm3, %v8802_v17, 0.0  ;;  %v7393_v17 = vunpack.c.l.bf16 %v7392_v63 }
 0xc11   : > { %5389 = vadd.xlane.f32.xlu0 %v5388_v18 }
 0xc12   : > { %5380 = vadd.xlane.f32.xlu1 %v5379_v57  ;;  %8407 = vmatmul.mubr.msk.bf16.vlgmr.msra.gmra.mxu1 %vm5249_vm3, %v5417_v54 }
 0xc16   : > { %5392 = vadd.xlane.f32.xlu1 %v5391_v19 }
 0xc6a   : > { %v5354_v20 = vpop.xlane.xlu0 %5353 }
 0xc6b   : > { %8803 = vrcp.f32 %v5354_v20 }
 0xc6e   : > { %v5357_v21 = vpop.xlane.xlu1 %5356 }
 0xc6f   : > { %8805 = vrcp.f32 %v5357_v21 }
 0xc72   : > { %v5369_v14 = vpop.xlane.xlu1 %5368 }
 0xc73   : > { %8807 = vrcp.f32 %v5369_v14  ;;  %v7397_v14 = vunpack.c.l.bf16 %v7420_v41 }
 0xc76   : > { %v5351_v24 = vpop.xlane.xlu1 %5350 }
 0xc77   : > { %8809 = vrcp.f32 %v5351_v24 }
 0xc78   : > { %v5366_v22 = vpop.xlane.xlu0 %5365  ;;  %v8804_v45 = vpop.eup %8803 }
 0xc79   : > { %8811 = vrcp.f32 %v5366_v22 }
 0xc7a   : > { %v5363_v27 = vpop.xlane.xlu1 %5362 }
 0xc7b   : > { %8813 = vrcp.f32 %v5363_v27 }
 0xc7c   : > { %v5348_v23 = vpop.xlane.xlu0 %5347  ;;  %v8806_v47 = vpop.eup %8805 }
 0xc7d   : > { %8815 = vrcp.f32 %v5348_v23 }
 0xc80   : > { %v5360_v25 = vpop.xlane.xlu0 %5359  ;;  %v8808_v49 = vpop.eup %8807 }
 0xc81   : > { %8817 = vrcp.f32 %v5360_v25 }
 0xc84   : > { %v8810_v50 = vpop.eup %8809 }
 0xc86   : > { %v8812_v58 = vpop.eup %8811 }
 0xc88   : > { %v8814_v59 = vpop.eup %8813 }
 0xc8a   : > { %v8816_v51 = vpop.eup %8815 }
 0xc8e   : > { %v5372_v28 = vpop.xlane.xlu0 %5371  ;;  %v8818_v61 = vpop.eup %8817 }
 0xc92   : > { %v5384_v6 = vpop.xlane.xlu0 %5383 }
 0xc93   : > { %v5375_v29 = vpop.xlane.xlu1 %5374 }
 0xc96   : > { %v5378_v31 = vpop.xlane.xlu0 %5377 }
 0xc97   : > { %v5387_v30 = vpop.xlane.xlu1 %5386  ;;  %8819 = vrcp.f32 %v5378_v31 }
 0xc98   : > { %8821 = vrcp.f32 %v5372_v28 }
 0xc99   : > { %8823 = vrcp.f32 %v5384_v6  ;;  %v7394_v6 = vunpack.c.h.bf16 %v7392_v63 }
 0xc9a   : > { %v5390_v38 = vpop.xlane.xlu0 %5389 }
 0xc9b   : > { %v5381_v37 = vpop.xlane.xlu1 %5380  ;;  %8825 = vrcp.f32 %v5390_v38 }
 0xc9c   : > { %8827 = vrcp.f32 %v5375_v29 }
 0xc9d   : > { %8829 = vrcp.f32 %v5381_v37 }
 0xc9f   : > { %v5393_v43 = vpop.xlane.xlu1 %5392 }
 0xca0   : > { %8831 = vrcp.f32 %v5393_v43 }
 0xca1   : > { %8833 = vrcp.f32 %v5387_v30 }
 0xca4   : > { %v8820_v32 = vpop.eup %8819 }
 0xca5   : > { %v8822_v3 = vpop.eup %8821 }
 0xca6   : > { %v8824_v5 = vpop.eup %8823 }
 0xca8   : > { %v8826_v7 = vpop.eup %8825 }
 0xca9   : > { %v8828_v9 = vpop.eup %8827 }
 0xcaa   : > { %v8830_v12 = vpop.eup %8829 }
 0xcad   : > { %v8372_v34 = vpop.f32.mrf.mxu0  ;;  %v8832_v21 = vpop.eup %8831 }
 0xcae   : > { %v5507_v52 = vmul.f32 %v8804_v45, %v8372_v34  ;;  %v8834_v29 = vpop.eup %8833 }
 0xcaf   : > { %v5490_v40 = vpop.f32.mrf.mxu0 }
 0xcb0   : > { %v8384_v56 = vpop.f32.mrf.mxu1  ;;  %v5505_v60 = vmul.f32 %v8816_v51, %v5490_v40  ;;  %v7398_v40 = vunpack.c.h.bf16 %v7420_v41  ;;  %v8748_v41 = vld [vmem:[%s10299_s13 + $0x24] ss:$8 sps:$4 sm:$0xff]  }
 0xcb1   : > { %v8373_v44 = vpop.f32.mrf.mxu0  ;;  %v5599_v0 = vmul.f32 %v8812_v58, %v8384_v56  ;;  %v7152_v56 = vld [vmem:[%s10296_s10] ss:$0 sm:$0xff] }
 0xcb2   : > { %v5582_v48 = vpop.f32.mrf.mxu1  ;;  %v5508_v13 = vmul.f32 %v8806_v47, %v8373_v44 }
 0xcb3   : > { %v5493_v53 = vpop.f32.mrf.mxu0  ;;  %v5597_v1 = vmul.f32 %v8818_v61, %v5582_v48  ;;  %v5603_v33 = vadd.f32 %v5599_v0, %v5507_v52 }
 0xcb4   : > { %v8385_v35 = vpop.f32.mrf.mxu1  ;;  %v5506_v15 = vmul.f32 %v8810_v50, %v5493_v53 }
 0xcb5   : > { %v5600_v46 = vmul.f32 %v8808_v49, %v8385_v35  ;;  %v5601_v2 = vadd.f32 %v5597_v1, %v5505_v60  ;;  %v8733_v35 = vld [vmem:[%s10299_s13 + $0x74] ss:$8 sps:$4 sm:$0xff]  }
 0xcb6   : > { %v5585_v36 = vpop.f32.mrf.mxu1  ;;  %5989 = vmatprep.subr.bf16.mxu0 %v8733_v35 }
 0xcb7   : > { %v5598_v10 = vmul.f32 %v8814_v59, %v5585_v36  ;;  %v5604_v22 = vadd.f32 %v5600_v46, %v5508_v13  ;;  %v8731_v59 = vld [vmem:[%s10299_s13 + $0x70] ss:$8 sps:$4 sm:$0xff]   ;;  %v8739_v46 = vld [vmem:[%s10299_s13 + $0x54] ss:$8 sps:$4 sm:$0xff]  }
 0xcb8   : > { %5990 = vmatpush1.bf16.msra.mxu0 %v8731_v59  ;;  %v8751_v13 = vld [vmem:[%s10299_s13 + $0x14] ss:$8 sps:$4 sm:$0xff]  }
 0xcb9   : > { %v5602_v24 = vadd.f32 %v5598_v10, %v5506_v15  ;;  %v8745_v10 = vld [vmem:[%s10299_s13 + $0x34] ss:$8 sps:$4 sm:$0xff]   ;;  %v8749_v15 = vld [vmem:[%s10299_s13 + $0x10] ss:$8 sps:$4 sm:$0xff]  }
 0xccc   : > { %v8396_v39 = vpop.f32.mrf.mxu0 }
 0xccd   : > { %v5695_v42 = vmul.f32 %v8820_v32, %v8396_v39 }
 0xcce   : > { %v5678_v26 = vpop.f32.mrf.mxu0 }
 0xccf   : > { %v5693_v62 = vmul.f32 %v8822_v3, %v5678_v26  ;;  %v5699_v16 = vadd.f32 %v5695_v42, %v5603_v33  ;;  %v8734_v33 = vld [vmem:[%s10299_s13 + $0x60] ss:$8 sps:$4 sm:$0xff]  }
 0xcd0   : > { %v8397_v55 = vpop.f32.mrf.mxu0 }
 0xcd1   : > { %v5697_v54 = vadd.f32 %v5693_v62, %v5601_v2  ;;  %v5696_v57 = vmul.f32 %v8830_v12, %v8397_v55  ;;  %v8743_v2 = vld [vmem:[%s10299_s13 + $0x30] ss:$8 sps:$4 sm:$0xff]   ;;  %v8746_v12 = vld [vmem:[%s10299_s13 + $0x20] ss:$8 sps:$4 sm:$0xff]  }
 0xcd2   : > { %v5681_v8 = vpop.f32.mrf.mxu0  ;;  %v8408_v4 = vpop.f32.mrf.mxu1 }
 0xcd3   : > { %v5791_v11 = vmul.f32 %v8826_v7, %v8408_v4  ;;  %v5694_v19 = vmul.f32 %v8828_v9, %v5681_v8  ;;  %v5700_v31 = vadd.f32 %v5696_v57, %v5604_v22  ;;  %v8736_v7 = vld [vmem:[%s10299_s13 + $0x64] ss:$8 sps:$4 sm:$0xff]   ;;  %v8737_v8 = vld [vmem:[%s10299_s13 + $0x50] ss:$8 sps:$4 sm:$0xff]   ;;  %v8740_v9 = vld [vmem:[%s10299_s13 + $0x40] ss:$8 sps:$4 sm:$0xff]  }
 0xcd4   : > { %v5774_v18 = vpop.f32.mrf.mxu1  ;;  %5991 = vmatprep.subr.bf16.mxu0 %v8736_v7  ;;  %v8742_v4 = vld [vmem:[%s10299_s13 + $0x44] ss:$8 sps:$4 sm:$0xff]  }
 0xcd5   : > { %v5789_v20 = vmul.f32 %v8824_v5, %v5774_v18  ;;  %v5795_v25 = vadd.f32 %v5791_v11, %v5699_v16  ;;  %v5698_v34 = vadd.f32 %v5694_v19, %v5602_v24  ;;  %5992 = vmatpush1.bf16.msra.mxu0 %v8734_v33  ;;  %v8899_v11 = vmov 0   ;;  %v8754_v16 = vld [vmem:[%s10299_s13 + $0x4] ss:$8 sps:$4 sm:$0xff]  }
 0xcd6   : > { %v8409_v23 = vpop.f32.mrf.mxu1  ;;  %5993 = vmatprep.subr.bf16.mxu0 %v8739_v46  ;;  %6021 = vmatprep.mubr.bf16.mxu0 %v8899_v11  ;;  %v8768_v7 = vld [vmem:[%s10301_s15 + $0x8] sm:$0xff]   ;;  %v8769_v33 = vld [vmem:[%s10301_s15 + $0x40] sm:$0xff]  }
 0xcd7   : > { %v5793_v27 = vadd.f32 %v5789_v20, %v5697_v54  ;;  %v5792_v28 = vmul.f32 %v8832_v21, %v8409_v23  ;;  %v5799_v43 = vadd.f32 %v7397_v14, %v5795_v25  ;;  %v8770_v46 = vld [vmem:[%s10301_s15] sm:$0xff]  }
 0xcd8   : > { %v5777_v30 = vpop.f32.mrf.mxu1 }
 0xcd9   : > { %v5797_v37 = vadd.f32 %v7393_v17, %v5793_v27  ;;  %v5790_v38 = vmul.f32 %v8834_v29, %v5777_v30  ;;  %v5796_v44 = vadd.f32 %v5792_v28, %v5700_v31  ;;  %v10131_v53 = vadd.f32 %v7152_v56, %v5799_v43  ;;  %5994 = vmatpush1.bf16.msra.mxu0 %v8737_v8  ;;  %v8752_v17 = vld [vmem:[%s10299_s13] ss:$8 sps:$4 sm:$0xff]  }
 0xcda   : > { %5995 = vmatprep.subr.bf16.mxu0 %v8742_v4  ;;  %v5899_v8 = vlaneseq }
 0xcdb   : > { %v5794_v45 = vadd.f32 %v5790_v38, %v5698_v34  ;;  %v10126_v47 = vadd.f32 %v7152_v56, %v5797_v37  ;;  %v5800_v49 = vadd.f32 %v7398_v40, %v5796_v44  ;;  %v7154_v38 = vld [vmem:[%s10298_s12] ss:$0 sm:$0xff] }
 0xcdc   : > { %v5900_v4 = vshrl.u32 %v5899_v8, 7 }
 0xcdd   : > { %v5798_v48 = vadd.f32 %v7394_v6, %v5794_v45  ;;  %5814 = vadd.xlane.f32.xlu0 %v10126_v47  ;;  %v10135_v58 = vadd.f32 %v7152_v56, %v5800_v49  ;;  %5996 = vmatpush1.bf16.msra.mxu0 %v8740_v9  ;;  %v7153_v6 = vld [vmem:[%s10297_s11] ss:$0 sm:$0xff] }
 0xcde   : > { %5997 = vmatprep.subr.bf16.mxu0 %v8745_v10  ;;  %v5901_v9 = vsub.s32 0, %v5900_v4  ;;  %v5905_v10 = vsub.s32 1, %v5900_v4 }
 0xcdf   : > { %v10129_v50 = vadd.f32 %v7152_v56, %v5798_v48 }
 0xce1   : > { %5816 = vadd.xlane.f32.xlu1 %v10129_v50  ;;  %5818 = vadd.xlane.f32.xlu0 %v10131_v53 }
 0xce2   : > { %5998 = vmatpush1.bf16.msra.mxu0 %v8743_v2  ;;  %v5897_v2 = vld [vmem:[%s10300_s14] sm:$0x3] }
 0xce3   : > { %5999 = vmatprep.subr.bf16.mxu0 %v8748_v41  ;;  %v5902_v41 = vrot.slane %v5897_v2, %v5901_v9 }
 0xce5   : > { %5820 = vadd.xlane.f32.xlu1 %v10135_v58 }
 0xce6   : > { %6000 = vmatpush1.bf16.msra.mxu0 %v8746_v12 }
 0xce7   : > { %6001 = vmatprep.subr.bf16.mxu0 %v8751_v13 }
 0xcea   : > { %6002 = vmatpush1.bf16.msra.mxu0 %v8749_v15 }
 0xceb   : > { %6003 = vmatprep.subr.bf16.mxu0 %v8754_v16 }
 0xcee   : > { %6004 = vmatpush1.bf16.msra.mxu0 %v8752_v17 }
 0xd66   : > { %v5815_v39 = vpop.xlane.xlu0 %5814 }
 0xd67   : > { %v5823_v51 = vmul.f32 0.0078125, %v5815_v39 }
 0xd69   : > { %v10145_v61 = vsub.f32 %v10126_v47, %v5823_v51 }
 0xd6a   : > { %v5817_v0 = vpop.xlane.xlu1 %5816  ;;  %v5819_v26 = vpop.xlane.xlu0 %5818 }
 0xd6b   : > { %v5824_v32 = vmul.f32 0.0078125, %v5817_v0  ;;  %v5825_v1 = vmul.f32 0.0078125, %v5819_v26  ;;  %v5831_v3 = vmul.f32 %v10145_v61, %v10145_v61  ;;  %v8755_v0 = vld [vmem:[%s10301_s15 + $0x78] sm:$0xff]  }
 0xd6c   : > { %v8756_v26 = vld [vmem:[%s10301_s15 + $0x38] sm:$0xff]   ;;  %7742 = vmatprep.subr.bf16.mxu1 %v8755_v0 }
 0xd6d   : > { %v5828_v52 = vsub.f32 %v10129_v50, %v5824_v32  ;;  %v10151_v36 = vsub.f32 %v10131_v53, %v5825_v1  ;;  %5835 = vadd.xlane.f32.xlu0 %v5831_v3  ;;  %7743 = vmatpush3.bf16.msra.mxu1 %v8756_v26  ;;  %v8757_v32 = vld [vmem:[%s10301_s15 + $0x70] sm:$0xff]   ;;  %v8759_v3 = vld [vmem:[%s10301_s15 + $0x68] sm:$0xff]  }
 0xd6e   : > { %v5821_v42 = vpop.xlane.xlu1 %5820  ;;  %v8758_v1 = vld [vmem:[%s10301_s15 + $0x30] sm:$0xff]   ;;  %7744 = vmatprep.subr.bf16.mxu1 %v8757_v32 }
 0xd6f   : > { %v5826_v55 = vmul.f32 0.0078125, %v5821_v42  ;;  %v5832_v5 = vmul.f32 %v5828_v52, %v5828_v52  ;;  %v5833_v60 = vmul.f32 %v10151_v36, %v10151_v36  ;;  %v8762_v42 = vld [vmem:[%s10301_s15 + $0x20] sm:$0xff]  }
 0xd71   : > { %v10156_v62 = vsub.f32 %v10135_v58, %v5826_v55  ;;  %5837 = vadd.xlane.f32.xlu1 %v5832_v5  ;;  %5839 = vadd.xlane.f32.xlu0 %v5833_v60  ;;  %v8763_v55 = vld [vmem:[%s10301_s15 + $0x58] sm:$0xff]   ;;  %v8765_v60 = vld [vmem:[%s10301_s15 + $0x50] sm:$0xff]  }
 0xd72   : > { %7745 = vmatpush3.bf16.msra.mxu1 %v8758_v1  ;;  %v8764_v5 = vld [vmem:[%s10301_s15 + $0x18] sm:$0xff]  }
 0xd73   : > { %v5834_v63 = vmul.f32 %v10156_v62, %v10156_v62  ;;  %7746 = vmatprep.subr.bf16.mxu1 %v8759_v3 }
 0xd75   : > { %5841 = vadd.xlane.f32.xlu1 %v5834_v63  ;;  %v8767_v63 = vld [vmem:[%s10301_s15 + $0x48] sm:$0xff]  }
 0xdf6   : > { %v5836_v18 = vpop.xlane.xlu0 %5835 }
 0xdf7   : > { %v5843_v54 = vmul.f32 0.0078125, %v5836_v18 }
 0xdf9   : > { %v5847_v57 = vadd.f32 1e-05, %v5843_v54 }
 0xdfa   : > { %v5838_v19 = vpop.xlane.xlu1 %5837  ;;  %v5840_v20 = vpop.xlane.xlu0 %5839 }
 0xdfb   : > { %8835 = vrsqrt.f32 %v5847_v57  ;;  %v5844_v21 = vmul.f32 0.0078125, %v5838_v19  ;;  %v5845_v22 = vmul.f32 0.0078125, %v5840_v20 }
 0xdfd   : > { %v5848_v14 = vadd.f32 1e-05, %v5844_v21  ;;  %v5849_v23 = vadd.f32 1e-05, %v5845_v22 }
 0xdfe   : > { %v5842_v24 = vpop.xlane.xlu1 %5841 }
 0xdff   : > { %8837 = vrsqrt.f32 %v5848_v14  ;;  %v5846_v25 = vmul.f32 0.0078125, %v5842_v24 }
 0xe00   : > { %8839 = vrsqrt.f32 %v5849_v23 }
 0xe01   : > { %v5850_v27 = vadd.f32 1e-05, %v5846_v25 }
 0xe03   : > { %8841 = vrsqrt.f32 %v5850_v27 }
 0xe08   : > { %v8836_v28 = vpop.eup %8835 }
 0xe09   : > { %v5855_v29 = vmul.f32 %v8836_v28, %v10145_v61 }
 0xe0b   : > { %v5865_v34 = vmul.f32 %v7153_v6, %v5855_v29 }
 0xe0c   : > { %v8838_v30 = vpop.eup %8837 }
 0xe0d   : > { %v5856_v31 = vmul.f32 %v8838_v30, %v5828_v52  ;;  %v8840_v37 = vpop.eup %8839  ;;  %v5875_v43 = vadd.f32 %v7154_v38, %v5865_v34  ;;  %v8760_v52 = vld [vmem:[%s10301_s15 + $0x28] sm:$0xff]  }
 0xe0e   : > { %v5857_v45 = vmul.f32 %v8840_v37, %v10151_v36  ;;  %7747 = vmatpush3.bf16.msra.mxu1 %v8760_v52  ;;  %v8761_v36 = vld [vmem:[%s10301_s15 + $0x60] sm:$0xff]  }
 0xe0f   : > { %v5866_v40 = vmul.f32 %v7153_v6, %v5856_v31  ;;  %7748 = vmatprep.subr.bf16.mxu1 %v8761_v36 }
 0xe10   : > { %v8842_v56 = vpop.eup %8841  ;;  %v5867_v35 = vmul.f32 %v7153_v6, %v5857_v45 }
 0xe11   : > { %v5876_v44 = vadd.f32 %v7154_v38, %v5866_v40  ;;  %v5858_v48 = vmul.f32 %v8842_v56, %v10156_v62  ;;  %v8766_v62 = vld [vmem:[%s10301_s15 + $0x10] sm:$0xff]  }
 0xe12   : > { %v5877_v51 = vadd.f32 %v7154_v38, %v5867_v35  ;;  %7749 = vmatpush3.bf16.msra.mxu1 %v8762_v42 }
 0xe13   : > { %v5879_v49 = vpack.c.bf16 %v5876_v44, %v5875_v43  ;;  %v5868_v59 = vmul.f32 %v7153_v6, %v5858_v48  ;;  %7750 = vmatprep.subr.bf16.mxu1 %v8763_v55 }
 0xe15   : > { %6022 = vmatmul.mubr.bf16.vlgmr.msra.gmra.mxu0 %v5879_v49  ;;  %v5878_v39 = vadd.f32 %v7154_v38, %v5868_v59 }
 0xe16   : > { %6031 = vmatprep.mubr.bf16.mxu0 %v8899_v11  ;;  %7751 = vmatpush3.bf16.msra.mxu1 %v8764_v5  ;;  %v5906_v11 = vrot.slane %v5897_v2, %v5905_v10 }
 0xe17   : > { %v5880_v61 = vpack.c.bf16 %v5878_v39, %v5877_v51  ;;  %7752 = vmatprep.subr.bf16.mxu1 %v8765_v60 }
 0xe1a   : > { %7753 = vmatpush3.bf16.msra.mxu1 %v8766_v62 }
 0xe1b   : > { %7754 = vmatprep.subr.bf16.mxu1 %v8767_v63 }
 0xe1d   : > { %6032 = vmatmul.mubr.bf16.gmra.mxu0 %v5880_v61 }
 0xe1e   : > { %7755 = vmatpush3.bf16.msra.mxu1 %v8768_v7 }
 0xe1f   : > { %7756 = vmatprep.subr.bf16.mxu1 %v8769_v33 }
 0xe22   : > { %7757 = vmatpush3.bf16.msra.mxu1 %v8770_v46 }
 0xed5   : > { %v6023_v12 = vpop.f32.mrf.mxu0 }
 0xed6   : > { %v6024_v13 = vadd.f32 %v6023_v12, %v5902_v41 }
 0xed7   : > { %v6025_v15 = vpop.f32.mrf.mxu0 }
 0xed8   : > { %v6026_v16 = vadd.f32 %v6025_v15, %v5906_v11  ;;  %v6050_v17 = vmul.f32 0.70710677, %v6024_v13  ;;  %v6042_v51 = vmul.f32 0.5, %v6024_v13 }
 0xed9   : > { %v6027_v18 = vpop.f32.mrf.mxu0 }
 0xeda   : > { %v6051_v54 = vmul.f32 0.70710677, %v6026_v16  ;;  %v6028_v57 = vadd.f32 %v6027_v18, %v5902_v41  ;;  %v6043_v59 = vmul.f32 0.5, %v6026_v16  ;;  %v7171_v16 = vld [vmem:[%s10302_s16] ss:$0 sm:$0xff] }
 0xedb   : > { %v6029_v19 = vpop.f32.mrf.mxu0 }
 0xedc   : > { %8843 = verf.f32 %v6051_v54  ;;  %v6052_v20 = vmul.f32 0.70710677, %v6028_v57  ;;  %v6030_v21 = vadd.f32 %v6029_v19, %v5906_v11  ;;  %v6044_v49 = vmul.f32 0.5, %v6028_v57 }
 0xedd   : > { %8845 = verf.f32 %v6050_v17  ;;  %v6033_v22 = vpop.f32.mrf.mxu0 }
 0xede   : > { %8847 = verf.f32 %v6052_v20  ;;  %v6053_v14 = vmul.f32 0.70710677, %v6030_v21  ;;  %v6034_v23 = vadd.f32 %v6033_v22, %v5902_v41  ;;  %v6045_v35 = vmul.f32 0.5, %v6030_v21 }
 0xedf   : > { %v6035_v24 = vpop.f32.mrf.mxu0 }
 0xee0   : > { %8849 = verf.f32 %v6053_v14  ;;  %v6036_v25 = vadd.f32 %v6035_v24, %v5906_v11  ;;  %v6054_v27 = vmul.f32 0.70710677, %v6034_v23  ;;  %v6046_v8 = vmul.f32 0.5, %v6034_v23 }
 0xee1   : > { %v6037_v28 = vpop.f32.mrf.mxu0 }
 0xee2   : > { %v6055_v29 = vmul.f32 0.70710677, %v6036_v25  ;;  %v6038_v6 = vadd.f32 %v6037_v28, %v5902_v41  ;;  %v6047_v7 = vmul.f32 0.5, %v6036_v25 }
 0xee3   : > { %v6039_v30 = vpop.f32.mrf.mxu0 }
 0xee4   : > { %8851 = verf.f32 %v6055_v29  ;;  %v6056_v31 = vmul.f32 0.70710677, %v6038_v6  ;;  %v6040_v34 = vadd.f32 %v6039_v30, %v5906_v11  ;;  %v6048_v63 = vmul.f32 0.5, %v6038_v6 }
 0xee5   : > { %8853 = verf.f32 %v6054_v27 }
 0xee6   : > { %8855 = verf.f32 %v6056_v31  ;;  %v6057_v37 = vmul.f32 0.70710677, %v6040_v34  ;;  %v6049_v33 = vmul.f32 0.5, %v6040_v34 }
 0xee8   : > { %8857 = verf.f32 %v6057_v37 }
 0xee9   : > { %v8844_v38 = vpop.eup %8843 }
 0xeea   : > { %v8846_v40 = vpop.eup %8845  ;;  %v6067_v43 = vadd.f32 1.0, %v8844_v38 }
 0xeeb   : > { %v8848_v56 = vpop.eup %8847  ;;  %v6066_v48 = vadd.f32 1.0, %v8846_v40 }
 0xeec   : > { %v6068_v44 = vadd.f32 1.0, %v8848_v56  ;;  %v6075_v0 = vmul.f32 %v6067_v43, %v6043_v59 }
 0xeed   : > { %v8850_v45 = vpop.eup %8849  ;;  %v6074_v1 = vmul.f32 %v6066_v48, %v6042_v51 }
 0xeee   : > { %v6069_v39 = vadd.f32 1.0, %v8850_v45  ;;  %v6076_v61 = vmul.f32 %v6068_v44, %v6044_v49 }
 0xef0   : > { %v6077_v26 = vmul.f32 %v6069_v39, %v6045_v35  ;;  %v6082_v42 = vpack.c.bf16 %v6076_v61, %v6074_v1 }
 0xef1   : > { %v8852_v32 = vpop.eup %8851 }
 0xef2   : > { %v8854_v3 = vpop.eup %8853  ;;  %v6083_v52 = vpack.c.bf16 %v6077_v26, %v6075_v0  ;;  %v6071_v55 = vadd.f32 1.0, %v8852_v32 }
 0xef3   : > { %v8856_v36 = vpop.eup %8855  ;;  %v6070_v62 = vadd.f32 1.0, %v8854_v3 }
 0xef4   : > { %v6072_v5 = vadd.f32 1.0, %v8856_v36  ;;  %6253 = vmatprep.mubr.bf16.mxu1 %v6083_v52  ;;  %v6079_v9 = vmul.f32 %v6071_v55, %v6047_v7 }
 0xef5   : > { %v8858_v60 = vpop.eup %8857  ;;  %6254 = vmatmul.mubr.bf16.vlgmr.msra.gmra.mxu1 %v6082_v42  ;;  %v6078_v10 = vmul.f32 %v6070_v62, %v6046_v8 }
 0xef6   : > { %v6073_v46 = vadd.f32 1.0, %v8858_v60  ;;  %v6080_v4 = vmul.f32 %v6072_v5, %v6048_v63 }
 0xef8   : > { %v6081_v2 = vmul.f32 %v6073_v46, %v6049_v33  ;;  %v6084_v11 = vpack.c.bf16 %v6080_v4, %v6078_v10 }
 0xefa   : > { %v6085_v41 = vpack.c.bf16 %v6081_v2, %v6079_v9 }
 0xefc   : > { %6261 = vmatprep.mubr.bf16.mxu1 %v6085_v41 }
 0xefd   : > { %6262 = vmatmul.mubr.bf16.gmra.mxu1 %v6084_v11 }
 0xfb5   : > { %v7758_v12 = vpop.f32.mrf.mxu1 }
 0xfb7   : > { %v7759_v13 = vpop.f32.mrf.mxu1 }
 0xfb8   : > { %v7760_v15 = vadd.f32 %v7759_v13, %v7758_v12 }
 0xfb9   : > { %v7761_v17 = vpop.f32.mrf.mxu1 }
 0xfba   : > { %v6256_v54 = vadd.f32 %v7760_v15, %v7171_v16 }
 0xfbb   : > { %v7762_v18 = vpop.f32.mrf.mxu1 }
 0xfbc   : > { %v7763_v57 = vadd.f32 %v7762_v18, %v7761_v17  ;;  %v6270_v22 = vadd.f32 %v6256_v54, %v10126_v47 }
 0xfbd   : > { %v7764_v19 = vpop.f32.mrf.mxu1 }
 0xfbe   : > { %v6259_v20 = vadd.f32 %v7763_v57, %v7171_v16 }
 0xfbf   : > { %v7765_v21 = vpop.f32.mrf.mxu1 }
 0xfc0   : > { %v6271_v14 = vadd.f32 %v6259_v20, %v10129_v50  ;;  %v7766_v23 = vadd.f32 %v7765_v21, %v7764_v19 }
 0xfc1   : > { %v7767_v24 = vpop.f32.mrf.mxu1 }
 0xfc2   : > { %v7402_v25 = vpack.c.bf16 %v6271_v14, %v6270_v22  ;;  %v6264_v28 = vadd.f32 %v7766_v23, %v7171_v16 }
 0xfc3   : > { %v7768_v27 = vpop.f32.mrf.mxu1 }
 0xfc4   : > { %7403 = vst [vmem:[%s9041_s18] sm:$0xff] %v7402_v25   ;;  %v7769_v29 = vadd.f32 %v7768_v27, %v7767_v24  ;;  %v6272_v30 = vadd.f32 %v6264_v28, %v10131_v53 }
 0xfc6   : > { %v6267_v6 = vadd.f32 %v7769_v29, %v7171_v16 }
 0xfc8   : > { %v6273_v31 = vadd.f32 %v6267_v6, %v10135_v58 }
 0xfca   : > { %v7407_v34 = vpack.c.bf16 %v6273_v31, %v6272_v30 }
 0xfcc   : > { %7421 = vst [vmem:[%s9041_s18 + $0x8] sm:$0xff] %v7407_v34  }
 0xfcd PF: > { %s29_s1 = sadd.s32 1, %s8897_s1   ;;  %s10321_s19 = sld [smem:[#allocation5_spill]] }
 0xfce   : > { %p26_p8 = scmp.ge.s32.totalorder %s29_s1, 6   ;;  %s10322_s28 = sld [smem:[#allocation6_spill]] }
 0xfcf   : > { %s10323_s0 = smov %s8889_s20  ;;  %s10324_s30 = smov %s8893_s21 }
 0xfd0   :  { %28 = sbr.rel (!%p26_p8) target bundleno = 6 (0x6), region = 178 }
 0xfd3   : > { %s10325_s20 = smov %s10321_s19 }
 0xfd4   : > { %s10326_s21 = smov %s10322_s28 }

// kernel: vit_forward.5
= control target key start
LH: loop header
LB: loop body
LE: loop exit
PB: predicated region body
PF: predicated region fallthrough
CT: control target
= control target key end

     0   :  { %s10513_s0 = inlined_call_operand.vmem [shape: bf16[2,64,128], index: 0, kind: input, shape index: {}]   ;;  %s10514_s1 = inlined_call_operand.vmem [shape: f32[1,128], index: 1, kind: input, shape index: {}]   ;;  %s10515_s2 = inlined_call_operand.vmem [shape: f32[1,128], index: 2, kind: input, shape index: {}]   ;;  %s10516_s3 = inlined_call_operand.vmem [shape: bf16[4,128,32], index: 3, kind: input, shape index: {}]   ;;  %s10517_s4 = inlined_call_operand.vmem [shape: f32[4,1,32], index: 4, kind: input, shape index: {}]   ;;  %s10518_s5 = inlined_call_operand.vmem [shape: bf16[4,128,32], index: 5, kind: input, shape index: {}]   ;;  %s10519_s6 = inlined_call_operand.vmem [shape: f32[4,1,32], index: 6, kind: input, shape index: {}]   ;;  %s10520_s7 = inlined_call_operand.vmem [shape: bf16[4,128,32], index: 7, kind: input, shape index: {}]   ;;  %s10521_s8 = inlined_call_operand.vmem [shape: f32[4,1,32], index: 8, kind: input, shape index: {}]   ;;  %s10522_s9 = inlined_call_operand.vmem [shape: bf16[4,32,128], index: 9, kind: input, shape index: {}]   ;;  %s10523_s10 = inlined_call_operand.vmem [shape: f32[1,128], index: 10, kind: input, shape index: {}]   ;;  %s10524_s11 = inlined_call_operand.vmem [shape: f32[1,128], index: 11, kind: input, shape index: {}]   ;;  %s10525_s12 = inlined_call_operand.vmem [shape: f32[1,128], index: 12, kind: input, shape index: {}]   ;;  %s10526_s13 = inlined_call_operand.vmem [shape: bf16[128,256], index: 13, kind: input, shape index: {}]   ;;  %s10527_s14 = inlined_call_operand.vmem [shape: f32[1,256], index: 14, kind: input, shape index: {}]   ;;  %s10528_s15 = inlined_call_operand.vmem [shape: bf16[256,128], index: 15, kind: input, shape index: {}]   ;;  %s10529_s16 = inlined_call_operand.vmem [shape: f32[1,128], index: 16, kind: input, shape index: {}]   ;;  %s10530_s17 = inlined_call_operand.vmem [shape: f32[1,128], index: 17, kind: input, shape index: {}]   ;;  %s10531_s18 = inlined_call_operand.vmem [shape: f32[1,128], index: 18, kind: input, shape index: {}]   ;;  %s10532_s19 = inlined_call_operand.hbm [shape: f32[2,64,128], index: 19, kind: output, shape index: {}]  }
   0x1   :  { %10549 = sst [smem:[#allocation18_spill]] %s10513_s0 }
   0x2   :  { %10550 = sst [smem:[#allocation19_spill]] %s10514_s1 }
   0x3   :  { %10551 = sst [smem:[#allocation20_spill]] %s10515_s2 }
   0x4   :  { %10552 = sst [smem:[#allocation21_spill]] %s10516_s3 }
   0x5   :  { %10553 = sst [smem:[#allocation22_spill]] %s10517_s4 }
   0x6   :  { %10554 = sst [smem:[#allocation23_spill]] %s10518_s5 }
   0x7   :  { %10555 = sst [smem:[#allocation24_spill]] %s10531_s18 }
   0x8   :  { %10556 = sst [smem:[#allocation25_spill]] %s10532_s19 }
   0x9   :  { %24 = vsyncpa [#allocation6], 0 }
   0xa   :  { %26 = vsyncpa [#allocation6 + $0x1], 0  ;;  %s9131_s0 = smov 0   ;;  %s9133_s30 = smov 0  }
   0xb   :  { %s9135_s20 = smov 0   ;;  %s9137_s21 = smov 0  }
   0xc   :  { %s9139_s1 = smov 0   ;;  %s9141_s22 = smov 0  }
   0xd   :  { %s9143_s2 = smov 0   ;;  %s9145_s23 = smov 0  }
   0xe LB: > { %10557 = sst [smem:[#allocation8_spill]] %s8997_s0  ;;  %s6448_s24 = sadd.s32 4294967295, %s9025_s23   ;;  %s9025_s23 = sphi %s9145_s23, %s32_s23   ;;  %s9021_s2 = sphi %s9143_s2, %s10590_s2   ;;  %s9017_s22 = sphi %s9141_s22, %s10589_s22   ;;  %s9013_s1 = sphi %s9139_s1, %s10588_s1   ;;  %s9009_s21 = sphi %s9137_s21, %s10593_s21   ;;  %s9005_s20 = sphi %s9135_s20, %s10586_s20   ;;  %s9001_s30 = sphi %s9133_s30, %s10592_s30   ;;  %s8997_s0 = sphi %s9131_s0, %s10591_s0  }
   0xf   : > { %10558 = sst [smem:[#allocation9_spill]] %s9005_s20  ;;  %s6449_s25 = sadd.s32 4294967294, %s9025_s23  }
  0x10   : > { %10559 = sst [smem:[#allocation10_spill]] %s9017_s22  ;;  %s41_s3 = sadd.s32 1, %s9017_s22 }
  0x11   : > { %10560 = sst [smem:[#allocation11_spill]] %s9021_s2  ;;  %p42_p0 = scmp.ge.s32.totalorder %s41_s3, 2 }
  0x12   : > { %10561 = sst [smem:[#allocation12_spill]] %s9025_s23  ;;  %s44_s26 = sadd.s32 1, %s9021_s2 }
  0x13   : > { %p467_p1 = scmp.ne.s32.totalorder %s9005_s20, %s9001_s30  ;;  %p468_p2 = scmp.eq.s32.totalorder %s6448_s24, 3 }
  0x14   : > { %s10595_s3 = smov (%p42_p0, %s41_s3), 0  ;;  %s10597_s26 = smov (!%p42_p0, %s44_s26), %s9021_s2 }
  0x15   : > { %10562 = sst [smem:[#allocation13_spill]] %s10595_s3  ;;  %s453_s27 = ssub.s32 %s9017_s22, %s10595_s3 }
  0x16   : > { %p9182_p3 = por %p468_p2, %p467_p1  ;;  %p46_p4 = scmp.ge.s32.totalorder %s10597_s26, 2 }
  0x17   : > { %p473_p5 = scmp.ne.s32.totalorder %s9001_s30, %s8997_s0  ;;  %p474_p6 = scmp.eq.s32.totalorder %s6449_s25, 3 }
  0x18   : > { %s10563_s28 = scalar_select %p9182_p3, 1, 0 }
  0x19   : > { %p6452_p7 = scmp.ge.s32.totalorder %s9025_s23, 1  ;;  %s10599_s26 = smov (%p46_p4, %s10597_s26), 0 }
  0x1a   : > { %10564 = sst [smem:[#allocation14_spill]] %s10563_s28  ;;  %p9191_p8 = por %p474_p6, %p473_p5 }
  0x1b   : > { %10565 = sst [smem:[#allocation15_spill]] %s10599_s26  ;;  %p554_p9 = scmp.lt.s32.totalorder %s9025_s23, 5 }
  0x1c   : > { %s10566_s29 = scalar_select %p9191_p8, 1, 0 }
  0x1d   : > { %s452_s24 = ssub.s32 %s9021_s2, %s10599_s26  ;;  %s457_s19 = sadd.s32 1, %s9005_s20 }
  0x1e   : > { %10567 = sst [smem:[#allocation16_spill]] %s10566_s29  ;;  %s454_s18 = sor.u32 %s453_s27, %s452_s24 }
  0x1f   : > { %p555_p10 = pnand %p6452_p7, %p554_p9  ;;  %p455_p11 = scmp.eq.s32.totalorder %s454_s18, 0 }
  0x20   : > { %s10547_s25 = sand.u32 (!%p555_p10), 1, %s9001_s30   ;;  %p610_p12 = scmp.lt.s32.totalorder (!%p555_p10), %s9013_s1, 1 }
  0x21   : > { %s9200_s3 = scalar_select %p455_p11, %s9005_s20, %s457_s19  }
  0x22   : > { %558 = sbr.rel (%p555_p10) target bundleno = 4383 (0x111f), region = 96  ;;  %s6453_s22 = sshll.u32 (!%p555_p10), %s10547_s25, 5 }
  0x23   : > { %10568 = sst [smem:[#allocation17_spill]] %s9200_s3  ;;  %s9212_s27 = scalar_lea.vmem (!%p555_p10), [#allocation5], %s6453_s22 }
  0x24   : > { %s10569_s26 = sld [smem:[#allocation18_spill]] (!%p555_p10)  ;;  %p6456_p13 = scmp.ne.s32.totalorder (!%p555_p10), %s9009_s21, 0 }
  0x27   : > { %s611_s0 = scalar_select %p610_p12, %s9013_s1, 1 }
  0x28   : > { %620 = sbr.rel (%p6456_p13) target bundleno = 2678 (0xa76), region = 100  ;;  %s10572_s5 = sld [smem:[#allocation23_spill]] (!%p6456_p13) }
  0x29   : > { %s7242_s28 = sshll.u32 %s611_s0, 5  ;;  %s10570_s0 = sld [smem:[#allocation21_spill]] (!%p6456_p13) }
  0x2a   : > { %s9210_s2 = scalar_lea.vmem %s10569_s26, %s7242_s28  ;;  %s10573_s19 = sld [smem:[#allocation19_spill]] (!%p6456_p13) }
  0x2b   : > { %s10574_s23 = sld [smem:[#allocation20_spill]] (!%p6456_p13) }
  0x2c   : > { %s10576_s4 = sld [smem:[#allocation22_spill]] (!%p6456_p13) }
  0x2d   : > { %v7340_v0 = vld [vmem:[%s9210_s2] sm:$0xff]   ;;  %v7443_v1 = vld [vmem:[%s9210_s2 + $0x8] sm:$0xff]   ;;  %v8549_v38 = vld [vmem:[%s10520_s7 + $0x38] sm:$0xff]   ;;  %vm1148_vm0 = vcmask 257024   ;;  %vm1076_vm1 = vcmask 261120  }
  0x2e   : > { %v7341_v2 = vunpack.c.l.bf16 %v7340_v0  ;;  %v7345_v3 = vunpack.c.l.bf16 %v7443_v1  ;;  %v7342_v4 = vunpack.c.h.bf16 %v7340_v0  ;;  %v7346_v5 = vunpack.c.h.bf16 %v7443_v1  ;;  %v8534_v23 = vld [vmem:[%s10572_s5 + $0x38] sm:$0xff]   ;;  %v8536_v25 = vld [vmem:[%s10572_s5 + $0x30] sm:$0xff]   ;;  %v8538_v27 = vld [vmem:[%s10572_s5 + $0x28] sm:$0xff]  }
  0x2f   : > { %s10571_s26 = smov %s10570_s0  ;;  %v8533_v22 = vld [vmem:[%s10570_s0 + $0x38] sm:$0xff]   ;;  %7823 = vmatprep.subr.bf16.mxu1 %v8534_v23  ;;  %v8540_v29 = vld [vmem:[%s10572_s5 + $0x20] sm:$0xff]   ;;  %v8544_v33 = vld [vmem:[%s10572_s5 + $0x10] sm:$0xff]  }
  0x30   : > { %631 = vadd.xlane.f32.xlu0 %v7341_v2  ;;  %635 = vadd.xlane.f32.xlu1 %v7345_v3  ;;  %v8535_v24 = vld [vmem:[%s10571_s26 + $0x30] sm:$0xff]   ;;  %v8537_v26 = vld [vmem:[%s10571_s26 + $0x28] sm:$0xff]   ;;  %v8539_v28 = vld [vmem:[%s10571_s26 + $0x20] sm:$0xff]  }
  0x31   : > { %7803 = vmatprep.subr.bf16.mxu0 %v8533_v22  ;;  %7824 = vmatpush3.bf16.msra.mxu1 %v8534_v23  ;;  %v8541_v30 = vld [vmem:[%s10571_s26 + $0x18] sm:$0xff]   ;;  %v8543_v32 = vld [vmem:[%s10571_s26 + $0x10] sm:$0xff]   ;;  %v8545_v34 = vld [vmem:[%s10571_s26 + $0x8] sm:$0xff]   ;;  %s10575_s28 = smov %s10574_s23 }
  0x32   : > { %7804 = vmatpush3.bf16.msra.mxu0 %v8533_v22  ;;  %7825 = vmatprep.subr.bf16.mxu1 %v8536_v25  ;;  %v8542_v31 = vld [vmem:[%s10572_s5 + $0x18] sm:$0xff]   ;;  %v8546_v35 = vld [vmem:[%s10572_s5 + $0x8] sm:$0xff]   ;;  %v8547_v36 = vld [vmem:[%s10571_s26] sm:$0xff]  }
  0x33   : > { %7805 = vmatprep.subr.bf16.mxu0 %v8535_v24  ;;  %v8548_v37 = vld [vmem:[%s10572_s5] sm:$0xff]   ;;  %v8565_v22 = vld [vmem:[%s10522_s9 + $0x8] sm:$0xff]  }
  0x34   : > { %633 = vadd.xlane.f32.xlu0 %v7342_v4  ;;  %637 = vadd.xlane.f32.xlu1 %v7346_v5  ;;  %v6457_v53 = vld [vmem:[%s10573_s19] ss:$0 sm:$0xff] }
  0x35   : > { %7826 = vmatpush3.bf16.msra.mxu1 %v8536_v25  ;;  %v6458_v58 = vld [vmem:[%s10574_s23] ss:$0 sm:$0xff] }
  0x36   : > { %7806 = vmatpush3.bf16.msra.mxu0 %v8535_v24  ;;  %7827 = vmatprep.subr.bf16.mxu1 %v8538_v27  ;;  %v8566_v23 = vld [vmem:[%s10522_s9] sm:$0xff]   ;;  %v8567_v24 = vld [vmem:[%s10571_s26 + $0x78] sm:$0xff]  }
  0x37   : > { %7807 = vmatprep.subr.bf16.mxu0 %v8537_v26  ;;  %v6459_v25 = vld [vmem:[%s10576_s4] ss:$0 sm:$0xff] }
  0x39   : > { %7828 = vmatpush3.bf16.msra.mxu1 %v8538_v27 }
  0x3a   : > { %7808 = vmatpush3.bf16.msra.mxu0 %v8537_v26  ;;  %7829 = vmatprep.subr.bf16.mxu1 %v8540_v29  ;;  %v6468_v26 = vld [vmem:[%s10519_s6] ss:$0 sm:$0xff] }
  0x3b   : > { %7809 = vmatprep.subr.bf16.mxu0 %v8539_v28 }
  0x3d   : > { %7830 = vmatpush3.bf16.msra.mxu1 %v8540_v29 }
  0x3e   : > { %7810 = vmatpush3.bf16.msra.mxu0 %v8539_v28  ;;  %7831 = vmatprep.subr.bf16.mxu1 %v8542_v31 }
  0x3f   : > { %7811 = vmatprep.subr.bf16.mxu0 %v8541_v30 }
  0x41   : > { %7832 = vmatpush3.bf16.msra.mxu1 %v8542_v31 }
  0x42   : > { %7812 = vmatpush3.bf16.msra.mxu0 %v8541_v30  ;;  %7833 = vmatprep.subr.bf16.mxu1 %v8544_v33 }
  0x43   : > { %7813 = vmatprep.subr.bf16.mxu0 %v8543_v32 }
  0x45   : > { %7834 = vmatpush3.bf16.msra.mxu1 %v8544_v33 }
  0x46   : > { %7814 = vmatpush3.bf16.msra.mxu0 %v8543_v32  ;;  %7835 = vmatprep.subr.bf16.mxu1 %v8546_v35 }
  0x47   : > { %7815 = vmatprep.subr.bf16.mxu0 %v8545_v34 }
  0x49   : > { %7836 = vmatpush3.bf16.msra.mxu1 %v8546_v35 }
  0x4a   : > { %7816 = vmatpush3.bf16.msra.mxu0 %v8545_v34  ;;  %7837 = vmatprep.subr.bf16.mxu1 %v8548_v37 }
  0x4b   : > { %7817 = vmatprep.subr.bf16.mxu0 %v8547_v36 }
  0x4d   : > { %7838 = vmatpush3.bf16.msra.mxu1 %v8548_v37 }
  0x4e   : > { %7818 = vmatpush3.bf16.msra.mxu0 %v8547_v36  ;;  %7863 = vmatprep.subr.bf16.mxu1 %v8565_v22 }
  0x4f   : > { %7843 = vmatprep.subr.bf16.mxu0 %v8549_v38 }
  0xb9   : > { %v632_v6 = vpop.xlane.xlu0 %631  ;;  %v636_v7 = vpop.xlane.xlu1 %635 }
  0xba   : > { %v640_v8 = vmul.f32 0.0078125, %v632_v6  ;;  %v642_v9 = vmul.f32 0.0078125, %v636_v7  ;;  %v8550_v7 = vld [vmem:[%s10520_s7 + $0x30] sm:$0xff]  }
  0xbc   : > { %v9217_v10 = vsub.f32 %v7341_v2, %v640_v8  ;;  %v9219_v11 = vsub.f32 %v7345_v3, %v642_v9  ;;  %v8551_v8 = vld [vmem:[%s10520_s7 + $0x28] sm:$0xff]   ;;  %v8552_v9 = vld [vmem:[%s10520_s7 + $0x20] sm:$0xff]  }
  0xbd   : > { %v634_v12 = vpop.xlane.xlu0 %633  ;;  %v638_v13 = vpop.xlane.xlu1 %637 }
  0xbe   : > { %v641_v14 = vmul.f32 0.0078125, %v634_v12  ;;  %v648_v15 = vmul.f32 %v9217_v10, %v9217_v10  ;;  %v643_v16 = vmul.f32 0.0078125, %v638_v13  ;;  %v650_v19 = vmul.f32 %v9219_v11, %v9219_v11  ;;  %v8555_v12 = vld [vmem:[%s10520_s7 + $0x8] sm:$0xff]   ;;  %v8556_v13 = vld [vmem:[%s10520_s7] sm:$0xff]  }
  0xc0   : > { %v9223_v17 = vsub.f32 %v7342_v4, %v641_v14  ;;  %652 = vadd.xlane.f32.xlu0 %v648_v15  ;;  %v9225_v18 = vsub.f32 %v7346_v5, %v643_v16  ;;  %v8557_v14 = vld [vmem:[%s10572_s5 + $0x78] sm:$0xff]   ;;  %v8558_v15 = vld [vmem:[%s10572_s5 + $0x70] sm:$0xff]   ;;  %v8559_v16 = vld [vmem:[%s10572_s5 + $0x68] sm:$0xff]  }
  0xc2   : > { %v649_v20 = vmul.f32 %v9223_v17, %v9223_v17  ;;  %v651_v21 = vmul.f32 %v9225_v18, %v9225_v18 }
  0xc4   : > { %656 = vadd.xlane.f32.xlu0 %v650_v19  ;;  %654 = vadd.xlane.f32.xlu1 %v649_v20  ;;  %v8562_v19 = vld [vmem:[%s10572_s5 + $0x50] sm:$0xff]   ;;  %v8563_v20 = vld [vmem:[%s10572_s5 + $0x48] sm:$0xff]  }
  0xc8   : > { %658 = vadd.xlane.f32.xlu1 %v651_v21  ;;  %v8564_v21 = vld [vmem:[%s10572_s5 + $0x40] sm:$0xff]  }
 0x149   : > { %v653_v39 = vpop.xlane.xlu0 %652 }
 0x14a   : > { %v660_v40 = vmul.f32 0.0078125, %v653_v39 }
 0x14c   : > { %v664_v41 = vadd.f32 1e-05, %v660_v40 }
 0x14d   : > { %v655_v42 = vpop.xlane.xlu1 %654  ;;  %v657_v43 = vpop.xlane.xlu0 %656 }
 0x14e   : > { %8741 = vrsqrt.f32 %v664_v41  ;;  %v661_v44 = vmul.f32 0.0078125, %v655_v42  ;;  %v662_v45 = vmul.f32 0.0078125, %v657_v43 }
 0x150   : > { %v665_v46 = vadd.f32 1e-05, %v661_v44  ;;  %v666_v47 = vadd.f32 1e-05, %v662_v45 }
 0x151   : > { %v659_v48 = vpop.xlane.xlu1 %658 }
 0x152   : > { %8743 = vrsqrt.f32 %v665_v46  ;;  %v663_v49 = vmul.f32 0.0078125, %v659_v48 }
 0x153   : > { %8745 = vrsqrt.f32 %v666_v47 }
 0x154   : > { %v667_v50 = vadd.f32 1e-05, %v663_v49 }
 0x156   : > { %8747 = vrsqrt.f32 %v667_v50 }
 0x15b   : > { %v8742_v51 = vpop.eup %8741 }
 0x15c   : > { %v672_v52 = vmul.f32 %v8742_v51, %v9217_v10  ;;  %v8553_v10 = vld [vmem:[%s10520_s7 + $0x18] sm:$0xff]  }
 0x15e   : > { %v682_v56 = vmul.f32 %v6457_v53, %v672_v52 }
 0x15f   : > { %v8744_v54 = vpop.eup %8743 }
 0x160   : > { %v8746_v55 = vpop.eup %8745  ;;  %v673_v57 = vmul.f32 %v8744_v54, %v9223_v17  ;;  %v692_v62 = vadd.f32 %v6458_v58, %v682_v56  ;;  %v8560_v17 = vld [vmem:[%s10572_s5 + $0x60] sm:$0xff]  }
 0x161   : > { %v674_v59 = vmul.f32 %v8746_v55, %v9219_v11  ;;  %v8554_v11 = vld [vmem:[%s10520_s7 + $0x10] sm:$0xff]   ;;  %v6477_v54 = vld [vmem:[%s10521_s8] ss:$0 sm:$0xff] }
 0x162   : > { %v683_v60 = vmul.f32 %v6457_v53, %v673_v57 }
 0x163   : > { %v8748_v61 = vpop.eup %8747  ;;  %v684_v0 = vmul.f32 %v6457_v53, %v674_v59 }
 0x164   : > { %v693_v63 = vadd.f32 %v6458_v58, %v683_v60  ;;  %v675_v1 = vmul.f32 %v8748_v61, %v9225_v18  ;;  %v8561_v18 = vld [vmem:[%s10572_s5 + $0x58] sm:$0xff]  }
 0x165   : > { %v694_v4 = vadd.f32 %v6458_v58, %v684_v0  ;;  %v8570_v0 = vld [vmem:[%s10571_s26 + $0x60] sm:$0xff]  }
 0x166   : > { %v9294_v2 = vpack.c.bf16 %v693_v63, %v692_v62  ;;  %v685_v3 = vmul.f32 %v6457_v53, %v675_v1  ;;  %v8568_v62 = vld [vmem:[%s10571_s26 + $0x70] sm:$0xff]   ;;  %v8569_v63 = vld [vmem:[%s10571_s26 + $0x68] sm:$0xff]   ;;  %v8571_v1 = vld [vmem:[%s10571_s26 + $0x58] sm:$0xff]  }
 0x168   : > { %v695_v5 = vadd.f32 %v6458_v58, %v685_v3  ;;  %7819 = vmatprep.mubr.bf16.mxu0 %v9294_v2  ;;  %7839 = vmatprep.mubr.bf16.mxu1 %v9294_v2  ;;  %v8572_v3 = vld [vmem:[%s10571_s26 + $0x50] sm:$0xff]  }
 0x16a   : > { %v9298_v6 = vpack.c.bf16 %v695_v5, %v694_v4  ;;  %v6545_v4 = vld [vmem:[%s10519_s6 + $0x1] ss:$0 sm:$0xff]  ;;  %v8573_v5 = vld [vmem:[%s10571_s26 + $0x48] sm:$0xff]  }
 0x16c   : > { %7820 = vmatmul.mubr.bf16.vlgmr.msra.gmra.mxu0 %v9298_v6  ;;  %7840 = vmatmul.mubr.bf16.vlgmr.msra.gmra.mxu1 %v9298_v6 }
 0x16d   : > { %7844 = vmatpush3.bf16.msra.mxu0 %v8549_v38  ;;  %7859 = vmatprep.mubr.bf16.mxu0 %v9294_v2 }
 0x16e   : > { %7845 = vmatprep.subr.bf16.mxu0 %v8550_v7  ;;  %7864 = vmatpush3.bf16.msra.mxu1 %v8565_v22  ;;  %v8577_v22 = vld [vmem:[%s10520_s7 + $0x68] sm:$0xff]  }
 0x16f   : > { %7865 = vmatprep.subr.bf16.mxu1 %v8566_v23 }
 0x171   : > { %7846 = vmatpush3.bf16.msra.mxu0 %v8550_v7 }
 0x172   : > { %7847 = vmatprep.subr.bf16.mxu0 %v8551_v8  ;;  %7866 = vmatpush3.bf16.msra.mxu1 %v8566_v23  ;;  %v8578_v23 = vld [vmem:[%s10520_s7 + $0x60] sm:$0xff]  }
 0x173   : > { %7871 = vmatprep.subr.bf16.mxu1 %v8567_v24 }
 0x175   : > { %7848 = vmatpush3.bf16.msra.mxu0 %v8551_v8 }
 0x176   : > { %7849 = vmatprep.subr.bf16.mxu0 %v8552_v9 }
 0x179   : > { %7850 = vmatpush3.bf16.msra.mxu0 %v8552_v9 }
 0x17a   : > { %7851 = vmatprep.subr.bf16.mxu0 %v8553_v10 }
 0x17d   : > { %7852 = vmatpush3.bf16.msra.mxu0 %v8553_v10  ;;  %v8574_v10 = vld [vmem:[%s10571_s26 + $0x40] sm:$0xff]  }
 0x17e   : > { %7853 = vmatprep.subr.bf16.mxu0 %v8554_v11 }
 0x181   : > { %7854 = vmatpush3.bf16.msra.mxu0 %v8554_v11 }
 0x182   : > { %7855 = vmatprep.subr.bf16.mxu0 %v8555_v12 }
 0x185   : > { %7856 = vmatpush3.bf16.msra.mxu0 %v8555_v12 }
 0x186   : > { %7857 = vmatprep.subr.bf16.mxu0 %v8556_v13 }
 0x189   : > { %7858 = vmatpush3.bf16.msra.mxu0 %v8556_v13 }
 0x18a   : > { %7891 = vmatprep.subr.bf16.mxu0 %v8557_v14 }
 0x18c   : > { %7860 = vmatmul.mubr.bf16.vlgmr.msra.gmra.mxu0 %v9298_v6 }
 0x18d   : > { %7892 = vmatpush3.bf16.msra.mxu0 %v8557_v14  ;;  %7907 = vmatprep.mubr.bf16.mxu0 %v9294_v2 }
 0x18e   : > { %7893 = vmatprep.subr.bf16.mxu0 %v8558_v15 }
 0x191   : > { %7894 = vmatpush3.bf16.msra.mxu0 %v8558_v15 }
 0x192   : > { %7895 = vmatprep.subr.bf16.mxu0 %v8559_v16 }
 0x195   : > { %7896 = vmatpush3.bf16.msra.mxu0 %v8559_v16 }
 0x196   : > { %7897 = vmatprep.subr.bf16.mxu0 %v8560_v17 }
 0x199   : > { %7898 = vmatpush3.bf16.msra.mxu0 %v8560_v17  ;;  %v8575_v17 = vld [vmem:[%s10520_s7 + $0x78] sm:$0xff]  }
 0x19a   : > { %7899 = vmatprep.subr.bf16.mxu0 %v8561_v18 }
 0x19d   : > { %7900 = vmatpush3.bf16.msra.mxu0 %v8561_v18 }
 0x19e   : > { %7901 = vmatprep.subr.bf16.mxu0 %v8562_v19 }
 0x1a1   : > { %7902 = vmatpush3.bf16.msra.mxu0 %v8562_v19 }
 0x1a2   : > { %7903 = vmatprep.subr.bf16.mxu0 %v8563_v20 }
 0x1a5   : > { %7904 = vmatpush3.bf16.msra.mxu0 %v8563_v20 }
 0x1a6   : > { %7905 = vmatprep.subr.bf16.mxu0 %v8564_v21 }
 0x1a9   : > { %7906 = vmatpush3.bf16.msra.mxu0 %v8564_v21  ;;  %v8576_v21 = vld [vmem:[%s10520_s7 + $0x70] sm:$0xff]  }
 0x1ac   : > { %7908 = vmatmul.mubr.bf16.vlgmr.msra.gmra.mxu0 %v9298_v6 }
 0x22c   : > { %v7821_v27 = vpop.f32.mrf.mxu0  ;;  %v7841_v28 = vpop.f32.mrf.mxu1 }
 0x22d   : > { %v812_v29 = vadd.f32 %v7821_v27, %v6459_v25  ;;  %v932_v30 = vadd.f32 %v7841_v28, %v6468_v26  ;;  %v8582_v27 = vld [vmem:[%s10520_s7 + $0x40] sm:$0xff]   ;;  %v8583_v28 = vld [vmem:[%s10572_s5 + $0xb8] sm:$0xff]  }
 0x22e   : > { %v803_v31 = vpop.f32.mrf.mxu0  ;;  %v923_v32 = vpop.f32.mrf.mxu1 }
 0x22f   : > { %v7245_v33 = vpack.c.bf16 %v812_v29, %v812_v29  ;;  %v7249_v34 = vpack.c.bf16 %v932_v30, %v932_v30  ;;  %v804_v35 = vadd.f32 %v6459_v25, %v803_v31  ;;  %v924_v36 = vadd.f32 %v6468_v26, %v923_v32  ;;  %v8584_v29 = vld [vmem:[%s10572_s5 + $0xb0] sm:$0xff]   ;;  %v8585_v30 = vld [vmem:[%s10572_s5 + $0xa8] sm:$0xff]   ;;  %v8586_v31 = vld [vmem:[%s10572_s5 + $0xa0] sm:$0xff]  }
 0x230   : > { %v7822_v37 = vpop.f32.mrf.mxu0  ;;  %v7842_v38 = vpop.f32.mrf.mxu1  ;;  %v8587_v32 = vld [vmem:[%s10572_s5 + $0x98] sm:$0xff]  }
 0x231   : > { %1151 = vst.msk [vmem:[#allocation2 + $0x8] sm:$0xf] %vm1148_vm0, %v7245_v33  ;;  %1171 = vst.msk [vmem:[#allocation3 + $0x8] sm:$0xf] %vm1148_vm0, %v7249_v34  ;;  %v7243_v39 = vpack.c.bf16 %v804_v35, %v804_v35  ;;  %v7247_v40 = vpack.c.bf16 %v924_v36, %v924_v36  ;;  %v815_v41 = vadd.f32 %v7822_v37, %v6459_v25  ;;  %v8588_v33 = vld [vmem:[%s10572_s5 + $0x90] sm:$0xff]   ;;  %v8589_v34 = vld [vmem:[%s10572_s5 + $0x88] sm:$0xff]  }
 0x232   : > { %v935_v42 = vadd.f32 %v7842_v38, %v6468_v26  ;;  %v806_v43 = vpop.f32.mrf.mxu0  ;;  %v926_v44 = vpop.f32.mrf.mxu1  ;;  %v8590_v35 = vld [vmem:[%s10572_s5 + $0x80] sm:$0xff]   ;;  %v8591_v36 = vld [vmem:[%s10522_s9 + $0x18] sm:$0xff]   ;;  %v8592_v37 = vld [vmem:[%s10522_s9 + $0x10] sm:$0xff]  }
 0x233   : > { %1149 = vst.msk [vmem:[#allocation2] sm:$0xf] %vm1148_vm0, %v7243_v39  ;;  %1169 = vst.msk [vmem:[#allocation3] sm:$0xf] %vm1148_vm0, %v7247_v40  ;;  %v7246_v45 = vpack.c.bf16 %v815_v41, %v815_v41  ;;  %v807_v47 = vadd.f32 %v6459_v25, %v806_v43  ;;  %v927_v48 = vadd.f32 %v6468_v26, %v926_v44  ;;  %v8580_v25 = vld [vmem:[%s10520_s7 + $0x50] sm:$0xff]   ;;  %v8581_v26 = vld [vmem:[%s10520_s7 + $0x48] sm:$0xff]   ;;  %7931 = vmatprep.subr.bf16.mxu0 %v8591_v36 }
 0x234   : > { %v7250_v46 = vpack.c.bf16 %v935_v42, %v935_v42  ;;  %7932 = vmatpush3.bf16.msra.mxu0 %v8591_v36  ;;  %v8593_v38 = vld [vmem:[%s10571_s26 + $0xb8] sm:$0xff]   ;;  %v8604_v36 = vld [vmem:[%s10520_s7 + $0xa0] sm:$0xff]  }
 0x235   : > { %1152 = vst.msk [vmem:[#allocation2 + $0xc] sm:$0xf] %vm1148_vm0, %v7246_v45  ;;  %v7244_v49 = vpack.c.bf16 %v807_v47, %v807_v47  ;;  %v7248_v50 = vpack.c.bf16 %v927_v48, %v927_v48  ;;  %7933 = vmatprep.subr.bf16.mxu0 %v8592_v37  ;;  %v6519_v45 = vld [vmem:[%s10576_s4 + $0x1] ss:$0 sm:$0xff] }
 0x236   : > { %1172 = vst.msk [vmem:[#allocation3 + $0xc] sm:$0xf] %vm1148_vm0, %v7250_v46 }
 0x237   : > { %1150 = vst.msk [vmem:[#allocation2 + $0x4] sm:$0xf] %vm1148_vm0, %v7244_v49  ;;  %1170 = vst.msk [vmem:[#allocation3 + $0x4] sm:$0xf] %vm1148_vm0, %v7248_v50 }
 0x238   : > { %7934 = vmatpush3.bf16.msra.mxu0 %v8592_v37  ;;  %v8605_v37 = vld [vmem:[%s10520_s7 + $0x98] sm:$0xff]  }
 0x239   : > { %7939 = vmatprep.subr.bf16.mxu0 %v8593_v38 }
 0x24c   : > { %v7861_v51 = vpop.f32.mrf.mxu0 }
 0x24d   : > { %v1052_v59 = vadd.f32 %v7861_v51, %v6477_v54 }
 0x24e   : > { %v1043_v52 = vpop.f32.mrf.mxu0 }
 0x24f   : > { %v1044_v57 = vadd.f32 %v6477_v54, %v1043_v52  ;;  %v9474_v52 = vld [vmem:[%s9210_s2 + $0x10] sm:$0xff]  }
 0x250   : > { %v7862_v53 = vpop.f32.mrf.mxu0 }
 0x251   : > { %v1055_v55 = vadd.f32 %v7862_v53, %v6477_v54 }
 0x252   : > { %v1046_v56 = vpop.f32.mrf.mxu0 }
 0x253   : > { %v1047_v58 = vadd.f32 %v6477_v54, %v1046_v56  ;;  %v1059_v61 = vpack.c.bf16 %v1055_v55, %v1052_v59  ;;  %v7389_v55 = vunpack.c.l.bf16 %v9474_v52  ;;  %v7390_v56 = vunpack.c.h.bf16 %v9474_v52 }
 0x255   : > { %v1058_v60 = vpack.c.bf16 %v1047_v58, %v1044_v57  ;;  %2725 = vadd.xlane.f32.xlu0 %v7389_v55  ;;  %2727 = vadd.xlane.f32.xlu1 %v7390_v56 }
 0x257   : > { %7867 = vmatprep.mubr.msk.bf16.mxu1 %vm1076_vm1, %v1058_v60  ;;  %v9485_v60 = vld [vmem:[%s9210_s2 + $0x18] sm:$0xff]  }
 0x258   : > { %7868 = vmatmul.mubr.msk.bf16.vlgmr.msra.gmra.mxu1 %vm1076_vm1, %v1059_v61 }
 0x259   : > { %7872 = vmatpush3.bf16.msra.mxu1 %v8567_v24  ;;  %7887 = vmatprep.mubr.bf16.mxu1 %v9294_v2  ;;  %v8579_v24 = vld [vmem:[%s10520_s7 + $0x58] sm:$0xff]  }
 0x25a   : > { %7873 = vmatprep.subr.bf16.mxu1 %v8568_v62 }
 0x25d   : > { %7874 = vmatpush3.bf16.msra.mxu1 %v8568_v62  ;;  %v7393_v62 = vunpack.c.l.bf16 %v9485_v60 }
 0x25e   : > { %7875 = vmatprep.subr.bf16.mxu1 %v8569_v63 }
 0x25f   : > { %2729 = vadd.xlane.f32.xlu0 %v7393_v62 }
 0x261   : > { %7876 = vmatpush3.bf16.msra.mxu1 %v8569_v63  ;;  %v7394_v63 = vunpack.c.h.bf16 %v9485_v60  ;;  %v8618_v60 = vld [vmem:[%s10522_s9 + $0x20] sm:$0xff]  }
 0x262   : > { %7877 = vmatprep.subr.bf16.mxu1 %v8570_v0 }
 0x263   : > { %2731 = vadd.xlane.f32.xlu1 %v7394_v63 }
 0x265   : > { %7878 = vmatpush3.bf16.msra.mxu1 %v8570_v0 }
 0x266   : > { %7879 = vmatprep.subr.bf16.mxu1 %v8571_v1 }
 0x269   : > { %7880 = vmatpush3.bf16.msra.mxu1 %v8571_v1 }
 0x26a   : > { %7881 = vmatprep.subr.bf16.mxu1 %v8572_v3 }
 0x26c   : > { %v7909_v7 = vpop.f32.mrf.mxu0 }
 0x26d   : > { %7882 = vmatpush3.bf16.msra.mxu1 %v8572_v3  ;;  %v1431_v8 = vadd.f32 %v7909_v7, %v6545_v4 }
 0x26e   : > { %v1422_v9 = vpop.f32.mrf.mxu0  ;;  %7883 = vmatprep.subr.bf16.mxu1 %v8573_v5 }
 0x26f   : > { %v7261_v11 = vpack.c.bf16 %v1431_v8, %v1431_v8  ;;  %v1423_v12 = vadd.f32 %v6545_v4, %v1422_v9 }
 0x270   : > { %v7910_v13 = vpop.f32.mrf.mxu0 }
 0x271   : > { %1676 = vst.msk [vmem:[#allocation3 + $0x28] sm:$0xf] %vm1148_vm0, %v7261_v11  ;;  %v7259_v14 = vpack.c.bf16 %v1423_v12, %v1423_v12  ;;  %7884 = vmatpush3.bf16.msra.mxu1 %v8573_v5  ;;  %v1434_v15 = vadd.f32 %v7910_v13, %v6545_v4  ;;  %v8594_v13 = vld [vmem:[%s10571_s26 + $0xb0] sm:$0xff]  }
 0x272   : > { %v1425_v16 = vpop.f32.mrf.mxu0  ;;  %7885 = vmatprep.subr.bf16.mxu1 %v8574_v10 }
 0x273   : > { %1674 = vst.msk [vmem:[#allocation3 + $0x20] sm:$0xf] %vm1148_vm0, %v7259_v14  ;;  %v7262_v18 = vpack.c.bf16 %v1434_v15, %v1434_v15  ;;  %v1426_v19 = vadd.f32 %v6545_v4, %v1425_v16  ;;  %v6571_v4 = vld [vmem:[%s10521_s8 + $0x1] ss:$0 sm:$0xff]  ;;  %v8595_v14 = vld [vmem:[%s10571_s26 + $0xa8] sm:$0xff]   ;;  %v8597_v16 = vld [vmem:[%s10571_s26 + $0x98] sm:$0xff]  }
 0x274   : > { %v8596_v15 = vld [vmem:[%s10571_s26 + $0xa0] sm:$0xff]  }
 0x275   : > { %1677 = vst.msk [vmem:[#allocation3 + $0x2c] sm:$0xf] %vm1148_vm0, %v7262_v18  ;;  %v7260_v20 = vpack.c.bf16 %v1426_v19, %v1426_v19  ;;  %7886 = vmatpush3.bf16.msra.mxu1 %v8574_v10  ;;  %v6643_v18 = vld [vmem:[%s10519_s6 + $0x2] ss:$0 sm:$0xff]  ;;  %v8599_v19 = vld [vmem:[%s10571_s26 + $0x88] sm:$0xff]  }
 0x276   : > { %7911 = vmatprep.subr.bf16.mxu1 %v8575_v17 }
 0x277   : > { %1675 = vst.msk [vmem:[#allocation3 + $0x24] sm:$0xf] %vm1148_vm0, %v7260_v20 }
 0x278   : > { %7888 = vmatmul.mubr.bf16.vlgmr.msra.gmra.mxu1 %v9298_v6 }
 0x279   : > { %7912 = vmatpush3.bf16.msra.mxu1 %v8575_v17  ;;  %7927 = vmatprep.mubr.bf16.mxu1 %v9294_v2  ;;  %v8598_v17 = vld [vmem:[%s10571_s26 + $0x90] sm:$0xff]  }
 0x27a   : > { %7913 = vmatprep.subr.bf16.mxu1 %v8576_v21 }
 0x27d   : > { %7914 = vmatpush3.bf16.msra.mxu1 %v8576_v21 }
 0x27e   : > { %7915 = vmatprep.subr.bf16.mxu1 %v8577_v22 }
 0x281   : > { %7916 = vmatpush3.bf16.msra.mxu1 %v8577_v22 }
 0x282   : > { %7917 = vmatprep.subr.bf16.mxu1 %v8578_v23 }
 0x285   : > { %7918 = vmatpush3.bf16.msra.mxu1 %v8578_v23  ;;  %v8600_v23 = vld [vmem:[%s10571_s26 + $0x80] sm:$0xff]  }
 0x286   : > { %7919 = vmatprep.subr.bf16.mxu1 %v8579_v24 }
 0x289   : > { %7920 = vmatpush3.bf16.msra.mxu1 %v8579_v24 }
 0x28a   : > { %7921 = vmatprep.subr.bf16.mxu1 %v8580_v25 }
 0x28d   : > { %7922 = vmatpush3.bf16.msra.mxu1 %v8580_v25 }
 0x28e   : > { %7923 = vmatprep.subr.bf16.mxu1 %v8581_v26 }
 0x291   : > { %7924 = vmatpush3.bf16.msra.mxu1 %v8581_v26 }
 0x292   : > { %7925 = vmatprep.subr.bf16.mxu1 %v8582_v27 }
 0x295   : > { %7926 = vmatpush3.bf16.msra.mxu1 %v8582_v27 }
 0x296   : > { %7959 = vmatprep.subr.bf16.mxu1 %v8583_v28 }
 0x298   : > { %7928 = vmatmul.mubr.bf16.vlgmr.msra.gmra.mxu1 %v9298_v6 }
 0x299   : > { %7960 = vmatpush3.bf16.msra.mxu1 %v8583_v28  ;;  %7975 = vmatprep.mubr.bf16.mxu1 %v9294_v2 }
 0x29a   : > { %7961 = vmatprep.subr.bf16.mxu1 %v8584_v29 }
 0x29d   : > { %7962 = vmatpush3.bf16.msra.mxu1 %v8584_v29 }
 0x29e   : > { %7963 = vmatprep.subr.bf16.mxu1 %v8585_v30 }
 0x2a1   : > { %7964 = vmatpush3.bf16.msra.mxu1 %v8585_v30  ;;  %v8601_v30 = vld [vmem:[%s10520_s7 + $0xb8] sm:$0xff]  }
 0x2a2   : > { %7965 = vmatprep.subr.bf16.mxu1 %v8586_v31 }
 0x2a5   : > { %7966 = vmatpush3.bf16.msra.mxu1 %v8586_v31 }
 0x2a6   : > { %7967 = vmatprep.subr.bf16.mxu1 %v8587_v32 }
 0x2a9   : > { %7968 = vmatpush3.bf16.msra.mxu1 %v8587_v32 }
 0x2aa   : > { %7969 = vmatprep.subr.bf16.mxu1 %v8588_v33 }
 0x2ad   : > { %7970 = vmatpush3.bf16.msra.mxu1 %v8588_v33 }
 0x2ae   : > { %7971 = vmatprep.subr.bf16.mxu1 %v8589_v34 }
 0x2b1   : > { %7972 = vmatpush3.bf16.msra.mxu1 %v8589_v34  ;;  %v8602_v34 = vld [vmem:[%s10520_s7 + $0xb0] sm:$0xff]  }
 0x2b2   : > { %7973 = vmatprep.subr.bf16.mxu1 %v8590_v35 }
 0x2b5   : > { %7974 = vmatpush3.bf16.msra.mxu1 %v8590_v35  ;;  %v8603_v35 = vld [vmem:[%s10520_s7 + $0xa8] sm:$0xff]  }
 0x2b8   : > { %7976 = vmatmul.mubr.bf16.vlgmr.msra.gmra.mxu1 %v9298_v6 }
 0x318   : > { %v7869_v39 = vpop.f32.mrf.mxu1 }
 0x31a   : > { %v1117_v40 = vpop.f32.mrf.mxu1 }
 0x31c   : > { %v7870_v41 = vpop.f32.mrf.mxu1 }
 0x31d   : > { %v7355_v42 = vpack.c.bf16 %v7870_v41, %v7869_v39  ;;  %v8607_v39 = vld [vmem:[%s10520_s7 + $0x88] sm:$0xff]   ;;  %v8609_v41 = vld [vmem:[%s10572_s5 + $0xf8] sm:$0xff]  }
 0x31e   : > { %v1120_v43 = vpop.f32.mrf.mxu1 }
 0x31f   : > { %7444 = vst [vmem:[#allocation4 + $0x8] sm:$0xff] %v7355_v42   ;;  %v7350_v44 = vpack.c.bf16 %v1120_v43, %v1117_v40  ;;  %v8608_v40 = vld [vmem:[%s10520_s7 + $0x80] sm:$0xff]   ;;  %v8610_v42 = vld [vmem:[%s10572_s5 + $0xf0] sm:$0xff]   ;;  %v8611_v43 = vld [vmem:[%s10572_s5 + $0xe8] sm:$0xff]  }
 0x321   : > { %7351 = vst [vmem:[#allocation4] sm:$0xff] %v7350_v44   ;;  %v8612_v44 = vld [vmem:[%s10572_s5 + $0xe0] sm:$0xff]  }
 0x338   : > { %v7889_v46 = vpop.f32.mrf.mxu1 }
 0x339   : > { %v1309_v47 = vadd.f32 %v7889_v46, %v6519_v45  ;;  %v8614_v46 = vld [vmem:[%s10572_s5 + $0xd0] sm:$0xff]  }
 0x33a   : > { %v1300_v48 = vpop.f32.mrf.mxu1 }
 0x33b   : > { %v7257_v49 = vpack.c.bf16 %v1309_v47, %v1309_v47  ;;  %v1301_v50 = vadd.f32 %v6519_v45, %v1300_v48  ;;  %v8615_v47 = vld [vmem:[%s10572_s5 + $0xc8] sm:$0xff]   ;;  %v8616_v48 = vld [vmem:[%s10572_s5 + $0xc0] sm:$0xff]  }
 0x33c   : > { %v7890_v51 = vpop.f32.mrf.mxu1 }
 0x33d   : > { %1654 = vst.msk [vmem:[#allocation2 + $0x28] sm:$0xf] %vm1148_vm0, %v7257_v49  ;;  %v7255_v53 = vpack.c.bf16 %v1301_v50, %v1301_v50  ;;  %v1312_v54 = vadd.f32 %v7890_v51, %v6519_v45  ;;  %v2728_v49 = vpop.xlane.xlu1 %2727  ;;  %v2726_v50 = vpop.xlane.xlu0 %2725 }
 0x33e   : > { %v1303_v57 = vpop.f32.mrf.mxu1  ;;  %v2734_v51 = vmul.f32 0.0078125, %v2728_v49 }
 0x33f   : > { %1652 = vst.msk [vmem:[#allocation2 + $0x20] sm:$0xf] %vm1148_vm0, %v7255_v53  ;;  %v7258_v58 = vpack.c.bf16 %v1312_v54, %v1312_v54  ;;  %v1304_v59 = vadd.f32 %v6519_v45, %v1303_v57  ;;  %v8613_v45 = vld [vmem:[%s10572_s5 + $0xd8] sm:$0xff]   ;;  %v2733_v53 = vmul.f32 0.0078125, %v2726_v50 }
 0x340   : > { %v9584_v54 = vsub.f32 %v7390_v56, %v2734_v51 }
 0x341   : > { %1655 = vst.msk [vmem:[#allocation2 + $0x2c] sm:$0xf] %vm1148_vm0, %v7258_v58  ;;  %v7256_v61 = vpack.c.bf16 %v1304_v59, %v1304_v59  ;;  %v9588_v57 = vsub.f32 %v7389_v55, %v2733_v53  ;;  %v2732_v58 = vpop.xlane.xlu1 %2731  ;;  %v2730_v59 = vpop.xlane.xlu0 %2729 }
 0x343   : > { %1653 = vst.msk [vmem:[#allocation2 + $0x24] sm:$0xf] %vm1148_vm0, %v7256_v61  ;;  %v2736_v61 = vmul.f32 0.0078125, %v2732_v58 }
 0x358   : > { %v7929_v0 = vpop.f32.mrf.mxu1 }
 0x359   : > { %v1553_v10 = vadd.f32 %v7929_v0, %v6571_v4  ;;  %v2735_v0 = vmul.f32 0.0078125, %v2730_v59 }
 0x35a   : > { %v1544_v1 = vpop.f32.mrf.mxu1 }
 0x35b   : > { %v1545_v8 = vadd.f32 %v6571_v4, %v1544_v1  ;;  %v2742_v1 = vmul.f32 %v9584_v54, %v9584_v54  ;;  %v9600_v56 = vsub.f32 %v7393_v62, %v2735_v0  ;;  %v8619_v62 = vld [vmem:[%s10571_s26 + $0xf8] sm:$0xff]  }
 0x35c   : > { %v7930_v3 = vpop.f32.mrf.mxu1 }
 0x35d   : > { %v1556_v5 = vadd.f32 %v7930_v3, %v6571_v4  ;;  %v2741_v3 = vmul.f32 %v9588_v57, %v9588_v57  ;;  %2747 = vadd.xlane.f32.xlu1 %v2742_v1  ;;  %v2743_v55 = vmul.f32 %v9600_v56, %v9600_v56  ;;  %v8627_v1 = vld [vmem:[%s10520_s7 + $0xf8] sm:$0xff]  }
 0x35e   : > { %v1547_v7 = vpop.f32.mrf.mxu1 }
 0x35f   : > { %v1548_v9 = vadd.f32 %v6571_v4, %v1547_v7  ;;  %v1560_v12 = vpack.c.bf16 %v1556_v5, %v1553_v10  ;;  %v9596_v4 = vsub.f32 %v7394_v63, %v2736_v61  ;;  %2745 = vadd.xlane.f32.xlu0 %v2741_v3  ;;  %v8617_v5 = vld [vmem:[%s10522_s9 + $0x28] sm:$0xff]  }
 0x360   : > { %7999 = vmatprep.subr.bf16.mxu1 %v8617_v5 }
 0x361   : > { %v1559_v11 = vpack.c.bf16 %v1548_v9, %v1545_v8  ;;  %v2744_v52 = vmul.f32 %v9596_v4, %v9596_v4  ;;  %8000 = vmatpush3.bf16.msra.mxu1 %v8617_v5 }
 0x362   : > { %8001 = vmatprep.subr.bf16.mxu1 %v8618_v60 }
 0x363   : > { %7935 = vmatprep.mubr.msk.bf16.mxu0 %vm1076_vm1, %v1559_v11  ;;  %2751 = vadd.xlane.f32.xlu1 %v2744_v52 }
 0x364   : > { %7936 = vmatmul.mubr.msk.bf16.vlgmr.msra.gmra.mxu0 %vm1076_vm1, %v1560_v12  ;;  %2749 = vadd.xlane.f32.xlu0 %v2743_v55  ;;  %v6617_v12 = vld [vmem:[%s10576_s4 + $0x2] ss:$0 sm:$0xff] }
 0x365   : > { %7940 = vmatpush3.bf16.msra.mxu0 %v8593_v38  ;;  %7955 = vmatprep.mubr.bf16.mxu0 %v9294_v2  ;;  %v8606_v38 = vld [vmem:[%s10520_s7 + $0x90] sm:$0xff]  }
 0x366   : > { %7941 = vmatprep.subr.bf16.mxu0 %v8594_v13  ;;  %8002 = vmatpush3.bf16.msra.mxu1 %v8618_v60 }
 0x367   : > { %8007 = vmatprep.subr.bf16.mxu1 %v8619_v62 }
 0x369   : > { %7942 = vmatpush3.bf16.msra.mxu0 %v8594_v13 }
 0x36a   : > { %7943 = vmatprep.subr.bf16.mxu0 %v8595_v14 }
 0x36d   : > { %7944 = vmatpush3.bf16.msra.mxu0 %v8595_v14 }
 0x36e   : > { %7945 = vmatprep.subr.bf16.mxu0 %v8596_v15 }
 0x371   : > { %7946 = vmatpush3.bf16.msra.mxu0 %v8596_v15 }
 0x372   : > { %7947 = vmatprep.subr.bf16.mxu0 %v8597_v16 }
 0x375   : > { %7948 = vmatpush3.bf16.msra.mxu0 %v8597_v16 }
 0x376   : > { %7949 = vmatprep.subr.bf16.mxu0 %v8598_v17 }
 0x378   : > { %v7977_v20 = vpop.f32.mrf.mxu1 }
 0x379   : > { %7950 = vmatpush3.bf16.msra.mxu0 %v8598_v17  ;;  %v1938_v21 = vadd.f32 %v7977_v20, %v6643_v18 }
 0x37a   : > { %v1929_v22 = vpop.f32.mrf.mxu1  ;;  %7951 = vmatprep.subr.bf16.mxu0 %v8599_v19 }
 0x37b   : > { %v7273_v24 = vpack.c.bf16 %v1938_v21, %v1938_v21  ;;  %v1930_v25 = vadd.f32 %v6643_v18, %v1929_v22 }
 0x37c   : > { %v7978_v26 = vpop.f32.mrf.mxu1 }
 0x37d   : > { %2183 = vst.msk [vmem:[#allocation3 + $0x48] sm:$0xf] %vm1148_vm0, %v7273_v24  ;;  %v7271_v27 = vpack.c.bf16 %v1930_v25, %v1930_v25  ;;  %7952 = vmatpush3.bf16.msra.mxu0 %v8599_v19  ;;  %v1941_v28 = vadd.f32 %v7978_v26, %v6643_v18 }
 0x37e   : > { %v1932_v29 = vpop.f32.mrf.mxu1  ;;  %7953 = vmatprep.subr.bf16.mxu0 %v8600_v23 }
 0x37f   : > { %2181 = vst.msk [vmem:[#allocation3 + $0x40] sm:$0xf] %vm1148_vm0, %v7271_v27  ;;  %v7274_v31 = vpack.c.bf16 %v1941_v28, %v1941_v28  ;;  %v1933_v32 = vadd.f32 %v6643_v18, %v1932_v29  ;;  %v6669_v28 = vld [vmem:[%s10521_s8 + $0x2] ss:$0 sm:$0xff] }
 0x381   : > { %2184 = vst.msk [vmem:[#allocation3 + $0x4c] sm:$0xf] %vm1148_vm0, %v7274_v31  ;;  %v7272_v33 = vpack.c.bf16 %v1933_v32, %v1933_v32  ;;  %7954 = vmatpush3.bf16.msra.mxu0 %v8600_v23 }
 0x382   : > { %7979 = vmatprep.subr.bf16.mxu0 %v8601_v30 }
 0x383   : > { %2182 = vst.msk [vmem:[#allocation3 + $0x44] sm:$0xf] %vm1148_vm0, %v7272_v33 }
 0x384   : > { %7956 = vmatmul.mubr.bf16.vlgmr.msra.gmra.mxu0 %v9298_v6 }
 0x385   : > { %7980 = vmatpush3.bf16.msra.mxu0 %v8601_v30  ;;  %7995 = vmatprep.mubr.bf16.mxu0 %v9294_v2 }
 0x386   : > { %7981 = vmatprep.subr.bf16.mxu0 %v8602_v34 }
 0x389   : > { %7982 = vmatpush3.bf16.msra.mxu0 %v8602_v34 }
 0x38a   : > { %7983 = vmatprep.subr.bf16.mxu0 %v8603_v35 }
 0x38d   : > { %7984 = vmatpush3.bf16.msra.mxu0 %v8603_v35 }
 0x38e   : > { %7985 = vmatprep.subr.bf16.mxu0 %v8604_v36 }
 0x391   : > { %7986 = vmatpush3.bf16.msra.mxu0 %v8604_v36  ;;  %v8620_v36 = vld [vmem:[%s10571_s26 + $0xf0] sm:$0xff]  }
 0x392   : > { %7987 = vmatprep.subr.bf16.mxu0 %v8605_v37 }
 0x395   : > { %7988 = vmatpush3.bf16.msra.mxu0 %v8605_v37  ;;  %v8621_v37 = vld [vmem:[%s10571_s26 + $0xe8] sm:$0xff]  }
 0x396   : > { %7989 = vmatprep.subr.bf16.mxu0 %v8606_v38 }
 0x399   : > { %7990 = vmatpush3.bf16.msra.mxu0 %v8606_v38  ;;  %v8622_v38 = vld [vmem:[%s10571_s26 + $0xe0] sm:$0xff]  }
 0x39a   : > { %7991 = vmatprep.subr.bf16.mxu0 %v8607_v39 }
 0x39d   : > { %7992 = vmatpush3.bf16.msra.mxu0 %v8607_v39  ;;  %v8623_v39 = vld [vmem:[%s10571_s26 + $0xd8] sm:$0xff]  }
 0x39e   : > { %7993 = vmatprep.subr.bf16.mxu0 %v8608_v40 }
 0x3a1   : > { %7994 = vmatpush3.bf16.msra.mxu0 %v8608_v40  ;;  %v8624_v40 = vld [vmem:[%s10571_s26 + $0xd0] sm:$0xff]  }
 0x3a2   : > { %8027 = vmatprep.subr.bf16.mxu0 %v8609_v41 }
 0x3a4   : > { %7996 = vmatmul.mubr.bf16.vlgmr.msra.gmra.mxu0 %v9298_v6 }
 0x3a5   : > { %8028 = vmatpush3.bf16.msra.mxu0 %v8609_v41  ;;  %8043 = vmatprep.mubr.bf16.mxu0 %v9294_v2  ;;  %v6741_v41 = vld [vmem:[%s10519_s6 + $0x3] ss:$0 sm:$0xff] }
 0x3a6   : > { %8029 = vmatprep.subr.bf16.mxu0 %v8610_v42 }
 0x3a9   : > { %8030 = vmatpush3.bf16.msra.mxu0 %v8610_v42  ;;  %v8625_v42 = vld [vmem:[%s10571_s26 + $0xc8] sm:$0xff]  }
 0x3aa   : > { %8031 = vmatprep.subr.bf16.mxu0 %v8611_v43 }
 0x3ad   : > { %8032 = vmatpush3.bf16.msra.mxu0 %v8611_v43 }
 0x3ae   : > { %8033 = vmatprep.subr.bf16.mxu0 %v8612_v44 }
 0x3b1   : > { %8034 = vmatpush3.bf16.msra.mxu0 %v8612_v44 }
 0x3b2   : > { %8035 = vmatprep.subr.bf16.mxu0 %v8613_v45 }
 0x3b5   : > { %8036 = vmatpush3.bf16.msra.mxu0 %v8613_v45 }
 0x3b6   : > { %8037 = vmatprep.subr.bf16.mxu0 %v8614_v46 }
 0x3b9   : > { %8038 = vmatpush3.bf16.msra.mxu0 %v8614_v46  ;;  %v8626_v46 = vld [vmem:[%s10571_s26 + $0xc0] sm:$0xff]  }
 0x3ba   : > { %8039 = vmatprep.subr.bf16.mxu0 %v8615_v47 }
 0x3bd   : > { %8040 = vmatpush3.bf16.msra.mxu0 %v8615_v47 }
 0x3be   : > { %8041 = vmatprep.subr.bf16.mxu0 %v8616_v48 }
 0x3c1   : > { %8042 = vmatpush3.bf16.msra.mxu0 %v8616_v48 }
 0x3c4   : > { %8044 = vmatmul.mubr.bf16.vlgmr.msra.gmra.mxu0 %v9298_v6 }
 0x3e6   : > { %v2748_v49 = vpop.xlane.xlu1 %2747 }
 0x3e7   : > { %v2754_v51 = vmul.f32 0.0078125, %v2748_v49  ;;  %v6715_v49 = vld [vmem:[%s10576_s4 + $0x3] ss:$0 sm:$0xff] }
 0x3e8   : > { %v2746_v53 = vpop.xlane.xlu0 %2745 }
 0x3e9   : > { %v2753_v61 = vmul.f32 0.0078125, %v2746_v53  ;;  %v2758_v55 = vadd.f32 1e-05, %v2754_v51 }
 0x3eb   : > { %v2757_v60 = vadd.f32 1e-05, %v2753_v61  ;;  %8749 = vrsqrt.f32 %v2758_v55 }
 0x3ed   : > { %8751 = vrsqrt.f32 %v2757_v60 }
 0x424   : > { %v7937_v63 = vpop.f32.mrf.mxu0 }
 0x426   : > { %v1618_v7 = vpop.f32.mrf.mxu0 }
 0x428   : > { %v7938_v8 = vpop.f32.mrf.mxu0 }
 0x429   : > { %v7365_v9 = vpack.c.bf16 %v7938_v8, %v7937_v63  ;;  %v8629_v63 = vld [vmem:[%s10520_s7 + $0xe8] sm:$0xff]   ;;  %v8631_v8 = vld [vmem:[%s10520_s7 + $0xd8] sm:$0xff]  }
 0x42a   : > { %v1621_v10 = vpop.f32.mrf.mxu0 }
 0x42b   : > { %7445 = vst [vmem:[#allocation4 + $0x28] sm:$0xff] %v7365_v9   ;;  %v7360_v11 = vpack.c.bf16 %v1621_v10, %v1618_v7  ;;  %v8630_v7 = vld [vmem:[%s10520_s7 + $0xe0] sm:$0xff]   ;;  %v8750_v9 = vpop.eup %8749  ;;  %v8632_v10 = vld [vmem:[%s10520_s7 + $0xd0] sm:$0xff]  }
 0x42d   : > { %7361 = vst [vmem:[#allocation4 + $0x20] sm:$0xff] %v7360_v11   ;;  %v2766_v11 = vmul.f32 %v8750_v9, %v9584_v54  ;;  %v8634_v54 = vld [vmem:[%s10520_s7 + $0xc0] sm:$0xff]  }
 0x444   : > { %v7957_v13 = vpop.f32.mrf.mxu0 }
 0x445   : > { %v1816_v14 = vadd.f32 %v7957_v13, %v6617_v12  ;;  %v8633_v13 = vld [vmem:[%s10520_s7 + $0xc8] sm:$0xff]  }
 0x446   : > { %v1807_v15 = vpop.f32.mrf.mxu0 }
 0x447   : > { %v7269_v16 = vpack.c.bf16 %v1816_v14, %v1816_v14  ;;  %v1808_v17 = vadd.f32 %v6617_v12, %v1807_v15  ;;  %v6800_v14 = vld [vmem:[%s10573_s19] ss:$0 sm:$0xff]  ;;  %v2752_v15 = vpop.xlane.xlu1 %2751 }
 0x448   : > { %v7958_v18 = vpop.f32.mrf.mxu0 }
 0x449   : > { %2161 = vst.msk [vmem:[#allocation2 + $0x48] sm:$0xf] %vm1148_vm0, %v7269_v16  ;;  %v7267_v19 = vpack.c.bf16 %v1808_v17, %v1808_v17  ;;  %v1819_v20 = vadd.f32 %v7958_v18, %v6617_v12  ;;  %v2776_v16 = vmul.f32 %v6800_v14, %v2766_v11  ;;  %v2750_v18 = vpop.xlane.xlu0 %2749 }
 0x44a   : > { %v1810_v21 = vpop.f32.mrf.mxu0 }
 0x44b   : > { %2159 = vst.msk [vmem:[#allocation2 + $0x40] sm:$0xf] %vm1148_vm0, %v7267_v19  ;;  %v7270_v22 = vpack.c.bf16 %v1819_v20, %v1819_v20  ;;  %v1811_v23 = vadd.f32 %v6617_v12, %v1810_v21  ;;  %v2756_v19 = vmul.f32 0.0078125, %v2752_v15  ;;  %v2755_v20 = vmul.f32 0.0078125, %v2750_v18  ;;  %v8647_v15 = vld [vmem:[%s10571_s26 + $0x28] sm:$0xff]   ;;  %v8650_v18 = vld [vmem:[%s10571_s26 + $0x10] sm:$0xff]  }
 0x44d   : > { %2162 = vst.msk [vmem:[#allocation2 + $0x4c] sm:$0xf] %vm1148_vm0, %v7270_v22  ;;  %v7268_v24 = vpack.c.bf16 %v1811_v23, %v1811_v23  ;;  %v8635_v23 = vld [vmem:[%s10572_s5 + $0x38] sm:$0xff]  }
 0x44f   : > { %2160 = vst.msk [vmem:[#allocation2 + $0x44] sm:$0xf] %vm1148_vm0, %v7268_v24  ;;  %v2760_v24 = vadd.f32 1e-05, %v2756_v19 }
 0x451   : > { %8753 = vrsqrt.f32 %v2760_v24 }
 0x464   : > { %v7997_v25 = vpop.f32.mrf.mxu0 }
 0x465   : > { %v2060_v33 = vadd.f32 %v7997_v25, %v6669_v28  ;;  %v2759_v25 = vadd.f32 1e-05, %v2755_v20 }
 0x466   : > { %v2051_v26 = vpop.f32.mrf.mxu0 }
 0x467   : > { %v2052_v31 = vadd.f32 %v6669_v28, %v2051_v26  ;;  %8755 = vrsqrt.f32 %v2759_v25 }
 0x468   : > { %v7998_v27 = vpop.f32.mrf.mxu0 }
 0x469   : > { %v2063_v29 = vadd.f32 %v7998_v27, %v6669_v28  ;;  %v8636_v27 = vld [vmem:[%s10572_s5 + $0x30] sm:$0xff]  }
 0x46a   : > { %v2054_v30 = vpop.f32.mrf.mxu0 }
 0x46b   : > { %v2055_v32 = vadd.f32 %v6669_v28, %v2054_v30  ;;  %v2067_v35 = vpack.c.bf16 %v2063_v29, %v2060_v33  ;;  %v8637_v28 = vld [vmem:[%s10572_s5 + $0x28] sm:$0xff]   ;;  %v8638_v29 = vld [vmem:[%s10572_s5 + $0x20] sm:$0xff]  }
 0x46d   : > { %v2066_v34 = vpack.c.bf16 %v2055_v32, %v2052_v31  ;;  %v8640_v32 = vld [vmem:[%s10572_s5 + $0x10] sm:$0xff]  }
 0x46f   : > { %8003 = vmatprep.mubr.msk.bf16.mxu1 %vm1076_vm1, %v2066_v34 }
 0x470   : > { %8004 = vmatmul.mubr.msk.bf16.vlgmr.msra.gmra.mxu1 %vm1076_vm1, %v2067_v35  ;;  %v8641_v35 = vld [vmem:[%s10572_s5 + $0x8] sm:$0xff]  }
 0x471   : > { %8008 = vmatpush3.bf16.msra.mxu1 %v8619_v62  ;;  %8023 = vmatprep.mubr.bf16.mxu1 %v9294_v2  ;;  %v8628_v62 = vld [vmem:[%s10520_s7 + $0xf0] sm:$0xff]  }
 0x472   : > { %8009 = vmatprep.subr.bf16.mxu1 %v8620_v36 }
 0x475   : > { %8010 = vmatpush3.bf16.msra.mxu1 %v8620_v36 }
 0x476   : > { %8011 = vmatprep.subr.bf16.mxu1 %v8621_v37 }
 0x479   : > { %8012 = vmatpush3.bf16.msra.mxu1 %v8621_v37 }
 0x47a   : > { %8013 = vmatprep.subr.bf16.mxu1 %v8622_v38 }
 0x47d   : > { %8014 = vmatpush3.bf16.msra.mxu1 %v8622_v38  ;;  %v8642_v38 = vld [vmem:[%s10572_s5] sm:$0xff]  }
 0x47e   : > { %8015 = vmatprep.subr.bf16.mxu1 %v8623_v39 }
 0x481   : > { %8016 = vmatpush3.bf16.msra.mxu1 %v8623_v39 }
 0x482   : > { %8017 = vmatprep.subr.bf16.mxu1 %v8624_v40 }
 0x484   : > { %v8045_v43 = vpop.f32.mrf.mxu0 }
 0x485   : > { %8018 = vmatpush3.bf16.msra.mxu1 %v8624_v40  ;;  %v2445_v44 = vadd.f32 %v8045_v43, %v6741_v41 }
 0x486   : > { %v2436_v45 = vpop.f32.mrf.mxu0  ;;  %8019 = vmatprep.subr.bf16.mxu1 %v8625_v42 }
 0x487   : > { %v7285_v47 = vpack.c.bf16 %v2445_v44, %v2445_v44  ;;  %v2437_v48 = vadd.f32 %v6741_v41, %v2436_v45 }
 0x488   : > { %v8046_v50 = vpop.f32.mrf.mxu0 }
 0x489   : > { %2690 = vst.msk [vmem:[#allocation3 + $0x68] sm:$0xf] %vm1148_vm0, %v7285_v47  ;;  %v7283_v58 = vpack.c.bf16 %v2437_v48, %v2437_v48  ;;  %8020 = vmatpush3.bf16.msra.mxu1 %v8625_v42  ;;  %v2448_v59 = vadd.f32 %v8046_v50, %v6741_v41  ;;  %v8645_v42 = vld [vmem:[%s10571_s26 + $0x38] sm:$0xff]  }
 0x48a   : > { %v2439_v0 = vpop.f32.mrf.mxu0  ;;  %8021 = vmatprep.subr.bf16.mxu1 %v8626_v46 }
 0x48b   : > { %2688 = vst.msk [vmem:[#allocation3 + $0x60] sm:$0xf] %vm1148_vm0, %v7283_v58  ;;  %v7286_v3 = vpack.c.bf16 %v2448_v59, %v2448_v59  ;;  %v2440_v52 = vadd.f32 %v6741_v41, %v2439_v0  ;;  %v8644_v41 = vld [vmem:[%s10522_s9 + $0x30] sm:$0xff]  }
 0x48d   : > { %2691 = vst.msk [vmem:[#allocation3 + $0x6c] sm:$0xf] %vm1148_vm0, %v7286_v3  ;;  %v7284_v5 = vpack.c.bf16 %v2440_v52, %v2440_v52  ;;  %8022 = vmatpush3.bf16.msra.mxu1 %v8626_v46 }
 0x48e   : > { %8047 = vmatprep.subr.bf16.mxu1 %v8627_v1 }
 0x48f   : > { %2689 = vst.msk [vmem:[#allocation3 + $0x64] sm:$0xf] %vm1148_vm0, %v7284_v5 }
 0x490   : > { %8024 = vmatmul.mubr.bf16.vlgmr.msra.gmra.mxu1 %v9298_v6 }
 0x491   : > { %8048 = vmatpush3.bf16.msra.mxu1 %v8627_v1  ;;  %8063 = vmatprep.mubr.bf16.mxu1 %v9294_v2  ;;  %v8752_v2 = vpop.eup %8751 }
 0x492   : > { %8049 = vmatprep.subr.bf16.mxu1 %v8628_v62  ;;  %v2765_v12 = vmul.f32 %v8752_v2, %v9588_v57  ;;  %v6801_v57 = vld [vmem:[%s10575_s28] ss:$0 sm:$0xff]  ;;  %v8754_v30 = vpop.eup %8753 }
 0x493   : > { %v2786_v21 = vadd.f32 %v6801_v57, %v2776_v16  ;;  %v8756_v31 = vpop.eup %8755  ;;  %v2768_v33 = vmul.f32 %v8754_v30, %v9596_v4  ;;  %v8648_v16 = vld [vmem:[%s10571_s26 + $0x20] sm:$0xff]  }
 0x494   : > { %v2775_v17 = vmul.f32 %v6800_v14, %v2765_v12  ;;  %v2767_v34 = vmul.f32 %v8756_v31, %v9600_v56  ;;  %v8643_v56 = vld [vmem:[%s10522_s9 + $0x38] sm:$0xff]  }
 0x495   : > { %8050 = vmatpush3.bf16.msra.mxu1 %v8628_v62  ;;  %v2778_v36 = vmul.f32 %v6800_v14, %v2768_v33  ;;  %8067 = vmatprep.subr.bf16.mxu0 %v8643_v56  ;;  %v8654_v33 = vld [vmem:[%s10520_s7 + $0x30] sm:$0xff]  }
 0x496   : > { %8051 = vmatprep.subr.bf16.mxu1 %v8629_v63  ;;  %v2785_v22 = vadd.f32 %v6801_v57, %v2775_v17  ;;  %v2777_v37 = vmul.f32 %v6800_v14, %v2767_v34  ;;  %8068 = vmatpush3.bf16.msra.mxu0 %v8643_v56  ;;  %v8646_v14 = vld [vmem:[%s10571_s26 + $0x30] sm:$0xff]   ;;  %v8649_v17 = vld [vmem:[%s10571_s26 + $0x18] sm:$0xff]   ;;  %v8655_v34 = vld [vmem:[%s10520_s7 + $0x28] sm:$0xff]  }
 0x497   : > { %v2788_v39 = vadd.f32 %v6801_v57, %v2778_v36  ;;  %8069 = vmatprep.subr.bf16.mxu0 %v8644_v41  ;;  %v8657_v36 = vld [vmem:[%s10520_s7 + $0x18] sm:$0xff]   ;;  %v8662_v56 = vld [vmem:[%s10572_s5 + $0x70] sm:$0xff]  }
 0x498   : > { %v9693_v26 = vpack.c.bf16 %v2786_v21, %v2785_v22  ;;  %v2787_v40 = vadd.f32 %v6801_v57, %v2777_v37  ;;  %v6811_v57 = vld [vmem:[%s10519_s6] ss:$0 sm:$0xff]  ;;  %v8658_v37 = vld [vmem:[%s10520_s7 + $0x10] sm:$0xff]  }
 0x499   : > { %8052 = vmatpush3.bf16.msra.mxu1 %v8629_v63  ;;  %v8652_v21 = vld [vmem:[%s10571_s26] sm:$0xff]  }
 0x49a   : > { %8053 = vmatprep.subr.bf16.mxu1 %v8630_v7  ;;  %v9720_v4 = vpack.c.bf16 %v2788_v39, %v2787_v40  ;;  %8070 = vmatpush3.bf16.msra.mxu0 %v8644_v41  ;;  %v8660_v39 = vld [vmem:[%s10520_s7] sm:$0xff]   ;;  %v8661_v40 = vld [vmem:[%s10572_s5 + $0x78] sm:$0xff]   ;;  %v8663_v41 = vld [vmem:[%s10572_s5 + $0x68] sm:$0xff]  }
 0x49b   : > { %8075 = vmatprep.subr.bf16.mxu0 %v8645_v42 }
 0x49d   : > { %8054 = vmatpush3.bf16.msra.mxu1 %v8630_v7  ;;  %v6767_v7 = vld [vmem:[%s10521_s8 + $0x3] ss:$0 sm:$0xff] }
 0x49e   : > { %8055 = vmatprep.subr.bf16.mxu1 %v8631_v8 }
 0x4a1   : > { %8056 = vmatpush3.bf16.msra.mxu1 %v8631_v8 }
 0x4a2   : > { %8057 = vmatprep.subr.bf16.mxu1 %v8632_v10 }
 0x4a5   : > { %8058 = vmatpush3.bf16.msra.mxu1 %v8632_v10 }
 0x4a6   : > { %8059 = vmatprep.subr.bf16.mxu1 %v8633_v13 }
 0x4a9   : > { %8060 = vmatpush3.bf16.msra.mxu1 %v8633_v13 }
 0x4aa   : > { %8061 = vmatprep.subr.bf16.mxu1 %v8634_v54 }
 0x4ad   : > { %8062 = vmatpush3.bf16.msra.mxu1 %v8634_v54  ;;  %v8651_v54 = vld [vmem:[%s10571_s26 + $0x8] sm:$0xff]  }
 0x4ae   : > { %8095 = vmatprep.subr.bf16.mxu1 %v8635_v23 }
 0x4b0   : > { %8064 = vmatmul.mubr.bf16.vlgmr.msra.gmra.mxu1 %v9298_v6  ;;  %v8639_v6 = vld [vmem:[%s10572_s5 + $0x18] sm:$0xff]  }
 0x4b1   : > { %8096 = vmatpush3.bf16.msra.mxu1 %v8635_v23  ;;  %8111 = vmatprep.mubr.bf16.mxu1 %v9693_v26 }
 0x4b2   : > { %8097 = vmatprep.subr.bf16.mxu1 %v8636_v27 }
 0x4b5   : > { %8098 = vmatpush3.bf16.msra.mxu1 %v8636_v27 }
 0x4b6   : > { %8099 = vmatprep.subr.bf16.mxu1 %v8637_v28 }
 0x4b9   : > { %8100 = vmatpush3.bf16.msra.mxu1 %v8637_v28 }
 0x4ba   : > { %8101 = vmatprep.subr.bf16.mxu1 %v8638_v29 }
 0x4bd   : > { %8102 = vmatpush3.bf16.msra.mxu1 %v8638_v29  ;;  %v8653_v29 = vld [vmem:[%s10520_s7 + $0x38] sm:$0xff]  }
 0x4be   : > { %8103 = vmatprep.subr.bf16.mxu1 %v8639_v6 }
 0x4c1   : > { %8104 = vmatpush3.bf16.msra.mxu1 %v8639_v6 }
 0x4c2   : > { %8105 = vmatprep.subr.bf16.mxu1 %v8640_v32 }
 0x4c5   : > { %8106 = vmatpush3.bf16.msra.mxu1 %v8640_v32 }
 0x4c6   : > { %8107 = vmatprep.subr.bf16.mxu1 %v8641_v35 }
 0x4c9   : > { %8108 = vmatpush3.bf16.msra.mxu1 %v8641_v35  ;;  %v8656_v35 = vld [vmem:[%s10520_s7 + $0x20] sm:$0xff]  }
 0x4ca   : > { %8109 = vmatprep.subr.bf16.mxu1 %v8642_v38 }
 0x4cd   : > { %8110 = vmatpush3.bf16.msra.mxu1 %v8642_v38  ;;  %v8659_v38 = vld [vmem:[%s10520_s7 + $0x8] sm:$0xff]  }
 0x4d0   : > { %8112 = vmatmul.mubr.bf16.vlgmr.msra.gmra.mxu1 %v9720_v4 }
 0x530   : > { %v8005_v43 = vpop.f32.mrf.mxu1 }
 0x532   : > { %v2125_v44 = vpop.f32.mrf.mxu1 }
 0x534   : > { %v8006_v45 = vpop.f32.mrf.mxu1 }
 0x535   : > { %v7375_v46 = vpack.c.bf16 %v8006_v45, %v8005_v43  ;;  %v8665_v43 = vld [vmem:[%s10572_s5 + $0x58] sm:$0xff]   ;;  %v8667_v45 = vld [vmem:[%s10572_s5 + $0x48] sm:$0xff]  }
 0x536   : > { %v2128_v47 = vpop.f32.mrf.mxu1 }
 0x537   : > { %7446 = vst [vmem:[#allocation4 + $0x48] sm:$0xff] %v7375_v46   ;;  %v7370_v48 = vpack.c.bf16 %v2128_v47, %v2125_v44  ;;  %v8666_v44 = vld [vmem:[%s10572_s5 + $0x50] sm:$0xff]   ;;  %v8668_v46 = vld [vmem:[%s10572_s5 + $0x40] sm:$0xff]   ;;  %v8669_v47 = vld [vmem:[%s10522_s9 + $0x8] sm:$0xff]  }
 0x538   : > { %8135 = vmatprep.subr.bf16.mxu1 %v8669_v47 }
 0x539   : > { %7371 = vst [vmem:[#allocation4 + $0x40] sm:$0xff] %v7370_v48   ;;  %8136 = vmatpush3.bf16.msra.mxu1 %v8669_v47  ;;  %v8670_v48 = vld [vmem:[%s10522_s9] sm:$0xff]   ;;  %v8688_v47 = vld [vmem:[%s10572_s5 + $0xb0] sm:$0xff]  }
 0x53a   : > { %8137 = vmatprep.subr.bf16.mxu1 %v8670_v48 }
 0x53d   : > { %8138 = vmatpush3.bf16.msra.mxu1 %v8670_v48  ;;  %v8689_v48 = vld [vmem:[%s10572_s5 + $0xa8] sm:$0xff]  }
 0x550   : > { %v8025_v50 = vpop.f32.mrf.mxu1 }
 0x551   : > { %v2323_v51 = vadd.f32 %v8025_v50, %v6715_v49 }
 0x552   : > { %v2314_v53 = vpop.f32.mrf.mxu1 }
 0x553   : > { %v7281_v58 = vpack.c.bf16 %v2323_v51, %v2323_v51  ;;  %v2315_v59 = vadd.f32 %v6715_v49, %v2314_v53 }
 0x554   : > { %v8026_v61 = vpop.f32.mrf.mxu1 }
 0x555   : > { %2668 = vst.msk [vmem:[#allocation2 + $0x68] sm:$0xf] %vm1148_vm0, %v7281_v58  ;;  %v7279_v0 = vpack.c.bf16 %v2315_v59, %v2315_v59  ;;  %v2326_v1 = vadd.f32 %v8026_v61, %v6715_v49 }
 0x556   : > { %v2317_v3 = vpop.f32.mrf.mxu1 }
 0x557   : > { %2666 = vst.msk [vmem:[#allocation2 + $0x60] sm:$0xf] %vm1148_vm0, %v7279_v0  ;;  %v7282_v52 = vpack.c.bf16 %v2326_v1, %v2326_v1  ;;  %v2318_v55 = vadd.f32 %v6715_v49, %v2317_v3  ;;  %v8671_v49 = vld [vmem:[%s10571_s26 + $0x78] sm:$0xff]   ;;  %v6802_v0 = vld [vmem:[%s10576_s4] ss:$0 sm:$0xff] }
 0x558   : > { %8143 = vmatprep.subr.bf16.mxu1 %v8671_v49 }
 0x559   : > { %2669 = vst.msk [vmem:[#allocation2 + $0x6c] sm:$0xf] %vm1148_vm0, %v7282_v52  ;;  %v7280_v5 = vpack.c.bf16 %v2318_v55, %v2318_v55 }
 0x55b   : > { %2667 = vst.msk [vmem:[#allocation2 + $0x64] sm:$0xf] %vm1148_vm0, %v7280_v5 }
 0x570   : > { %v8065_v60 = vpop.f32.mrf.mxu1 }
 0x571   : > { %v2567_v11 = vadd.f32 %v8065_v60, %v6767_v7 }
 0x572   : > { %v2558_v62 = vpop.f32.mrf.mxu1 }
 0x573   : > { %v2559_v2 = vadd.f32 %v6767_v7, %v2558_v62 }
 0x574   : > { %v8066_v63 = vpop.f32.mrf.mxu1 }
 0x575   : > { %v2570_v8 = vadd.f32 %v8066_v63, %v6767_v7 }
 0x576   : > { %v2561_v9 = vpop.f32.mrf.mxu1 }
 0x577   : > { %v2562_v10 = vadd.f32 %v6767_v7, %v2561_v9  ;;  %v2574_v13 = vpack.c.bf16 %v2570_v8, %v2567_v11 }
 0x579   : > { %v2573_v12 = vpack.c.bf16 %v2562_v10, %v2559_v2 }
 0x57b   : > { %8071 = vmatprep.mubr.msk.bf16.mxu0 %vm1076_vm1, %v2573_v12 }
 0x57c   : > { %8072 = vmatmul.mubr.msk.bf16.vlgmr.msra.gmra.mxu0 %vm1076_vm1, %v2574_v13  ;;  %v6820_v13 = vld [vmem:[%s10521_s8] ss:$0 sm:$0xff] }
 0x57d   : > { %8076 = vmatpush3.bf16.msra.mxu0 %v8645_v42  ;;  %8091 = vmatprep.mubr.bf16.mxu0 %v9693_v26  ;;  %v8664_v42 = vld [vmem:[%s10572_s5 + $0x60] sm:$0xff]  }
 0x57e   : > { %8077 = vmatprep.subr.bf16.mxu0 %v8646_v14 }
 0x581   : > { %8078 = vmatpush3.bf16.msra.mxu0 %v8646_v14 }
 0x582   : > { %8079 = vmatprep.subr.bf16.mxu0 %v8647_v15 }
 0x585   : > { %8080 = vmatpush3.bf16.msra.mxu0 %v8647_v15 }
 0x586   : > { %8081 = vmatprep.subr.bf16.mxu0 %v8648_v16 }
 0x589   : > { %8082 = vmatpush3.bf16.msra.mxu0 %v8648_v16 }
 0x58a   : > { %8083 = vmatprep.subr.bf16.mxu0 %v8649_v17 }
 0x58d   : > { %8084 = vmatpush3.bf16.msra.mxu0 %v8649_v17 }
 0x58e   : > { %8085 = vmatprep.subr.bf16.mxu0 %v8650_v18 }
 0x590   : > { %v8113_v19 = vpop.f32.mrf.mxu1 }
 0x591   : > { %8086 = vmatpush3.bf16.msra.mxu0 %v8650_v18  ;;  %v3025_v20 = vadd.f32 %v8113_v19, %v6811_v57  ;;  %v8672_v19 = vld [vmem:[%s10571_s26 + $0x70] sm:$0xff]  }
 0x592   : > { %8087 = vmatprep.subr.bf16.mxu0 %v8651_v54  ;;  %v3016_v22 = vpop.f32.mrf.mxu1 }
 0x593   : > { %v7297_v23 = vpack.c.bf16 %v3025_v20, %v3025_v20  ;;  %v3017_v24 = vadd.f32 %v6811_v57, %v3016_v22  ;;  %v8673_v20 = vld [vmem:[%s10571_s26 + $0x68] sm:$0xff]   ;;  %v8675_v22 = vld [vmem:[%s10571_s26 + $0x58] sm:$0xff]  }
 0x594   : > { %v8114_v25 = vpop.f32.mrf.mxu1 }
 0x595   : > { %8088 = vmatpush3.bf16.msra.mxu0 %v8651_v54  ;;  %3264 = vst.msk [vmem:[#allocation3 + $0x18] sm:$0xf] %vm1148_vm0, %v7297_v23  ;;  %v7295_v27 = vpack.c.bf16 %v3017_v24, %v3017_v24  ;;  %v3028_v28 = vadd.f32 %v8114_v25, %v6811_v57  ;;  %v8676_v23 = vld [vmem:[%s10571_s26 + $0x50] sm:$0xff]   ;;  %v6888_v24 = vld [vmem:[%s10519_s6 + $0x1] ss:$0 sm:$0xff]  ;;  %v8677_v25 = vld [vmem:[%s10571_s26 + $0x48] sm:$0xff]  }
 0x596   : > { %8089 = vmatprep.subr.bf16.mxu0 %v8652_v21  ;;  %v3019_v6 = vpop.f32.mrf.mxu1 }
 0x597   : > { %3262 = vst.msk [vmem:[#allocation3 + $0x10] sm:$0xf] %vm1148_vm0, %v7295_v27  ;;  %v7298_v30 = vpack.c.bf16 %v3028_v28, %v3028_v28  ;;  %v3020_v31 = vadd.f32 %v6811_v57, %v3019_v6  ;;  %v8678_v6 = vld [vmem:[%s10571_s26 + $0x40] sm:$0xff]  }
 0x599   : > { %8090 = vmatpush3.bf16.msra.mxu0 %v8652_v21  ;;  %3265 = vst.msk [vmem:[#allocation3 + $0x1c] sm:$0xf] %vm1148_vm0, %v7298_v30  ;;  %v7296_v32 = vpack.c.bf16 %v3020_v31, %v3020_v31  ;;  %v8674_v21 = vld [vmem:[%s10571_s26 + $0x60] sm:$0xff]  }
 0x59a   : > { %8115 = vmatprep.subr.bf16.mxu0 %v8653_v29 }
 0x59b   : > { %3263 = vst.msk [vmem:[#allocation3 + $0x14] sm:$0xf] %vm1148_vm0, %v7296_v32 }
 0x59c   : > { %8092 = vmatmul.mubr.bf16.vlgmr.msra.gmra.mxu0 %v9720_v4 }
 0x59d   : > { %8116 = vmatpush3.bf16.msra.mxu0 %v8653_v29  ;;  %8131 = vmatprep.mubr.bf16.mxu0 %v9693_v26 }
 0x59e   : > { %8117 = vmatprep.subr.bf16.mxu0 %v8654_v33 }
 0x5a1   : > { %8118 = vmatpush3.bf16.msra.mxu0 %v8654_v33 }
 0x5a2   : > { %8119 = vmatprep.subr.bf16.mxu0 %v8655_v34 }
 0x5a5   : > { %8120 = vmatpush3.bf16.msra.mxu0 %v8655_v34 }
 0x5a6   : > { %8121 = vmatprep.subr.bf16.mxu0 %v8656_v35 }
 0x5a9   : > { %8122 = vmatpush3.bf16.msra.mxu0 %v8656_v35 }
 0x5aa   : > { %8123 = vmatprep.subr.bf16.mxu0 %v8657_v36 }
 0x5ad   : > { %8124 = vmatpush3.bf16.msra.mxu0 %v8657_v36  ;;  %v8679_v36 = vld [vmem:[%s10520_s7 + $0x78] sm:$0xff]  }
 0x5ae   : > { %8125 = vmatprep.subr.bf16.mxu0 %v8658_v37 }
 0x5b1   : > { %8126 = vmatpush3.bf16.msra.mxu0 %v8658_v37 }
 0x5b2   : > { %8127 = vmatprep.subr.bf16.mxu0 %v8659_v38 }
 0x5b5   : > { %8128 = vmatpush3.bf16.msra.mxu0 %v8659_v38 }
 0x5b6   : > { %8129 = vmatprep.subr.bf16.mxu0 %v8660_v39 }
 0x5b9   : > { %8130 = vmatpush3.bf16.msra.mxu0 %v8660_v39 }
 0x5ba   : > { %8163 = vmatprep.subr.bf16.mxu0 %v8661_v40 }
 0x5bc   : > { %8132 = vmatmul.mubr.bf16.vlgmr.msra.gmra.mxu0 %v9720_v4 }
 0x5bd   : > { %8164 = vmatpush3.bf16.msra.mxu0 %v8661_v40  ;;  %8179 = vmatprep.mubr.bf16.mxu0 %v9693_v26  ;;  %v8680_v40 = vld [vmem:[%s10520_s7 + $0x70] sm:$0xff]  }
 0x5be   : > { %8165 = vmatprep.subr.bf16.mxu0 %v8662_v56 }
 0x5c1   : > { %8166 = vmatpush3.bf16.msra.mxu0 %v8662_v56  ;;  %v8681_v56 = vld [vmem:[%s10520_s7 + $0x68] sm:$0xff]  }
 0x5c2   : > { %8167 = vmatprep.subr.bf16.mxu0 %v8663_v41 }
 0x5c5   : > { %8168 = vmatpush3.bf16.msra.mxu0 %v8663_v41  ;;  %v8682_v41 = vld [vmem:[%s10520_s7 + $0x60] sm:$0xff]  }
 0x5c6   : > { %8169 = vmatprep.subr.bf16.mxu0 %v8664_v42 }
 0x5c9   : > { %8170 = vmatpush3.bf16.msra.mxu0 %v8664_v42  ;;  %v8683_v42 = vld [vmem:[%s10520_s7 + $0x58] sm:$0xff]  }
 0x5ca   : > { %8171 = vmatprep.subr.bf16.mxu0 %v8665_v43 }
 0x5cd   : > { %8172 = vmatpush3.bf16.msra.mxu0 %v8665_v43  ;;  %v8684_v43 = vld [vmem:[%s10520_s7 + $0x50] sm:$0xff]  }
 0x5ce   : > { %8173 = vmatprep.subr.bf16.mxu0 %v8666_v44 }
 0x5d1   : > { %8174 = vmatpush3.bf16.msra.mxu0 %v8666_v44  ;;  %v8685_v44 = vld [vmem:[%s10520_s7 + $0x48] sm:$0xff]  }
 0x5d2   : > { %8175 = vmatprep.subr.bf16.mxu0 %v8667_v45 }
 0x5d5   : > { %8176 = vmatpush3.bf16.msra.mxu0 %v8667_v45  ;;  %v8686_v45 = vld [vmem:[%s10520_s7 + $0x40] sm:$0xff]  }
 0x5d6   : > { %8177 = vmatprep.subr.bf16.mxu0 %v8668_v46 }
 0x5d9   : > { %8178 = vmatpush3.bf16.msra.mxu0 %v8668_v46  ;;  %v8687_v46 = vld [vmem:[%s10572_s5 + $0xb8] sm:$0xff]  }
 0x5dc   : > { %8180 = vmatmul.mubr.bf16.vlgmr.msra.gmra.mxu0 %v9720_v4 }
 0x63c   : > { %v8073_v50 = vpop.f32.mrf.mxu0 }
 0x63e   : > { %v2632_v51 = vpop.f32.mrf.mxu0 }
 0x640   : > { %v8074_v53 = vpop.f32.mrf.mxu0 }
 0x641   : > { %v7385_v58 = vpack.c.bf16 %v8074_v53, %v8073_v50  ;;  %v8691_v50 = vld [vmem:[%s10572_s5 + $0x98] sm:$0xff]   ;;  %v8693_v53 = vld [vmem:[%s10572_s5 + $0x88] sm:$0xff]  }
 0x642   : > { %v2635_v59 = vpop.f32.mrf.mxu0 }
 0x643   : > { %7447 = vst [vmem:[#allocation4 + $0x68] sm:$0xff] %v7385_v58   ;;  %v7380_v61 = vpack.c.bf16 %v2635_v59, %v2632_v51  ;;  %v8692_v51 = vld [vmem:[%s10572_s5 + $0x90] sm:$0xff]   ;;  %v8694_v58 = vld [vmem:[%s10572_s5 + $0x80] sm:$0xff]   ;;  %v8695_v59 = vld [vmem:[%s10522_s9 + $0x18] sm:$0xff]  }
 0x644   : > { %8203 = vmatprep.subr.bf16.mxu0 %v8695_v59 }
 0x645   : > { %7381 = vst [vmem:[#allocation4 + $0x60] sm:$0xff] %v7380_v61   ;;  %8204 = vmatpush3.bf16.msra.mxu0 %v8695_v59  ;;  %v8696_v61 = vld [vmem:[%s10522_s9 + $0x10] sm:$0xff]  }
 0x646   : > { %8205 = vmatprep.subr.bf16.mxu0 %v8696_v61  ;;  %v8714_v59 = vld [vmem:[%s10572_s5 + $0xf0] sm:$0xff]  }
 0x649   : > { %8206 = vmatpush3.bf16.msra.mxu0 %v8696_v61  ;;  %v8715_v61 = vld [vmem:[%s10572_s5 + $0xe8] sm:$0xff]  }
 0x65c   : > { %v8093_v1 = vpop.f32.mrf.mxu0 }
 0x65d   : > { %v2905_v3 = vadd.f32 %v8093_v1, %v6802_v0 }
 0x65e   : > { %v2896_v52 = vpop.f32.mrf.mxu0 }
 0x65f   : > { %v7293_v55 = vpack.c.bf16 %v2905_v3, %v2905_v3  ;;  %v2897_v5 = vadd.f32 %v6802_v0, %v2896_v52 }
 0x660   : > { %v8094_v60 = vpop.f32.mrf.mxu0 }
 0x661   : > { %3243 = vst.msk [vmem:[#allocation2 + $0x18] sm:$0xf] %vm1148_vm0, %v7293_v55  ;;  %v7291_v62 = vpack.c.bf16 %v2897_v5, %v2897_v5  ;;  %v2908_v63 = vadd.f32 %v8094_v60, %v6802_v0 }
 0x662   : > { %v2899_v7 = vpop.f32.mrf.mxu0 }
 0x663   : > { %3241 = vst.msk [vmem:[#allocation2 + $0x10] sm:$0xf] %vm1148_vm0, %v7291_v62  ;;  %v7294_v8 = vpack.c.bf16 %v2908_v63, %v2908_v63  ;;  %v2900_v9 = vadd.f32 %v6802_v0, %v2899_v7  ;;  %v8697_v0 = vld [vmem:[%s10571_s26 + $0xb8] sm:$0xff]   ;;  %v6862_v62 = vld [vmem:[%s10576_s4 + $0x1] ss:$0 sm:$0xff] }
 0x664   : > { %8211 = vmatprep.subr.bf16.mxu0 %v8697_v0 }
 0x665   : > { %3244 = vst.msk [vmem:[#allocation2 + $0x1c] sm:$0xf] %vm1148_vm0, %v7294_v8  ;;  %v7292_v2 = vpack.c.bf16 %v2900_v9, %v2900_v9 }
 0x667   : > { %3242 = vst.msk [vmem:[#allocation2 + $0x14] sm:$0xf] %vm1148_vm0, %v7292_v2 }
 0x67c   : > { %v8133_v10 = vpop.f32.mrf.mxu0 }
 0x67d   : > { %v3145_v18 = vadd.f32 %v8133_v10, %v6820_v13 }
 0x67e   : > { %v3136_v11 = vpop.f32.mrf.mxu0 }
 0x67f   : > { %v3137_v16 = vadd.f32 %v6820_v13, %v3136_v11 }
 0x680   : > { %v8134_v12 = vpop.f32.mrf.mxu0 }
 0x681   : > { %v3148_v14 = vadd.f32 %v8134_v12, %v6820_v13 }
 0x682   : > { %v3139_v15 = vpop.f32.mrf.mxu0 }
 0x683   : > { %v3140_v17 = vadd.f32 %v6820_v13, %v3139_v15  ;;  %v3152_v57 = vpack.c.bf16 %v3148_v14, %v3145_v18 }
 0x685   : > { %v3151_v54 = vpack.c.bf16 %v3140_v17, %v3137_v16 }
 0x687   : > { %8139 = vmatprep.mubr.msk.bf16.mxu1 %vm1076_vm1, %v3151_v54 }
 0x688   : > { %8140 = vmatmul.mubr.msk.bf16.vlgmr.msra.gmra.mxu1 %vm1076_vm1, %v3152_v57  ;;  %v6914_v57 = vld [vmem:[%s10521_s8 + $0x1] ss:$0 sm:$0xff] }
 0x689   : > { %8144 = vmatpush3.bf16.msra.mxu1 %v8671_v49  ;;  %8159 = vmatprep.mubr.bf16.mxu1 %v9693_v26  ;;  %v8690_v49 = vld [vmem:[%s10572_s5 + $0xa0] sm:$0xff]  }
 0x68a   : > { %8145 = vmatprep.subr.bf16.mxu1 %v8672_v19 }
 0x68d   : > { %8146 = vmatpush3.bf16.msra.mxu1 %v8672_v19 }
 0x68e   : > { %8147 = vmatprep.subr.bf16.mxu1 %v8673_v20 }
 0x691   : > { %8148 = vmatpush3.bf16.msra.mxu1 %v8673_v20 }
 0x692   : > { %8149 = vmatprep.subr.bf16.mxu1 %v8674_v21 }
 0x695   : > { %8150 = vmatpush3.bf16.msra.mxu1 %v8674_v21 }
 0x696   : > { %8151 = vmatprep.subr.bf16.mxu1 %v8675_v22 }
 0x699   : > { %8152 = vmatpush3.bf16.msra.mxu1 %v8675_v22 }
 0x69a   : > { %8153 = vmatprep.subr.bf16.mxu1 %v8676_v23 }
 0x69c   : > { %v8181_v27 = vpop.f32.mrf.mxu0 }
 0x69d   : > { %8154 = vmatpush3.bf16.msra.mxu1 %v8676_v23  ;;  %v3521_v28 = vadd.f32 %v8181_v27, %v6888_v24  ;;  %v8698_v27 = vld [vmem:[%s10571_s26 + $0xb0] sm:$0xff]  }
 0x69e   : > { %v3512_v29 = vpop.f32.mrf.mxu0  ;;  %8155 = vmatprep.subr.bf16.mxu1 %v8677_v25 }
 0x69f   : > { %v7309_v30 = vpack.c.bf16 %v3521_v28, %v3521_v28  ;;  %v3513_v31 = vadd.f32 %v6888_v24, %v3512_v29  ;;  %v8699_v28 = vld [vmem:[%s10571_s26 + $0xa8] sm:$0xff]   ;;  %v8700_v29 = vld [vmem:[%s10571_s26 + $0xa0] sm:$0xff]  }
 0x6a0   : > { %v8182_v32 = vpop.f32.mrf.mxu0 }
 0x6a1   : > { %3763 = vst.msk [vmem:[#allocation3 + $0x38] sm:$0xf] %vm1148_vm0, %v7309_v30  ;;  %v7307_v33 = vpack.c.bf16 %v3513_v31, %v3513_v31  ;;  %8156 = vmatpush3.bf16.msra.mxu1 %v8677_v25  ;;  %v3524_v34 = vadd.f32 %v8182_v32, %v6888_v24  ;;  %v8702_v30 = vld [vmem:[%s10571_s26 + $0x90] sm:$0xff]   ;;  %v6986_v31 = vld [vmem:[%s10519_s6 + $0x2] ss:$0 sm:$0xff]  ;;  %v8703_v32 = vld [vmem:[%s10571_s26 + $0x88] sm:$0xff]  }
 0x6a2   : > { %v3515_v35 = vpop.f32.mrf.mxu0  ;;  %8157 = vmatprep.subr.bf16.mxu1 %v8678_v6 }
 0x6a3   : > { %3761 = vst.msk [vmem:[#allocation3 + $0x30] sm:$0xf] %vm1148_vm0, %v7307_v33  ;;  %v7310_v37 = vpack.c.bf16 %v3524_v34, %v3524_v34  ;;  %v3516_v38 = vadd.f32 %v6888_v24, %v3515_v35 }
 0x6a5   : > { %3764 = vst.msk [vmem:[#allocation3 + $0x3c] sm:$0xf] %vm1148_vm0, %v7310_v37  ;;  %v7308_v39 = vpack.c.bf16 %v3516_v38, %v3516_v38  ;;  %8158 = vmatpush3.bf16.msra.mxu1 %v8678_v6  ;;  %v8701_v6 = vld [vmem:[%s10571_s26 + $0x98] sm:$0xff]  }
 0x6a6   : > { %8183 = vmatprep.subr.bf16.mxu1 %v8679_v36 }
 0x6a7   : > { %3762 = vst.msk [vmem:[#allocation3 + $0x34] sm:$0xf] %vm1148_vm0, %v7308_v39 }
 0x6a8   : > { %8160 = vmatmul.mubr.bf16.vlgmr.msra.gmra.mxu1 %v9720_v4 }
 0x6a9   : > { %8184 = vmatpush3.bf16.msra.mxu1 %v8679_v36  ;;  %8199 = vmatprep.mubr.bf16.mxu1 %v9693_v26  ;;  %v8704_v36 = vld [vmem:[%s10571_s26 + $0x80] sm:$0xff]  }
 0x6aa   : > { %8185 = vmatprep.subr.bf16.mxu1 %v8680_v40 }
 0x6ad   : > { %8186 = vmatpush3.bf16.msra.mxu1 %v8680_v40 }
 0x6ae   : > { %8187 = vmatprep.subr.bf16.mxu1 %v8681_v56 }
 0x6b1   : > { %8188 = vmatpush3.bf16.msra.mxu1 %v8681_v56 }
 0x6b2   : > { %8189 = vmatprep.subr.bf16.mxu1 %v8682_v41 }
 0x6b5   : > { %8190 = vmatpush3.bf16.msra.mxu1 %v8682_v41 }
 0x6b6   : > { %8191 = vmatprep.subr.bf16.mxu1 %v8683_v42 }
 0x6b9   : > { %8192 = vmatpush3.bf16.msra.mxu1 %v8683_v42  ;;  %v8705_v42 = vld [vmem:[%s10520_s7 + $0xb8] sm:$0xff]  }
 0x6ba   : > { %8193 = vmatprep.subr.bf16.mxu1 %v8684_v43 }
 0x6bd   : > { %8194 = vmatpush3.bf16.msra.mxu1 %v8684_v43 }
 0x6be   : > { %8195 = vmatprep.subr.bf16.mxu1 %v8685_v44 }
 0x6c1   : > { %8196 = vmatpush3.bf16.msra.mxu1 %v8685_v44 }
 0x6c2   : > { %8197 = vmatprep.subr.bf16.mxu1 %v8686_v45 }
 0x6c5   : > { %8198 = vmatpush3.bf16.msra.mxu1 %v8686_v45 }
 0x6c6   : > { %8231 = vmatprep.subr.bf16.mxu1 %v8687_v46 }
 0x6c8   : > { %8200 = vmatmul.mubr.bf16.vlgmr.msra.gmra.mxu1 %v9720_v4 }
 0x6c9   : > { %8232 = vmatpush3.bf16.msra.mxu1 %v8687_v46  ;;  %8247 = vmatprep.mubr.bf16.mxu1 %v9693_v26  ;;  %v8706_v46 = vld [vmem:[%s10520_s7 + $0xb0] sm:$0xff]  }
 0x6ca   : > { %8233 = vmatprep.subr.bf16.mxu1 %v8688_v47 }
 0x6cd   : > { %8234 = vmatpush3.bf16.msra.mxu1 %v8688_v47  ;;  %v8707_v47 = vld [vmem:[%s10520_s7 + $0xa8] sm:$0xff]  }
 0x6ce   : > { %8235 = vmatprep.subr.bf16.mxu1 %v8689_v48 }
 0x6d1   : > { %8236 = vmatpush3.bf16.msra.mxu1 %v8689_v48  ;;  %v8708_v48 = vld [vmem:[%s10520_s7 + $0xa0] sm:$0xff]  }
 0x6d2   : > { %8237 = vmatprep.subr.bf16.mxu1 %v8690_v49 }
 0x6d5   : > { %8238 = vmatpush3.bf16.msra.mxu1 %v8690_v49  ;;  %v8709_v49 = vld [vmem:[%s10520_s7 + $0x98] sm:$0xff]  }
 0x6d6   : > { %8239 = vmatprep.subr.bf16.mxu1 %v8691_v50 }
 0x6d9   : > { %8240 = vmatpush3.bf16.msra.mxu1 %v8691_v50  ;;  %v8710_v50 = vld [vmem:[%s10520_s7 + $0x90] sm:$0xff]  }
 0x6da   : > { %8241 = vmatprep.subr.bf16.mxu1 %v8692_v51 }
 0x6dd   : > { %8242 = vmatpush3.bf16.msra.mxu1 %v8692_v51  ;;  %v8711_v51 = vld [vmem:[%s10520_s7 + $0x88] sm:$0xff]  }
 0x6de   : > { %8243 = vmatprep.subr.bf16.mxu1 %v8693_v53 }
 0x6e1   : > { %8244 = vmatpush3.bf16.msra.mxu1 %v8693_v53  ;;  %v8712_v53 = vld [vmem:[%s10520_s7 + $0x80] sm:$0xff]  }
 0x6e2   : > { %8245 = vmatprep.subr.bf16.mxu1 %v8694_v58 }
 0x6e5   : > { %8246 = vmatpush3.bf16.msra.mxu1 %v8694_v58  ;;  %v8713_v58 = vld [vmem:[%s10572_s5 + $0xf8] sm:$0xff]  }
 0x6e8   : > { %8248 = vmatmul.mubr.bf16.vlgmr.msra.gmra.mxu1 %v9720_v4 }
 0x748   : > { %v8141_v1 = vpop.f32.mrf.mxu1 }
 0x74a   : > { %v3209_v3 = vpop.f32.mrf.mxu1 }
 0x74c   : > { %v8142_v52 = vpop.f32.mrf.mxu1 }
 0x74d   : > { %v7403_v55 = vpack.c.bf16 %v8142_v52, %v8141_v1  ;;  %v8717_v1 = vld [vmem:[%s10572_s5 + $0xd8] sm:$0xff]   ;;  %v8719_v52 = vld [vmem:[%s10572_s5 + $0xc8] sm:$0xff]  }
 0x74e   : > { %v3212_v5 = vpop.f32.mrf.mxu1 }
 0x74f   : > { %7450 = vst [vmem:[#allocation4 + $0x18] sm:$0xff] %v7403_v55   ;;  %v7398_v60 = vpack.c.bf16 %v3212_v5, %v3209_v3  ;;  %v8718_v3 = vld [vmem:[%s10572_s5 + $0xd0] sm:$0xff]   ;;  %v8720_v55 = vld [vmem:[%s10572_s5 + $0xc0] sm:$0xff]   ;;  %v8721_v5 = vld [vmem:[%s10522_s9 + $0x28] sm:$0xff]  }
 0x750   : > { %8271 = vmatprep.subr.bf16.mxu1 %v8721_v5 }
 0x751   : > { %7399 = vst [vmem:[#allocation4 + $0x10] sm:$0xff] %v7398_v60   ;;  %8272 = vmatpush3.bf16.msra.mxu1 %v8721_v5  ;;  %v8722_v60 = vld [vmem:[%s10522_s9 + $0x20] sm:$0xff]  }
 0x752   : > { %8273 = vmatprep.subr.bf16.mxu1 %v8722_v60 }
 0x755   : > { %8274 = vmatpush3.bf16.msra.mxu1 %v8722_v60 }
 0x768   : > { %v8161_v63 = vpop.f32.mrf.mxu1 }
 0x769   : > { %v3401_v7 = vadd.f32 %v8161_v63, %v6862_v62 }
 0x76a   : > { %v3392_v8 = vpop.f32.mrf.mxu1 }
 0x76b   : > { %v7305_v9 = vpack.c.bf16 %v3401_v7, %v3401_v7  ;;  %v3393_v2 = vadd.f32 %v6862_v62, %v3392_v8 }
 0x76c   : > { %v8162_v10 = vpop.f32.mrf.mxu1 }
 0x76d   : > { %3741 = vst.msk [vmem:[#allocation2 + $0x38] sm:$0xf] %vm1148_vm0, %v7305_v9  ;;  %v7303_v11 = vpack.c.bf16 %v3393_v2, %v3393_v2  ;;  %v3404_v12 = vadd.f32 %v8162_v10, %v6862_v62 }
 0x76e   : > { %v3395_v13 = vpop.f32.mrf.mxu1 }
 0x76f   : > { %3739 = vst.msk [vmem:[#allocation2 + $0x30] sm:$0xf] %vm1148_vm0, %v7303_v11  ;;  %v7306_v14 = vpack.c.bf16 %v3404_v12, %v3404_v12  ;;  %v3396_v15 = vadd.f32 %v6862_v62, %v3395_v13  ;;  %v8723_v62 = vld [vmem:[%s10571_s26 + $0xf8] sm:$0xff]   ;;  %v6960_v11 = vld [vmem:[%s10576_s4 + $0x2] ss:$0 sm:$0xff] }
 0x770   : > { %8279 = vmatprep.subr.bf16.mxu1 %v8723_v62 }
 0x771   : > { %3742 = vst.msk [vmem:[#allocation2 + $0x3c] sm:$0xf] %vm1148_vm0, %v7306_v14  ;;  %v7304_v16 = vpack.c.bf16 %v3396_v15, %v3396_v15 }
 0x773   : > { %3740 = vst.msk [vmem:[#allocation2 + $0x34] sm:$0xf] %vm1148_vm0, %v7304_v16 }
 0x788   : > { %v8201_v17 = vpop.f32.mrf.mxu1 }
 0x789   : > { %v3641_v23 = vadd.f32 %v8201_v17, %v6914_v57 }
 0x78a   : > { %v3632_v18 = vpop.f32.mrf.mxu1 }
 0x78b   : > { %v3633_v21 = vadd.f32 %v6914_v57, %v3632_v18 }
 0x78c   : > { %v8202_v54 = vpop.f32.mrf.mxu1 }
 0x78d   : > { %v3644_v19 = vadd.f32 %v8202_v54, %v6914_v57 }
 0x78e   : > { %v3635_v20 = vpop.f32.mrf.mxu1 }
 0x78f   : > { %v3636_v22 = vadd.f32 %v6914_v57, %v3635_v20  ;;  %v3648_v25 = vpack.c.bf16 %v3644_v19, %v3641_v23 }
 0x791   : > { %v3647_v24 = vpack.c.bf16 %v3636_v22, %v3633_v21 }
 0x793   : > { %8207 = vmatprep.mubr.msk.bf16.mxu0 %vm1076_vm1, %v3647_v24 }
 0x794   : > { %8208 = vmatmul.mubr.msk.bf16.vlgmr.msra.gmra.mxu0 %vm1076_vm1, %v3648_v25  ;;  %v7012_v25 = vld [vmem:[%s10521_s8 + $0x2] ss:$0 sm:$0xff] }
 0x795   : > { %8212 = vmatpush3.bf16.msra.mxu0 %v8697_v0  ;;  %8227 = vmatprep.mubr.bf16.mxu0 %v9693_v26  ;;  %v8716_v0 = vld [vmem:[%s10572_s5 + $0xe0] sm:$0xff]  }
 0x796   : > { %8213 = vmatprep.subr.bf16.mxu0 %v8698_v27 }
 0x799   : > { %8214 = vmatpush3.bf16.msra.mxu0 %v8698_v27 }
 0x79a   : > { %8215 = vmatprep.subr.bf16.mxu0 %v8699_v28 }
 0x79d   : > { %8216 = vmatpush3.bf16.msra.mxu0 %v8699_v28 }
 0x79e   : > { %8217 = vmatprep.subr.bf16.mxu0 %v8700_v29 }
 0x7a1   : > { %8218 = vmatpush3.bf16.msra.mxu0 %v8700_v29 }
 0x7a2   : > { %8219 = vmatprep.subr.bf16.mxu0 %v8701_v6 }
 0x7a5   : > { %8220 = vmatpush3.bf16.msra.mxu0 %v8701_v6 }
 0x7a6   : > { %8221 = vmatprep.subr.bf16.mxu0 %v8702_v30 }
 0x7a8   : > { %v8249_v33 = vpop.f32.mrf.mxu1 }
 0x7a9   : > { %8222 = vmatpush3.bf16.msra.mxu0 %v8702_v30  ;;  %v4021_v34 = vadd.f32 %v8249_v33, %v6986_v31  ;;  %v8724_v33 = vld [vmem:[%s10571_s26 + $0xf0] sm:$0xff]  }
 0x7aa   : > { %v4012_v35 = vpop.f32.mrf.mxu1  ;;  %8223 = vmatprep.subr.bf16.mxu0 %v8703_v32 }
 0x7ab   : > { %v7321_v37 = vpack.c.bf16 %v4021_v34, %v4021_v34  ;;  %v4013_v38 = vadd.f32 %v6986_v31, %v4012_v35  ;;  %v8725_v34 = vld [vmem:[%s10571_s26 + $0xe8] sm:$0xff]   ;;  %v8726_v35 = vld [vmem:[%s10571_s26 + $0xe0] sm:$0xff]  }
 0x7ac   : > { %v8250_v39 = vpop.f32.mrf.mxu1 }
 0x7ad   : > { %4263 = vst.msk [vmem:[#allocation3 + $0x58] sm:$0xf] %vm1148_vm0, %v7321_v37  ;;  %v7319_v40 = vpack.c.bf16 %v4013_v38, %v4013_v38  ;;  %8224 = vmatpush3.bf16.msra.mxu0 %v8703_v32  ;;  %v4024_v56 = vadd.f32 %v8250_v39, %v6986_v31  ;;  %v8728_v37 = vld [vmem:[%s10571_s26 + $0xd0] sm:$0xff]   ;;  %v7084_v38 = vld [vmem:[%s10519_s6 + $0x3] ss:$0 sm:$0xff]  ;;  %v8729_v39 = vld [vmem:[%s10571_s26 + $0xc8] sm:$0xff]  }
 0x7ae   : > { %v4015_v41 = vpop.f32.mrf.mxu1  ;;  %8225 = vmatprep.subr.bf16.mxu0 %v8704_v36 }
 0x7af   : > { %4261 = vst.msk [vmem:[#allocation3 + $0x50] sm:$0xf] %vm1148_vm0, %v7319_v40  ;;  %v7322_v43 = vpack.c.bf16 %v4024_v56, %v4024_v56  ;;  %v4016_v44 = vadd.f32 %v6986_v31, %v4015_v41 }
 0x7b1   : > { %4264 = vst.msk [vmem:[#allocation3 + $0x5c] sm:$0xf] %vm1148_vm0, %v7322_v43  ;;  %v7320_v45 = vpack.c.bf16 %v4016_v44, %v4016_v44  ;;  %8226 = vmatpush3.bf16.msra.mxu0 %v8704_v36  ;;  %v8727_v36 = vld [vmem:[%s10571_s26 + $0xd8] sm:$0xff]  }
 0x7b2   : > { %8251 = vmatprep.subr.bf16.mxu0 %v8705_v42 }
 0x7b3   : > { %4262 = vst.msk [vmem:[#allocation3 + $0x54] sm:$0xf] %vm1148_vm0, %v7320_v45 }
 0x7b4   : > { %8228 = vmatmul.mubr.bf16.vlgmr.msra.gmra.mxu0 %v9720_v4 }
 0x7b5   : > { %8252 = vmatpush3.bf16.msra.mxu0 %v8705_v42  ;;  %8267 = vmatprep.mubr.bf16.mxu0 %v9693_v26  ;;  %v8730_v42 = vld [vmem:[%s10571_s26 + $0xc0] sm:$0xff]  }
 0x7b6   : > { %8253 = vmatprep.subr.bf16.mxu0 %v8706_v46 }
 0x7b9   : > { %8254 = vmatpush3.bf16.msra.mxu0 %v8706_v46 }
 0x7ba   : > { %8255 = vmatprep.subr.bf16.mxu0 %v8707_v47 }
 0x7bd   : > { %8256 = vmatpush3.bf16.msra.mxu0 %v8707_v47 }
 0x7be   : > { %8257 = vmatprep.subr.bf16.mxu0 %v8708_v48 }
 0x7c1   : > { %8258 = vmatpush3.bf16.msra.mxu0 %v8708_v48 }
 0x7c2   : > { %8259 = vmatprep.subr.bf16.mxu0 %v8709_v49 }
 0x7c5   : > { %8260 = vmatpush3.bf16.msra.mxu0 %v8709_v49  ;;  %v8731_v49 = vld [vmem:[%s10520_s7 + $0xf8] sm:$0xff]  }
 0x7c6   : > { %8261 = vmatprep.subr.bf16.mxu0 %v8710_v50 }
 0x7c9   : > { %8262 = vmatpush3.bf16.msra.mxu0 %v8710_v50 }
 0x7ca   : > { %8263 = vmatprep.subr.bf16.mxu0 %v8711_v51 }
 0x7cd   : > { %8264 = vmatpush3.bf16.msra.mxu0 %v8711_v51 }
 0x7ce   : > { %8265 = vmatprep.subr.bf16.mxu0 %v8712_v53 }
 0x7d1   : > { %8266 = vmatpush3.bf16.msra.mxu0 %v8712_v53 }
 0x7d2   : > { %8299 = vmatprep.subr.bf16.mxu0 %v8713_v58 }
 0x7d4   : > { %8268 = vmatmul.mubr.bf16.vlgmr.msra.gmra.mxu0 %v9720_v4 }
 0x7d5   : > { %8300 = vmatpush3.bf16.msra.mxu0 %v8713_v58  ;;  %8315 = vmatprep.mubr.bf16.mxu0 %v9693_v26  ;;  %v8732_v58 = vld [vmem:[%s10520_s7 + $0xf0] sm:$0xff]  }
 0x7d6   : > { %8301 = vmatprep.subr.bf16.mxu0 %v8714_v59 }
 0x7d9   : > { %8302 = vmatpush3.bf16.msra.mxu0 %v8714_v59  ;;  %v8733_v59 = vld [vmem:[%s10520_s7 + $0xe8] sm:$0xff]  }
 0x7da   : > { %8303 = vmatprep.subr.bf16.mxu0 %v8715_v61 }
 0x7dd   : > { %8304 = vmatpush3.bf16.msra.mxu0 %v8715_v61  ;;  %v8734_v61 = vld [vmem:[%s10520_s7 + $0xe0] sm:$0xff]  }
 0x7de   : > { %8305 = vmatprep.subr.bf16.mxu0 %v8716_v0 }
 0x7e1   : > { %8306 = vmatpush3.bf16.msra.mxu0 %v8716_v0  ;;  %v8735_v0 = vld [vmem:[%s10520_s7 + $0xd8] sm:$0xff]  }
 0x7e2   : > { %8307 = vmatprep.subr.bf16.mxu0 %v8717_v1 }
 0x7e5   : > { %8308 = vmatpush3.bf16.msra.mxu0 %v8717_v1  ;;  %v8737_v1 = vld [vmem:[%s10520_s7 + $0xc8] sm:$0xff]  }
 0x7e6   : > { %8309 = vmatprep.subr.bf16.mxu0 %v8718_v3 }
 0x7e9   : > { %8310 = vmatpush3.bf16.msra.mxu0 %v8718_v3  ;;  %v8738_v3 = vld [vmem:[%s10520_s7 + $0xc0] sm:$0xff]  }
 0x7ea   : > { %8311 = vmatprep.subr.bf16.mxu0 %v8719_v52 }
 0x7ed   : > { %8312 = vmatpush3.bf16.msra.mxu0 %v8719_v52  ;;  %v8739_v52 = vld [vmem:[%s10522_s9 + $0x38] sm:$0xff]  }
 0x7ee   : > { %8313 = vmatprep.subr.bf16.mxu0 %v8720_v55 }
 0x7f1   : > { %8314 = vmatpush3.bf16.msra.mxu0 %v8720_v55  ;;  %v8740_v55 = vld [vmem:[%s10522_s9 + $0x30] sm:$0xff]  }
 0x7f2   : > { %8339 = vmatprep.subr.bf16.mxu0 %v8739_v52 }
 0x7f4   : > { %8316 = vmatmul.mubr.bf16.vlgmr.msra.gmra.mxu0 %v9720_v4 }
 0x7f5   : > { %8340 = vmatpush3.bf16.msra.mxu0 %v8739_v52 }
 0x7f6   : > { %8341 = vmatprep.subr.bf16.mxu0 %v8740_v55 }
 0x7f9   : > { %8342 = vmatpush3.bf16.msra.mxu0 %v8740_v55 }
 0x854   : > { %v8209_v63 = vpop.f32.mrf.mxu0 }
 0x856   : > { %v3705_v7 = vpop.f32.mrf.mxu0 }
 0x858   : > { %v8210_v8 = vpop.f32.mrf.mxu0 }
 0x859   : > { %v7413_v9 = vpack.c.bf16 %v8210_v8, %v8209_v63 }
 0x85a   : > { %v3708_v2 = vpop.f32.mrf.mxu0 }
 0x85b   : > { %7451 = vst [vmem:[#allocation4 + $0x38] sm:$0xff] %v7413_v9   ;;  %v7408_v10 = vpack.c.bf16 %v3708_v2, %v3705_v7 }
 0x85d   : > { %7409 = vst [vmem:[#allocation4 + $0x30] sm:$0xff] %v7408_v10  }
 0x874   : > { %v8229_v12 = vpop.f32.mrf.mxu0 }
 0x875   : > { %v3901_v13 = vadd.f32 %v8229_v12, %v6960_v11 }
 0x876   : > { %v3892_v14 = vpop.f32.mrf.mxu0 }
 0x877   : > { %v7317_v15 = vpack.c.bf16 %v3901_v13, %v3901_v13  ;;  %v3893_v16 = vadd.f32 %v6960_v11, %v3892_v14 }
 0x878   : > { %v8230_v17 = vpop.f32.mrf.mxu0 }
 0x879   : > { %4241 = vst.msk [vmem:[#allocation2 + $0x58] sm:$0xf] %vm1148_vm0, %v7317_v15  ;;  %v7315_v18 = vpack.c.bf16 %v3893_v16, %v3893_v16  ;;  %v3904_v54 = vadd.f32 %v8230_v17, %v6960_v11 }
 0x87a   : > { %v3895_v57 = vpop.f32.mrf.mxu0 }
 0x87b   : > { %4239 = vst.msk [vmem:[#allocation2 + $0x50] sm:$0xf] %vm1148_vm0, %v7315_v18  ;;  %v7318_v19 = vpack.c.bf16 %v3904_v54, %v3904_v54  ;;  %v3896_v20 = vadd.f32 %v6960_v11, %v3895_v57 }
 0x87d   : > { %4242 = vst.msk [vmem:[#allocation2 + $0x5c] sm:$0xf] %vm1148_vm0, %v7318_v19  ;;  %v7316_v21 = vpack.c.bf16 %v3896_v20, %v3896_v20 }
 0x87f   : > { %4240 = vst.msk [vmem:[#allocation2 + $0x54] sm:$0xf] %vm1148_vm0, %v7316_v21  ;;  %v7110_v21 = vld [vmem:[%s10521_s8 + $0x3] ss:$0 sm:$0xff] }
 0x894   : > { %v8269_v22 = vpop.f32.mrf.mxu0 }
 0x895   : > { %v4141_v30 = vadd.f32 %v8269_v22, %v7012_v25 }
 0x896   : > { %v4132_v23 = vpop.f32.mrf.mxu0 }
 0x897   : > { %v4133_v29 = vadd.f32 %v7012_v25, %v4132_v23 }
 0x898   : > { %v8270_v24 = vpop.f32.mrf.mxu0 }
 0x899   : > { %v4144_v27 = vadd.f32 %v8270_v24, %v7012_v25 }
 0x89a   : > { %v4135_v28 = vpop.f32.mrf.mxu0 }
 0x89b   : > { %v4136_v6 = vadd.f32 %v7012_v25, %v4135_v28  ;;  %v4148_v32 = vpack.c.bf16 %v4144_v27, %v4141_v30 }
 0x89d   : > { %v4147_v31 = vpack.c.bf16 %v4136_v6, %v4133_v29 }
 0x89f   : > { %8275 = vmatprep.mubr.msk.bf16.mxu1 %vm1076_vm1, %v4147_v31 }
 0x8a0   : > { %8276 = vmatmul.mubr.msk.bf16.vlgmr.msra.gmra.mxu1 %vm1076_vm1, %v4148_v32 }
 0x8a1   : > { %8280 = vmatpush3.bf16.msra.mxu1 %v8723_v62  ;;  %8295 = vmatprep.mubr.bf16.mxu1 %v9693_v26 }
 0x8a2   : > { %8281 = vmatprep.subr.bf16.mxu1 %v8724_v33 }
 0x8a5   : > { %8282 = vmatpush3.bf16.msra.mxu1 %v8724_v33 }
 0x8a6   : > { %8283 = vmatprep.subr.bf16.mxu1 %v8725_v34 }
 0x8a9   : > { %8284 = vmatpush3.bf16.msra.mxu1 %v8725_v34 }
 0x8aa   : > { %8285 = vmatprep.subr.bf16.mxu1 %v8726_v35 }
 0x8ad   : > { %8286 = vmatpush3.bf16.msra.mxu1 %v8726_v35 }
 0x8ae   : > { %8287 = vmatprep.subr.bf16.mxu1 %v8727_v36 }
 0x8b1   : > { %8288 = vmatpush3.bf16.msra.mxu1 %v8727_v36 }
 0x8b2   : > { %8289 = vmatprep.subr.bf16.mxu1 %v8728_v37 }
 0x8b4   : > { %v8317_v40 = vpop.f32.mrf.mxu0 }
 0x8b5   : > { %8290 = vmatpush3.bf16.msra.mxu1 %v8728_v37  ;;  %v4521_v56 = vadd.f32 %v8317_v40, %v7084_v38 }
 0x8b6   : > { %v4512_v41 = vpop.f32.mrf.mxu0  ;;  %8291 = vmatprep.subr.bf16.mxu1 %v8729_v39 }
 0x8b7   : > { %v7333_v43 = vpack.c.bf16 %v4521_v56, %v4521_v56  ;;  %v4513_v44 = vadd.f32 %v7084_v38, %v4512_v41 }
 0x8b8   : > { %v8318_v45 = vpop.f32.mrf.mxu0 }
 0x8b9   : > { %4763 = vst.msk [vmem:[#allocation3 + $0x78] sm:$0xf] %vm1148_vm0, %v7333_v43  ;;  %v7331_v46 = vpack.c.bf16 %v4513_v44, %v4513_v44  ;;  %8292 = vmatpush3.bf16.msra.mxu1 %v8729_v39  ;;  %v4524_v47 = vadd.f32 %v8318_v45, %v7084_v38 }
 0x8ba   : > { %v4515_v48 = vpop.f32.mrf.mxu0  ;;  %8293 = vmatprep.subr.bf16.mxu1 %v8730_v42 }
 0x8bb   : > { %4761 = vst.msk [vmem:[#allocation3 + $0x70] sm:$0xf] %vm1148_vm0, %v7331_v46  ;;  %v7334_v50 = vpack.c.bf16 %v4524_v47, %v4524_v47  ;;  %v4516_v51 = vadd.f32 %v7084_v38, %v4515_v48 }
 0x8bd   : > { %4764 = vst.msk [vmem:[#allocation3 + $0x7c] sm:$0xf] %vm1148_vm0, %v7334_v50  ;;  %v7332_v53 = vpack.c.bf16 %v4516_v51, %v4516_v51  ;;  %8294 = vmatpush3.bf16.msra.mxu1 %v8730_v42 }
 0x8be   : > { %8319 = vmatprep.subr.bf16.mxu1 %v8731_v49 }
 0x8bf   : > { %4762 = vst.msk [vmem:[#allocation3 + $0x74] sm:$0xf] %vm1148_vm0, %v7332_v53 }
 0x8c0   : > { %8296 = vmatmul.mubr.bf16.vlgmr.msra.gmra.mxu1 %v9720_v4 }
 0x8c1   : > { %8320 = vmatpush3.bf16.msra.mxu1 %v8731_v49  ;;  %8335 = vmatprep.mubr.bf16.mxu1 %v9693_v26  ;;  %v8736_v26 = vld [vmem:[%s10520_s7 + $0xd0] sm:$0xff]  }
 0x8c2   : > { %8321 = vmatprep.subr.bf16.mxu1 %v8732_v58 }
 0x8c5   : > { %8322 = vmatpush3.bf16.msra.mxu1 %v8732_v58 }
 0x8c6   : > { %8323 = vmatprep.subr.bf16.mxu1 %v8733_v59 }
 0x8c9   : > { %8324 = vmatpush3.bf16.msra.mxu1 %v8733_v59 }
 0x8ca   : > { %8325 = vmatprep.subr.bf16.mxu1 %v8734_v61 }
 0x8cd   : > { %8326 = vmatpush3.bf16.msra.mxu1 %v8734_v61 }
 0x8ce   : > { %8327 = vmatprep.subr.bf16.mxu1 %v8735_v0 }
 0x8d1   : > { %8328 = vmatpush3.bf16.msra.mxu1 %v8735_v0 }
 0x8d2   : > { %8329 = vmatprep.subr.bf16.mxu1 %v8736_v26 }
 0x8d5   : > { %8330 = vmatpush3.bf16.msra.mxu1 %v8736_v26 }
 0x8d6   : > { %8331 = vmatprep.subr.bf16.mxu1 %v8737_v1 }
 0x8d9   : > { %8332 = vmatpush3.bf16.msra.mxu1 %v8737_v1 }
 0x8da   : > { %8333 = vmatprep.subr.bf16.mxu1 %v8738_v3 }
 0x8dd   : > { %8334 = vmatpush3.bf16.msra.mxu1 %v8738_v3 }
 0x8e0   : > { %8336 = vmatmul.mubr.bf16.vlgmr.msra.gmra.mxu1 %v9720_v4  ;;  %v7058_v4 = vld [vmem:[%s10576_s4 + $0x3] ss:$0 sm:$0xff] }
 0x960   : > { %v8277_v5 = vpop.f32.mrf.mxu1 }
 0x962   : > { %v4205_v60 = vpop.f32.mrf.mxu1 }
 0x964   : > { %v8278_v62 = vpop.f32.mrf.mxu1 }
 0x965   : > { %v7423_v63 = vpack.c.bf16 %v8278_v62, %v8277_v5 }
 0x966   : > { %v4208_v7 = vpop.f32.mrf.mxu1 }
 0x967   : > { %7452 = vst [vmem:[#allocation4 + $0x58] sm:$0xff] %v7423_v63   ;;  %v7418_v8 = vpack.c.bf16 %v4208_v7, %v4205_v60 }
 0x969   : > { %7419 = vst [vmem:[#allocation4 + $0x50] sm:$0xff] %v7418_v8  }
 0x980   : > { %v8297_v9 = vpop.f32.mrf.mxu1 }
 0x981   : > { %v4401_v2 = vadd.f32 %v8297_v9, %v7058_v4 }
 0x982   : > { %v4392_v10 = vpop.f32.mrf.mxu1 }
 0x983   : > { %v7329_v11 = vpack.c.bf16 %v4401_v2, %v4401_v2  ;;  %v4393_v12 = vadd.f32 %v7058_v4, %v4392_v10 }
 0x984   : > { %v8298_v13 = vpop.f32.mrf.mxu1 }
 0x985   : > { %4741 = vst.msk [vmem:[#allocation2 + $0x78] sm:$0xf] %vm1148_vm0, %v7329_v11  ;;  %v7327_v14 = vpack.c.bf16 %v4393_v12, %v4393_v12  ;;  %v4404_v15 = vadd.f32 %v8298_v13, %v7058_v4 }
 0x986   : > { %v4395_v16 = vpop.f32.mrf.mxu1 }
 0x987   : > { %4739 = vst.msk [vmem:[#allocation2 + $0x70] sm:$0xf] %vm1148_vm0, %v7327_v14  ;;  %v7330_v17 = vpack.c.bf16 %v4404_v15, %v4404_v15  ;;  %v4396_v18 = vadd.f32 %v7058_v4, %v4395_v16 }
 0x989   : > { %4742 = vst.msk [vmem:[#allocation2 + $0x7c] sm:$0xf] %vm1148_vm0, %v7330_v17  ;;  %v7328_v54 = vpack.c.bf16 %v4396_v18, %v4396_v18 }
 0x98b   : > { %4740 = vst.msk [vmem:[#allocation2 + $0x74] sm:$0xf] %vm1148_vm0, %v7328_v54 }
 0x9a0   : > { %v8337_v57 = vpop.f32.mrf.mxu1 }
 0x9a1   : > { %v4641_v27 = vadd.f32 %v8337_v57, %v7110_v21 }
 0x9a2   : > { %v4632_v19 = vpop.f32.mrf.mxu1 }
 0x9a3   : > { %v4633_v24 = vadd.f32 %v7110_v21, %v4632_v19 }
 0x9a4   : > { %v8338_v20 = vpop.f32.mrf.mxu1 }
 0x9a5   : > { %v4644_v22 = vadd.f32 %v8338_v20, %v7110_v21 }
 0x9a6   : > { %v4635_v23 = vpop.f32.mrf.mxu1 }
 0x9a7   : > { %v4636_v25 = vadd.f32 %v7110_v21, %v4635_v23  ;;  %v4648_v29 = vpack.c.bf16 %v4644_v22, %v4641_v27 }
 0x9a9   : > { %v4647_v28 = vpack.c.bf16 %v4636_v25, %v4633_v24 }
 0x9ab   : > { %8343 = vmatprep.mubr.msk.bf16.mxu0 %vm1076_vm1, %v4647_v28 }
 0x9ac   : > { %8344 = vmatmul.mubr.msk.bf16.vlgmr.msra.gmra.mxu0 %vm1076_vm1, %v4648_v29 }
 0xa6c   : > { %v8345_v6 = vpop.f32.mrf.mxu0 }
 0xa6e   : > { %v4705_v30 = vpop.f32.mrf.mxu0 }
 0xa70   : > { %v8346_v31 = vpop.f32.mrf.mxu0 }
 0xa71   : > { %v7433_v32 = vpack.c.bf16 %v8346_v31, %v8345_v6 }
 0xa72   : > { %v4708_v33 = vpop.f32.mrf.mxu0 }
 0xa73   : > { %7453 = vst [vmem:[#allocation4 + $0x78] sm:$0xff] %v7433_v32   ;;  %v7428_v34 = vpack.c.bf16 %v4708_v33, %v4705_v30 }
 0xa75   : > { %7429 = vst [vmem:[#allocation4 + $0x70] sm:$0xff] %v7428_v34  }
 0xa76 PF: > { %v8757_v35 = vld [vmem:[#allocation3 + $0x18] sm:$0xff]   ;;  %vm4880_vm2 = vcmask 261120   ;;  %v8759_v38 = vld [vmem:[#allocation3 + $0x10] sm:$0xff]   ;;  %s7139_s22 = sshll.u32 %s9009_s21, 5  ;;  %v8761_v41 = vld [vmem:[#allocation3 + $0x8] sm:$0xff]   ;;  %vm5239_vm3 = vcmask 523264  }
 0xa77   : > { %v8758_v36 = vld [vmem:[#allocation3 + $0x38] sm:$0xff]   ;;  %8443 = vmatprep.subr.msk.bf16.mxu0 %vm4880_vm2, %v8757_v35  ;;  %v4897_v37 = vsel %vm4880_vm2, %v8757_v35, 0  ;;  %v8760_v40 = vld [vmem:[#allocation3 + $0x30] sm:$0xff]   ;;  %v4894_v56 = vsel %vm4880_vm2, %v8759_v38, 0  ;;  %s10135_s23 = sshra.s32 %s7139_s22, 3  ;;  %v8762_v43 = vld [vmem:[#allocation3 + $0x28] sm:$0xff]  }
 0xa78   : > { %8447 = vmatprep.subr.msk.bf16.mxu1 %vm4880_vm2, %v8758_v36  ;;  %8348 = vmatpush3.bf16.xpose.msra.mxu0 %v4897_v37  ;;  %v4994_v39 = vsel %vm4880_vm2, %v8758_v36, 0  ;;  %v4991_v42 = vsel %vm4880_vm2, %v8760_v40, 0  ;;  %s7140_s20 = sshll.u32 %s10135_s23, 2  ;;  %v4891_v46 = vsel %vm4880_vm2, %v8761_v41, 0  ;;  %v8763_v47 = vld [vmem:[#allocation3] sm:$0xff]   ;;  %v4988_v48 = vsel %vm4880_vm2, %v8762_v43, 0 }
 0xa79   : > { %8360 = vmatpush3.bf16.xpose.msra.mxu1 %v4994_v39  ;;  %8444 = vmatprep.subr.msk.bf16.mxu0 %vm4880_vm2, %v8759_v38  ;;  %s10141_s25 = scalar_lea.vmem [#allocation2], %s7140_s20  ;;  %v8764_v49 = vld [vmem:[#allocation3 + $0x20] sm:$0xff]   ;;  %v8768_v50 = vld [vmem:[#allocation3 + $0x58] sm:$0xff]   ;;  %v4888_v53 = vsel %vm4880_vm2, %v8763_v47, 0  ;;  %v8771_v1 = vld [vmem:[#allocation3 + $0x50] sm:$0xff]   ;;  %s4791_s3 = scalar_lea.vmem %s9210_s2, %s7140_s20 }
 0xa7a   : > { %8448 = vmatprep.subr.msk.bf16.mxu1 %vm4880_vm2, %v8760_v40  ;;  %v8765_v44 = vld [vmem:[%s10141_s25] sm:$0xff]   ;;  %v8769_v51 = vld [vmem:[#allocation3 + $0x78] sm:$0xff]   ;;  %v4985_v58 = vsel %vm4880_vm2, %v8764_v49, 0  ;;  %v5091_v59 = vsel %vm4880_vm2, %v8768_v50, 0  ;;  %v8766_v0 = vld [vmem:[%s10141_s25 + $0x8] sm:$0xff]   ;;  %v5088_v62 = vsel %vm4880_vm2, %v8771_v1, 0 }
 0xa7b   : > { %8355 = vmatprep.mubr.msk.bf16.mxu0 %vm4880_vm2, %v8765_v44  ;;  %v8767_v45 = vld [vmem:[%s10141_s25 + $0x20] sm:$0xff]   ;;  %v5188_v61 = vsel %vm4880_vm2, %v8769_v51, 0  ;;  %v8770_v26 = vld [vmem:[%s10141_s25 + $0x28] sm:$0xff]   ;;  %v8772_v3 = vld [vmem:[#allocation3 + $0x70] sm:$0xff]   ;;  %s7238_s2 = sshll.u32 %s9013_s1, 3  ;;  %s6350_s0 = sshll.u32 %s9212_s27, 4  ;;  %s10457_s0 = int_to_ptr.vmem [resolvable:$true] %s6350_s0 }
 0xa7c   : > { %8367 = vmatprep.mubr.msk.bf16.mxu1 %vm4880_vm2, %v8767_v45  ;;  %v8777_v52 = vld [vmem:[%s10141_s25 + $0x40] sm:$0xff]   ;;  %v8773_v5 = vld [vmem:[#allocation3 + $0x48] sm:$0xff]   ;;  %v5185_v63 = vsel %vm4880_vm2, %v8772_v3, 0  ;;  %v8781_v28 = vld [vmem:[#allocation4 + $0x18] sm:$0xff]   ;;  %s10581_s20 = sand.u32 1, %s9001_s30  }
 0xa7d   : > { %v8778_v55 = vld [vmem:[%s10141_s25 + $0x60] sm:$0xff]   ;;  %v8774_v60 = vld [vmem:[#allocation3 + $0x68] sm:$0xff]   ;;  %v5085_v7 = vsel %vm4880_vm2, %v8773_v5, 0  ;;  %v8782_v29 = vld [vmem:[#allocation4 + $0x38] sm:$0xff]  }
 0xa7e   : > { %v5182_v8 = vsel %vm4880_vm2, %v8774_v60, 0  ;;  %v8775_v4 = vld [vmem:[#allocation3 + $0x40] sm:$0xff]   ;;  %v8779_v11 = vld [vmem:[%s10141_s25 + $0x48] sm:$0xff]   ;;  %v8783_v6 = vld [vmem:[#allocation4 + $0x10] sm:$0xff]  }
 0xa7f   : > { %v8776_v9 = vld [vmem:[#allocation3 + $0x60] sm:$0xff]   ;;  %v5082_v2 = vsel %vm4880_vm2, %v8775_v4, 0  ;;  %v8780_v12 = vld [vmem:[%s10141_s25 + $0x68] sm:$0xff]   ;;  %v8784_v30 = vld [vmem:[#allocation4 + $0x30] sm:$0xff]   ;;  %s10577_s25 = sld [smem:[#allocation24_spill]] }
 0xa80   : > { %8350 = vmatpush3.bf16.xpose.msra.mxu0 %v4894_v56  ;;  %v5179_v10 = vsel %vm4880_vm2, %v8776_v9, 0  ;;  %v8785_v31 = vld [vmem:[#allocation4 + $0x8] sm:$0xff]   ;;  %v8787_v38 = vld [vmem:[#allocation4] sm:$0xff]  }
 0xa81   : > { %8362 = vmatpush3.bf16.xpose.msra.mxu1 %v4991_v42  ;;  %8445 = vmatprep.subr.msk.bf16.mxu0 %vm4880_vm2, %v8761_v41  ;;  %v8786_v37 = vld [vmem:[#allocation4 + $0x28] sm:$0xff]   ;;  %v8788_v45 = vld [vmem:[#allocation4 + $0x20] sm:$0xff]  }
 0xa82   : > { %8449 = vmatprep.subr.msk.bf16.mxu1 %vm4880_vm2, %v8762_v43 }
 0xa88   : > { %8352 = vmatpush3.bf16.xpose.msra.mxu0 %v4891_v46 }
 0xa89   : > { %8364 = vmatpush3.bf16.xpose.msra.mxu1 %v4988_v48  ;;  %8446 = vmatprep.subr.msk.bf16.mxu0 %vm4880_vm2, %v8763_v47 }
 0xa8a   : > { %8450 = vmatprep.subr.msk.bf16.mxu1 %vm4880_vm2, %v8764_v49 }
 0xa90   : > { %8354 = vmatpush3.bf16.xpose.msra.mxu0 %v4888_v53 }
 0xa91   : > { %8366 = vmatpush3.bf16.xpose.msra.mxu1 %v4985_v58  ;;  %8451 = vmatprep.subr.msk.bf16.mxu0 %vm4880_vm2, %v8768_v50  ;;  %v8789_v50 = vld [vmem:[#allocation4 + $0x58] sm:$0xff]  }
 0xa92   : > { %8455 = vmatprep.subr.msk.bf16.mxu1 %vm4880_vm2, %v8769_v51  ;;  %v10247_v51 = vld [vmem:[#allocation4 + $0x78] sm:$0xff]  }
 0xa97   : > { %8356 = vmatmul.mubr.msk.bf16.vlgmr.msra.gmra.mxu0 %vm4880_vm2, %v8766_v0 }
 0xa98   : > { %8368 = vmatmul.mubr.msk.bf16.vlgmr.msra.gmra.mxu1 %vm4880_vm2, %v8770_v26  ;;  %8372 = vmatpush3.bf16.xpose.msra.mxu0 %v5091_v59 }
 0xa99   : > { %8384 = vmatpush3.bf16.xpose.msra.mxu1 %v5188_v61  ;;  %8452 = vmatprep.subr.msk.bf16.mxu0 %vm4880_vm2, %v8771_v1 }
 0xa9a   : > { %8456 = vmatprep.subr.msk.bf16.mxu1 %vm4880_vm2, %v8772_v3  ;;  %8379 = vmatprep.mubr.msk.bf16.mxu0 %vm4880_vm2, %v8777_v52 }
 0xa9b   : > { %8391 = vmatprep.mubr.msk.bf16.mxu1 %vm4880_vm2, %v8778_v55 }
 0xaa0   : > { %8374 = vmatpush3.bf16.xpose.msra.mxu0 %v5088_v62 }
 0xaa1   : > { %8386 = vmatpush3.bf16.xpose.msra.mxu1 %v5185_v63  ;;  %8453 = vmatprep.subr.msk.bf16.mxu0 %vm4880_vm2, %v8773_v5 }
 0xaa2   : > { %8457 = vmatprep.subr.msk.bf16.mxu1 %vm4880_vm2, %v8774_v60 }
 0xaa8   : > { %8376 = vmatpush3.bf16.xpose.msra.mxu0 %v5085_v7 }
 0xaa9   : > { %8388 = vmatpush3.bf16.xpose.msra.mxu1 %v5182_v8  ;;  %8454 = vmatprep.subr.msk.bf16.mxu0 %vm4880_vm2, %v8775_v4 }
 0xaaa   : > { %8458 = vmatprep.subr.msk.bf16.mxu1 %vm4880_vm2, %v8776_v9 }
 0xab0   : > { %8378 = vmatpush3.bf16.xpose.msra.mxu0 %v5082_v2 }
 0xab1   : > { %8390 = vmatpush3.bf16.xpose.msra.mxu1 %v5179_v10  ;;  %8395 = vmatprep.subr.bf16.mxu0 %v8781_v28 }
 0xab2   : > { %8407 = vmatprep.subr.bf16.mxu1 %v8782_v29 }
 0xab7   : > { %8380 = vmatmul.mubr.msk.bf16.vlgmr.msra.gmra.mxu0 %vm4880_vm2, %v8779_v11 }
 0xab8   : > { %8392 = vmatmul.mubr.msk.bf16.vlgmr.msra.gmra.mxu1 %vm4880_vm2, %v8780_v12  ;;  %8396 = vmatpush3.bf16.msra.mxu0 %v8781_v28 }
 0xab9   : > { %8397 = vmatprep.subr.bf16.mxu0 %v8783_v6  ;;  %8408 = vmatpush3.bf16.msra.mxu1 %v8782_v29 }
 0xaba   : > { %8409 = vmatprep.subr.bf16.mxu1 %v8784_v30 }
 0xabc   : > { %8398 = vmatpush3.bf16.msra.mxu0 %v8783_v6 }
 0xabd   : > { %8399 = vmatprep.subr.bf16.mxu0 %v8785_v31  ;;  %8410 = vmatpush3.bf16.msra.mxu1 %v8784_v30 }
 0xabe   : > { %8411 = vmatprep.subr.bf16.mxu1 %v8786_v37 }
 0xac0   : > { %8400 = vmatpush3.bf16.msra.mxu0 %v8785_v31 }
 0xac1   : > { %8401 = vmatprep.subr.bf16.mxu0 %v8787_v38  ;;  %8412 = vmatpush3.bf16.msra.mxu1 %v8786_v37  ;;  %v8792_v37 = vld [vmem:[#allocation4 + $0x48] sm:$0xff]  }
 0xac2   : > { %8413 = vmatprep.subr.bf16.mxu1 %v8788_v45 }
 0xac4   : > { %8402 = vmatpush3.bf16.msra.mxu0 %v8787_v38 }
 0xac5   : > { %8414 = vmatpush3.bf16.msra.mxu1 %v8788_v45  ;;  %8419 = vmatprep.subr.bf16.mxu0 %v8789_v50 }
 0xac6   : > { %8431 = vmatprep.subr.bf16.mxu1 %v10247_v51 }
 0xb57   : > { %v10183_v13 = vpop.f32.mrf.mxu0 }
 0xb58   : > { %v10185_v14 = vpop.f32.mrf.mxu1  ;;  %v5246_v15 = vsel %vm5239_vm3, %v10183_v13, -inf }
 0xb59   : > { %5247 = vmax.xlane.f32.xlu1 %v5246_v15  ;;  %v10189_v16 = vpop.f32.mrf.mxu0  ;;  %v5258_v27 = vsel %vm5239_vm3, %v10185_v14, -inf }
 0xb5a   : > { %v10191_v17 = vpop.f32.mrf.mxu1  ;;  %v5240_v18 = vsel %vm5239_vm3, %v10189_v16, -inf }
 0xb5b   : > { %5241 = vmax.xlane.f32.xlu0 %v5240_v18  ;;  %v10195_v54 = vpop.f32.mrf.mxu0  ;;  %v5252_v19 = vsel %vm5239_vm3, %v10191_v17, -inf }
 0xb5c   : > { %v5249_v57 = vsel %vm5239_vm3, %v10195_v54, -inf  ;;  %v10201_v20 = vpop.f32.mrf.mxu1 }
 0xb5d   : > { %5250 = vmax.xlane.f32.xlu1 %v5249_v57  ;;  %v5261_v21 = vsel %vm5239_vm3, %v10201_v20, -inf  ;;  %v10205_v22 = vpop.f32.mrf.mxu0 }
 0xb5e   : > { %v10207_v23 = vpop.f32.mrf.mxu1  ;;  %v5243_v24 = vsel %vm5239_vm3, %v10205_v22, -inf }
 0xb5f   : > { %5253 = vmax.xlane.f32.xlu0 %v5252_v19  ;;  %v5255_v25 = vsel %vm5239_vm3, %v10207_v23, -inf }
 0xb61   : > { %5262 = vmax.xlane.f32.xlu1 %v5261_v21 }
 0xb63   : > { %5244 = vmax.xlane.f32.xlu0 %v5243_v24 }
 0xb65   : > { %5256 = vmax.xlane.f32.xlu1 %v5255_v25  ;;  %v8790_v25 = vld [vmem:[#allocation4 + $0x50] sm:$0xff]  }
 0xb67   : > { %5259 = vmax.xlane.f32.xlu0 %v5258_v27 }
 0xb77   : > { %v10215_v32 = vpop.f32.mrf.mxu0 }
 0xb78   : > { %v10217_v33 = vpop.f32.mrf.mxu1  ;;  %v5270_v34 = vsel %vm5239_vm3, %v10215_v32, -inf }
 0xb79   : > { %5271 = vmax.xlane.f32.xlu0 %v5270_v34  ;;  %v10221_v35 = vpop.f32.mrf.mxu0  ;;  %v5282_v47 = vsel %vm5239_vm3, %v10217_v33, -inf  ;;  %v8793_v34 = vld [vmem:[#allocation4 + $0x70] sm:$0xff]  }
 0xb7a   : > { %v10223_v36 = vpop.f32.mrf.mxu1  ;;  %v5264_v40 = vsel %vm5239_vm3, %v10221_v35, -inf }
 0xb7b   : > { %v10225_v39 = vpop.f32.mrf.mxu0  ;;  %v5276_v43 = vsel %vm5239_vm3, %v10223_v36, -inf }
 0xb7c   : > { %v5273_v56 = vsel %vm5239_vm3, %v10225_v39, -inf  ;;  %v10231_v41 = vpop.f32.mrf.mxu1 }
 0xb7d   : > { %5265 = vmax.xlane.f32.xlu0 %v5264_v40  ;;  %5274 = vmax.xlane.f32.xlu1 %v5273_v56  ;;  %v10233_v42 = vpop.f32.mrf.mxu0  ;;  %v5285_v49 = vsel %vm5239_vm3, %v10231_v41, -inf }
 0xb7e   : > { %v5267_v44 = vsel %vm5239_vm3, %v10233_v42, -inf  ;;  %v10239_v46 = vpop.f32.mrf.mxu1 }
 0xb7f   : > { %v5279_v48 = vsel %vm5239_vm3, %v10239_v46, -inf }
 0xb81   : > { %5277 = vmax.xlane.f32.xlu0 %v5276_v43  ;;  %5268 = vmax.xlane.f32.xlu1 %v5267_v44 }
 0xb85   : > { %5283 = vmax.xlane.f32.xlu0 %v5282_v47  ;;  %5280 = vmax.xlane.f32.xlu1 %v5279_v48  ;;  %v8795_v47 = vld [vmem:[#allocation4 + $0x68] sm:$0xff]   ;;  %v8794_v48 = vld [vmem:[#allocation4 + $0x40] sm:$0xff]  }
 0xb89   : > { %5286 = vmax.xlane.f32.xlu1 %v5285_v49 }
 0xbe2   : > { %v5248_v53 = vpop.xlane.xlu1 %5247 }
 0xbe3   : > { %v5290_v58 = vsub.f32 %v10183_v13, %v5248_v53 }
 0xbe4   : > { %v5242_v59 = vpop.xlane.xlu0 %5241 }
 0xbe5   : > { %v5308_v61 = vmul.f32 1.442695, %v5290_v58  ;;  %v5288_v1 = vsub.f32 %v10189_v16, %v5242_v59 }
 0xbe6   : > { %v5251_v0 = vpop.xlane.xlu1 %5250 }
 0xbe7   : > { %8837 = vpow2.f32 %v5308_v61  ;;  %v5291_v26 = vsub.f32 %v10195_v54, %v5251_v0  ;;  %v5304_v62 = vmul.f32 1.442695, %v5288_v1  ;;  %v8796_v61 = vld [vmem:[#allocation4 + $0x60] sm:$0xff]  }
 0xbe8   : > { %v5254_v3 = vpop.xlane.xlu0 %5253 }
 0xbe9   : > { %v5310_v52 = vmul.f32 1.442695, %v5291_v26  ;;  %v5292_v55 = vsub.f32 %v10191_v17, %v5254_v3 }
 0xbea   : > { %v5263_v5 = vpop.xlane.xlu1 %5262 }
 0xbeb   : > { %8839 = vpow2.f32 %v5310_v52  ;;  %v5295_v60 = vsub.f32 %v10201_v20, %v5263_v5  ;;  %v5312_v4 = vmul.f32 1.442695, %v5292_v55 }
 0xbec   : > { %v5245_v63 = vpop.xlane.xlu0 %5244 }
 0xbed   : > { %v5318_v7 = vmul.f32 1.442695, %v5295_v60  ;;  %v5289_v8 = vsub.f32 %v10205_v22, %v5245_v63 }
 0xbee   : > { %v5257_v9 = vpop.xlane.xlu1 %5256 }
 0xbef   : > { %8841 = vpow2.f32 %v5318_v7  ;;  %v5306_v2 = vmul.f32 1.442695, %v5289_v8  ;;  %v5293_v10 = vsub.f32 %v10207_v23, %v5257_v9 }
 0xbf0   : > { %8843 = vpow2.f32 %v5304_v62  ;;  %v5260_v11 = vpop.xlane.xlu0 %5259 }
 0xbf1   : > { %8845 = vpow2.f32 %v5306_v2  ;;  %v5314_v12 = vmul.f32 1.442695, %v5293_v10  ;;  %v5294_v13 = vsub.f32 %v10185_v14, %v5260_v11 }
 0xbf2   : > { %8847 = vpow2.f32 %v5312_v4 }
 0xbf3   : > { %8849 = vpow2.f32 %v5314_v12  ;;  %v5316_v15 = vmul.f32 1.442695, %v5294_v13 }
 0xbf4   : > { %v8838_v16 = vpop.eup %8837 }
 0xbf5   : > { %8851 = vpow2.f32 %v5316_v15  ;;  %v5342_v17 = vsel %vm5239_vm3, %v8838_v16, 0.0 }
 0xbf6   : > { %5343 = vadd.xlane.f32.xlu0 %v5342_v17 }
 0xbf8   : > { %v8840_v18 = vpop.eup %8839 }
 0xbf9   : > { %v5345_v54 = vsel %vm5239_vm3, %v8840_v18, 0.0  ;;  %v5401_v24 = vpack.c.bf16 %v8840_v18, %v8838_v16 }
 0xbfa   : > { %5346 = vadd.xlane.f32.xlu1 %v5345_v54 }
 0xbfc   : > { %v8842_v57 = vpop.eup %8841 }
 0xbfd   : > { %v8844_v19 = vpop.eup %8843  ;;  %v5357_v20 = vsel %vm5239_vm3, %v8842_v57, 0.0 }
 0xbfe   : > { %v8846_v21 = vpop.eup %8845  ;;  %5358 = vadd.xlane.f32.xlu1 %v5357_v20  ;;  %v5336_v45 = vsel %vm5239_vm3, %v8844_v19, 0.0 }
 0xbff   : > { %v8848_v22 = vpop.eup %8847  ;;  %v5400_v14 = vpack.c.bf16 %v8846_v21, %v8844_v19  ;;  %v5339_v27 = vsel %vm5239_vm3, %v8846_v21, 0.0 }
 0xc00   : > { %v8850_v23 = vpop.eup %8849 }
 0xc01   : > { %8403 = vmatprep.mubr.msk.bf16.mxu0 %vm5239_vm3, %v5400_v14  ;;  %v5402_v28 = vpack.c.bf16 %v8850_v23, %v8848_v22  ;;  %v5351_v38 = vsel %vm5239_vm3, %v8850_v23, 0.0 }
 0xc02   : > { %v8852_v29 = vpop.eup %8851  ;;  %8404 = vmatmul.mubr.msk.bf16.vlgmr.msra.gmra.mxu0 %vm5239_vm3, %v5401_v24  ;;  %v5272_v6 = vpop.xlane.xlu0 %5271  ;;  %5340 = vadd.xlane.f32.xlu1 %v5339_v27 }
 0xc03   : > { %8415 = vmatprep.mubr.msk.bf16.mxu1 %vm5239_vm3, %v5402_v28  ;;  %v5354_v30 = vsel %vm5239_vm3, %v8852_v29, 0.0  ;;  %v5403_v31 = vpack.c.bf16 %v8842_v57, %v8852_v29  ;;  %8420 = vmatpush3.bf16.msra.mxu0 %v8789_v50  ;;  %v5298_v49 = vsub.f32 %v10215_v32, %v5272_v6 }
 0xc04   : > { %5355 = vadd.xlane.f32.xlu0 %v5354_v30  ;;  %8421 = vmatprep.subr.bf16.mxu0 %v8790_v25 }
 0xc05   : > { %8416 = vmatmul.mubr.msk.bf16.vlgmr.msra.gmra.mxu1 %vm5239_vm3, %v5403_v31  ;;  %v5324_v0 = vmul.f32 1.442695, %v5298_v49 }
 0xc06   : > { %v5266_v40 = vpop.xlane.xlu0 %5265  ;;  %v5275_v56 = vpop.xlane.xlu1 %5274  ;;  %5352 = vadd.xlane.f32.xlu1 %v5351_v38  ;;  %8432 = vmatpush3.bf16.msra.mxu1 %v10247_v51  ;;  %v5348_v51 = vsel %vm5239_vm3, %v8848_v22, 0.0 }
 0xc07   : > { %v5296_v43 = vsub.f32 %v10221_v35, %v5266_v40  ;;  %v5299_v44 = vsub.f32 %v10225_v39, %v5275_v56  ;;  %8422 = vmatpush3.bf16.msra.mxu0 %v8790_v25  ;;  %8433 = vmatprep.subr.bf16.mxu1 %v8793_v34 }
 0xc08   : > { %5337 = vadd.xlane.f32.xlu0 %v5336_v45  ;;  %8423 = vmatprep.subr.bf16.mxu0 %v8792_v37 }
 0xc09   : > { %v5320_v50 = vmul.f32 1.442695, %v5296_v43  ;;  %v5326_v53 = vmul.f32 1.442695, %v5299_v44 }
 0xc0a   : > { %v5278_v58 = vpop.xlane.xlu0 %5277  ;;  %v5269_v59 = vpop.xlane.xlu1 %5268  ;;  %8434 = vmatpush3.bf16.msra.mxu1 %v8793_v34 }
 0xc0b   : > { %8853 = vpow2.f32 %v5320_v50  ;;  %v5300_v35 = vsub.f32 %v10223_v36, %v5278_v58  ;;  %v5297_v39 = vsub.f32 %v10233_v42, %v5269_v59  ;;  %8424 = vmatpush3.bf16.msra.mxu0 %v8792_v37  ;;  %8435 = vmatprep.subr.bf16.mxu1 %v8795_v47 }
 0xc0c   : > { %5349 = vadd.xlane.f32.xlu0 %v5348_v51  ;;  %8425 = vmatprep.subr.bf16.mxu0 %v8794_v48  ;;  %8855 = vpow2.f32 %v5326_v53 }
 0xc0d   : > { %v5328_v26 = vmul.f32 1.442695, %v5300_v35  ;;  %v5322_v32 = vmul.f32 1.442695, %v5297_v39 }
 0xc0e   : > { %v5284_v1 = vpop.xlane.xlu0 %5283  ;;  %v5281_v3 = vpop.xlane.xlu1 %5280  ;;  %8436 = vmatpush3.bf16.msra.mxu1 %v8795_v47 }
 0xc0f   : > { %8857 = vpow2.f32 %v5328_v26  ;;  %v5302_v52 = vsub.f32 %v10217_v33, %v5284_v1  ;;  %v5301_v36 = vsub.f32 %v10239_v46, %v5281_v3  ;;  %8426 = vmatpush3.bf16.msra.mxu0 %v8794_v48  ;;  %8437 = vmatprep.subr.bf16.mxu1 %v8796_v61 }
 0xc10   : > { %8859 = vpow2.f32 %v5322_v32 }
 0xc11   : > { %8861 = vpow2.f32 %v5324_v0  ;;  %v5332_v42 = vmul.f32 1.442695, %v5302_v52  ;;  %v5330_v55 = vmul.f32 1.442695, %v5301_v36 }
 0xc12   : > { %v5287_v5 = vpop.xlane.xlu1 %5286  ;;  %8438 = vmatpush3.bf16.msra.mxu1 %v8796_v61 }
 0xc13   : > { %v5303_v60 = vsub.f32 %v10231_v41, %v5287_v5  ;;  %8863 = vpow2.f32 %v5330_v55 }
 0xc14   : > { %8865 = vpow2.f32 %v5332_v42 }
 0xc15   : > { %v5334_v62 = vmul.f32 1.442695, %v5303_v60 }
 0xc17   : > { %8867 = vpow2.f32 %v5334_v62 }
 0xc18   : > { %v8854_v63 = vpop.eup %8853 }
 0xc19   : > { %v5360_v7 = vsel %vm5239_vm3, %v8854_v63, 0.0  ;;  %v8856_v33 = vpop.eup %8855 }
 0xc1a   : > { %5361 = vadd.xlane.f32.xlu0 %v5360_v7  ;;  %v5369_v57 = vsel %vm5239_vm3, %v8856_v33, 0.0 }
 0xc1c   : > { %v8858_v46 = vpop.eup %8857 }
 0xc1d   : > { %v8860_v8 = vpop.eup %8859  ;;  %v5372_v4 = vsel %vm5239_vm3, %v8858_v46, 0.0 }
 0xc1e   : > { %v8862_v9 = vpop.eup %8861  ;;  %5373 = vadd.xlane.f32.xlu0 %v5372_v4  ;;  %v5363_v2 = vsel %vm5239_vm3, %v8860_v8, 0.0  ;;  %v5404_v10 = vpack.c.bf16 %v8860_v8, %v8854_v63  ;;  %v7436_v63 = vld [vmem:[%s4791_s3] sm:$0xff]  }
 0xc1f   : > { %5364 = vadd.xlane.f32.xlu1 %v5363_v2  ;;  %v5405_v41 = vpack.c.bf16 %v8856_v33, %v8862_v9  ;;  %v5366_v12 = vsel %vm5239_vm3, %v8862_v9, 0.0 }
 0xc20   : > { %8427 = vmatprep.mubr.msk.bf16.mxu0 %vm5239_vm3, %v5404_v10  ;;  %v8864_v11 = vpop.eup %8863 }
 0xc21   : > { %8428 = vmatmul.mubr.msk.bf16.vlgmr.msra.gmra.mxu0 %vm5239_vm3, %v5405_v41  ;;  %v8866_v13 = vpop.eup %8865  ;;  %v5375_v15 = vsel %vm5239_vm3, %v8864_v11, 0.0  ;;  %v5406_v16 = vpack.c.bf16 %v8864_v11, %v8858_v46  ;;  %v7454_v41 = vld [vmem:[%s4791_s3 + $0x8] sm:$0xff]   ;;  %s7237_s3 = sshll.u32 %s9009_s21, 2  ;;  %s10579_s21 = sld [smem:[#allocation25_spill]] }
 0xc22   : > { %5367 = vadd.xlane.f32.xlu0 %v5366_v12  ;;  %v5378_v18 = vsel %vm5239_vm3, %v8866_v13, 0.0  ;;  %s6347_s29 = sadd.s32 %s7238_s2, %s7237_s3  ;;  %s10462_s3 = scalar_lea.sflag [#allocation6], %s10581_s20 }
 0xc23   : > { %5376 = vadd.xlane.f32.xlu1 %v5375_v15  ;;  %8439 = vmatprep.mubr.msk.bf16.mxu1 %vm5239_vm3, %v5406_v16  ;;  %s7239_s18 = sshll.u32 %s6347_s29, 7  ;;  %s8933_s2 = scalar_lea.vmem %s10457_s0, 512 }
 0xc24   : > { %v8868_v17 = vpop.eup %8867  ;;  %p8934_p0 = scmp.ne.s32.totalorder %s10457_s0, %s8933_s2  ;;  %s9028_s29 = smov [#allocation5]  }
 0xc25   : > { %v5407_v54 = vpack.c.bf16 %v8868_v17, %v8866_v13  ;;  %v5381_v19 = vsel %vm5239_vm3, %v8868_v17, 0.0  ;;  %v7437_v17 = vunpack.c.l.bf16 %v7436_v63  ;;  %s8937_s4 = sshll.u32 %s9028_s29, 4  ;;  %s8938_s4 = int_to_ptr.vmem [resolvable:$false] %s8937_s4 }
 0xc26   : > { %5379 = vadd.xlane.f32.xlu0 %v5378_v18  ;;  %p8935_p1 = pnand %p8934_p0, %p9182_p3  ;;  %p8940_p4 = scmp.lt.s32.totalorder %s10457_s0, %s8938_s4 }
 0xc27   : > { %5370 = vadd.xlane.f32.xlu1 %v5369_v57  ;;  %8440 = vmatmul.mubr.msk.bf16.vlgmr.msra.gmra.mxu1 %vm5239_vm3, %v5407_v54  ;;  %s10455_s1 = scalar_lea.hbm %s10579_s21, %s7239_s18  ;;  %s8939_s18 = scalar_lea.vmem %s8938_s4, 1024 }
 0xc28   : > { %p8936_p2 = pneg %p8935_p1  ;;  %p8941_p5 = scmp.lt.s32.totalorder %s8939_s18, %s8933_s2 }
 0xc2a   : > { %p8942_p6 = por %p8941_p5, %p8940_p4 }
 0xc2b   : > { %5382 = vadd.xlane.f32.xlu1 %v5381_v19 }
 0xc2c   : > { %p8943_p7 = pnand %p8942_p6, %p8936_p2 }
 0xc7f   : > { %v5344_v20 = vpop.xlane.xlu0 %5343 }
 0xc80   : > { %8869 = vrcp.f32 %v5344_v20 }
 0xc83   : > { %v5347_v21 = vpop.xlane.xlu1 %5346 }
 0xc84   : > { %8871 = vrcp.f32 %v5347_v21 }
 0xc87   : > { %v5359_v14 = vpop.xlane.xlu1 %5358 }
 0xc88   : > { %8873 = vrcp.f32 %v5359_v14  ;;  %v7441_v14 = vunpack.c.l.bf16 %v7454_v41 }
 0xc8b   : > { %v5341_v24 = vpop.xlane.xlu1 %5340 }
 0xc8c   : > { %8875 = vrcp.f32 %v5341_v24 }
 0xc8d   : > { %v5356_v22 = vpop.xlane.xlu0 %5355  ;;  %v8870_v45 = vpop.eup %8869 }
 0xc8e   : > { %8877 = vrcp.f32 %v5356_v22 }
 0xc8f   : > { %v5353_v27 = vpop.xlane.xlu1 %5352 }
 0xc90   : > { %8879 = vrcp.f32 %v5353_v27 }
 0xc91   : > { %v5338_v23 = vpop.xlane.xlu0 %5337  ;;  %v8872_v47 = vpop.eup %8871 }
 0xc92   : > { %8881 = vrcp.f32 %v5338_v23 }
 0xc95   : > { %v5350_v25 = vpop.xlane.xlu0 %5349  ;;  %v8874_v49 = vpop.eup %8873 }
 0xc96   : > { %8883 = vrcp.f32 %v5350_v25 }
 0xc99   : > { %v8876_v50 = vpop.eup %8875 }
 0xc9b   : > { %v8878_v58 = vpop.eup %8877 }
 0xc9d   : > { %v8880_v59 = vpop.eup %8879 }
 0xc9f   : > { %v8882_v51 = vpop.eup %8881 }
 0xca3   : > { %v5362_v28 = vpop.xlane.xlu0 %5361  ;;  %v8884_v61 = vpop.eup %8883 }
 0xca7   : > { %v5374_v6 = vpop.xlane.xlu0 %5373 }
 0xca8   : > { %v5365_v29 = vpop.xlane.xlu1 %5364 }
 0xcab   : > { %v5368_v31 = vpop.xlane.xlu0 %5367 }
 0xcac   : > { %v5377_v30 = vpop.xlane.xlu1 %5376  ;;  %8885 = vrcp.f32 %v5368_v31 }
 0xcad   : > { %8887 = vrcp.f32 %v5362_v28 }
 0xcae   : > { %8889 = vrcp.f32 %v5374_v6  ;;  %v7438_v6 = vunpack.c.h.bf16 %v7436_v63 }
 0xcaf   : > { %v5380_v38 = vpop.xlane.xlu0 %5379 }
 0xcb0   : > { %v5371_v37 = vpop.xlane.xlu1 %5370  ;;  %8891 = vrcp.f32 %v5380_v38 }
 0xcb1   : > { %8893 = vrcp.f32 %v5365_v29 }
 0xcb2   : > { %8895 = vrcp.f32 %v5371_v37 }
 0xcb4   : > { %v5383_v43 = vpop.xlane.xlu1 %5382 }
 0xcb5   : > { %8897 = vrcp.f32 %v5383_v43 }
 0xcb6   : > { %8899 = vrcp.f32 %v5377_v30 }
 0xcb9   : > { %v8886_v32 = vpop.eup %8885 }
 0xcba   : > { %v8888_v3 = vpop.eup %8887 }
 0xcbb   : > { %v8890_v5 = vpop.eup %8889 }
 0xcbd   : > { %v8892_v7 = vpop.eup %8891 }
 0xcbe   : > { %v8894_v9 = vpop.eup %8893 }
 0xcbf   : > { %v8896_v12 = vpop.eup %8895 }
 0xcc2   : > { %v8405_v34 = vpop.f32.mrf.mxu0  ;;  %v8898_v21 = vpop.eup %8897 }
 0xcc3   : > { %v5497_v52 = vmul.f32 %v8870_v45, %v8405_v34  ;;  %v8900_v29 = vpop.eup %8899 }
 0xcc4   : > { %v5480_v40 = vpop.f32.mrf.mxu0 }
 0xcc5   : > { %v8417_v56 = vpop.f32.mrf.mxu1  ;;  %v5495_v60 = vmul.f32 %v8882_v51, %v5480_v40  ;;  %v7442_v40 = vunpack.c.h.bf16 %v7454_v41  ;;  %v8814_v41 = vld [vmem:[%s10526_s13 + $0x24] ss:$8 sps:$4 sm:$0xff]  }
 0xcc6   : > { %v8406_v44 = vpop.f32.mrf.mxu0  ;;  %v5589_v0 = vmul.f32 %v8878_v58, %v8417_v56  ;;  %v7198_v56 = vld [vmem:[%s10523_s10] ss:$0 sm:$0xff] }
 0xcc7   : > { %v5572_v48 = vpop.f32.mrf.mxu1  ;;  %v5498_v13 = vmul.f32 %v8872_v47, %v8406_v44 }
 0xcc8   : > { %v5483_v53 = vpop.f32.mrf.mxu0  ;;  %v5587_v1 = vmul.f32 %v8884_v61, %v5572_v48  ;;  %v5593_v33 = vadd.f32 %v5589_v0, %v5497_v52 }
 0xcc9   : > { %v8418_v35 = vpop.f32.mrf.mxu1  ;;  %v5496_v15 = vmul.f32 %v8876_v50, %v5483_v53 }
 0xcca   : > { %v5590_v46 = vmul.f32 %v8874_v49, %v8418_v35  ;;  %v5591_v2 = vadd.f32 %v5587_v1, %v5495_v60  ;;  %v8799_v35 = vld [vmem:[%s10526_s13 + $0x74] ss:$8 sps:$4 sm:$0xff]  }
 0xccb   : > { %v5575_v36 = vpop.f32.mrf.mxu1  ;;  %5979 = vmatprep.subr.bf16.mxu0 %v8799_v35 }
 0xccc   : > { %v5588_v10 = vmul.f32 %v8880_v59, %v5575_v36  ;;  %v5594_v22 = vadd.f32 %v5590_v46, %v5498_v13  ;;  %v8797_v59 = vld [vmem:[%s10526_s13 + $0x70] ss:$8 sps:$4 sm:$0xff]   ;;  %v8805_v46 = vld [vmem:[%s10526_s13 + $0x54] ss:$8 sps:$4 sm:$0xff]  }
 0xccd   : > { %5980 = vmatpush1.bf16.msra.mxu0 %v8797_v59  ;;  %v8817_v13 = vld [vmem:[%s10526_s13 + $0x14] ss:$8 sps:$4 sm:$0xff]  }
 0xcce   : > { %v5592_v24 = vadd.f32 %v5588_v10, %v5496_v15  ;;  %v8811_v10 = vld [vmem:[%s10526_s13 + $0x34] ss:$8 sps:$4 sm:$0xff]   ;;  %v8815_v15 = vld [vmem:[%s10526_s13 + $0x10] ss:$8 sps:$4 sm:$0xff]  }
 0xce1   : > { %v8429_v39 = vpop.f32.mrf.mxu0 }
 0xce2   : > { %v5685_v42 = vmul.f32 %v8886_v32, %v8429_v39 }
 0xce3   : > { %v5668_v26 = vpop.f32.mrf.mxu0 }
 0xce4   : > { %v5683_v62 = vmul.f32 %v8888_v3, %v5668_v26  ;;  %v5689_v16 = vadd.f32 %v5685_v42, %v5593_v33  ;;  %v8800_v33 = vld [vmem:[%s10526_s13 + $0x60] ss:$8 sps:$4 sm:$0xff]  }
 0xce5   : > { %v8430_v55 = vpop.f32.mrf.mxu0 }
 0xce6   : > { %v5687_v54 = vadd.f32 %v5683_v62, %v5591_v2  ;;  %v5686_v57 = vmul.f32 %v8896_v12, %v8430_v55  ;;  %v8809_v2 = vld [vmem:[%s10526_s13 + $0x30] ss:$8 sps:$4 sm:$0xff]   ;;  %v8812_v12 = vld [vmem:[%s10526_s13 + $0x20] ss:$8 sps:$4 sm:$0xff]  }
 0xce7   : > { %v5671_v8 = vpop.f32.mrf.mxu0  ;;  %v8441_v4 = vpop.f32.mrf.mxu1 }
 0xce8   : > { %v5781_v11 = vmul.f32 %v8892_v7, %v8441_v4  ;;  %v5684_v19 = vmul.f32 %v8894_v9, %v5671_v8  ;;  %v5690_v31 = vadd.f32 %v5686_v57, %v5594_v22  ;;  %v8802_v7 = vld [vmem:[%s10526_s13 + $0x64] ss:$8 sps:$4 sm:$0xff]   ;;  %v8803_v8 = vld [vmem:[%s10526_s13 + $0x50] ss:$8 sps:$4 sm:$0xff]   ;;  %v8806_v9 = vld [vmem:[%s10526_s13 + $0x40] ss:$8 sps:$4 sm:$0xff]  }
 0xce9   : > { %v5764_v18 = vpop.f32.mrf.mxu1  ;;  %5981 = vmatprep.subr.bf16.mxu0 %v8802_v7  ;;  %v8808_v4 = vld [vmem:[%s10526_s13 + $0x44] ss:$8 sps:$4 sm:$0xff]  }
 0xcea   : > { %v5779_v20 = vmul.f32 %v8890_v5, %v5764_v18  ;;  %v5785_v25 = vadd.f32 %v5781_v11, %v5689_v16  ;;  %v5688_v34 = vadd.f32 %v5684_v19, %v5592_v24  ;;  %5982 = vmatpush1.bf16.msra.mxu0 %v8800_v33  ;;  %v9027_v11 = vmov 0   ;;  %v8820_v16 = vld [vmem:[%s10526_s13 + $0x4] ss:$8 sps:$4 sm:$0xff]  }
 0xceb   : > { %v8442_v23 = vpop.f32.mrf.mxu1  ;;  %5983 = vmatprep.subr.bf16.mxu0 %v8805_v46  ;;  %6011 = vmatprep.mubr.bf16.mxu0 %v9027_v11  ;;  %v8834_v7 = vld [vmem:[%s10528_s15 + $0x8] sm:$0xff]   ;;  %v8835_v33 = vld [vmem:[%s10528_s15 + $0x40] sm:$0xff]  }
 0xcec   : > { %v5783_v27 = vadd.f32 %v5779_v20, %v5687_v54  ;;  %v5782_v28 = vmul.f32 %v8898_v21, %v8442_v23  ;;  %v5789_v43 = vadd.f32 %v7441_v14, %v5785_v25  ;;  %v8836_v46 = vld [vmem:[%s10528_s15] sm:$0xff]  }
 0xced   : > { %v5767_v30 = vpop.f32.mrf.mxu1 }
 0xcee   : > { %v5787_v37 = vadd.f32 %v7437_v17, %v5783_v27  ;;  %v5780_v38 = vmul.f32 %v8900_v29, %v5767_v30  ;;  %v5786_v44 = vadd.f32 %v5782_v28, %v5690_v31  ;;  %v10302_v53 = vadd.f32 %v7198_v56, %v5789_v43  ;;  %5984 = vmatpush1.bf16.msra.mxu0 %v8803_v8  ;;  %v8818_v17 = vld [vmem:[%s10526_s13] ss:$8 sps:$4 sm:$0xff]  }
 0xcef   : > { %5985 = vmatprep.subr.bf16.mxu0 %v8808_v4  ;;  %v5889_v8 = vlaneseq }
 0xcf0   : > { %v5784_v45 = vadd.f32 %v5780_v38, %v5688_v34  ;;  %v10297_v47 = vadd.f32 %v7198_v56, %v5787_v37  ;;  %v5790_v49 = vadd.f32 %v7442_v40, %v5786_v44  ;;  %v7200_v38 = vld [vmem:[%s10525_s12] ss:$0 sm:$0xff] }
 0xcf1   : > { %v5890_v4 = vshrl.u32 %v5889_v8, 7 }
 0xcf2   : > { %v5788_v48 = vadd.f32 %v7438_v6, %v5784_v45  ;;  %5804 = vadd.xlane.f32.xlu0 %v10297_v47  ;;  %v10306_v58 = vadd.f32 %v7198_v56, %v5790_v49  ;;  %5986 = vmatpush1.bf16.msra.mxu0 %v8806_v9  ;;  %v7199_v6 = vld [vmem:[%s10524_s11] ss:$0 sm:$0xff] }
 0xcf3   : > { %5987 = vmatprep.subr.bf16.mxu0 %v8811_v10  ;;  %v5891_v9 = vsub.s32 0, %v5890_v4  ;;  %v5895_v10 = vsub.s32 1, %v5890_v4 }
 0xcf4   : > { %v10300_v50 = vadd.f32 %v7198_v56, %v5788_v48 }
 0xcf6   : > { %5806 = vadd.xlane.f32.xlu1 %v10300_v50  ;;  %5808 = vadd.xlane.f32.xlu0 %v10302_v53 }
 0xcf7   : > { %5988 = vmatpush1.bf16.msra.mxu0 %v8809_v2  ;;  %v5887_v2 = vld [vmem:[%s10527_s14] sm:$0x3] }
 0xcf8   : > { %5989 = vmatprep.subr.bf16.mxu0 %v8814_v41  ;;  %v5892_v41 = vrot.slane %v5887_v2, %v5891_v9 }
 0xcfa   : > { %5810 = vadd.xlane.f32.xlu1 %v10306_v58 }
 0xcfb   : > { %5990 = vmatpush1.bf16.msra.mxu0 %v8812_v12 }
 0xcfc   : > { %5991 = vmatprep.subr.bf16.mxu0 %v8817_v13 }
 0xcff   : > { %5992 = vmatpush1.bf16.msra.mxu0 %v8815_v15 }
 0xd00   : > { %5993 = vmatprep.subr.bf16.mxu0 %v8820_v16 }
 0xd03   : > { %5994 = vmatpush1.bf16.msra.mxu0 %v8818_v17 }
 0xd7b   : > { %v5805_v39 = vpop.xlane.xlu0 %5804 }
 0xd7c   : > { %v5813_v51 = vmul.f32 0.0078125, %v5805_v39 }
 0xd7e   : > { %v10316_v61 = vsub.f32 %v10297_v47, %v5813_v51 }
 0xd7f   : > { %v5807_v0 = vpop.xlane.xlu1 %5806  ;;  %v5809_v26 = vpop.xlane.xlu0 %5808 }
 0xd80   : > { %v5814_v32 = vmul.f32 0.0078125, %v5807_v0  ;;  %v5815_v1 = vmul.f32 0.0078125, %v5809_v26  ;;  %v5821_v3 = vmul.f32 %v10316_v61, %v10316_v61  ;;  %v8821_v0 = vld [vmem:[%s10528_s15 + $0x78] sm:$0xff]  }
 0xd81   : > { %v8822_v26 = vld [vmem:[%s10528_s15 + $0x38] sm:$0xff]   ;;  %7775 = vmatprep.subr.bf16.mxu1 %v8821_v0 }
 0xd82   : > { %v5818_v52 = vsub.f32 %v10300_v50, %v5814_v32  ;;  %v10322_v36 = vsub.f32 %v10302_v53, %v5815_v1  ;;  %5825 = vadd.xlane.f32.xlu0 %v5821_v3  ;;  %7776 = vmatpush3.bf16.msra.mxu1 %v8822_v26  ;;  %v8823_v32 = vld [vmem:[%s10528_s15 + $0x70] sm:$0xff]   ;;  %v8825_v3 = vld [vmem:[%s10528_s15 + $0x68] sm:$0xff]  }
 0xd83   : > { %v5811_v42 = vpop.xlane.xlu1 %5810  ;;  %v8824_v1 = vld [vmem:[%s10528_s15 + $0x30] sm:$0xff]   ;;  %7777 = vmatprep.subr.bf16.mxu1 %v8823_v32 }
 0xd84   : > { %v5816_v55 = vmul.f32 0.0078125, %v5811_v42  ;;  %v5822_v5 = vmul.f32 %v5818_v52, %v5818_v52  ;;  %v5823_v60 = vmul.f32 %v10322_v36, %v10322_v36  ;;  %v8828_v42 = vld [vmem:[%s10528_s15 + $0x20] sm:$0xff]  }
 0xd86   : > { %v10327_v62 = vsub.f32 %v10306_v58, %v5816_v55  ;;  %5827 = vadd.xlane.f32.xlu1 %v5822_v5  ;;  %5829 = vadd.xlane.f32.xlu0 %v5823_v60  ;;  %v8829_v55 = vld [vmem:[%s10528_s15 + $0x58] sm:$0xff]   ;;  %v8831_v60 = vld [vmem:[%s10528_s15 + $0x50] sm:$0xff]  }
 0xd87   : > { %7778 = vmatpush3.bf16.msra.mxu1 %v8824_v1  ;;  %v8830_v5 = vld [vmem:[%s10528_s15 + $0x18] sm:$0xff]  }
 0xd88   : > { %v5824_v63 = vmul.f32 %v10327_v62, %v10327_v62  ;;  %7779 = vmatprep.subr.bf16.mxu1 %v8825_v3 }
 0xd8a   : > { %5831 = vadd.xlane.f32.xlu1 %v5824_v63  ;;  %v8833_v63 = vld [vmem:[%s10528_s15 + $0x48] sm:$0xff]  }
 0xe0b   : > { %v5826_v18 = vpop.xlane.xlu0 %5825 }
 0xe0c   : > { %v5833_v54 = vmul.f32 0.0078125, %v5826_v18 }
 0xe0e   : > { %v5837_v57 = vadd.f32 1e-05, %v5833_v54 }
 0xe0f   : > { %v5828_v19 = vpop.xlane.xlu1 %5827  ;;  %v5830_v20 = vpop.xlane.xlu0 %5829 }
 0xe10   : > { %8901 = vrsqrt.f32 %v5837_v57  ;;  %v5834_v21 = vmul.f32 0.0078125, %v5828_v19  ;;  %v5835_v22 = vmul.f32 0.0078125, %v5830_v20 }
 0xe12   : > { %v5838_v14 = vadd.f32 1e-05, %v5834_v21  ;;  %v5839_v23 = vadd.f32 1e-05, %v5835_v22 }
 0xe13   : > { %v5832_v24 = vpop.xlane.xlu1 %5831 }
 0xe14   : > { %8903 = vrsqrt.f32 %v5838_v14  ;;  %v5836_v25 = vmul.f32 0.0078125, %v5832_v24 }
 0xe15   : > { %8905 = vrsqrt.f32 %v5839_v23 }
 0xe16   : > { %v5840_v27 = vadd.f32 1e-05, %v5836_v25 }
 0xe18   : > { %8907 = vrsqrt.f32 %v5840_v27 }
 0xe1d   : > { %v8902_v28 = vpop.eup %8901 }
 0xe1e   : > { %v5845_v29 = vmul.f32 %v8902_v28, %v10316_v61 }
 0xe20   : > { %v5855_v34 = vmul.f32 %v7199_v6, %v5845_v29 }
 0xe21   : > { %v8904_v30 = vpop.eup %8903 }
 0xe22   : > { %v5846_v31 = vmul.f32 %v8904_v30, %v5818_v52  ;;  %v8906_v37 = vpop.eup %8905  ;;  %v5865_v43 = vadd.f32 %v7200_v38, %v5855_v34  ;;  %v8826_v52 = vld [vmem:[%s10528_s15 + $0x28] sm:$0xff]  }
 0xe23   : > { %v5847_v45 = vmul.f32 %v8906_v37, %v10322_v36  ;;  %7780 = vmatpush3.bf16.msra.mxu1 %v8826_v52  ;;  %v8827_v36 = vld [vmem:[%s10528_s15 + $0x60] sm:$0xff]  }
 0xe24   : > { %v5856_v40 = vmul.f32 %v7199_v6, %v5846_v31  ;;  %7781 = vmatprep.subr.bf16.mxu1 %v8827_v36 }
 0xe25   : > { %v8908_v56 = vpop.eup %8907  ;;  %v5857_v35 = vmul.f32 %v7199_v6, %v5847_v45 }
 0xe26   : > { %v5866_v44 = vadd.f32 %v7200_v38, %v5856_v40  ;;  %v5848_v48 = vmul.f32 %v8908_v56, %v10327_v62  ;;  %v8832_v62 = vld [vmem:[%s10528_s15 + $0x10] sm:$0xff]  }
 0xe27   : > { %v5867_v51 = vadd.f32 %v7200_v38, %v5857_v35  ;;  %7782 = vmatpush3.bf16.msra.mxu1 %v8828_v42 }
 0xe28   : > { %v5869_v49 = vpack.c.bf16 %v5866_v44, %v5865_v43  ;;  %v5858_v59 = vmul.f32 %v7199_v6, %v5848_v48  ;;  %7783 = vmatprep.subr.bf16.mxu1 %v8829_v55 }
 0xe2a   : > { %6012 = vmatmul.mubr.bf16.vlgmr.msra.gmra.mxu0 %v5869_v49  ;;  %v5868_v39 = vadd.f32 %v7200_v38, %v5858_v59 }
 0xe2b   : > { %6021 = vmatprep.mubr.bf16.mxu0 %v9027_v11  ;;  %7784 = vmatpush3.bf16.msra.mxu1 %v8830_v5  ;;  %v5896_v11 = vrot.slane %v5887_v2, %v5895_v10 }
 0xe2c   : > { %v5870_v61 = vpack.c.bf16 %v5868_v39, %v5867_v51  ;;  %7785 = vmatprep.subr.bf16.mxu1 %v8831_v60 }
 0xe2f   : > { %7786 = vmatpush3.bf16.msra.mxu1 %v8832_v62 }
 0xe30   : > { %7787 = vmatprep.subr.bf16.mxu1 %v8833_v63 }
 0xe32   : > { %6022 = vmatmul.mubr.bf16.gmra.mxu0 %v5870_v61 }
 0xe33   : > { %7788 = vmatpush3.bf16.msra.mxu1 %v8834_v7 }
 0xe34   : > { %7789 = vmatprep.subr.bf16.mxu1 %v8835_v33 }
 0xe37   : > { %7790 = vmatpush3.bf16.msra.mxu1 %v8836_v46 }
 0xeea   : > { %v6013_v12 = vpop.f32.mrf.mxu0 }
 0xeeb   : > { %v6014_v13 = vadd.f32 %v6013_v12, %v5892_v41 }
 0xeec   : > { %v6015_v15 = vpop.f32.mrf.mxu0 }
 0xeed   : > { %v6016_v16 = vadd.f32 %v6015_v15, %v5896_v11  ;;  %v6040_v17 = vmul.f32 0.70710677, %v6014_v13  ;;  %v6032_v51 = vmul.f32 0.5, %v6014_v13  ;;  %v7217_v13 = vld [vmem:[%s10529_s16] ss:$0 sm:$0xff] }
 0xeee   : > { %v6017_v18 = vpop.f32.mrf.mxu0 }
 0xeef   : > { %v6041_v54 = vmul.f32 0.70710677, %v6016_v16  ;;  %v6018_v57 = vadd.f32 %v6017_v18, %v5892_v41  ;;  %v6033_v59 = vmul.f32 0.5, %v6016_v16 }
 0xef0   : > { %v6019_v19 = vpop.f32.mrf.mxu0 }
 0xef1   : > { %8909 = verf.f32 %v6041_v54  ;;  %v6042_v20 = vmul.f32 0.70710677, %v6018_v57  ;;  %v6020_v21 = vadd.f32 %v6019_v19, %v5896_v11  ;;  %v6034_v49 = vmul.f32 0.5, %v6018_v57 }
 0xef2   : > { %8911 = verf.f32 %v6040_v17  ;;  %v6023_v22 = vpop.f32.mrf.mxu0 }
 0xef3   : > { %8913 = verf.f32 %v6042_v20  ;;  %v6043_v14 = vmul.f32 0.70710677, %v6020_v21  ;;  %v6024_v23 = vadd.f32 %v6023_v22, %v5892_v41  ;;  %v6035_v35 = vmul.f32 0.5, %v6020_v21 }
 0xef4   : > { %v6025_v24 = vpop.f32.mrf.mxu0 }
 0xef5   : > { %8915 = verf.f32 %v6043_v14  ;;  %v6026_v25 = vadd.f32 %v6025_v24, %v5896_v11  ;;  %v6044_v27 = vmul.f32 0.70710677, %v6024_v23  ;;  %v6036_v8 = vmul.f32 0.5, %v6024_v23 }
 0xef6   : > { %v6027_v28 = vpop.f32.mrf.mxu0 }
 0xef7   : > { %v6045_v29 = vmul.f32 0.70710677, %v6026_v25  ;;  %v6028_v6 = vadd.f32 %v6027_v28, %v5892_v41  ;;  %v6037_v7 = vmul.f32 0.5, %v6026_v25 }
 0xef8   : > { %v6029_v30 = vpop.f32.mrf.mxu0 }
 0xef9   : > { %8917 = verf.f32 %v6045_v29  ;;  %v6046_v31 = vmul.f32 0.70710677, %v6028_v6  ;;  %v6030_v34 = vadd.f32 %v6029_v30, %v5896_v11  ;;  %v6038_v63 = vmul.f32 0.5, %v6028_v6 }
 0xefa   : > { %8919 = verf.f32 %v6044_v27 }
 0xefb   : > { %8921 = verf.f32 %v6046_v31  ;;  %v6047_v37 = vmul.f32 0.70710677, %v6030_v34  ;;  %v6039_v33 = vmul.f32 0.5, %v6030_v34 }
 0xefd   : > { %8923 = verf.f32 %v6047_v37 }
 0xefe   : > { %v8910_v38 = vpop.eup %8909 }
 0xeff   : > { %v8912_v40 = vpop.eup %8911  ;;  %v6057_v43 = vadd.f32 1.0, %v8910_v38 }
 0xf00   : > { %v8914_v56 = vpop.eup %8913  ;;  %v6056_v48 = vadd.f32 1.0, %v8912_v40 }
 0xf01   : > { %v6058_v44 = vadd.f32 1.0, %v8914_v56  ;;  %v6065_v0 = vmul.f32 %v6057_v43, %v6033_v59 }
 0xf02   : > { %v8916_v45 = vpop.eup %8915  ;;  %v6064_v1 = vmul.f32 %v6056_v48, %v6032_v51 }
 0xf03   : > { %v6059_v39 = vadd.f32 1.0, %v8916_v45  ;;  %v6066_v61 = vmul.f32 %v6058_v44, %v6034_v49 }
 0xf05   : > { %v6067_v26 = vmul.f32 %v6059_v39, %v6035_v35  ;;  %v6072_v42 = vpack.c.bf16 %v6066_v61, %v6064_v1 }
 0xf06   : > { %v8918_v32 = vpop.eup %8917 }
 0xf07   : > { %v8920_v3 = vpop.eup %8919  ;;  %v6073_v52 = vpack.c.bf16 %v6067_v26, %v6065_v0  ;;  %v6061_v55 = vadd.f32 1.0, %v8918_v32 }
 0xf08   : > { %v8922_v36 = vpop.eup %8921  ;;  %v6060_v62 = vadd.f32 1.0, %v8920_v3 }
 0xf09   : > { %v6062_v5 = vadd.f32 1.0, %v8922_v36  ;;  %6243 = vmatprep.mubr.bf16.mxu1 %v6073_v52  ;;  %v6069_v9 = vmul.f32 %v6061_v55, %v6037_v7 }
 0xf0a   : > { %v8924_v60 = vpop.eup %8923  ;;  %6244 = vmatmul.mubr.bf16.vlgmr.msra.gmra.mxu1 %v6072_v42  ;;  %v6068_v10 = vmul.f32 %v6060_v62, %v6036_v8  ;;  %v7235_v62 = vld [vmem:[%s10577_s25] ss:$0 sm:$0xff]  ;;  %s10580_s25 = smov %s10579_s21 }
 0xf0b   : > { %v6063_v46 = vadd.f32 1.0, %v8924_v60  ;;  %v6070_v4 = vmul.f32 %v6062_v5, %v6038_v63  ;;  %v7234_v5 = vld [vmem:[%s10530_s17] ss:$0 sm:$0xff] }
 0xf0d   : > { %v6071_v2 = vmul.f32 %v6063_v46, %v6039_v33  ;;  %v6074_v11 = vpack.c.bf16 %v6070_v4, %v6068_v10 }
 0xf0f   : > { %v6075_v41 = vpack.c.bf16 %v6071_v2, %v6069_v9 }
 0xf11   : > { %6251 = vmatprep.mubr.bf16.mxu1 %v6075_v41 }
 0xf12   : > { %6252 = vmatmul.mubr.bf16.gmra.mxu1 %v6074_v11 }
 0xfca   : > { %v7791_v12 = vpop.f32.mrf.mxu1 }
 0xfcc   : > { %v7792_v15 = vpop.f32.mrf.mxu1 }
 0xfcd   : > { %v7793_v16 = vadd.f32 %v7792_v15, %v7791_v12 }
 0xfce   : > { %v7794_v17 = vpop.f32.mrf.mxu1 }
 0xfcf   : > { %v6246_v18 = vadd.f32 %v7793_v16, %v7217_v13 }
 0xfd0   : > { %v7795_v54 = vpop.f32.mrf.mxu1 }
 0xfd1   : > { %v7796_v57 = vadd.f32 %v7795_v54, %v7794_v17  ;;  %v6260_v19 = vadd.f32 %v6246_v18, %v10297_v47 }
 0xfd2   : > { %v7797_v20 = vpop.f32.mrf.mxu1 }
 0xfd3   : > { %v6249_v21 = vadd.f32 %v7796_v57, %v7217_v13  ;;  %6266 = vadd.xlane.f32.xlu0 %v6260_v19 }
 0xfd4   : > { %v7798_v22 = vpop.f32.mrf.mxu1 }
 0xfd5   : > { %v7799_v14 = vadd.f32 %v7798_v22, %v7797_v20  ;;  %v6261_v23 = vadd.f32 %v6249_v21, %v10300_v50 }
 0xfd6   : > { %v7800_v24 = vpop.f32.mrf.mxu1 }
 0xfd7   : > { %v6254_v25 = vadd.f32 %v7799_v14, %v7217_v13  ;;  %6268 = vadd.xlane.f32.xlu1 %v6261_v23 }
 0xfd8   : > { %v7801_v27 = vpop.f32.mrf.mxu1 }
 0xfd9   : > { %v7802_v28 = vadd.f32 %v7801_v27, %v7800_v24  ;;  %v6262_v29 = vadd.f32 %v6254_v25, %v10302_v53 }
 0xfdb   : > { %v6257_v6 = vadd.f32 %v7802_v28, %v7217_v13  ;;  %6270 = vadd.xlane.f32.xlu0 %v6262_v29 }
 0xfdd   : > { %v6263_v30 = vadd.f32 %v6257_v6, %v10306_v58 }
 0xfdf   : > { %6272 = vadd.xlane.f32.xlu1 %v6263_v30 }
0x105c   : > { %v6267_v47 = vpop.xlane.xlu0 %6266 }
0x105d   : > { %v6274_v31 = vmul.f32 0.0078125, %v6267_v47 }
0x105f   : > { %v6278_v34 = vsub.f32 %v6260_v19, %v6274_v31 }
0x1060   : > { %v6269_v37 = vpop.xlane.xlu1 %6268 }
0x1061   : > { %v6275_v38 = vmul.f32 0.0078125, %v6269_v37  ;;  %v6282_v40 = vmul.f32 %v6278_v34, %v6278_v34 }
0x1063   : > { %v6279_v56 = vsub.f32 %v6261_v23, %v6275_v38  ;;  %6286 = vadd.xlane.f32.xlu0 %v6282_v40 }
0x1064   : > { %v6271_v50 = vpop.xlane.xlu0 %6270 }
0x1065   : > { %v6276_v43 = vmul.f32 0.0078125, %v6271_v50  ;;  %v6283_v44 = vmul.f32 %v6279_v56, %v6279_v56 }
0x1067   : > { %v6280_v45 = vsub.f32 %v6262_v29, %v6276_v43  ;;  %6288 = vadd.xlane.f32.xlu1 %v6283_v44 }
0x1068   : > { %v6273_v48 = vpop.xlane.xlu1 %6272 }
0x1069   : > { %v6277_v53 = vmul.f32 0.0078125, %v6273_v48  ;;  %v6284_v49 = vmul.f32 %v6280_v45, %v6280_v45 }
0x106b   : > { %v6281_v59 = vsub.f32 %v6263_v30, %v6277_v53  ;;  %6290 = vadd.xlane.f32.xlu0 %v6284_v49 }
0x106d   : > { %v6285_v58 = vmul.f32 %v6281_v59, %v6281_v59 }
0x106f   : > { %6292 = vadd.xlane.f32.xlu1 %v6285_v58 }
0x10ec   : > { %v6287_v35 = vpop.xlane.xlu0 %6286 }
0x10ed   : > { %v6294_v39 = vmul.f32 0.0078125, %v6287_v35 }
0x10ef   : > { %v6298_v51 = vadd.f32 1e-05, %v6294_v39 }
0x10f0   : > { %v6289_v61 = vpop.xlane.xlu1 %6288 }
0x10f1   : > { %8925 = vrsqrt.f32 %v6298_v51  ;;  %v6295_v0 = vmul.f32 0.0078125, %v6289_v61 }
0x10f3   : > { %v6299_v26 = vadd.f32 1e-05, %v6295_v0 }
0x10f4   : > { %v6291_v32 = vpop.xlane.xlu0 %6290 }
0x10f5   : > { %8927 = vrsqrt.f32 %v6299_v26  ;;  %v6296_v1 = vmul.f32 0.0078125, %v6291_v32 }
0x10f7   : > { %v6300_v3 = vadd.f32 1e-05, %v6296_v1 }
0x10f8   : > { %v6293_v52 = vpop.xlane.xlu1 %6292 }
0x10f9   : > { %8929 = vrsqrt.f32 %v6300_v3  ;;  %v6297_v36 = vmul.f32 0.0078125, %v6293_v52 }
0x10fb   : > { %v6301_v42 = vadd.f32 1e-05, %v6297_v36 }
0x10fd   : > { %8931 = vrsqrt.f32 %v6301_v42 }
0x10fe   : > { %v8926_v55 = vpop.eup %8925 }
0x10ff   : > { %v6306_v60 = vmul.f32 %v8926_v55, %v6278_v34 }
0x1101   : > { %v6316_v63 = vmul.f32 %v7234_v5, %v6306_v60 }
0x1102   : > { %v8928_v7 = vpop.eup %8927 }
0x1103   : > { %v6326_v33 = vadd.f32 %v7235_v62, %v6316_v63  ;;  %v6307_v46 = vmul.f32 %v8928_v7, %v6279_v56 }
0x1105   : > { %6330 = vst [vmem:[%s9212_s27] sm:$0xff] %v6326_v33  ;;  %v6317_v8 = vmul.f32 %v7234_v5, %v6307_v46 }
0x1106   : > { %v8930_v4 = vpop.eup %8929 }
0x1107   : > { %v6327_v9 = vadd.f32 %v7235_v62, %v6317_v8  ;;  %v6308_v2 = vmul.f32 %v8930_v4, %v6280_v45 }
0x1109   : > { %6331 = vst [vmem:[%s9212_s27 + $0x8] sm:$0xff] %v6327_v9  ;;  %v6318_v10 = vmul.f32 %v7234_v5, %v6308_v2 }
0x110a   : > { %v8932_v41 = vpop.eup %8931 }
0x110b   : > { %v6328_v11 = vadd.f32 %v7235_v62, %v6318_v10  ;;  %v6309_v12 = vmul.f32 %v8932_v41, %v6281_v59 }
0x110d   : > { %6332 = vst [vmem:[%s9212_s27 + $0x10] sm:$0xff] %v6328_v11  ;;  %v6319_v13 = vmul.f32 %v7234_v5, %v6309_v12 }
0x110f   : > { %v6329_v15 = vadd.f32 %v7235_v62, %v6319_v13 }
0x1111   : > { %6333 = vst [vmem:[%s9212_s27 + $0x18] sm:$0xff] %v6329_v15 }
0x1112   : > { %8946 = shalt.err (!%p8943_p7)
}
0x1113   : > { %s8947_s27 = scalar_lea.hbm %s10455_s1, 512  ;;  %s8951_s21 = scalar_lea.hbm %s10580_s25, 2048 }
0x1114   : > { %p8948_p9 = scmp.ne.s32.totalorder %s10455_s1, %s8947_s27  ;;  %p8952_p12 = scmp.lt.s32.totalorder %s10455_s1, %s10580_s25 }
0x1115   : > { %p8953_p13 = scmp.lt.s32.totalorder %s8951_s21, %s8947_s27 }
0x1116   : > { %p8949_p10 = pnand %p8948_p9, %p9182_p3 }
0x1117   : > { %p8954_p0 = por %p8953_p13, %p8952_p12 }
0x1118   : > { %p8950_p11 = pneg %p8949_p10 }
0x111a   : > { %p8955_p1 = pnand %p8954_p0, %p8950_p11 }
0x111c   : > { %8958 = shalt.err (!%p8955_p1)
}
0x111d   : > { %s9029_s4 = smov 128   ;;  %s9030_s2 = smov 8  }
0x111e   : > { %8459 = dma.vmem_to_hbm [thread:$0]  (%p9182_p3), %s10457_s0, 512, %s10455_s1, %s10462_s3, %s9029_s4, %s9029_s4, %s9030_s2  }
0x111f PF: > { %s10582_s18 = sld [smem:[#allocation12_spill]] }
0x1120   : > { %s10583_s22 = sld [smem:[#allocation8_spill]] }
0x1125   : > { %p8465_p2 = scmp.ge.s32.totalorder %s10582_s18, 2 }
0x1126   : > { %s6365_s5 = sand.u32 1, %s10583_s22  }
0x1127   : > { %p8462_p4 = pnand %p8465_p2, %p9191_p8  ;;  %s6366_s27 = scalar_lea.sflag [#allocation6], %s6365_s5 }
0x1129   : > { %p8463_p5 = pneg %p8462_p4 }
0x112b   : > { %8992 = dma.done.wait (%p8463_p5), %s6366_s27, 512  }
0x112c   : > { %8994 = vsyncadd (%p8463_p5), %s6366_s27, 4294966784  ;;  %s32_s23 = sadd.s32 1, %s10582_s18   ;;  %s10585_s21 = sld [smem:[#allocation9_spill]] }
0x112d   : > { %p29_p6 = scmp.ge.s32.totalorder %s32_s23, 6   ;;  %s10586_s20 = sld [smem:[#allocation17_spill]] }
0x112e   : > { %s10587_s24 = sld [smem:[#allocation10_spill]]  ;;  %s10591_s0 = smov %s9001_s30 }
0x112f   : > { %s10588_s1 = sld [smem:[#allocation11_spill]] }
0x1130   : > { %s10589_s22 = sld [smem:[#allocation13_spill]]  ;;  %31 = sbr.rel (!%p29_p6) target bundleno = 14 (0xe), region = 183 }
0x1131   : > { %s10590_s2 = sld [smem:[#allocation15_spill]] }
0x1132   : > { %s10592_s30 = smov %s10585_s21 }
0x1134   : > { %s10593_s21 = smov %s10587_s24 }
0x1135   :  { %6371 = vsyncpa [#allocation6], 1 }
0x1136   :  { %6373 = vsyncpa [#allocation6 + $0x1], 1 }

</bundles_post_ra>
